<compile_context>
chip_gen: v6e
topology: v6e:2x2x1
jax: 0.10.0
libtpu: 0.0.40
codegen_flags: <defaults>
</compile_context>

<pallas_src>
import functools

import jax
import jax.numpy as jnp
from jax.experimental import pallas as pl
from jax.experimental.pallas import tpu as pltpu


def window_attention_kernel(x_ref, wqkv_ref, bqkv_ref, wp_ref, bp_ref, o_ref,
                            *, num_heads, head_dim, tb, n_tokens):
    """One grid step: fused attention for a block of `tb` windows.

    x_ref  : (tb*N, C)  bf16 activations for tb windows
    wqkv   : (C, 3C)    bf16 fused qkv weight
    bqkv   : (1, 3C)    f32  fused qkv bias
    wp     : (C, C)     bf16 output-projection weight
    bp     : (1, C)     f32  output-projection bias
    o_ref  : (tb*N, C)  bf16 output slab
    """
    H, d = num_heads, head_dim
    C = H * d
    N = n_tokens
    R = tb * N
    scale = d ** (-0.5)

    # ---- fused QKV projection on the whole (R, C) slab: one MXU push, f32 acc.
    qkv = jnp.dot(x_ref[...], wqkv_ref[...],
                  preferred_element_type=jnp.float32) + bqkv_ref[...]   # (R, 3C) f32

    q = qkv[:, 0 * C:1 * C] * scale     # scale applied once, in f32
    k = qkv[:, 1 * C:2 * C]
    v = qkv[:, 2 * C:3 * C]

    def split_heads(a):                 # (R, H*d) -> (H*tb, N, d); batch = h*tb + b
        heads = [a[:, h * d:(h + 1) * d] for h in range(H)]
        return jnp.concatenate(heads, axis=0).reshape(H * tb, N, d)

    qh = split_heads(q).astype(jnp.bfloat16)
    kh = split_heads(k).astype(jnp.bfloat16)
    vh = split_heads(v).astype(jnp.bfloat16)

    # ---- all heads & windows in ONE batched QK^T / softmax / PV pass (f32 math).
    s = jnp.einsum('bnd,bmd->bnm', qh, kh,
                   preferred_element_type=jnp.float32)                  # (H*tb, N, N)
    m = jnp.max(s, axis=-1, keepdims=True)
    e = jnp.exp(s - m)
    denom = jnp.sum(e, axis=-1, keepdims=True)
    p = e * pl.reciprocal(denom, approx=True)        # divide rides the otherwise-idle EUP
    o = jnp.einsum('bnm,bmd->bnd', p.astype(jnp.bfloat16), vh,
                   preferred_element_type=jnp.float32)                  # (H*tb, N, d)

    # merge heads back into lanes (head-major columns, matching the torch layout)
    o_heads = o.reshape(H, R, d)
    out2d = jnp.concatenate([o_heads[h] for h in range(H)], axis=-1)    # (R, C) f32

    # ---- output projection on the full slab (single MXU push), f32 acc.
    y = jnp.dot(out2d.astype(jnp.bfloat16), wp_ref[...],
                preferred_element_type=jnp.float32) + bp_ref[...]
    o_ref[...] = y.astype(o_ref.dtype)


def window_attention(x, params, *, num_heads, target_rows=256):
    """x: (B, N, C) float; params: fused projection weights/biases."""
    B, N, C = x.shape
    head_dim = C // num_heads

    # MXU operands in bf16 (halves weight DMA/VMEM footprint); biases stay f32
    # and are added to the f32 accumulators.
    wqkv = params["wqkv"].astype(jnp.bfloat16)   # (C, 3C)
    bqkv = params["bqkv"].astype(jnp.float32)    # (1, 3C)
    wp = params["wp"].astype(jnp.bfloat16)       # (C, C)
    bp = params["bp"].astype(jnp.float32)        # (1, C)

    # Block enough windows per grid step to reach >= target_rows (256) rows:
    # fills the v6e/v7x MXU height and gives a single grid step at this size
    # (no second-step overhead on v5e's single TensorCore).  On v7x with
    # larger B, keep the grid a multiple of 2 and re-derive against 64 MiB VMEM.
    tb = max(1, min(B, max(1, target_rows // N)))
    num_blocks = pl.cdiv(B, tb)
    b_pad = num_blocks * tb
    rows = tb * N

    # x / out cross the boundary as bf16 flat (B*N, C) slabs — the only
    # grid-varying operands, so bf16 halves their HBM<->VMEM traffic; the
    # in-kernel math already consumed bf16 MXU operands, so accuracy is unchanged.
    x_flat = x.reshape(B * N, C).astype(jnp.bfloat16)
    if b_pad != B:
        # zero-pad to a whole number of window blocks; padded windows produce a
        # harmless uniform softmax and are sliced off below.
        x_flat = jnp.pad(x_flat, ((0, (b_pad - B) * N), (0, 0)))

    kernel = functools.partial(window_attention_kernel,
                               num_heads=num_heads, head_dim=head_dim,
                               tb=tb, n_tokens=N)

    const2d = lambda shape: pl.BlockSpec(shape, lambda b: (0, 0))  # grid-invariant

    out_flat = pl.pallas_call(
        kernel,
        out_shape=jax.ShapeDtypeStruct((b_pad * N, C), jnp.bfloat16),
        grid_spec=pltpu.PrefetchScalarGridSpec(
            num_scalar_prefetch=0,
            grid=(num_blocks,),
            in_specs=[
                pl.BlockSpec((rows, C), lambda b: (b, 0)),   # x slab (grid-varying)
                const2d((C, 3 * C)),                         # fused wqkv
                const2d((1, 3 * C)),                         # fused bqkv
                const2d((C, C)),                             # wp
                const2d((1, C)),                             # bp
            ],
            out_specs=pl.BlockSpec((rows, C), lambda b: (b, 0)),
        ),
        compiler_params=pltpu.CompilerParams(
            dimension_semantics=("parallel",)),   # v7x: 2 TCs split window blocks
    )(x_flat, wqkv, bqkv, wp, bp)

    return out_flat[:B * N].reshape(B, N, C).astype(x.dtype)


def init_params(key, dim):
    """Deterministic synthetic parameters (weights stored as (in, out))."""
    ks = jax.random.split(key, 4)
    std = dim ** (-0.5)
    return {
        "wqkv": jax.random.normal(ks[0], (dim, 3 * dim), jnp.float32) * std,
        "bqkv": jax.random.normal(ks[1], (1, 3 * dim), jnp.float32) * 0.02,
        "wp": jax.random.normal(ks[2], (dim, dim), jnp.float32) * std,
        "bp": jax.random.normal(ks[3], (1, dim), jnp.float32) * 0.02,
    }


def window_attention_ref(x, params, *, num_heads):
    """Pure-JAX f32 reference mirroring the PyTorch forward."""
    B, N, C = x.shape
    d = C // num_heads
    scale = d ** (-0.5)
    qkv = x @ params["wqkv"] + params["bqkv"]                       # (B, N, 3C)
    qkv = qkv.reshape(B, N, 3, num_heads, d).transpose(2, 0, 3, 1, 4)
    q, k, v = qkv[0], qkv[1], qkv[2]
    attn = jnp.einsum("bhnd,bhmd->bhnm", q, k) * scale
    attn = jax.nn.softmax(attn, axis=-1)
    out = jnp.einsum("bhnm,bhmd->bhnd", attn, v)
    out = out.transpose(0, 2, 1, 3).reshape(B, N, C)
    return out @ params["wp"] + params["bp"]


if __name__ == "__main__":
    # Small shapes consistent with the module: window_size=4 -> N=16 tokens,
    # dim=32, num_heads=4 (head_dim=8).  B=16 windows so one grid step sees a
    # (256, 32) slab (tb = 16 from the 256-row target) and grid=(1,).
    B, window_size, dim, num_heads = 16, 4, 32, 4
    N = window_size * window_size

    key = jax.random.PRNGKey(0)
    kx, kp = jax.random.split(key)
    x = jax.random.normal(kx, (B, N, dim), jnp.float32)
    params = init_params(kp, dim)

    out = window_attention(x, params, num_heads=num_heads)
    out = jax.block_until_ready(out)

    ref = window_attention_ref(x, params, num_heads=num_heads)
    assert out.shape == (B, N, dim)
    max_err = float(jnp.max(jnp.abs(out - ref)))
    # bf16 MXU inputs / bf16 boundary I/O with f32 accumulation -> loosened
    # tolerance vs the f32 reference.
    assert jnp.allclose(out, ref, atol=5e-2, rtol=5e-2), (
        f"mismatch vs reference, max abs err={max_err}")

    print("KERNEL_OK")
</pallas_src>

<mosaic_0001>
module attributes {stable_mosaic.version = 11 : i64} {
  func.func @window_attention_kernel(%arg0: i32, %arg1: memref<256x32xbf16, #tpu.memory_space<vmem>>, %arg2: memref<32x96xbf16, #tpu.memory_space<vmem>>, %arg3: memref<1x96xf32, #tpu.memory_space<vmem>>, %arg4: memref<32x32xbf16, #tpu.memory_space<vmem>>, %arg5: memref<1x32xf32, #tpu.memory_space<vmem>>, %arg6: memref<256x32xbf16, #tpu.memory_space<vmem>>) attributes {dimension_semantics = [#tpu.dimension_semantics<parallel>], iteration_bounds = array<i64: 1>, scalar_prefetch = 0 : i64, scratch_operands = 0 : i64, tpu.core_type = #tpu.core_type<tc>, window_params = [{transform_indices = @transform_0, window_bounds = array<i64: 256, 32>}, {pipeline_mode = #tpu.pipeline_mode<synchronous>, transform_indices = @transform_1, window_bounds = array<i64: 32, 96>}, {pipeline_mode = #tpu.pipeline_mode<synchronous>, transform_indices = @transform_2, window_bounds = array<i64: 1, 96>}, {pipeline_mode = #tpu.pipeline_mode<synchronous>, transform_indices = @transform_3, window_bounds = array<i64: 32, 32>}, {pipeline_mode = #tpu.pipeline_mode<synchronous>, transform_indices = @transform_4, window_bounds = array<i64: 1, 32>}, {transform_indices = @transform_5, window_bounds = array<i64: 256, 32>}]} {
    %c0 = arith.constant 0 : index
    %c0_0 = arith.constant 0 : index
    %0 = vector.load %arg1[%c0, %c0_0] : memref<256x32xbf16, #tpu.memory_space<vmem>>, vector<256x32xbf16>
    %c0_1 = arith.constant 0 : index
    %c0_2 = arith.constant 0 : index
    %1 = vector.load %arg2[%c0_1, %c0_2] : memref<32x96xbf16, #tpu.memory_space<vmem>>, vector<32x96xbf16>
    %cst = arith.constant dense<0.000000e+00> : vector<256x96xf32>
    %2 = tpu.matmul %0, %1, %cst {dimension_numbers = #tpu.dot_dimension_numbers<[1], [0], [0], [1], [0, 0, 1, 1], [], []>} : vector<256x32xbf16>, vector<32x96xbf16>, vector<256x96xf32> -> vector<256x96xf32>
    %c0_3 = arith.constant 0 : index
    %c0_4 = arith.constant 0 : index
    %3 = vector.load %arg3[%c0_3, %c0_4] : memref<1x96xf32, #tpu.memory_space<vmem>>, vector<1x96xf32>
    %4 = vector.broadcast %3 : vector<1x96xf32> to vector<256x96xf32>
    %5 = arith.addf %2, %4 : vector<256x96xf32>
    %6 = vector.extract_strided_slice %5 {offsets = [0, 0], sizes = [256, 32], strides = [1, 1]} : vector<256x96xf32> to vector<256x32xf32>
    %cst_5 = arith.constant 0.353553385 : f32
    %7 = vector.broadcast %cst_5 : f32 to vector<256x32xf32>
    %8 = arith.mulf %6, %7 : vector<256x32xf32>
    %9 = vector.extract_strided_slice %5 {offsets = [0, 32], sizes = [256, 32], strides = [1, 1]} : vector<256x96xf32> to vector<256x32xf32>
    %10 = vector.extract_strided_slice %5 {offsets = [0, 64], sizes = [256, 32], strides = [1, 1]} : vector<256x96xf32> to vector<256x32xf32>
    %11 = vector.extract_strided_slice %8 {offsets = [0, 0], sizes = [256, 8], strides = [1, 1]} : vector<256x32xf32> to vector<256x8xf32>
    %12 = vector.extract_strided_slice %8 {offsets = [0, 8], sizes = [256, 8], strides = [1, 1]} : vector<256x32xf32> to vector<256x8xf32>
    %13 = vector.extract_strided_slice %8 {offsets = [0, 16], sizes = [256, 8], strides = [1, 1]} : vector<256x32xf32> to vector<256x8xf32>
    %14 = vector.extract_strided_slice %8 {offsets = [0, 24], sizes = [256, 8], strides = [1, 1]} : vector<256x32xf32> to vector<256x8xf32>
    %15 = tpu.concatenate %11, %12, %13, %14 in 0 : vector<256x8xf32>, vector<256x8xf32>, vector<256x8xf32>, vector<256x8xf32> -> vector<1024x8xf32>
    %16 = vector.shape_cast %15 : vector<1024x8xf32> to vector<64x16x8xf32>
    %17 = arith.truncf %16 : vector<64x16x8xf32> to vector<64x16x8xbf16>
    %18 = vector.extract_strided_slice %9 {offsets = [0, 0], sizes = [256, 8], strides = [1, 1]} : vector<256x32xf32> to vector<256x8xf32>
    %19 = vector.extract_strided_slice %9 {offsets = [0, 8], sizes = [256, 8], strides = [1, 1]} : vector<256x32xf32> to vector<256x8xf32>
    %20 = vector.extract_strided_slice %9 {offsets = [0, 16], sizes = [256, 8], strides = [1, 1]} : vector<256x32xf32> to vector<256x8xf32>
    %21 = vector.extract_strided_slice %9 {offsets = [0, 24], sizes = [256, 8], strides = [1, 1]} : vector<256x32xf32> to vector<256x8xf32>
    %22 = tpu.concatenate %18, %19, %20, %21 in 0 : vector<256x8xf32>, vector<256x8xf32>, vector<256x8xf32>, vector<256x8xf32> -> vector<1024x8xf32>
    %23 = vector.shape_cast %22 : vector<1024x8xf32> to vector<64x16x8xf32>
    %24 = arith.truncf %23 : vector<64x16x8xf32> to vector<64x16x8xbf16>
    %25 = vector.extract_strided_slice %10 {offsets = [0, 0], sizes = [256, 8], strides = [1, 1]} : vector<256x32xf32> to vector<256x8xf32>
    %26 = vector.extract_strided_slice %10 {offsets = [0, 8], sizes = [256, 8], strides = [1, 1]} : vector<256x32xf32> to vector<256x8xf32>
    %27 = vector.extract_strided_slice %10 {offsets = [0, 16], sizes = [256, 8], strides = [1, 1]} : vector<256x32xf32> to vector<256x8xf32>
    %28 = vector.extract_strided_slice %10 {offsets = [0, 24], sizes = [256, 8], strides = [1, 1]} : vector<256x32xf32> to vector<256x8xf32>
    %29 = tpu.concatenate %25, %26, %27, %28 in 0 : vector<256x8xf32>, vector<256x8xf32>, vector<256x8xf32>, vector<256x8xf32> -> vector<1024x8xf32>
    %30 = vector.shape_cast %29 : vector<1024x8xf32> to vector<64x16x8xf32>
    %31 = arith.truncf %30 : vector<64x16x8xf32> to vector<64x16x8xbf16>
    "tpu.trace_start"() <{level = 10 : i32, message = "bnd,bmd->bnm"}> : () -> ()
    %cst_6 = arith.constant dense<0.000000e+00> : vector<64x16x16xf32>
    %32 = tpu.matmul %17, %24, %cst_6 {dimension_numbers = #tpu.dot_dimension_numbers<[2], [2], [1], [1], [0, 0, 0, 1, 1, 1], [0], [0]>} : vector<64x16x8xbf16>, vector<64x16x8xbf16>, vector<64x16x16xf32> -> vector<64x16x16xf32>
    "tpu.trace_stop"() : () -> ()
    %cst_7 = arith.constant dense<0xFF800000> : vector<64x16xf32>
    %33 = vector.multi_reduction <maximumf>, %32, %cst_7 [2] : vector<64x16x16xf32> to vector<64x16xf32>
    %34 = vector.shape_cast %33 : vector<64x16xf32> to vector<64x16x1xf32>
    %35 = vector.broadcast %34 : vector<64x16x1xf32> to vector<64x16x16xf32>
    %36 = arith.subf %32, %35 : vector<64x16x16xf32>
    %37 = math.exp %36 : vector<64x16x16xf32>
    %cst_8 = arith.constant dense<0.000000e+00> : vector<64x16xf32>
    %38 = vector.multi_reduction <add>, %37, %cst_8 [2] : vector<64x16x16xf32> to vector<64x16xf32>
    %39 = vector.shape_cast %38 : vector<64x16xf32> to vector<64x16x1xf32>
    %40 = tpu.reciprocal %39 {approx = true} : vector<64x16x1xf32> -> vector<64x16x1xf32>
    %41 = vector.broadcast %40 : vector<64x16x1xf32> to vector<64x16x16xf32>
    %42 = arith.mulf %37, %41 : vector<64x16x16xf32>
    %43 = arith.truncf %42 : vector<64x16x16xf32> to vector<64x16x16xbf16>
    "tpu.trace_start"() <{level = 10 : i32, message = "bnm,bmd->bnd"}> : () -> ()
    %cst_9 = arith.constant dense<0.000000e+00> : vector<64x16x8xf32>
    %44 = tpu.matmul %43, %31, %cst_9 {dimension_numbers = #tpu.dot_dimension_numbers<[2], [1], [1], [2], [0, 0, 0, 1, 1, 2], [0], [0]>} : vector<64x16x16xbf16>, vector<64x16x8xbf16>, vector<64x16x8xf32> -> vector<64x16x8xf32>
    "tpu.trace_stop"() : () -> ()
    %45 = vector.shape_cast %44 : vector<64x16x8xf32> to vector<4x256x8xf32>
    %46 = vector.extract_strided_slice %45 {offsets = [0, 0, 0], sizes = [1, 256, 8], strides = [1, 1, 1]} : vector<4x256x8xf32> to vector<1x256x8xf32>
    %47 = vector.shape_cast %46 : vector<1x256x8xf32> to vector<256x8xf32>
    %48 = vector.extract_strided_slice %45 {offsets = [1, 0, 0], sizes = [1, 256, 8], strides = [1, 1, 1]} : vector<4x256x8xf32> to vector<1x256x8xf32>
    %49 = vector.shape_cast %48 : vector<1x256x8xf32> to vector<256x8xf32>
    %50 = vector.extract_strided_slice %45 {offsets = [2, 0, 0], sizes = [1, 256, 8], strides = [1, 1, 1]} : vector<4x256x8xf32> to vector<1x256x8xf32>
    %51 = vector.shape_cast %50 : vector<1x256x8xf32> to vector<256x8xf32>
    %52 = vector.extract_strided_slice %45 {offsets = [3, 0, 0], sizes = [1, 256, 8], strides = [1, 1, 1]} : vector<4x256x8xf32> to vector<1x256x8xf32>
    %53 = vector.shape_cast %52 : vector<1x256x8xf32> to vector<256x8xf32>
    %54 = tpu.concatenate %47, %49, %51, %53 in 1 : vector<256x8xf32>, vector<256x8xf32>, vector<256x8xf32>, vector<256x8xf32> -> vector<256x32xf32>
    %55 = arith.truncf %54 : vector<256x32xf32> to vector<256x32xbf16>
    %c0_10 = arith.constant 0 : index
    %c0_11 = arith.constant 0 : index
    %56 = vector.load %arg4[%c0_10, %c0_11] : memref<32x32xbf16, #tpu.memory_space<vmem>>, vector<32x32xbf16>
    %cst_12 = arith.constant dense<0.000000e+00> : vector<256x32xf32>
    %57 = tpu.matmul %55, %56, %cst_12 {dimension_numbers = #tpu.dot_dimension_numbers<[1], [0], [0], [1], [0, 0, 1, 1], [], []>} : vector<256x32xbf16>, vector<32x32xbf16>, vector<256x32xf32> -> vector<256x32xf32>
    %c0_13 = arith.constant 0 : index
    %c0_14 = arith.constant 0 : index
    %58 = vector.load %arg5[%c0_13, %c0_14] : memref<1x32xf32, #tpu.memory_space<vmem>>, vector<1x32xf32>
    %59 = vector.broadcast %58 : vector<1x32xf32> to vector<256x32xf32>
    %60 = arith.addf %57, %59 : vector<256x32xf32>
    %61 = arith.truncf %60 : vector<256x32xf32> to vector<256x32xbf16>
    %c0_15 = arith.constant 0 : index
    %c0_16 = arith.constant 0 : index
    %62 = vector.load %arg6[%c0_15, %c0_16] : memref<256x32xbf16, #tpu.memory_space<vmem>>, vector<256x32xbf16>
    tpu.vector_store %arg6[%c0_15, %c0_16], %61 {strides = array<i32>} : memref<256x32xbf16, #tpu.memory_space<vmem>>, vector<256x32xbf16>,
    return
  }
  func.func @transform_0(%arg0: i32) -> (i32, i32) {
    %c0_i32 = arith.constant 0 : i32
    %c0_i32_0 = arith.constant 0 : i32
    return %arg0, %c0_i32 : i32, i32
  }
  func.func @transform_1(%arg0: i32) -> (i32, i32) {
    %c0_i32 = arith.constant 0 : i32
    %c0_i32_0 = arith.constant 0 : i32
    %c0_i32_1 = arith.constant 0 : i32
    return %c0_i32, %c0_i32_0 : i32, i32
  }
  func.func @transform_2(%arg0: i32) -> (i32, i32) {
    %c0_i32 = arith.constant 0 : i32
    %c0_i32_0 = arith.constant 0 : i32
    %c0_i32_1 = arith.constant 0 : i32
    return %c0_i32, %c0_i32_0 : i32, i32
  }
  func.func @transform_3(%arg0: i32) -> (i32, i32) {
    %c0_i32 = arith.constant 0 : i32
    %c0_i32_0 = arith.constant 0 : i32
    %c0_i32_1 = arith.constant 0 : i32
    return %c0_i32, %c0_i32_0 : i32, i32
  }
  func.func @transform_4(%arg0: i32) -> (i32, i32) {
    %c0_i32 = arith.constant 0 : i32
    %c0_i32_0 = arith.constant 0 : i32
    %c0_i32_1 = arith.constant 0 : i32
    return %c0_i32, %c0_i32_0 : i32, i32
  }
  func.func @transform_5(%arg0: i32) -> (i32, i32) {
    %c0_i32 = arith.constant 0 : i32
    %c0_i32_0 = arith.constant 0 : i32
    return %arg0, %c0_i32 : i32, i32
  }
}

</mosaic_0001>

<bundles_post_ra>
// kernel: tpu_custom_call.1
= control target key start
LH: loop header
LB: loop body
LE: loop exit
PB: predicated region body
PF: predicated region fallthrough
CT: control target
= control target key end

     0   :  { %vm156_vm0 = vcmask 261120   ;;  %s12388_s29 = smov 104   ;;  %s12390_s30 = smov 96   ;;  %vm12391_vm1 = vmmov 0   ;;  %vm1169_vm2 = vcmask 64512   ;;  %vm4367_vm3 = vcmask 130048   ;;  %s17041_s1 = inlined_call_operand.vmem [shape: bf16[32,96], index: 1, kind: input, shape index: {}]   ;;  %s17042_s0 = inlined_call_operand.vmem [shape: bf16[256,32], index: 0, kind: input, shape index: {}]   ;;  %s17043_s2 = inlined_call_operand.vmem [shape: f32[1,96], index: 2, kind: input, shape index: {}]   ;;  %s17044_s3 = inlined_call_operand.vmem [shape: bf16[32,32], index: 3, kind: input, shape index: {}]   ;;  %s17045_s4 = inlined_call_operand.vmem [shape: f32[1,32], index: 4, kind: input, shape index: {}]   ;;  %s17046_s5 = inlined_call_operand.vmem [shape: bf16[256,32], index: 5, kind: output, shape index: {}]  }
   0x1   :  { %v11854_v0 = vld [vmem:[%s17041_s1 + $0x8] sm:$0xff]   ;;  %v11855_v1 = vld [vmem:[%s17041_s1] sm:$0xff]   ;;  %v11860_v6 = vld [vmem:[%s17042_s0 + $0x10] sm:$0xff]   ;;  %s12392_s6 = smov 64   ;;  %s12393_s7 = smov 8   ;;  %vm9296_vm4 = vcmask 195584  }
   0x2   :  { %10280 = vmatprep.subr.bf16.mxu0 %v11854_v0  ;;  %11120 = vmatprep.subr.bf16.mxu1 %v11854_v0  ;;  %v11856_v2 = vld [vmem:[%s17042_s0] sm:$0xff]   ;;  %v11858_v4 = vld [vmem:[%s17042_s0 + $0x8] sm:$0xff]   ;;  %v11862_v7 = vld [vmem:[%s17042_s0 + $0x50] sm:$0xff]   ;;  %s12394_s8 = smov 16   ;;  %s12395_s9 = smov 24   ;;  %vm9705_vm5 = vcmask 257024  }
   0x3   :  { %10281 = vmatpush3.bf16.msra.mxu0 %v11854_v0  ;;  %11122 = vmatpush3.bf16.msra.mxu1 %v11854_v0  ;;  %v11857_v3 = vld [vmem:[%s17042_s0 + $0x40] sm:$0xff]   ;;  %v11859_v5 = vld [vmem:[%s17042_s0 + $0x48] sm:$0xff]   ;;  %v11861_v8 = vld [vmem:[%s17042_s0 + $0x18] sm:$0xff]  }
   0x4   :  { %10282 = vmatprep.subr.bf16.mxu0 %v11855_v1  ;;  %11121 = vmatprep.subr.bf16.mxu1 %v11855_v1  ;;  %v11863_v9 = vld [vmem:[%s17042_s0 + $0x58] sm:$0xff]   ;;  %v11864_v10 = vld [vmem:[%s17042_s0 + $0x20] sm:$0xff]   ;;  %v11865_v12 = vld [vmem:[%s17042_s0 + $0x28] sm:$0xff]  }
   0x5   :  { %10284 = vmatprep.mubr.msk.bf16.mxu0 %vm156_vm0, %v11856_v2  ;;  %10300 = vmatprep.mubr.msk.bf16.mxu1 %vm156_vm0, %v11857_v3  ;;  %v11866_v11 = vld [vmem:[%s17042_s0 + $0x60] sm:$0xff]   ;;  %v11867_v13 = vld [vmem:[%s17042_s0 + $0x68] sm:$0xff]   ;;  %v11868_v14 = vld [vmem:[%s17042_s0 + $0x70] sm:$0xff]  }
   0x6   :  { %v11870_v15 = vld [vmem:[%s17042_s0 + $0x30] sm:$0xff]   ;;  %v11869_v16 = vld [vmem:[%s17042_s0 + $0x78] sm:$0xff]   ;;  %v12499_v19 = vld [vmem:[%s17043_s2] ss:$0 sm:$0xff]  ;;  %s12387_s2 = smov 112  }
   0x7   :  { %10283 = vmatpush3.bf16.msra.mxu0 %v11855_v1  ;;  %11123 = vmatpush3.bf16.msra.mxu1 %v11855_v1  ;;  %v11871_v17 = vld [vmem:[%s17042_s0 + $0x38] sm:$0xff]   ;;  %s12386_s0 = smov 120  }
   0xa   :  { %10285 = vmatmul.mubr.msk.bf16.vlgmr.msra.gmra.mxu0 %vm156_vm0, %v11858_v4  ;;  %10301 = vmatmul.mubr.msk.bf16.vlgmr.msra.gmra.mxu1 %vm156_vm0, %v11859_v5 }
   0xb   :  { %10288 = vmatprep.mubr.msk.bf16.mxu0 %vm156_vm0, %v11860_v6  ;;  %10304 = vmatprep.mubr.msk.bf16.mxu1 %vm156_vm0, %v11862_v7 }
  0x12   :  { %10289 = vmatmul.mubr.msk.bf16.gmra.mxu0 %vm156_vm0, %v11861_v8  ;;  %10305 = vmatmul.mubr.msk.bf16.gmra.mxu1 %vm156_vm0, %v11863_v9 }
  0x13   :  { %10292 = vmatprep.mubr.msk.bf16.mxu0 %vm156_vm0, %v11864_v10  ;;  %10308 = vmatprep.mubr.msk.bf16.mxu1 %vm156_vm0, %v11866_v11 }
  0x1a   :  { %10293 = vmatmul.mubr.msk.bf16.gmra.mxu0 %vm156_vm0, %v11865_v12  ;;  %10309 = vmatmul.mubr.msk.bf16.gmra.mxu1 %vm156_vm0, %v11867_v13 }
  0x1b   :  { %10312 = vmatprep.mubr.msk.bf16.mxu1 %vm156_vm0, %v11868_v14  ;;  %10296 = vmatprep.mubr.msk.bf16.mxu0 %vm156_vm0, %v11870_v15 }
  0x22   :  { %10313 = vmatmul.mubr.msk.bf16.gmra.mxu1 %vm156_vm0, %v11869_v16  ;;  %10297 = vmatmul.mubr.msk.bf16.gmra.mxu0 %vm156_vm0, %v11871_v17 }
  0xca   :  { %v10286_v18 = vpop.f32.mrf.mxu0  ;;  %v10302_v20 = vpop.f32.mrf.mxu1 }
  0xcb   :  { %v12502_v23 = vadd.f32 %v10286_v18, %v12499_v19  ;;  %v12508_v27 = vadd.f32 %v10302_v20, %v12499_v19 }
  0xcc   :  { %v239_v21 = vpop.f32.mrf.mxu0  ;;  %v303_v22 = vpop.f32.mrf.mxu1 }
  0xcd   :  { %v12516_v32 = vmul.f32 0.35355338, %v12502_v23  ;;  %v12530_v40 = vadd.f32 %v12499_v19, %v239_v21  ;;  %v12545_v50 = vadd.f32 %v12499_v19, %v303_v22  ;;  %v12557_v54 = vmul.f32 0.35355338, %v12508_v27 }
  0xce   :  { %v10287_v24 = vpop.f32.mrf.mxu0  ;;  %v10303_v25 = vpop.f32.mrf.mxu1 }
  0xcf   :  { %v12505_v26 = vadd.f32 %v10287_v24, %v12499_v19  ;;  %v12511_v30 = vadd.f32 %v10303_v25, %v12499_v19  ;;  %17277 = vst [vmem:[#allocation2_spill] sm:$0xff] %v12557_v54  ;;  %v12570_v60 = vmul.f32 0.35355338, %v12530_v40  ;;  %v12573_v61 = vmul.f32 0.35355338, %v12545_v50 }
  0xd0   :  { %v242_v28 = vpop.f32.mrf.mxu0  ;;  %v306_v29 = vpop.f32.mrf.mxu1 }
  0xd1   :  { %v11134_v31 = vpack.i.bf16 %v12505_v26, %v12502_v23  ;;  %v12519_v33 = vmul.f32 0.35355338, %v12505_v26  ;;  %v12522_v36 = vadd.f32 %v12499_v19, %v242_v28  ;;  %v11139_v41 = vpack.i.bf16 %v12511_v30, %v12508_v27 }
  0xd2   :  { %v10290_v34 = vpop.f32.mrf.mxu0  ;;  %v10306_v35 = vpop.f32.mrf.mxu1  ;;  %v12541_v47 = vadd.f32 %v12499_v19, %v306_v29  ;;  %v12560_v55 = vmul.f32 0.35355338, %v12511_v30 }
  0xd3   :  { %11135 = vrot.lane.b32.xlu1 %v11134_v31, %s12386_s0  ;;  %v12527_v37 = vpack.i.bf16 %v12519_v33, %v12516_v32  ;;  %v11194_v44 = vpack.i.bf16 %v12522_v36, %v12530_v40  ;;  %v12563_v58 = vmul.f32 0.35355338, %v12522_v36  ;;  %v12590_v5 = vadd.f32 %v10290_v34, %v12499_v19 }
  0xd4   :  { %v255_v38 = vpop.f32.mrf.mxu0  ;;  %v319_v39 = vpop.f32.mrf.mxu1  ;;  %v12551_v51 = vpack.i.bf16 %v12541_v47, %v12545_v50  ;;  %17278 = vst [vmem:[#allocation3_spill] sm:$0xff] %v12560_v55  ;;  %v11169_v63 = vpack.i.bf16 %v12560_v55, %v12557_v54  ;;  %v12582_v0 = vmul.f32 0.35355338, %v12541_v47  ;;  %v12601_v8 = vadd.f32 %v10306_v35, %v12499_v19 }
  0xd5   :  { %11165 = vrot.lane.b32.xlu0 %v12527_v37, %s12386_s0  ;;  %v12567_v59 = vadd.f32 %v12499_v19, %v319_v39  ;;  %v12585_v1 = vadd.f32 %v12499_v19, %v255_v38  ;;  %v11224_v4 = vpack.i.bf16 %v12563_v58, %v12570_v60  ;;  %v12641_v22 = vmul.f32 0.35355338, %v12590_v5 }
  0xd6   :  { %v10291_v42 = vpop.f32.mrf.mxu0  ;;  %v10307_v43 = vpop.f32.mrf.mxu1  ;;  %v12651_v28 = vmul.f32 0.35355338, %v12601_v8  ;;  %v11229_v39 = vpack.i.bf16 %v12582_v0, %v12573_v61 }
  0xd7   :  { %11140 = vrot.lane.b32.xlu1 %v11139_v41, %s12386_s0  ;;  %v12593_v6 = vadd.f32 %v10291_v42, %v12499_v19  ;;  %v12604_v9 = vadd.f32 %v10307_v43, %v12499_v19  ;;  %v12607_v10 = vmul.f32 0.35355338, %v12567_v59  ;;  %v12626_v16 = vmul.f32 0.35355338, %v12585_v1 }
  0xd8   :  { %v258_v45 = vpop.f32.mrf.mxu0  ;;  %v322_v46 = vpop.f32.mrf.mxu1  ;;  %17279 = vst [vmem:[#allocation4_spill] sm:$0xff] %v12651_v28 }
  0xd9   :  { %11195 = vrot.lane.b32.xlu0 %v11194_v44, %s12386_s0  ;;  %v12576_v62 = vadd.f32 %v12499_v19, %v322_v46  ;;  %v12596_v7 = vadd.f32 %v12499_v19, %v258_v45  ;;  %v12644_v24 = vmul.f32 0.35355338, %v12593_v6  ;;  %v12654_v29 = vmul.f32 0.35355338, %v12604_v9 }
  0xda   :  { %v10294_v48 = vpop.f32.mrf.mxu0  ;;  %v10310_v49 = vpop.f32.mrf.mxu1 }
  0xdb   :  { %11145 = vrot.lane.b32.xlu1 %v11134_v31, %s12387_s2  ;;  %v12613_v12 = vmul.f32 0.35355338, %v12576_v62  ;;  %v12629_v17 = vadd.f32 %v10294_v48, %v12499_v19  ;;  %v12635_v20 = vadd.f32 %v10310_v49, %v12499_v19  ;;  %v12638_v21 = vmul.f32 0.35355338, %v12596_v7  ;;  %17280 = vst [vmem:[#allocation5_spill] sm:$0xff] %v12654_v29 }
  0xdc   :  { %v271_v52 = vpop.f32.mrf.mxu0  ;;  %v335_v53 = vpop.f32.mrf.mxu1 }
  0xdd   :  { %11205 = vrot.lane.b32.xlu0 %v11194_v44, %s12387_s2  ;;  %v12610_v11 = vadd.f32 %v12499_v19, %v271_v52  ;;  %v12619_v14 = vadd.f32 %v12499_v19, %v335_v53  ;;  %v12679_v43 = vmul.f32 0.35355338, %v12635_v20  ;;  %v12747_v53 = vpack.c.bf16 %v12593_v6, %v12590_v5 }
  0xde   :  { %v10295_v56 = vpop.f32.mrf.mxu0  ;;  %v10311_v57 = vpop.f32.mrf.mxu1 }
  0xdf   :  { %11150 = vrot.lane.b32.xlu1 %v11139_v41, %s12387_s2  ;;  %v12632_v18 = vadd.f32 %v10295_v56, %v12499_v19  ;;  %v12647_v25 = vadd.f32 %v10311_v57, %v12499_v19  ;;  %v12663_v35 = vmul.f32 0.35355338, %v12619_v14  ;;  %17283 = vst [vmem:[#allocation8_spill] sm:$0xff] %v12679_v43  ;;  %v12724_v56 = vpack.c.bf16 %v12505_v26, %v12502_v23 }
  0xe0   :  { %v274_v2 = vpop.f32.mrf.mxu0  ;;  %v338_v3 = vpop.f32.mrf.mxu1  ;;  %v12737_v23 = vpack.c.bf16 %v12541_v47, %v12545_v50  ;;  %17286 = vst [vmem:[#allocation11_spill] sm:$0xff] %v12747_v53  ;;  %v1102_v47 = vpack.c.bf16 %v12522_v36, %v12530_v40  ;;  %v11319_v50 = vpack.i.bf16 %v12576_v62, %v12567_v59  ;;  %v12773_v40 = vpack.c.bf16 %v12604_v9, %v12601_v8 }
  0xe1   :  { %11210 = vrot.lane.b32.xlu0 %v12551_v51, %s12387_s2  ;;  %v12616_v13 = vadd.f32 %v12499_v19, %v274_v2  ;;  %v12622_v15 = vadd.f32 %v12499_v19, %v338_v3  ;;  %v12676_v42 = vmul.f32 0.35355338, %v12632_v18  ;;  %v17047_v2 = vmov 0.0  }
  0xe2   :  { %10364 = vmatprep.subr.bf16.mxu0 %v17047_v2  ;;  %10316 = vmatprep.subr.bf16.mxu1 %v17047_v2  ;;  %v10314_v52 = vpop.f32.mrf.mxu1  ;;  %17284 = vst [vmem:[#allocation9_spill] sm:$0xff] %v12737_v23  ;;  %17287 = vst [vmem:[#allocation12_spill] sm:$0xff] %v12773_v40 }
  0xe3   :  { %11155 = vrot.lane.b32.xlu1 %v11134_v31, %s12388_s29  ;;  %v12657_v31 = vmul.f32 0.35355338, %v12610_v11  ;;  %v12660_v34 = vmul.f32 0.35355338, %v12616_v13  ;;  %v12666_v38 = vmul.f32 0.35355338, %v12622_v15  ;;  %v12688_v46 = vpack.c.bf16 %v12616_v13, %v12610_v11  ;;  %10366 = vmatprep.mubr.msk.bf16.mxu0 %vm12391_vm1, %v17047_v2 }
  0xe4   :  { %10318 = vmatprep.mubr.msk.bf16.mxu1 %vm12391_vm1, %v17047_v2  ;;  %v12766_v57 = vadd.f32 %v10314_v52, %v12499_v19 }
  0xe5   :  { %11215 = vrot.lane.b32.xlu0 %v11194_v44, %s12388_s29  ;;  %17281 = vst [vmem:[#allocation6_spill] sm:$0xff] %v12657_v31  ;;  %17282 = vst [vmem:[#allocation7_spill] sm:$0xff] %v12660_v34  ;;  %v12682_v44 = vmul.f32 0.35355338, %v12647_v25 }
  0xe7   :  { %11160 = vrot.lane.b32.xlu1 %v11139_v41, %s12388_s29  ;;  %v12673_v41 = vmul.f32 0.35355338, %v12629_v17 }
  0xe9   :  { %11220 = vrot.lane.b32.xlu0 %v12551_v51, %s12388_s29 }
  0xeb   :  { %11170 = vrot.lane.b32.xlu1 %v11169_v63, %s12386_s0 }
  0xed   :  { %11225 = vrot.lane.b32.xlu0 %v11224_v4, %s12386_s0 }
  0xef   :  { %11175 = vrot.lane.b32.xlu1 %v12527_v37, %s12387_s2 }
  0xf1   :  { %11230 = vrot.lane.b32.xlu0 %v11229_v39, %s12386_s0 }
  0xf3   :  { %11180 = vrot.lane.b32.xlu1 %v11169_v63, %s12387_s2 }
  0xf5   :  { %11235 = vrot.lane.b32.xlu0 %v11224_v4, %s12387_s2 }
  0xf7   :  { %11185 = vrot.lane.b32.xlu1 %v12527_v37, %s12388_s29  ;;  %v351_v37 = vpop.f32.mrf.mxu1 }
  0xf9   :  { %11240 = vrot.lane.b32.xlu0 %v11229_v39, %s12387_s2  ;;  %v10315_v26 = vpop.f32.mrf.mxu1 }
  0xfa   :  { %v12769_v49 = vadd.f32 %v10315_v26, %v12499_v19 }
  0xfb   :  { %11190 = vrot.lane.b32.xlu1 %v11169_v63, %s12388_s29  ;;  %v10298_v63 = vpop.f32.mrf.mxu0 }
  0xfc   :  { %v12802_v2 = vmul.f32 0.35355338, %v12769_v49 }
  0xfd   :  { %11245 = vrot.lane.b32.xlu0 %v11224_v4, %s12388_s29  ;;  %v12743_v4 = vpack.c.bf16 %v12511_v30, %v12508_v27  ;;  %v12759_v30 = vadd.f32 %v12499_v19, %v351_v37 }
  0xfe   :  { %17289 = vst [vmem:[#allocation14_spill] sm:$0xff] %v12802_v2 }
  0xff   :  { %1218 = vrot.lane.b32.xlu1 %v12724_v56, %s12390_s30  ;;  %17285 = vst [vmem:[#allocation10_spill] sm:$0xff] %v12743_v4  ;;  %v12777_v37 = vmul.f32 0.35355338, %v12759_v30 }
 0x101   :  { %11250 = vrot.lane.b32.xlu0 %v11229_v39, %s12388_s29  ;;  %v287_v39 = vpop.f32.mrf.mxu0 }
 0x102   :  { %v12789_v48 = vadd.f32 %v12499_v19, %v287_v39 }
 0x103   :  { %11200 = vrot.lane.b32.xlu1 %v12551_v51, %s12386_s0  ;;  %v354_v51 = vpop.f32.mrf.mxu1  ;;  %v10299_v27 = vpop.f32.mrf.mxu0 }
 0x104   :  { %v12762_v3 = vadd.f32 %v12499_v19, %v354_v51  ;;  %v12780_v51 = vadd.f32 %v10298_v63, %v12499_v19  ;;  %v12786_v26 = vadd.f32 %v10299_v27, %v12499_v19  ;;  %v12799_v63 = vmul.f32 0.35355338, %v12766_v57 }
 0x105   :  { %1568 = vrot.lane.b32.xlu0 %v12737_v23, %s12390_s30  ;;  %v290_v36 = vpop.f32.mrf.mxu0  ;;  %v12806_v27 = vpack.c.bf16 %v12769_v49, %v12766_v57  ;;  %v11284_v23 = vpack.i.bf16 %v12644_v24, %v12641_v22 }
 0x106   :  { %v12783_v52 = vmul.f32 0.35355338, %v12762_v3  ;;  %v12792_v45 = vadd.f32 %v12499_v19, %v290_v36  ;;  %17288 = vst [vmem:[#allocation13_spill] sm:$0xff] %v12799_v63  ;;  %v11324_v19 = vpack.i.bf16 %v12596_v7, %v12585_v1  ;;  %v12812_v39 = vmul.f32 0.35355338, %v12780_v51 }
 0x107   :  { %1618 = vrot.lane.b32.xlu1 %v12743_v4, %s12390_s30  ;;  %17290 = vst [vmem:[#allocation15_spill] sm:$0xff] %v12806_v27  ;;  %v12820_v36 = vmul.f32 0.35355338, %v12789_v48  ;;  %v11259_v4 = vpack.i.bf16 %v12604_v9, %v12601_v8  ;;  %v11349_v8 = vpack.i.bf16 %v12613_v12, %v12607_v10  ;;  %v11354_v9 = vpack.i.bf16 %v12638_v21, %v12626_v16 }
 0x109   :  { %1318 = vrot.lane.b32.xlu0 %v12747_v53, %s12390_s30 }
 0x10b   :  { %1167 = vrot.lane.b32.xlu1 %v1102_v47, %s12390_s30 }
 0x10d   :  { %11320 = vrot.lane.b32.xlu0 %v11319_v50, %s12386_s0 }
 0x10f   :  { %5840 = vrot.lane.b32.xlu1 %v1102_v47, %s12392_s6  ;;  %v11254_v47 = vpack.i.bf16 %v12593_v6, %v12590_v5  ;;  %v12815_v5 = vmul.f32 0.35355338, %v12786_v26 }
 0x111   :  { %1718 = vrot.lane.b32.xlu0 %v12773_v40, %s12390_s30  ;;  %v12823_v40 = vmul.f32 0.35355338, %v12792_v45 }
 0x113   :  { %11255 = vrot.lane.b32.xlu1 %v11254_v47, %s12386_s0 }
 0x115   :  { %11325 = vrot.lane.b32.xlu0 %v11324_v19, %s12387_s2 }
 0x117   :  { %11260 = vrot.lane.b32.xlu1 %v11259_v4, %s12386_s0 }
 0x119   :  { %11330 = vrot.lane.b32.xlu0 %v11319_v50, %s12387_s2 }
 0x11b   :  { %11265 = vrot.lane.b32.xlu1 %v11254_v47, %s12387_s2 }
 0x11d   :  { %11335 = vrot.lane.b32.xlu0 %v11324_v19, %s12388_s29 }
 0x11f   :  { %11270 = vrot.lane.b32.xlu1 %v11259_v4, %s12387_s2 }
 0x121   :  { %11340 = vrot.lane.b32.xlu0 %v11319_v50, %s12388_s29  ;;  %v11289_v50 = vpack.i.bf16 %v12654_v29, %v12651_v28  ;;  %v11469_v29 = vpack.i.bf16 %v12666_v38, %v12663_v35 }
 0x123   :  { %11275 = vrot.lane.b32.xlu1 %v11254_v47, %s12388_s29  ;;  %v11374_v47 = vpack.i.bf16 %v12632_v18, %v12629_v17 }
 0x125   :  { %11350 = vrot.lane.b32.xlu0 %v11349_v8, %s12386_s0 }
 0x127   :  { %11280 = vrot.lane.b32.xlu1 %v11259_v4, %s12388_s29  ;;  %v12861_v4 = vpack.c.bf16 %v12596_v7, %v12585_v1  ;;  %v11439_v1 = vpack.i.bf16 %v12622_v15, %v12619_v14 }
 0x129   :  { %11355 = vrot.lane.b32.xlu0 %v11354_v9, %s12387_s2 }
 0x12b   :  { %11285 = vrot.lane.b32.xlu1 %v11284_v23, %s12386_s0 }
 0x12d   :  { %11360 = vrot.lane.b32.xlu0 %v11349_v8, %s12387_s2 }
 0x12f   :  { %11290 = vrot.lane.b32.xlu1 %v11289_v50, %s12386_s0 }
 0x131   :  { %11365 = vrot.lane.b32.xlu0 %v11354_v9, %s12388_s29 }
 0x133   :  { %11295 = vrot.lane.b32.xlu1 %v11284_v23, %s12387_s2 }
 0x135   :  { %11370 = vrot.lane.b32.xlu0 %v11349_v8, %s12388_s29  ;;  %v11434_v8 = vpack.i.bf16 %v12616_v13, %v12610_v11  ;;  %v12887_v11 = vpack.c.bf16 %v12576_v62, %v12567_v59 }
 0x137   :  { %11300 = vrot.lane.b32.xlu1 %v11289_v50, %s12387_s2  ;;  %17292 = vst [vmem:[#allocation17_spill] sm:$0xff] %v12887_v11 }
 0x139   :  { %1268 = vrot.lane.b32.xlu0 %v12861_v4, %s12390_s30 }
 0x13b   :  { %11305 = vrot.lane.b32.xlu1 %v11284_v23, %s12388_s29 }
 0x13d   :  { %11375 = vrot.lane.b32.xlu0 %v11374_v47, %s12386_s0 }
 0x13f   :  { %11310 = vrot.lane.b32.xlu1 %v11289_v50, %s12388_s29 }
 0x141   :  { %11435 = vrot.lane.b32.xlu0 %v11434_v8, %s12386_s0 }
 0x143   :  { %11315 = vrot.lane.b32.xlu1 %v11324_v19, %s12386_s0 }
 0x145   :  { %v12876_v7 = vpop.permute.xlu1 %11135  ;;  %11440 = vrot.lane.b32.xlu0 %v11439_v1, %s12386_s0 }
 0x147   :  { %v12879_v6 = vpop.permute.xlu0 %11165  ;;  %11345 = vrot.lane.b32.xlu1 %v11354_v9, %s12386_s0  ;;  %v11379_v9 = vpack.i.bf16 %v12647_v25, %v12635_v20 }
 0x148   :  { %17291 = vst [vmem:[#allocation16_spill] sm:$0xff] %v12879_v6  ;;  %v11464_v6 = vpack.i.bf16 %v12660_v34, %v12657_v31  ;;  %v11404_v31 = vpack.i.bf16 %v12676_v42, %v12673_v41 }
 0x149   :  { %v12882_v23 = vpop.permute.xlu1 %11140  ;;  %11445 = vrot.lane.b32.xlu0 %v11434_v8, %s12387_s2 }
 0x14b   :  { %v12889_v13 = vpop.permute.xlu0 %11195  ;;  %1668 = vrot.lane.b32.xlu1 %v12887_v11, %s12390_s30 }
 0x14d   :  { %v12893_v19 = vpop.permute.xlu1 %11145  ;;  %11450 = vrot.lane.b32.xlu0 %v11439_v1, %s12387_s2 }
 0x14f   :  { %v12898_v50 = vpop.permute.xlu0 %11205  ;;  %11380 = vrot.lane.b32.xlu1 %v11379_v9, %s12386_s0 }
 0x151   :  { %v12901_v54 = vpop.permute.xlu1 %11150  ;;  %11455 = vrot.lane.b32.xlu0 %v11434_v8, %s12388_s29 }
 0x153   :  { %v12904_v59 = vpop.permute.xlu0 %11210  ;;  %11385 = vrot.lane.b32.xlu1 %v11374_v47, %s12387_s2 }
 0x155   :  { %v12907_v62 = vpop.permute.xlu1 %11155  ;;  %11460 = vrot.lane.b32.xlu0 %v11439_v1, %s12388_s29 }
 0x157   :  { %v12910_v11 = vpop.permute.xlu0 %11215  ;;  %11390 = vrot.lane.b32.xlu1 %v11379_v9, %s12387_s2 }
 0x159   :  { %v12915_v28 = vpop.permute.xlu1 %11160  ;;  %11465 = vrot.lane.b32.xlu0 %v11464_v6, %s12386_s0 }
 0x15b   :  { %v12918_v8 = vpop.permute.xlu0 %11220  ;;  %11395 = vrot.lane.b32.xlu1 %v11374_v47, %s12388_s29 }
 0x15d   :  { %v12923_v55 = vpop.permute.xlu1 %11170  ;;  %11470 = vrot.lane.b32.xlu0 %v11469_v29, %s12386_s0 }
 0x15e   :  { %17293 = vst [vmem:[#allocation18_spill] sm:$0xff] %v12923_v55 }
 0x15f   :  { %11400 = vrot.lane.b32.xlu1 %v11379_v9, %s12388_s29  ;;  %v12927_v1 = vpop.permute.xlu0 %11225  ;;  %v11409_v9 = vpack.i.bf16 %v12682_v44, %v12679_v43  ;;  %v12959_v43 = vpack.c.bf16 %v12622_v15, %v12619_v14  ;;  %v11554_v14 = vpack.i.bf16 %v12792_v45, %v12789_v48 }
 0x160   :  { %17294 = vst [vmem:[#allocation19_spill] sm:$0xff] %v12927_v1 }
 0x161   :  { %v12929_v53 = vpop.permute.xlu1 %11175  ;;  %11475 = vrot.lane.b32.xlu0 %v11464_v6, %s12387_s2  ;;  %17303 = vst [vmem:[#allocation28_spill] sm:$0xff] %v12959_v43 }
 0x162   :  { %17295 = vst [vmem:[#allocation20_spill] sm:$0xff] %v12929_v53 }
 0x163   :  { %11405 = vrot.lane.b32.xlu1 %v11404_v31, %s12386_s0  ;;  %v12935_v47 = vpop.permute.xlu0 %11230 }
 0x164   :  { %17296 = vst [vmem:[#allocation21_spill] sm:$0xff] %v12935_v47 }
 0x165   :  { %v12937_v34 = vpop.permute.xlu1 %11180  ;;  %11480 = vrot.lane.b32.xlu0 %v11469_v29, %s12387_s2 }
 0x166   :  { %17297 = vst [vmem:[#allocation22_spill] sm:$0xff] %v12937_v34 }
 0x167   :  { %11410 = vrot.lane.b32.xlu1 %v11409_v9, %s12386_s0  ;;  %v12943_v55 = vpop.permute.xlu0 %11235 }
 0x168   :  { %17298 = vst [vmem:[#allocation23_spill] sm:$0xff] %v12943_v55 }
 0x169   :  { %v12945_v53 = vpop.permute.xlu1 %11185  ;;  %11485 = vrot.lane.b32.xlu0 %v11464_v6, %s12388_s29  ;;  %v12965_v6 = vpack.i.bf16 %v12802_v2, %v12799_v63  ;;  %v17307_v63 = vpack.c.bf16 %v12582_v0, %v12573_v61  ;;  %v11494_v61 = vpack.i.bf16 %v12786_v26, %v12780_v51 }
 0x16a   :  { %17299 = vst [vmem:[#allocation24_spill] sm:$0xff] %v12945_v53 }
 0x16b   :  { %11415 = vrot.lane.b32.xlu1 %v11404_v31, %s12387_s2  ;;  %v12949_v1 = vpop.permute.xlu0 %11240 }
 0x16c   :  { %17300 = vst [vmem:[#allocation25_spill] sm:$0xff] %v12949_v1  ;;  %v11559_v1 = vpack.i.bf16 %v12762_v3, %v12759_v30 }
 0x16d   :  { %v12951_v47 = vpop.permute.xlu1 %11190  ;;  %11490 = vrot.lane.b32.xlu0 %v11469_v29, %s12388_s29 }
 0x16e   :  { %17301 = vst [vmem:[#allocation26_spill] sm:$0xff] %v12951_v47 }
 0x16f   :  { %11420 = vrot.lane.b32.xlu1 %v11409_v9, %s12387_s2  ;;  %v12955_v34 = vpop.permute.xlu0 %11245 }
 0x170   :  { %17302 = vst [vmem:[#allocation27_spill] sm:$0xff] %v12955_v34 }
 0x171   :  { %v1219_v55 = vpop.permute.xlu1 %1218  ;;  %1768 = vrot.lane.b32.xlu0 %v12959_v43, %s12390_s30 }
 0x172   :  { %v1224_v0 = vsel %vm1169_vm2, %v1219_v55, 0  ;;  %v11499_v55 = vpack.i.bf16 %v12769_v49, %v12766_v57 }
 0x173   :  { %11425 = vrot.lane.b32.xlu1 %v11404_v31, %s12388_s29  ;;  %v12968_v47 = vpop.permute.xlu0 %11250  ;;  %v12983_v31 = vpack.c.bf16 %v12632_v18, %v12629_v17 }
 0x174   :  { %17304 = vst [vmem:[#allocation29_spill] sm:$0xff] %v12968_v47  ;;  %v17305_v47 = vmov 0.0  }
 0x175   :  { %v12970_v29 = vpop.permute.xlu1 %11200  ;;  %11550 = vrot.lane.b32.xlu0 %v12965_v6, %s12388_s29 }
 0x177   :  { %11430 = vrot.lane.b32.xlu1 %v11409_v9, %s12388_s29  ;;  %v1569_v15 = vpop.permute.xlu0 %1568  ;;  %v12992_v9 = vpack.c.bf16 %v12786_v26, %v12780_v51  ;;  %v17310_v51 = vpack.c.bf16 %v12519_v33, %v12516_v32  ;;  %v11584_v32 = vpack.i.bf16 %v12823_v40, %v12820_v36 }
 0x178   :  { %v1574_v43 = vsel %vm1169_vm2, %v1569_v15, 0 }
 0x179   :  { %v12978_v53 = vpop.permute.xlu1 %1618  ;;  %11555 = vrot.lane.b32.xlu0 %v11554_v14, %s12386_s0  ;;  %10365 = vmatpush3.bf16.xpose.msra.mxu0 %v1574_v43  ;;  %v12998_v43 = vpack.c.bf16 %v12647_v25, %v12635_v20 }
 0x17a   :  { %10376 = vmatprep.subr.bf16.mxu0 %v17305_v47 }
 0x17b   :  { %1418 = vrot.lane.b32.xlu1 %v12983_v31, %s12390_s30  ;;  %v12988_v34 = vpop.permute.xlu0 %1318  ;;  %17306 = vst [vmem:[#allocation30_spill] sm:$0xff] %v12998_v43 }
 0x17d   :  { %v1168_v15 = vpop.permute.xlu1 %1167  ;;  %1518 = vrot.lane.b32.xlu0 %v12992_v9, %s12390_s30 }
 0x17e   :  { %v1174_v17 = vsel %vm1169_vm2, %v1168_v15, 0 }
 0x17f   :  { %1818 = vrot.lane.b32.xlu1 %v12998_v43, %s12390_s30  ;;  %10317 = vmatpush3.bf16.xpose.msra.mxu1 %v1174_v17  ;;  %v13003_v18 = vpop.permute.xlu0 %11320 }
 0x180   :  { %10367 = vmatmul.mubr.msk.bf16.vlgmr.msra.gmra.mxu0 %vm1169_vm2, %v17307_v63  ;;  %10322 = vmatprep.subr.bf16.mxu1 %v17305_v47  ;;  %v17309_v63 = vpack.c.bf16 %v12563_v58, %v12570_v60 }
 0x181   :  { %v13012_v20 = vpop.permute.xlu1 %5840  ;;  %11560 = vrot.lane.b32.xlu0 %v11559_v1, %s12386_s0  ;;  %10378 = vmatprep.mubr.msk.bf16.mxu0 %vm12391_vm1, %v17305_v47 }
 0x182   :  { %17308 = vst [vmem:[#allocation31_spill] sm:$0xff] %v13012_v20 }
 0x183   :  { %1368 = vrot.lane.b32.xlu1 %v12688_v46, %s12390_s30  ;;  %v13019_v25 = vpop.permute.xlu0 %1718 }
 0x185   :  { %v13021_v15 = vpop.permute.xlu1 %11255  ;;  %11565 = vrot.lane.b32.xlu0 %v11554_v14, %s12387_s2 }
 0x186   :  { %10319 = vmatmul.mubr.msk.bf16.vlgmr.msra.gmra.mxu1 %vm1169_vm2, %v17309_v63 }
 0x187   :  { %11495 = vrot.lane.b32.xlu1 %v11494_v61, %s12386_s0  ;;  %v13032_v17 = vpop.permute.xlu0 %11325  ;;  %10323 = vmatpush3.bf16.xpose.msra.mxu1 %v1224_v0  ;;  %v11589_v0 = vpack.i.bf16 %v12783_v52, %v12777_v37 }
 0x188   :  { %10324 = vmatprep.mubr.msk.bf16.mxu1 %vm12391_vm1, %v17305_v47  ;;  %10328 = vmatprep.subr.bf16.mxu1 %v17305_v47 }
 0x189   :  { %v13037_v43 = vpop.permute.xlu1 %11260  ;;  %11570 = vrot.lane.b32.xlu0 %v11559_v1, %s12387_s2 }
 0x18b   :  { %11500 = vrot.lane.b32.xlu1 %v11499_v55, %s12386_s0  ;;  %v13043_v58 = vpop.permute.xlu0 %11330 }
 0x18d   :  { %v13045_v60 = vpop.permute.xlu1 %11265  ;;  %11575 = vrot.lane.b32.xlu0 %v11554_v14, %s12388_s29 }
 0x18e   :  { %10325 = vmatmul.mubr.msk.bf16.vlgmr.msra.gmra.mxu1 %vm1169_vm2, %v17310_v51 }
 0x18f   :  { %11505 = vrot.lane.b32.xlu1 %v11494_v61, %s12387_s2  ;;  %v13053_v26 = vpop.permute.xlu0 %11335  ;;  %10330 = vmatprep.mubr.msk.bf16.mxu1 %vm12391_vm1, %v17305_v47 }
 0x191   :  { %v13057_v49 = vpop.permute.xlu1 %11270  ;;  %11580 = vrot.lane.b32.xlu0 %v11559_v1, %s12388_s29 }
 0x193   :  { %11510 = vrot.lane.b32.xlu1 %v11499_v55, %s12387_s2  ;;  %v13061_v57 = vpop.permute.xlu0 %11340 }
 0x195   :  { %v13065_v33 = vpop.permute.xlu1 %11275  ;;  %11585 = vrot.lane.b32.xlu0 %v11584_v32, %s12386_s0 }
 0x197   :  { %11515 = vrot.lane.b32.xlu1 %v11494_v61, %s12388_s29  ;;  %v13069_v14 = vpop.permute.xlu0 %11350  ;;  %v11524_v61 = vpack.i.bf16 %v12815_v5, %v12812_v39 }
 0x198   :  { %17311 = vst [vmem:[#allocation32_spill] sm:$0xff] %v13069_v14 }
 0x199   :  { %v13073_v63 = vpop.permute.xlu1 %11280  ;;  %11590 = vrot.lane.b32.xlu0 %v11589_v0, %s12386_s0 }
 0x19b   :  { %11520 = vrot.lane.b32.xlu1 %v11499_v55, %s12388_s29  ;;  %v13077_v1 = vpop.permute.xlu0 %11355 }
 0x19c   :  { %17312 = vst [vmem:[#allocation33_spill] sm:$0xff] %v13077_v1 }
 0x19d   :  { %v13079_v51 = vpop.permute.xlu1 %11285  ;;  %11595 = vrot.lane.b32.xlu0 %v11584_v32, %s12387_s2 }
 0x19e   :  { %17313 = vst [vmem:[#allocation34_spill] sm:$0xff] %v13079_v51 }
 0x19f   :  { %11525 = vrot.lane.b32.xlu1 %v11524_v61, %s12386_s0  ;;  %v13085_v20 = vpop.permute.xlu0 %11360 }
 0x1a0   :  { %17314 = vst [vmem:[#allocation35_spill] sm:$0xff] %v13085_v20 }
 0x1a1   :  { %v13087_v14 = vpop.permute.xlu1 %11290  ;;  %11600 = vrot.lane.b32.xlu0 %v11589_v0, %s12387_s2 }
 0x1a2   :  { %17315 = vst [vmem:[#allocation36_spill] sm:$0xff] %v13087_v14  ;;  %v13107_v14 = vpack.c.bf16 %v12792_v45, %v12789_v48  ;;  %v11198_v48 = vunpack.i.h.bf16 %v12889_v13 }
 0x1a3   :  { %11530 = vrot.lane.b32.xlu1 %v12965_v6, %s12386_s0  ;;  %v13092_v55 = vpop.permute.xlu0 %11365 }
 0x1a4   :  { %17316 = vst [vmem:[#allocation37_spill] sm:$0xff] %v13092_v55 }
 0x1a5   :  { %v13094_v1 = vpop.permute.xlu1 %11295  ;;  %11605 = vrot.lane.b32.xlu0 %v11584_v32, %s12388_s29 }
 0x1a6   :  { %17317 = vst [vmem:[#allocation38_spill] sm:$0xff] %v13094_v1 }
 0x1a7   :  { %11535 = vrot.lane.b32.xlu1 %v11524_v61, %s12387_s2  ;;  %v13098_v51 = vpop.permute.xlu0 %11370 }
 0x1a9   :  { %v13100_v2 = vpop.permute.xlu1 %11300  ;;  %11610 = vrot.lane.b32.xlu0 %v11589_v0, %s12388_s29 }
 0x1ab   :  { %11540 = vrot.lane.b32.xlu1 %v12965_v6, %s12387_s2  ;;  %v1269_v20 = vpop.permute.xlu0 %1268  ;;  %v13120_v6 = vpack.c.bf16 %v12762_v3, %v12759_v30  ;;  %v17319_v3 = vpack.c.bf16 %v12638_v21, %v12626_v16  ;;  %v11138_v30 = vunpack.i.h.bf16 %v12876_v7  ;;  %v11203_v16 = vunpack.i.h.bf16 %v12970_v29 }
 0x1ac   :  { %v1274_v55 = vsel %vm1169_vm2, %v1269_v20, 0  ;;  %v11197_v20 = vunpack.i.l.bf16 %v12889_v13  ;;  %v11202_v21 = vunpack.i.l.bf16 %v12970_v29  ;;  %v11207_v29 = vunpack.i.l.bf16 %v12898_v50 }
 0x1ad   :  { %v13110_v1 = vpop.permute.xlu1 %11305  ;;  %1468 = vrot.lane.b32.xlu0 %v13107_v14, %s12390_s30  ;;  %10329 = vmatpush3.bf16.xpose.msra.mxu1 %v1274_v55  ;;  %17318 = vst [vmem:[#allocation39_spill] sm:$0xff] %v13120_v6  ;;  %v11137_v55 = vunpack.i.l.bf16 %v12876_v7 }
 0x1ae   :  { %10334 = vmatprep.subr.bf16.mxu1 %v17305_v47 }
 0x1af   :  { %11545 = vrot.lane.b32.xlu1 %v11524_v61, %s12388_s29  ;;  %v13116_v32 = vpop.permute.xlu0 %11375  ;;  %v1324_v61 = vsel %vm1169_vm2, %v12988_v34, 0  ;;  %v13147_v34 = vpack.c.bf16 %v11198_v48, %v11197_v20  ;;  %v13155_v13 = vpack.c.bf16 %v11138_v30, %v11137_v55  ;;  %v11208_v48 = vunpack.i.h.bf16 %v12898_v50 }
 0x1b0   :  { %v13165_v20 = vpack.c.bf16 %v11203_v16, %v11202_v21  ;;  %v17323_v30 = vpack.c.bf16 %v12644_v24, %v12641_v22  ;;  %v11148_v55 = vunpack.i.h.bf16 %v12893_v19  ;;  %v11213_v22 = vunpack.i.h.bf16 %v12904_v59 }
 0x1b1   :  { %v13122_v45 = vpop.permute.xlu1 %11310  ;;  %1868 = vrot.lane.b32.xlu0 %v13120_v6, %s12390_s30  ;;  %17320 = vst [vmem:[#allocation40_spill] sm:$0xff] %v13147_v34  ;;  %17321 = vst [vmem:[#allocation41_spill] sm:$0xff] %v13155_v13  ;;  %v13184_v16 = vpack.c.bf16 %v11208_v48, %v11207_v29  ;;  %v11212_v24 = vunpack.i.l.bf16 %v12904_v59  ;;  %v11218_v48 = vunpack.i.h.bf16 %v12910_v11  ;;  %v11217_v29 = vunpack.i.l.bf16 %v12910_v11 }
 0x1b2   :  { %17322 = vst [vmem:[#allocation42_spill] sm:$0xff] %v13165_v20 }
 0x1b3   :  { %1918 = vrot.lane.b32.xlu1 %v12806_v27, %s12390_s30  ;;  %v13130_v0 = vpop.permute.xlu0 %11435  ;;  %17325 = vst [vmem:[#allocation44_spill] sm:$0xff] %v13184_v16  ;;  %v13201_v59 = vpack.c.bf16 %v11213_v22, %v11212_v24  ;;  %v17329_v22 = vpack.c.bf16 %v12613_v12, %v12607_v10  ;;  %v13221_v11 = vpack.c.bf16 %v11218_v48, %v11217_v29  ;;  %v11223_v24 = vunpack.i.h.bf16 %v12918_v8 }
 0x1b4   :  { %10331 = vmatmul.mubr.msk.bf16.vlgmr.msra.gmra.mxu1 %vm1169_vm2, %v17319_v3  ;;  %v11163_v10 = vunpack.i.h.bf16 %v12915_v28  ;;  %v11162_v12 = vunpack.i.l.bf16 %v12915_v28  ;;  %v11258_v28 = vunpack.i.h.bf16 %v13021_v15 }
 0x1b5   :  { %v13140_v6 = vpop.permute.xlu1 %11315  ;;  %5887 = vrot.lane.b32.xlu0 %v12724_v56, %s12392_s6  ;;  %10335 = vmatpush3.bf16.xpose.msra.mxu1 %v1324_v61  ;;  %v11143_v56 = vunpack.i.h.bf16 %v12882_v23  ;;  %v11142_v61 = vunpack.i.l.bf16 %v12882_v23  ;;  %17327 = vst [vmem:[#allocation46_spill] sm:$0xff] %v13201_v59  ;;  %17330 = vst [vmem:[#allocation48_spill] sm:$0xff] %v13221_v11 }
 0x1b6   :  { %10336 = vmatprep.mubr.msk.bf16.mxu1 %vm12391_vm1, %v17305_v47  ;;  %10340 = vmatprep.subr.bf16.mxu1 %v17305_v47  ;;  %v11318_v29 = vunpack.i.h.bf16 %v13140_v6 }
 0x1b7   :  { %5934 = vrot.lane.b32.xlu1 %v12861_v4, %s12392_s6  ;;  %v13153_v7 = vpop.permute.xlu0 %11440  ;;  %v13175_v23 = vpack.c.bf16 %v11143_v56, %v11142_v61  ;;  %v11153_v56 = vunpack.i.h.bf16 %v12901_v54 }
 0x1b9   :  { %v13159_v3 = vpop.permute.xlu1 %11345  ;;  %1968 = vrot.lane.b32.xlu0 %v13147_v34, %s12390_s30  ;;  %17324 = vst [vmem:[#allocation43_spill] sm:$0xff] %v13175_v23  ;;  %v11147_v34 = vunpack.i.l.bf16 %v12893_v19 }
 0x1bb   :  { %2018 = vrot.lane.b32.xlu1 %v13155_v13, %s12390_s30  ;;  %v13169_v4 = vpop.permute.xlu0 %11445  ;;  %v13193_v21 = vpack.c.bf16 %v11148_v55, %v11147_v34  ;;  %v11157_v55 = vunpack.i.l.bf16 %v12907_v62 }
 0x1bc   :  { %10337 = vmatmul.mubr.msk.bf16.vlgmr.msra.gmra.mxu1 %vm1169_vm2, %v17323_v30 }
 0x1bd   :  { %v1669_v27 = vpop.permute.xlu1 %1668  ;;  %2368 = vrot.lane.b32.xlu0 %v13165_v20, %s12390_s30  ;;  %10342 = vmatprep.mubr.msk.bf16.mxu1 %vm12391_vm1, %v17305_v47  ;;  %17326 = vst [vmem:[#allocation45_spill] sm:$0xff] %v13193_v21  ;;  %v17395_v20 = vld [vmem:[#allocation8_spill] sm:$0xff] }
 0x1be   :  { %v1674_v50 = vsel %vm1169_vm2, %v1669_v27, 0  ;;  %v11152_v27 = vunpack.i.l.bf16 %v12901_v54  ;;  %v11158_v54 = vunpack.i.h.bf16 %v12907_v62 }
 0x1bf   :  { %2418 = vrot.lane.b32.xlu1 %v13175_v23, %s12390_s30  ;;  %10377 = vmatpush3.bf16.xpose.msra.mxu0 %v1674_v50  ;;  %v13190_v19 = vpop.permute.xlu0 %11450 }
 0x1c0   :  { %10388 = vmatprep.subr.bf16.mxu0 %v17305_v47  ;;  %v13209_v30 = vpack.c.bf16 %v11153_v56, %v11152_v27  ;;  %v11222_v56 = vunpack.i.l.bf16 %v12918_v8  ;;  %v13231_v27 = vpack.c.bf16 %v11158_v54, %v11157_v55  ;;  %v13247_v55 = vpack.c.bf16 %v11163_v10, %v11162_v12 }
 0x1c1   :  { %v13197_v61 = vpop.permute.xlu1 %11380  ;;  %2768 = vrot.lane.b32.xlu0 %v13184_v16, %s12390_s30 }
 0x1c2   :  { %17328 = vst [vmem:[#allocation47_spill] sm:$0xff] %v13209_v30  ;;  %17331 = vst [vmem:[#allocation49_spill] sm:$0xff] %v13231_v27  ;;  %v13239_v8 = vpack.c.bf16 %v11223_v24, %v11222_v56  ;;  %v11323_v24 = vunpack.i.h.bf16 %v13003_v18 }
 0x1c3   :  { %2818 = vrot.lane.b32.xlu1 %v13193_v21, %s12390_s30  ;;  %v13207_v34 = vpop.permute.xlu0 %11455  ;;  %17333 = vst [vmem:[#allocation51_spill] sm:$0xff] %v13247_v55  ;;  %v11272_v21 = vunpack.i.l.bf16 %v13057_v49 }
 0x1c4   :  { %17332 = vst [vmem:[#allocation50_spill] sm:$0xff] %v13239_v8 }
 0x1c5   :  { %v13213_v50 = vpop.permute.xlu1 %11385  ;;  %3168 = vrot.lane.b32.xlu0 %v13201_v59, %s12390_s30 }
 0x1c6   :  { %10379 = vmatmul.mubr.msk.bf16.vlgmr.msra.gmra.mxu0 %vm1169_vm2, %v17329_v22  ;;  %v11317_v22 = vunpack.i.l.bf16 %v13140_v6  ;;  %v11322_v6 = vunpack.i.l.bf16 %v13003_v18  ;;  %v11328_v18 = vunpack.i.h.bf16 %v13032_v17 }
 0x1c7   :  { %3218 = vrot.lane.b32.xlu1 %v13209_v30, %s12390_s30  ;;  %v13227_v62 = vpop.permute.xlu0 %11460  ;;  %10390 = vmatprep.mubr.msk.bf16.mxu0 %vm12391_vm1, %v17305_v47  ;;  %v11257_v30 = vunpack.i.l.bf16 %v13021_v15  ;;  %v11263_v15 = vunpack.i.h.bf16 %v13037_v43 }
 0x1c8   :  { %v13257_v56 = vpack.c.bf16 %v11318_v29, %v11317_v22  ;;  %v11327_v29 = vunpack.i.l.bf16 %v13032_v17  ;;  %v11333_v17 = vunpack.i.h.bf16 %v13043_v58 }
 0x1c9   :  { %v13235_v48 = vpop.permute.xlu1 %11390  ;;  %3568 = vrot.lane.b32.xlu0 %v13221_v11, %s12390_s30  ;;  %v13263_v12 = vpack.c.bf16 %v11258_v28, %v11257_v30  ;;  %v11267_v28 = vunpack.i.l.bf16 %v13045_v60 }
 0x1ca   :  { %17334 = vst [vmem:[#allocation52_spill] sm:$0xff] %v13257_v56 }
 0x1cb   :  { %3618 = vrot.lane.b32.xlu1 %v13231_v27, %s12390_s30  ;;  %v13245_v54 = vpop.permute.xlu0 %11465  ;;  %17335 = vst [vmem:[#allocation53_spill] sm:$0xff] %v13263_v12  ;;  %v11262_v27 = vunpack.i.l.bf16 %v13037_v43  ;;  %v11268_v43 = vunpack.i.h.bf16 %v13045_v60  ;;  %v11273_v60 = vunpack.i.h.bf16 %v13057_v49  ;;  %v11278_v49 = vunpack.i.h.bf16 %v13065_v33 }
 0x1cd   :  { %v13251_v59 = vpop.permute.xlu1 %11395  ;;  %3968 = vrot.lane.b32.xlu0 %v13239_v8, %s12390_s30  ;;  %v13271_v8 = vpack.c.bf16 %v11323_v24, %v11322_v6  ;;  %v13279_v22 = vpack.c.bf16 %v11263_v15, %v11262_v27  ;;  %v13287_v24 = vpack.c.bf16 %v11328_v18, %v11327_v29  ;;  %v11332_v6 = vunpack.i.l.bf16 %v13043_v58 }
 0x1ce   :  { %v13295_v15 = vpack.c.bf16 %v11268_v43, %v11267_v28  ;;  %v11338_v58 = vunpack.i.h.bf16 %v13053_v26  ;;  %v11337_v29 = vunpack.i.l.bf16 %v13053_v26  ;;  %v13311_v28 = vpack.c.bf16 %v11273_v60, %v11272_v21 }
 0x1cf   :  { %4018 = vrot.lane.b32.xlu1 %v13247_v55, %s12390_s30  ;;  %v13261_v10 = vpop.permute.xlu0 %11470  ;;  %17336 = vst [vmem:[#allocation54_spill] sm:$0xff] %v13271_v8  ;;  %17337 = vst [vmem:[#allocation55_spill] sm:$0xff] %v13279_v22  ;;  %v13303_v18 = vpack.c.bf16 %v11333_v17, %v11332_v6  ;;  %v11343_v26 = vunpack.i.h.bf16 %v13061_v57  ;;  %v11342_v6 = vunpack.i.l.bf16 %v13061_v57  ;;  %v11438_v57 = vunpack.i.h.bf16 %v13130_v0 }
 0x1d0   :  { %17338 = vst [vmem:[#allocation56_spill] sm:$0xff] %v13287_v24  ;;  %17339 = vst [vmem:[#allocation57_spill] sm:$0xff] %v13295_v15  ;;  %v13319_v17 = vpack.c.bf16 %v11338_v58, %v11337_v29  ;;  %v11437_v29 = vunpack.i.l.bf16 %v13130_v0 }
 0x1d1   :  { %v13267_v11 = vpop.permute.xlu1 %11400  ;;  %2068 = vrot.lane.b32.xlu0 %v13257_v56, %s12390_s30  ;;  %17340 = vst [vmem:[#allocation58_spill] sm:$0xff] %v13303_v18  ;;  %17341 = vst [vmem:[#allocation59_spill] sm:$0xff] %v13311_v28  ;;  %v13335_v58 = vpack.c.bf16 %v11343_v26, %v11342_v6  ;;  %v11443_v26 = vunpack.i.h.bf16 %v13153_v7  ;;  %v11442_v6 = vunpack.i.l.bf16 %v13153_v7  ;;  %v11448_v7 = vunpack.i.h.bf16 %v13169_v4 }
 0x1d2   :  { %17342 = vst [vmem:[#allocation60_spill] sm:$0xff] %v13319_v17  ;;  %v13351_v0 = vpack.c.bf16 %v11438_v57, %v11437_v29  ;;  %v11447_v29 = vunpack.i.l.bf16 %v13169_v4 }
 0x1d3   :  { %2118 = vrot.lane.b32.xlu1 %v13263_v12, %s12390_s30  ;;  %v13277_v30 = vpop.permute.xlu0 %11475  ;;  %17345 = vst [vmem:[#allocation63_spill] sm:$0xff] %v13335_v58  ;;  %v13367_v57 = vpack.c.bf16 %v11443_v26, %v11442_v6  ;;  %v11387_v26 = vunpack.i.l.bf16 %v13213_v50 }
 0x1d4   :  { %17347 = vst [vmem:[#allocation65_spill] sm:$0xff] %v13351_v0  ;;  %v13385_v4 = vpack.c.bf16 %v11448_v7, %v11447_v29  ;;  %v11457_v29 = vunpack.i.l.bf16 %v13207_v34 }
 0x1d5   :  { %v13283_v55 = vpop.permute.xlu1 %11405  ;;  %2468 = vrot.lane.b32.xlu0 %v13271_v8, %s12390_s30  ;;  %17351 = vst [vmem:[#allocation69_spill] sm:$0xff] %v13367_v57 }
 0x1d6   :  { %17354 = vst [vmem:[#allocation71_spill] sm:$0xff] %v13385_v4 }
 0x1d7   :  { %2518 = vrot.lane.b32.xlu1 %v13279_v22, %s12390_s30  ;;  %v13293_v27 = vpop.permute.xlu0 %11480  ;;  %v11277_v22 = vunpack.i.l.bf16 %v13065_v33  ;;  %v11283_v33 = vunpack.i.h.bf16 %v13073_v63 }
 0x1d9   :  { %v13299_v16 = vpop.permute.xlu1 %11410  ;;  %2868 = vrot.lane.b32.xlu0 %v13287_v24, %s12390_s30  ;;  %v13327_v60 = vpack.c.bf16 %v11278_v49, %v11277_v22 }
 0x1db   :  { %2918 = vrot.lane.b32.xlu1 %v13295_v15, %s12390_s30  ;;  %v13309_v43 = vpop.permute.xlu0 %11485  ;;  %17344 = vst [vmem:[#allocation62_spill] sm:$0xff] %v13327_v60  ;;  %v11282_v15 = vunpack.i.l.bf16 %v13073_v63  ;;  %v11378_v63 = vunpack.i.h.bf16 %v13116_v32 }
 0x1dd   :  { %v13315_v8 = vpop.permute.xlu1 %11415  ;;  %3268 = vrot.lane.b32.xlu0 %v13303_v18, %s12390_s30  ;;  %v11377_v18 = vunpack.i.l.bf16 %v13116_v32 }
 0x1df   :  { %3318 = vrot.lane.b32.xlu1 %v13311_v28, %s12390_s30  ;;  %v13325_v21 = vpop.permute.xlu0 %11490  ;;  %v13342_v28 = vpack.c.bf16 %v11283_v33, %v11282_v15  ;;  %v13359_v32 = vpack.c.bf16 %v11378_v63, %v11377_v18  ;;  %v11383_v33 = vunpack.i.h.bf16 %v13197_v61  ;;  %v17352_v18 = vpack.c.bf16 %v12666_v38, %v12663_v35 }
 0x1e0   :  { %17343 = vst [vmem:[#allocation61_spill] sm:$0xff] %v13325_v21  ;;  %v11388_v63 = vunpack.i.h.bf16 %v13213_v50  ;;  %v11452_v35 = vunpack.i.l.bf16 %v13190_v19  ;;  %v11393_v50 = vunpack.i.h.bf16 %v13235_v48 }
 0x1e1   :  { %v13331_v24 = vpop.permute.xlu1 %11420  ;;  %3668 = vrot.lane.b32.xlu0 %v13319_v17, %s12390_s30  ;;  %17346 = vst [vmem:[#allocation64_spill] sm:$0xff] %v13342_v28  ;;  %17349 = vst [vmem:[#allocation67_spill] sm:$0xff] %v13359_v32 }
 0x1e3   :  { %3718 = vrot.lane.b32.xlu1 %v13327_v60, %s12390_s30  ;;  %v1769_v22 = vpop.permute.xlu0 %1768 }
 0x1e4   :  { %v1774_v49 = vsel %vm1169_vm2, %v1769_v22, 0  ;;  %v11382_v22 = vunpack.i.l.bf16 %v13197_v61 }
 0x1e5   :  { %v13346_v23 = vpop.permute.xlu1 %11425  ;;  %10389 = vmatpush3.bf16.xpose.msra.mxu0 %v1774_v49  ;;  %4068 = vrot.lane.b32.xlu0 %v13335_v58, %s12390_s30  ;;  %v11453_v58 = vunpack.i.h.bf16 %v13190_v19  ;;  %v11458_v19 = vunpack.i.h.bf16 %v13207_v34  ;;  %v11463_v34 = vunpack.i.h.bf16 %v13227_v62 }
 0x1e6   :  { %10400 = vmatprep.subr.bf16.mxu0 %v17305_v47  ;;  %v13377_v61 = vpack.c.bf16 %v11383_v33, %v11382_v22  ;;  %v13393_v33 = vpack.c.bf16 %v11388_v63, %v11387_v26  ;;  %v11392_v22 = vunpack.i.l.bf16 %v13235_v48  ;;  %v11398_v26 = vunpack.i.h.bf16 %v13251_v59 }
 0x1e7   :  { %4118 = vrot.lane.b32.xlu1 %v13342_v28, %s12390_s30  ;;  %v13357_v15 = vpop.permute.xlu0 %11550  ;;  %v13401_v7 = vpack.c.bf16 %v11453_v58, %v11452_v35  ;;  %v11397_v48 = vunpack.i.l.bf16 %v13251_v59  ;;  %v13414_v35 = vpack.c.bf16 %v11458_v19, %v11457_v29 }
 0x1e8   :  { %17348 = vst [vmem:[#allocation66_spill] sm:$0xff] %v13357_v15  ;;  %17353 = vst [vmem:[#allocation70_spill] sm:$0xff] %v13377_v61  ;;  %v13407_v63 = vpack.c.bf16 %v11393_v50, %v11392_v22  ;;  %v11403_v50 = vunpack.i.h.bf16 %v13267_v11  ;;  %v11402_v22 = vunpack.i.l.bf16 %v13267_v11 }
 0x1e9   :  { %v13363_v49 = vpop.permute.xlu1 %11430  ;;  %2168 = vrot.lane.b32.xlu0 %v13351_v0, %s12390_s30  ;;  %17355 = vst [vmem:[#allocation72_spill] sm:$0xff] %v13393_v33  ;;  %17356 = vst [vmem:[#allocation73_spill] sm:$0xff] %v13401_v7  ;;  %v13421_v59 = vpack.c.bf16 %v11398_v26, %v11397_v48  ;;  %v17402_v0 = vld [vmem:[#allocation16_spill] sm:$0xff] }
 0x1ea   :  { %17350 = vst [vmem:[#allocation68_spill] sm:$0xff] %v13363_v49  ;;  %17357 = vst [vmem:[#allocation74_spill] sm:$0xff] %v13407_v63  ;;  %v11168_v12 = vunpack.i.h.bf16 %v17402_v0  ;;  %v11167_v56 = vunpack.i.l.bf16 %v17402_v0 }
 0x1eb   :  { %v11556_v28 = vpop.permute.xlu0 %11555  ;;  %2218 = vrot.lane.b32.xlu1 %v13359_v32, %s12390_s30  ;;  %17358 = vst [vmem:[#allocation75_spill] sm:$0xff] %v13414_v35  ;;  %17359 = vst [vmem:[#allocation76_spill] sm:$0xff] %v13421_v59 }
 0x1ec   :  { %10391 = vmatmul.mubr.msk.bf16.vlgmr.msra.gmra.mxu0 %vm1169_vm2, %v17352_v18  ;;  %v11557_v29 = vunpack.i.l.bf16 %v11556_v28 }
 0x1ed   :  { %v1419_v6 = vpop.permute.xlu1 %1418  ;;  %2568 = vrot.lane.b32.xlu0 %v13367_v57, %s12390_s30  ;;  %10402 = vmatprep.mubr.msk.bf16.mxu0 %vm12391_vm1, %v17305_v47 }
 0x1ee   :  { %v1424_v11 = vsel %vm1169_vm2, %v1419_v6, 0 }
 0x1ef   :  { %v13389_v38 = vpop.permute.xlu0 %1518  ;;  %2618 = vrot.lane.b32.xlu1 %v13377_v61, %s12390_s30 }
 0x1f1   :  { %v13397_v18 = vpop.permute.xlu1 %1818  ;;  %2968 = vrot.lane.b32.xlu0 %v13385_v4, %s12390_s30  ;;  %v11462_v4 = vunpack.i.l.bf16 %v13227_v62  ;;  %v11558_v62 = vunpack.i.h.bf16 %v11556_v28 }
 0x1f3   :  { %v11561_v60 = vpop.permute.xlu0 %11560  ;;  %3018 = vrot.lane.b32.xlu1 %v13393_v33, %s12390_s30  ;;  %v13427_v19 = vpack.c.bf16 %v11463_v34, %v11462_v4  ;;  %v17362_v33 = vld [vmem:[#allocation7_spill] sm:$0xff]  ;;  %v13440_v28 = vpack.c.bf16 %v11558_v62, %v11557_v29 }
 0x1f4   :  { %v11563_v34 = vunpack.i.h.bf16 %v11561_v60  ;;  %v11562_v57 = vunpack.i.l.bf16 %v11561_v60 }
 0x1f5   :  { %v1369_v17 = vpop.permute.xlu1 %1368  ;;  %3368 = vrot.lane.b32.xlu0 %v13401_v7, %s12390_s30  ;;  %17360 = vst [vmem:[#allocation77_spill] sm:$0xff] %v13427_v19  ;;  %17365 = vst [vmem:[#allocation7_spill] sm:$0xff] %v13440_v28 }
 0x1f6   :  { %v1374_v58 = vsel %vm1169_vm2, %v1369_v17, 0 }
 0x1f7   :  { %v11566_v61 = vpop.permute.xlu0 %11565  ;;  %3418 = vrot.lane.b32.xlu1 %v13407_v63, %s12390_s30  ;;  %10341 = vmatpush3.bf16.xpose.msra.mxu1 %v1374_v58  ;;  %v13431_v58 = vpack.c.bf16 %v11403_v50, %v11402_v22  ;;  %v13451_v22 = vpack.c.bf16 %v11563_v34, %v11562_v57 }
 0x1f8   :  { %10346 = vmatprep.subr.bf16.mxu1 %v17305_v47  ;;  %v11568_v60 = vunpack.i.h.bf16 %v11566_v61 }
 0x1f9   :  { %v11496_v17 = vpop.permute.xlu1 %11495  ;;  %3768 = vrot.lane.b32.xlu0 %v13414_v35, %s12390_s30  ;;  %17361 = vst [vmem:[#allocation78_spill] sm:$0xff] %v13431_v58  ;;  %v17363_v35 = vld [vmem:[#allocation6_spill] sm:$0xff]  ;;  %17367 = vst [vmem:[#allocation79_spill] sm:$0xff] %v13451_v22 }
 0x1fa   :  { %v11498_v26 = vunpack.i.h.bf16 %v11496_v17  ;;  %v11497_v48 = vunpack.i.l.bf16 %v11496_v17  ;;  %v17364_v4 = vpack.c.bf16 %v17362_v33, %v17363_v35  ;;  %v11567_v17 = vunpack.i.l.bf16 %v11566_v61 }
 0x1fb   :  { %v11571_v7 = vpop.permute.xlu0 %11570  ;;  %3818 = vrot.lane.b32.xlu1 %v13421_v59, %s12390_s30 }
 0x1fc   :  { %v13447_v6 = vpack.c.bf16 %v11498_v26, %v11497_v48  ;;  %v13463_v57 = vpack.c.bf16 %v11568_v60, %v11567_v17  ;;  %v11573_v61 = vunpack.i.h.bf16 %v11571_v7  ;;  %v11572_v48 = vunpack.i.l.bf16 %v11571_v7 }
 0x1fd   :  { %v11501_v63 = vpop.permute.xlu1 %11500  ;;  %4168 = vrot.lane.b32.xlu0 %v13427_v19, %s12390_s30 }
 0x1fe   :  { %10343 = vmatmul.mubr.msk.bf16.vlgmr.msra.gmra.mxu1 %vm1169_vm2, %v17364_v4  ;;  %17366 = vst [vmem:[#allocation6_spill] sm:$0xff] %v13447_v6  ;;  %v11503_v50 = vunpack.i.h.bf16 %v11501_v63  ;;  %v11502_v33 = vunpack.i.l.bf16 %v11501_v63  ;;  %v17369_v63 = vpack.c.bf16 %v12676_v42, %v12673_v41  ;;  %17370 = vst [vmem:[#allocation81_spill] sm:$0xff] %v13463_v57  ;;  %v13475_v41 = vpack.c.bf16 %v11573_v61, %v11572_v48 }
 0x1ff   :  { %v11576_v59 = vpop.permute.xlu0 %11575  ;;  %4218 = vrot.lane.b32.xlu1 %v13431_v58, %s12390_s30  ;;  %10347 = vmatpush3.bf16.xpose.msra.mxu1 %v1424_v11 }
 0x200   :  { %10348 = vmatprep.mubr.msk.bf16.mxu1 %vm12391_vm1, %v17305_v47  ;;  %10352 = vmatprep.subr.bf16.mxu1 %v17305_v47  ;;  %v13455_v29 = vpack.c.bf16 %v11503_v50, %v11502_v33  ;;  %17372 = vst [vmem:[#allocation83_spill] sm:$0xff] %v13475_v41  ;;  %v11578_v42 = vunpack.i.h.bf16 %v11576_v59  ;;  %v11577_v7 = vunpack.i.l.bf16 %v11576_v59 }
 0x201   :  { %v11506_v35 = vpop.permute.xlu1 %11505  ;;  %2268 = vrot.lane.b32.xlu0 %v13440_v28, %s12390_s30 }
 0x202   :  { %17368 = vst [vmem:[#allocation80_spill] sm:$0xff] %v13455_v29  ;;  %v11508_v11 = vunpack.i.h.bf16 %v11506_v35  ;;  %v11507_v4 = vunpack.i.l.bf16 %v11506_v35 }
 0x203   :  { %v11581_v62 = vpop.permute.xlu0 %11580  ;;  %2318 = vrot.lane.b32.xlu1 %v13447_v6, %s12390_s30 }
 0x204   :  { %v13471_v50 = vpack.c.bf16 %v11508_v11, %v11507_v4  ;;  %v11583_v58 = vunpack.i.h.bf16 %v11581_v62  ;;  %v11582_v61 = vunpack.i.l.bf16 %v11581_v62 }
 0x205   :  { %v11511_v26 = vpop.permute.xlu1 %11510  ;;  %2668 = vrot.lane.b32.xlu0 %v13451_v22, %s12390_s30 }
 0x206   :  { %10349 = vmatmul.mubr.msk.bf16.vlgmr.msra.gmra.mxu1 %vm1169_vm2, %v17369_v63  ;;  %17371 = vst [vmem:[#allocation82_spill] sm:$0xff] %v13471_v50  ;;  %v11513_v33 = vunpack.i.h.bf16 %v11511_v26  ;;  %v11512_v35 = vunpack.i.l.bf16 %v11511_v26  ;;  %v13485_v26 = vpack.c.bf16 %v11578_v42, %v11577_v7 }
 0x207   :  { %v13465_v34 = vpop.permute.xlu0 %11585  ;;  %2718 = vrot.lane.b32.xlu1 %v13455_v29, %s12390_s30  ;;  %10354 = vmatprep.mubr.msk.bf16.mxu1 %vm12391_vm1, %v17305_v47 }
 0x208   :  { %v13481_v17 = vpack.c.bf16 %v11513_v33, %v11512_v35  ;;  %17374 = vst [vmem:[#allocation85_spill] sm:$0xff] %v13485_v26 }
 0x209   :  { %v11516_v19 = vpop.permute.xlu1 %11515  ;;  %3068 = vrot.lane.b32.xlu0 %v13463_v57, %s12390_s30 }
 0x20a   :  { %17373 = vst [vmem:[#allocation84_spill] sm:$0xff] %v13481_v17  ;;  %v11518_v63 = vunpack.i.h.bf16 %v11516_v19  ;;  %v11517_v11 = vunpack.i.l.bf16 %v11516_v19  ;;  %v13497_v19 = vpack.c.bf16 %v11583_v58, %v11582_v61  ;;  %v17378_v58 = vld [vmem:[#allocation11_spill] sm:$0xff] }
 0x20b   :  { %v13477_v60 = vpop.permute.xlu0 %11590  ;;  %3118 = vrot.lane.b32.xlu1 %v13471_v50, %s12390_s30 }
 0x20c   :  { %v13491_v59 = vpack.c.bf16 %v11518_v63, %v11517_v11  ;;  %17376 = vst [vmem:[#allocation87_spill] sm:$0xff] %v13497_v19 }
 0x20d   :  { %v11521_v4 = vpop.permute.xlu1 %11520  ;;  %3468 = vrot.lane.b32.xlu0 %v13475_v41, %s12390_s30 }
 0x20e   :  { %17375 = vst [vmem:[#allocation86_spill] sm:$0xff] %v13491_v59  ;;  %v11523_v50 = vunpack.i.h.bf16 %v11521_v4  ;;  %v11522_v33 = vunpack.i.l.bf16 %v11521_v4 }
 0x20f   :  { %v13487_v48 = vpop.permute.xlu0 %11595  ;;  %3518 = vrot.lane.b32.xlu1 %v13481_v17, %s12390_s30 }
 0x210   :  { %v13503_v62 = vpack.c.bf16 %v11523_v50, %v11522_v33 }
 0x211   :  { %v13493_v35 = vpop.permute.xlu1 %11525  ;;  %3868 = vrot.lane.b32.xlu0 %v13485_v26, %s12390_s30 }
 0x212   :  { %17377 = vst [vmem:[#allocation88_spill] sm:$0xff] %v13503_v62  ;;  %v11527_v49 = vunpack.i.l.bf16 %v13493_v35 }
 0x213   :  { %v13499_v42 = vpop.permute.xlu0 %11600  ;;  %3918 = vrot.lane.b32.xlu1 %v13491_v59, %s12390_s30 }
 0x215   :  { %v13505_v7 = vpop.permute.xlu1 %11530  ;;  %4268 = vrot.lane.b32.xlu0 %v13497_v19, %s12390_s30 }
 0x217   :  { %v13509_v63 = vpop.permute.xlu0 %11605  ;;  %4318 = vrot.lane.b32.xlu1 %v13503_v62, %s12390_s30 }
 0x219   :  { %v13513_v11 = vpop.permute.xlu1 %11535  ;;  %5981 = vrot.lane.b32.xlu0 %v17378_v58, %s12392_s6 }
 0x21b   :  { %v13517_v4 = vpop.permute.xlu0 %11610  ;;  %6028 = vrot.lane.b32.xlu1 %v12688_v46, %s12392_s6 }
 0x21c   :  { %17379 = vst [vmem:[#allocation11_spill] sm:$0xff] %v13517_v4  ;;  %v11528_v4 = vunpack.i.h.bf16 %v13493_v35 }
 0x21d   :  { %v13521_v50 = vpop.permute.xlu1 %11540  ;;  %6075 = vrot.lane.b32.xlu0 %v12983_v31, %s12392_s6 }
 0x21e   :  { %v741_v21 = vpack.c.bf16 %v11528_v4, %v11527_v49  ;;  %v17408_v49 = vld [vmem:[#allocation18_spill] sm:$0xff] }
 0x21f   :  { %v1469_v61 = vpop.permute.xlu0 %1468  ;;  %6122 = vrot.lane.b32.xlu1 %v13107_v14, %s12392_s6  ;;  %v1524_v14 = vsel %vm1169_vm2, %v13389_v38, 0  ;;  %v11173_v4 = vunpack.i.h.bf16 %v17408_v49 }
 0x220   :  { %v1474_v33 = vsel %vm1169_vm2, %v1469_v61, 0  ;;  %v17381_v61 = vpack.c.bf16 %v12823_v40, %v12820_v36  ;;  %v17384_v40 = vld [vmem:[#allocation19_spill] sm:$0xff] }
 0x221   :  { %v13528_v19 = vpop.permute.xlu1 %11545  ;;  %6169 = vrot.lane.b32.xlu0 %v12992_v9, %s12392_s6  ;;  %10353 = vmatpush3.bf16.xpose.msra.mxu1 %v1474_v33  ;;  %v11228_v36 = vunpack.i.h.bf16 %v17384_v40 }
 0x222   :  { %10358 = vmatprep.subr.bf16.mxu1 %v17305_v47 }
 0x223   :  { %v1869_v46 = vpop.permute.xlu0 %1868 }
 0x224   :  { %v1874_v58 = vsel %vm1169_vm2, %v1869_v46, 0 }
 0x225   :  { %v13534_v62 = vpop.permute.xlu1 %1918  ;;  %10401 = vmatpush3.bf16.xpose.msra.mxu0 %v1874_v58  ;;  %v17383_v58 = vpack.c.bf16 %v12783_v52, %v12777_v37  ;;  %v17385_v37 = vpack.c.bf16 %v12815_v5, %v12812_v39  ;;  %v1724_v39 = vsel %vm1169_vm2, %v13019_v25, 0  ;;  %v17386_v5 = vld [vmem:[#allocation3_spill] sm:$0xff]  ;;  %v1824_v25 = vsel %vm1169_vm2, %v13397_v18, 0 }
 0x226   :  { %10412 = vmatprep.subr.bf16.mxu0 %v17305_v47 }
 0x227   :  { %v13537_v31 = vpop.permute.xlu0 %5887 }
 0x228   :  { %17380 = vst [vmem:[#allocation89_spill] sm:$0xff] %v13537_v31  ;;  %10355 = vmatmul.mubr.msk.bf16.vlgmr.msra.gmra.mxu1 %vm1169_vm2, %v17381_v61 }
 0x229   :  { %v13545_v9 = vpop.permute.xlu1 %5934  ;;  %10359 = vmatpush3.bf16.xpose.msra.mxu1 %v1524_v14  ;;  %10360 = vmatprep.mubr.msk.bf16.mxu1 %vm12391_vm1, %v17305_v47  ;;  %v11227_v14 = vunpack.i.l.bf16 %v17384_v40 }
 0x22a   :  { %17382 = vst [vmem:[#allocation90_spill] sm:$0xff] %v13545_v9  ;;  %10370 = vmatprep.subr.bf16.mxu1 %v17305_v47  ;;  %v17404_v9 = vld [vmem:[#allocation34_spill] sm:$0xff] }
 0x22b   :  { %v1969_v33 = vpop.permute.xlu0 %1968 }
 0x22c   :  { %v1974_v46 = vsel %vm1169_vm2, %v1969_v33, 0  ;;  %10403 = vmatmul.mubr.msk.bf16.vlgmr.msra.gmra.mxu0 %vm1169_vm2, %v17383_v58  ;;  %v1624_v33 = vsel %vm1169_vm2, %v12978_v53, 0 }
 0x22d   :  { %v13555_v38 = vpop.permute.xlu1 %2018  ;;  %10413 = vmatpush3.bf16.xpose.msra.mxu0 %v1974_v46  ;;  %10414 = vmatprep.mubr.msk.bf16.mxu0 %vm12391_vm1, %v17305_v47  ;;  %v734_v46 = vpack.c.bf16 %v11228_v36, %v11227_v14 }
 0x22e   :  { %10424 = vmatprep.subr.bf16.mxu0 %v17305_v47 }
 0x22f   :  { %v13562_v61 = vpop.permute.xlu0 %2368 }
 0x230   :  { %10361 = vmatmul.mubr.msk.bf16.vlgmr.msra.gmra.mxu1 %vm1169_vm2, %v17385_v37 }
 0x231   :  { %v13570_v52 = vpop.permute.xlu1 %2418  ;;  %10371 = vmatpush3.bf16.xpose.msra.mxu1 %v1624_v33  ;;  %10372 = vmatprep.mubr.msk.bf16.mxu1 %vm12391_vm1, %v17305_v47  ;;  %v17387_v33 = vld [vmem:[#allocation2_spill] sm:$0xff] }
 0x232   :  { %10382 = vmatprep.subr.bf16.mxu1 %v17305_v47  ;;  %v17388_v37 = vpack.c.bf16 %v17386_v5, %v17387_v33  ;;  %v17390_v33 = vld [vmem:[#allocation5_spill] sm:$0xff] }
 0x233   :  { %v13575_v58 = vpop.permute.xlu0 %2768 }
 0x234   :  { %10415 = vmatmul.mubr.msk.bf16.vlgmr.msra.gmra.mxu0 %vm1169_vm2, %v734_v46 }
 0x235   :  { %v13578_v40 = vpop.permute.xlu1 %2818  ;;  %10426 = vmatprep.mubr.msk.bf16.mxu0 %vm12391_vm1, %v17305_v47 }
 0x237   :  { %v13582_v53 = vpop.permute.xlu0 %3168 }
 0x238   :  { %10373 = vmatmul.mubr.msk.bf16.vlgmr.msra.gmra.mxu1 %vm1169_vm2, %v17388_v37  ;;  %v17391_v37 = vld [vmem:[#allocation4_spill] sm:$0xff] }
 0x239   :  { %v13590_v36 = vpop.permute.xlu1 %3218  ;;  %10383 = vmatpush3.bf16.xpose.msra.mxu1 %v1724_v39  ;;  %10384 = vmatprep.mubr.msk.bf16.mxu1 %vm12391_vm1, %v17305_v47  ;;  %v17392_v39 = vpack.c.bf16 %v17390_v33, %v17391_v37  ;;  %v11348_v37 = vunpack.i.h.bf16 %v13159_v3 }
 0x23a   :  { %10394 = vmatprep.subr.bf16.mxu1 %v17305_v47 }
 0x23b   :  { %v13595_v14 = vpop.permute.xlu0 %3568 }
 0x23d   :  { %v13597_v46 = vpop.permute.xlu1 %3618 }
 0x23f   :  { %v13599_v59 = vpop.permute.xlu0 %3968 }
 0x240   :  { %v13603_v5 = vpop.f32.mrf.mxu0  ;;  %10385 = vmatmul.mubr.msk.bf16.vlgmr.msra.gmra.mxu1 %vm1169_vm2, %v17392_v39 }
 0x241   :  { %17389 = vst [vmem:[#allocation19_spill] sm:$0xff] %v13603_v5  ;;  %v13609_v26 = vpop.permute.xlu1 %4018  ;;  %10395 = vmatpush3.bf16.xpose.msra.mxu1 %v1824_v25  ;;  %v4416_v17 = vsel %vm4367_vm3, %v13603_v5, -inf  ;;  %10396 = vmatprep.mubr.msk.bf16.mxu1 %vm12391_vm1, %v17305_v47  ;;  %v11347_v25 = vunpack.i.l.bf16 %v13159_v3 }
 0x242   :  { %v10368_v41 = vpop.f32.mrf.mxu0  ;;  %10406 = vmatprep.subr.bf16.mxu1 %v17305_v47 }
 0x243   :  { %v2069_v18 = vpop.permute.xlu0 %2068  ;;  %4417 = vmax.xlane.f32.xlu1 %v4416_v17 }
 0x244   :  { %v2074_v57 = vsel %vm1169_vm2, %v2069_v18, 0  ;;  %v13617_v29 = vpop.f32.mrf.mxu0  ;;  %v1924_v18 = vsel %vm1169_vm2, %v13534_v62, 0 }
 0x245   :  { %17393 = vst [vmem:[#allocation3_spill] sm:$0xff] %v13617_v29  ;;  %v2119_v33 = vpop.permute.xlu1 %2118  ;;  %10425 = vmatpush3.bf16.xpose.msra.mxu0 %v2074_v57  ;;  %v17396_v57 = vpack.c.bf16 %v12682_v44, %v17395_v20  ;;  %v4419_v44 = vsel %vm4367_vm3, %v13617_v29, -inf }
 0x246   :  { %v13621_v39 = vpop.f32.mrf.mxu1  ;;  %v10369_v22 = vpop.f32.mrf.mxu0  ;;  %10436 = vmatprep.subr.bf16.mxu0 %v17305_v47 }
 0x247   :  { %17394 = vst [vmem:[#allocation2_spill] sm:$0xff] %v13621_v39  ;;  %v13624_v41 = vpop.permute.xlu0 %2468  ;;  %v4368_v17 = vsel %vm4367_vm3, %v13621_v39, -inf  ;;  %v736_v22 = vpack.c.bf16 %v11348_v37, %v11347_v25  ;;  %v11587_v39 = vunpack.i.l.bf16 %v13465_v34 }
 0x248   :  { %10397 = vmatmul.mubr.msk.bf16.vlgmr.msra.gmra.mxu1 %vm1169_vm2, %v17396_v57  ;;  %4369 = vmax.xlane.f32.xlu0 %v4368_v17  ;;  %v10320_v3 = vpop.f32.mrf.mxu1  ;;  %v2024_v57 = vsel %vm1169_vm2, %v13555_v38, 0 }
 0x249   :  { %v13634_v6 = vpop.permute.xlu1 %2518  ;;  %10407 = vmatpush3.bf16.xpose.msra.mxu1 %v1924_v18  ;;  %10408 = vmatprep.mubr.msk.bf16.mxu1 %vm12391_vm1, %v17305_v47  ;;  %v17399_v3 = vld [vmem:[#allocation14_spill] sm:$0xff] }
 0x24a   :  { %v13638_v28 = vpop.f32.mrf.mxu1  ;;  %10418 = vmatprep.subr.bf16.mxu1 %v17305_v47 }
 0x24b   :  { %17397 = vst [vmem:[#allocation5_spill] sm:$0xff] %v13638_v28  ;;  %v13641_v32 = vpop.permute.xlu0 %2868  ;;  %v4371_v20 = vsel %vm4367_vm3, %v13638_v28, -inf }
 0x24c   :  { %10427 = vmatmul.mubr.msk.bf16.vlgmr.msra.gmra.mxu0 %vm1169_vm2, %v736_v22  ;;  %4420 = vmax.xlane.f32.xlu0 %v4419_v44  ;;  %v10321_v62 = vpop.f32.mrf.mxu1  ;;  %v17400_v22 = vld [vmem:[#allocation13_spill] sm:$0xff] }
 0x24d   :  { %4372 = vmax.xlane.f32.xlu1 %v4371_v20  ;;  %v13648_v17 = vpop.permute.xlu1 %2918  ;;  %10438 = vmatprep.mubr.msk.bf16.mxu0 %vm12391_vm1, %v17305_v47  ;;  %v17401_v44 = vpack.c.bf16 %v17399_v3, %v17400_v22 }
 0x24e   :  { %v13652_v37 = vpop.f32.mrf.mxu1 }
 0x24f   :  { %17398 = vst [vmem:[#allocation4_spill] sm:$0xff] %v13652_v37  ;;  %v13654_v25 = vpop.permute.xlu0 %3268  ;;  %v4374_v18 = vsel %vm4367_vm3, %v13652_v37, -inf  ;;  %v11288_v37 = vunpack.i.h.bf16 %v17404_v9 }
 0x250   :  { %10409 = vmatmul.mubr.msk.bf16.vlgmr.msra.gmra.mxu1 %vm1169_vm2, %v17401_v44  ;;  %4375 = vmax.xlane.f32.xlu0 %v4374_v18  ;;  %v10326_v20 = vpop.f32.mrf.mxu1 }
 0x251   :  { %v13664_v62 = vpop.permute.xlu1 %3318  ;;  %10419 = vmatpush3.bf16.xpose.msra.mxu1 %v2024_v57  ;;  %10420 = vmatprep.mubr.msk.bf16.mxu1 %vm12391_vm1, %v17305_v47  ;;  %v735_v57 = vpack.c.bf16 %v11168_v12, %v11167_v56  ;;  %v2124_v20 = vsel %vm1169_vm2, %v2119_v33, 0 }
 0x252   :  { %v13670_v13 = vpop.f32.mrf.mxu1  ;;  %10430 = vmatprep.subr.bf16.mxu1 %v17305_v47 }
 0x253   :  { %17403 = vst [vmem:[#allocation8_spill] sm:$0xff] %v13670_v13  ;;  %v13673_v38 = vpop.permute.xlu0 %3668  ;;  %v4377_v18 = vsel %vm4367_vm3, %v13670_v13, -inf  ;;  %v11467_v13 = vunpack.i.l.bf16 %v13245_v54 }
 0x254   :  { %4378 = vmax.xlane.f32.xlu0 %v4377_v18  ;;  %v10327_v3 = vpop.f32.mrf.mxu1  ;;  %v11287_v18 = vunpack.i.l.bf16 %v17404_v9 }
 0x255   :  { %v13677_v22 = vpop.permute.xlu1 %3718 }
 0x256   :  { %v737_v33 = vpack.c.bf16 %v11288_v37, %v11287_v18  ;;  %v11408_v37 = vunpack.i.h.bf16 %v13283_v55  ;;  %v11407_v18 = vunpack.i.l.bf16 %v13283_v55 }
 0x257   :  { %v13679_v44 = vpop.permute.xlu0 %4068 }
 0x258   :  { %10421 = vmatmul.mubr.msk.bf16.vlgmr.msra.gmra.mxu1 %vm1169_vm2, %v735_v57  ;;  %v11468_v57 = vunpack.i.h.bf16 %v13245_v54 }
 0x259   :  { %v13683_v0 = vpop.permute.xlu1 %4118  ;;  %10431 = vmatpush3.bf16.xpose.msra.mxu1 %v2124_v20  ;;  %10432 = vmatprep.mubr.msk.bf16.mxu1 %vm12391_vm1, %v17305_v47 }
 0x25a   :  { %10442 = vmatprep.subr.bf16.mxu1 %v17305_v47 }
 0x25b   :  { %v2169_v3 = vpop.permute.xlu0 %2168 }
 0x25c   :  { %v2174_v56 = vsel %vm1169_vm2, %v2169_v3, 0  ;;  %v738_v3 = vpack.c.bf16 %v11468_v57, %v11467_v13 }
 0x25d   :  { %v2219_v12 = vpop.permute.xlu1 %2218  ;;  %10437 = vmatpush3.bf16.xpose.msra.mxu0 %v2174_v56 }
 0x25e   :  { %10448 = vmatprep.subr.bf16.mxu0 %v17305_v47  ;;  %v2224_v29 = vsel %vm1169_vm2, %v2219_v12, 0 }
 0x25f   :  { %v13694_v20 = vpop.permute.xlu0 %2568 }
 0x260   :  { %10433 = vmatmul.mubr.msk.bf16.vlgmr.msra.gmra.mxu1 %vm1169_vm2, %v737_v33 }
 0x261   :  { %v13698_v9 = vpop.permute.xlu1 %2618  ;;  %10443 = vmatpush3.bf16.xpose.msra.mxu1 %v2224_v29  ;;  %10444 = vmatprep.mubr.msk.bf16.mxu1 %vm12391_vm1, %v17305_v47  ;;  %v739_v29 = vpack.c.bf16 %v11408_v37, %v11407_v18 }
 0x262   :  { %10454 = vmatprep.subr.bf16.mxu1 %v17305_v47 }
 0x263   :  { %v13705_v54 = vpop.permute.xlu0 %2968 }
 0x264   :  { %10439 = vmatmul.mubr.msk.bf16.vlgmr.msra.gmra.mxu0 %vm1169_vm2, %v738_v3 }
 0x265   :  { %v13708_v56 = vpop.permute.xlu1 %3018  ;;  %10450 = vmatprep.mubr.msk.bf16.mxu0 %vm12391_vm1, %v17305_v47 }
 0x267   :  { %v13712_v12 = vpop.permute.xlu0 %3368 }
 0x268   :  { %10445 = vmatmul.mubr.msk.bf16.vlgmr.msra.gmra.mxu1 %vm1169_vm2, %v739_v29  ;;  %v11588_v29 = vunpack.i.h.bf16 %v13465_v34  ;;  %v2374_v34 = vsel %vm1169_vm2, %v13562_v61, 0  ;;  %v11172_v61 = vunpack.i.l.bf16 %v17408_v49 }
 0x269   :  { %v13715_v13 = vpop.permute.xlu1 %3418  ;;  %10456 = vmatprep.mubr.msk.bf16.mxu1 %vm12391_vm1, %v17305_v47 }
 0x26b   :  { %v13719_v55 = vpop.permute.xlu0 %3768 }
 0x26d   :  { %v13721_v33 = vpop.permute.xlu1 %3818 }
 0x26f   :  { %v13723_v57 = vpop.permute.xlu0 %4168 }
 0x270   :  { %17405 = vst [vmem:[#allocation14_spill] sm:$0xff] %v13723_v57 }
 0x271   :  { %v13725_v3 = vpop.permute.xlu1 %4218 }
 0x272   :  { %17406 = vst [vmem:[#allocation13_spill] sm:$0xff] %v13725_v3 }
 0x273   :  { %v2269_v28 = vpop.permute.xlu0 %2268 }
 0x274   :  { %v2274_v37 = vsel %vm1169_vm2, %v2269_v28, 0  ;;  %v13728_v18 = vpop.f32.mrf.mxu1  ;;  %v740_v28 = vpack.c.bf16 %v11588_v29, %v11587_v39 }
 0x275   :  { %v2319_v5 = vpop.permute.xlu1 %2318  ;;  %10449 = vmatpush3.bf16.xpose.msra.mxu0 %v2274_v37 }
 0x276   :  { %v2324_v31 = vsel %vm1169_vm2, %v2319_v5, 0  ;;  %v10332_v15 = vpop.f32.mrf.mxu1  ;;  %10460 = vmatprep.subr.bf16.mxu0 %v17305_v47  ;;  %v2424_v5 = vsel %vm1169_vm2, %v13570_v52, 0  ;;  %v743_v52 = vpack.c.bf16 %v11173_v4, %v11172_v61 }
 0x277   :  { %10455 = vmatpush3.bf16.xpose.msra.mxu1 %v2324_v31  ;;  %v17407_v15 = vld [vmem:[#allocation21_spill] sm:$0xff] }
 0x278   :  { %v13736_v3 = vpop.f32.mrf.mxu1  ;;  %10466 = vmatprep.subr.bf16.mxu1 %v17305_v47  ;;  %v11233_v35 = vunpack.i.h.bf16 %v17407_v15  ;;  %v11232_v31 = vunpack.i.l.bf16 %v17407_v15 }
 0x27a   :  { %v10333_v37 = vpop.f32.mrf.mxu1 }
 0x27c   :  { %v13741_v57 = vpop.f32.mrf.mxu1  ;;  %10451 = vmatmul.mubr.msk.bf16.vlgmr.msra.gmra.mxu0 %vm1169_vm2, %v740_v28  ;;  %v742_v28 = vpack.c.bf16 %v11233_v35, %v11232_v31  ;;  %v17410_v35 = vld [vmem:[#allocation36_spill] sm:$0xff] }
 0x27d   :  { %10461 = vmatpush3.bf16.xpose.msra.mxu0 %v2374_v34  ;;  %10462 = vmatprep.mubr.msk.bf16.mxu0 %vm12391_vm1, %v17305_v47  ;;  %v17409_v34 = vld [vmem:[#allocation32_spill] sm:$0xff]  ;;  %v11293_v31 = vunpack.i.h.bf16 %v17410_v35  ;;  %v11292_v4 = vunpack.i.l.bf16 %v17410_v35  ;;  %v11413_v35 = vunpack.i.h.bf16 %v13299_v16 }
 0x27e   :  { %v10338_v39 = vpop.f32.mrf.mxu1  ;;  %10457 = vmatmul.mubr.msk.bf16.vlgmr.msra.gmra.mxu1 %vm1169_vm2, %v741_v21  ;;  %10472 = vmatprep.subr.bf16.mxu0 %v17305_v47  ;;  %v2474_v21 = vsel %vm1169_vm2, %v13624_v41, 0  ;;  %v11353_v15 = vunpack.i.h.bf16 %v17409_v34 }
 0x27f   :  { %10467 = vmatpush3.bf16.xpose.msra.mxu1 %v2424_v5  ;;  %10468 = vmatprep.mubr.msk.bf16.mxu1 %vm12391_vm1, %v17305_v47  ;;  %v11352_v5 = vunpack.i.l.bf16 %v17409_v34  ;;  %v2524_v39 = vsel %vm1169_vm2, %v13634_v6, 0 }
 0x280   :  { %v13756_v29 = vpop.f32.mrf.mxu1  ;;  %10478 = vmatprep.subr.bf16.mxu1 %v17305_v47 }
 0x281   :  { %v744_v6 = vpack.c.bf16 %v11353_v15, %v11352_v5  ;;  %v11473_v15 = vunpack.i.h.bf16 %v13261_v10  ;;  %v11472_v5 = vunpack.i.l.bf16 %v13261_v10  ;;  %v2669_v10 = vpop.permute.xlu0 %2668 }
 0x282   :  { %v10339_v37 = vpop.f32.mrf.mxu1 }
 0x284   :  { %10463 = vmatmul.mubr.msk.bf16.vlgmr.msra.gmra.mxu0 %vm1169_vm2, %v742_v28 }
 0x285   :  { %10473 = vmatpush3.bf16.xpose.msra.mxu0 %v2474_v21  ;;  %10474 = vmatprep.mubr.msk.bf16.mxu0 %vm12391_vm1, %v17305_v47  ;;  %v2574_v21 = vsel %vm1169_vm2, %v13694_v20, 0  ;;  %v4383_v20 = vsel %vm4367_vm3, %v13736_v3, -inf }
 0x286   :  { %v13768_v49 = vpop.f32.mrf.mxu0  ;;  %10469 = vmatmul.mubr.msk.bf16.vlgmr.msra.gmra.mxu1 %vm1169_vm2, %v743_v52  ;;  %10484 = vmatprep.subr.bf16.mxu0 %v17305_v47  ;;  %v745_v52 = vpack.c.bf16 %v11293_v31, %v11292_v4  ;;  %v11412_v31 = vunpack.i.l.bf16 %v13299_v16  ;;  %v2719_v4 = vpop.permute.xlu1 %2718  ;;  %v11593_v16 = vunpack.i.h.bf16 %v13477_v60 }
 0x287   :  { %10479 = vmatpush3.bf16.xpose.msra.mxu1 %v2524_v39  ;;  %v4428_v41 = vsel %vm4367_vm3, %v13768_v49, -inf  ;;  %10480 = vmatprep.mubr.msk.bf16.mxu1 %vm12391_vm1, %v17305_v47  ;;  %v4380_v39 = vsel %vm4367_vm3, %v13728_v18, -inf }
 0x288   :  { %v10380_v61 = vpop.f32.mrf.mxu0  ;;  %4429 = vmax.xlane.f32.xlu1 %v4428_v41  ;;  %10490 = vmatprep.subr.bf16.mxu1 %v17305_v47  ;;  %v2624_v41 = vsel %vm1169_vm2, %v13698_v9, 0  ;;  %v746_v9 = vpack.c.bf16 %v11473_v15, %v11472_v5  ;;  %v17411_v5 = vld [vmem:[#allocation23_spill] sm:$0xff] }
 0x289   :  { %v747_v61 = vpack.c.bf16 %v11413_v35, %v11412_v31 }
 0x28a   :  { %v13779_v28 = vpop.f32.mrf.mxu0 }
 0x28b   :  { %v4431_v37 = vsel %vm4367_vm3, %v13779_v28, -inf }
 0x28c   :  { %v10381_v34 = vpop.f32.mrf.mxu0  ;;  %10475 = vmatmul.mubr.msk.bf16.vlgmr.msra.gmra.mxu0 %vm1169_vm2, %v744_v6  ;;  %4432 = vmax.xlane.f32.xlu0 %v4431_v37  ;;  %v2674_v6 = vsel %vm1169_vm2, %v2669_v10, 0  ;;  %v11592_v37 = vunpack.i.l.bf16 %v13477_v60  ;;  %v2774_v60 = vsel %vm1169_vm2, %v13575_v58, 0  ;;  %v17412_v58 = vld [vmem:[#allocation20_spill] sm:$0xff] }
 0x28d   :  { %4381 = vmax.xlane.f32.xlu1 %v4380_v39  ;;  %10485 = vmatpush3.bf16.xpose.msra.mxu0 %v2574_v21  ;;  %v11533_v21 = vunpack.i.h.bf16 %v13505_v7  ;;  %v11532_v34 = vunpack.i.l.bf16 %v13505_v7  ;;  %v2824_v7 = vsel %vm1169_vm2, %v13578_v40, 0  ;;  %v11178_v35 = vunpack.i.h.bf16 %v17412_v58  ;;  %v17413_v40 = vld [vmem:[#allocation33_spill] sm:$0xff] }
 0x28e   :  { %10481 = vmatmul.mubr.msk.bf16.vlgmr.msra.gmra.mxu1 %vm1169_vm2, %v745_v52  ;;  %10486 = vmatprep.mubr.msk.bf16.mxu0 %vm12391_vm1, %v17305_v47  ;;  %v2724_v52 = vsel %vm1169_vm2, %v2719_v4, 0  ;;  %v748_v39 = vpack.c.bf16 %v11593_v16, %v11592_v37  ;;  %v11177_v31 = vunpack.i.l.bf16 %v17412_v58  ;;  %v2874_v4 = vsel %vm1169_vm2, %v13641_v32, 0  ;;  %v17414_v32 = vld [vmem:[#allocation38_spill] sm:$0xff] }
 0x28f   :  { %10491 = vmatpush3.bf16.xpose.msra.mxu1 %v2624_v41  ;;  %10496 = vmatprep.subr.bf16.mxu0 %v17305_v47  ;;  %v749_v15 = vpack.c.bf16 %v11533_v21, %v11532_v34  ;;  %v11238_v41 = vunpack.i.h.bf16 %v17411_v5  ;;  %v2924_v16 = vsel %vm1169_vm2, %v13648_v17, 0  ;;  %v11298_v37 = vunpack.i.h.bf16 %v17414_v32 }
 0x290   :  { %4384 = vmax.xlane.f32.xlu0 %v4383_v20  ;;  %10492 = vmatprep.mubr.msk.bf16.mxu1 %vm12391_vm1, %v17305_v47  ;;  %v11237_v20 = vunpack.i.l.bf16 %v17411_v5  ;;  %v11477_v5 = vunpack.i.l.bf16 %v13277_v30 }
 0x291   :  { %10502 = vmatprep.subr.bf16.mxu1 %v17305_v47 }
 0x292   :  { %v750_v10 = vpack.c.bf16 %v11238_v41, %v11237_v20  ;;  %v3024_v41 = vsel %vm1169_vm2, %v13708_v56, 0 }
 0x294   :  { %10487 = vmatmul.mubr.msk.bf16.vlgmr.msra.gmra.mxu0 %vm1169_vm2, %v746_v9  ;;  %v751_v9 = vpack.c.bf16 %v11178_v35, %v11177_v31  ;;  %v4386_v35 = vsel %vm4367_vm3, %v13741_v57, -inf }
 0x295   :  { %10497 = vmatpush3.bf16.xpose.msra.mxu0 %v2674_v6  ;;  %10498 = vmatprep.mubr.msk.bf16.mxu0 %vm12391_vm1, %v17305_v47  ;;  %v11357_v6 = vunpack.i.l.bf16 %v17413_v40 }
 0x296   :  { %10493 = vmatmul.mubr.msk.bf16.vlgmr.msra.gmra.mxu1 %vm1169_vm2, %v747_v61  ;;  %10508 = vmatprep.subr.bf16.mxu0 %v17305_v47  ;;  %v11358_v61 = vunpack.i.h.bf16 %v17413_v40  ;;  %v4389_v40 = vsel %vm4367_vm3, %v13756_v29, -inf }
 0x297   :  { %10503 = vmatpush3.bf16.xpose.msra.mxu1 %v2724_v52  ;;  %10504 = vmatprep.mubr.msk.bf16.mxu1 %vm12391_vm1, %v17305_v47  ;;  %v11297_v52 = vunpack.i.l.bf16 %v17414_v32  ;;  %v11538_v32 = vunpack.i.h.bf16 %v13513_v11 }
 0x298   :  { %10514 = vmatprep.subr.bf16.mxu1 %v17305_v47  ;;  %v752_v21 = vpack.c.bf16 %v11358_v61, %v11357_v6  ;;  %v11598_v61 = vunpack.i.h.bf16 %v13487_v48  ;;  %v11597_v6 = vunpack.i.l.bf16 %v13487_v48  ;;  %v3174_v48 = vsel %vm1169_vm2, %v13582_v53, 0  ;;  %v17416_v53 = vld [vmem:[#allocation22_spill] sm:$0xff] }
 0x299   :  { %v753_v34 = vpack.c.bf16 %v11298_v37, %v11297_v52  ;;  %v11537_v37 = vunpack.i.l.bf16 %v13513_v11 }
 0x29a   :  { %v756_v52 = vpack.c.bf16 %v11598_v61, %v11597_v6 }
 0x29c   :  { %10499 = vmatmul.mubr.msk.bf16.vlgmr.msra.gmra.mxu0 %vm1169_vm2, %v748_v39  ;;  %v2974_v39 = vsel %vm1169_vm2, %v13705_v54, 0  ;;  %v11418_v54 = vunpack.i.h.bf16 %v13315_v8 }
 0x29d   :  { %10509 = vmatpush3.bf16.xpose.msra.mxu0 %v2774_v60  ;;  %10510 = vmatprep.mubr.msk.bf16.mxu0 %vm12391_vm1, %v17305_v47  ;;  %v11478_v60 = vunpack.i.h.bf16 %v13277_v30  ;;  %v3069_v30 = vpop.permute.xlu0 %3068 }
 0x29e   :  { %10505 = vmatmul.mubr.msk.bf16.vlgmr.msra.gmra.mxu1 %vm1169_vm2, %v749_v15  ;;  %10520 = vmatprep.subr.bf16.mxu0 %v17305_v47 }
 0x29f   :  { %10515 = vmatpush3.bf16.xpose.msra.mxu1 %v2824_v7  ;;  %10516 = vmatprep.mubr.msk.bf16.mxu1 %vm12391_vm1, %v17305_v47  ;;  %v11417_v7 = vunpack.i.l.bf16 %v13315_v8  ;;  %v754_v31 = vpack.c.bf16 %v11478_v60, %v11477_v5  ;;  %v11183_v5 = vunpack.i.h.bf16 %v17416_v53 }
 0x2a0   :  { %10526 = vmatprep.subr.bf16.mxu1 %v17305_v47 }
 0x2a1   :  { %v755_v8 = vpack.c.bf16 %v11418_v54, %v11417_v7 }
 0x2a4   :  { %10511 = vmatmul.mubr.msk.bf16.vlgmr.msra.gmra.mxu0 %vm1169_vm2, %v750_v10 }
 0x2a5   :  { %10521 = vmatpush3.bf16.xpose.msra.mxu0 %v2874_v4  ;;  %10522 = vmatprep.mubr.msk.bf16.mxu0 %vm12391_vm1, %v17305_v47  ;;  %v3074_v4 = vsel %vm1169_vm2, %v3069_v30, 0  ;;  %v3274_v30 = vsel %vm1169_vm2, %v13654_v25, 0  ;;  %v11303_v25 = vunpack.i.h.bf16 %v13100_v2 }
 0x2a6   :  { %10517 = vmatmul.mubr.msk.bf16.vlgmr.msra.gmra.mxu1 %vm1169_vm2, %v751_v9  ;;  %10532 = vmatprep.subr.bf16.mxu0 %v17305_v47  ;;  %v3119_v9 = vpop.permute.xlu1 %3118 }
 0x2a7   :  { %10527 = vmatpush3.bf16.xpose.msra.mxu1 %v2924_v16  ;;  %10528 = vmatprep.mubr.msk.bf16.mxu1 %vm12391_vm1, %v17305_v47  ;;  %v3124_v16 = vsel %vm1169_vm2, %v3119_v9, 0  ;;  %v3324_v9 = vsel %vm1169_vm2, %v13664_v62, 0 }
 0x2a8   :  { %10538 = vmatprep.subr.bf16.mxu1 %v17305_v47 }
 0x2ac   :  { %v13851_v17 = vpop.f32.mrf.mxu0  ;;  %10523 = vmatmul.mubr.msk.bf16.vlgmr.msra.gmra.mxu0 %vm1169_vm2, %v752_v21  ;;  %v757_v21 = vpack.c.bf16 %v11538_v32, %v11537_v37  ;;  %v11483_v37 = vunpack.i.h.bf16 %v13293_v27 }
 0x2ad   :  { %10533 = vmatpush3.bf16.xpose.msra.mxu0 %v2974_v39  ;;  %v4440_v15 = vsel %vm4367_vm3, %v13851_v17, -inf  ;;  %10534 = vmatprep.mubr.msk.bf16.mxu0 %vm12391_vm1, %v17305_v47 }
 0x2ae   :  { %v10392_v20 = vpop.f32.mrf.mxu0  ;;  %10529 = vmatmul.mubr.msk.bf16.vlgmr.msra.gmra.mxu1 %vm1169_vm2, %v753_v34  ;;  %4441 = vmax.xlane.f32.xlu1 %v4440_v15  ;;  %v17415_v34 = vld [vmem:[#allocation25_spill] sm:$0xff]  ;;  %v3224_v15 = vsel %vm1169_vm2, %v13590_v36, 0 }
 0x2af   :  { %10539 = vmatpush3.bf16.xpose.msra.mxu1 %v3024_v41  ;;  %10544 = vmatprep.subr.bf16.mxu0 %v17305_v47  ;;  %v11243_v39 = vunpack.i.h.bf16 %v17415_v34  ;;  %v11242_v11 = vunpack.i.l.bf16 %v17415_v34  ;;  %v11182_v41 = vunpack.i.l.bf16 %v17416_v53  ;;  %v11543_v53 = vunpack.i.h.bf16 %v13521_v50 }
 0x2b0   :  { %v13866_v58 = vpop.f32.mrf.mxu0  ;;  %10540 = vmatprep.mubr.msk.bf16.mxu1 %vm12391_vm1, %v17305_v47  ;;  %10550 = vmatprep.subr.bf16.mxu1 %v17305_v47 }
 0x2b1   :  { %v4443_v56 = vsel %vm4367_vm3, %v13866_v58, -inf  ;;  %v758_v54 = vpack.c.bf16 %v11243_v39, %v11242_v11  ;;  %v759_v36 = vpack.c.bf16 %v11183_v5, %v11182_v41  ;;  %v11603_v11 = vunpack.i.h.bf16 %v13499_v42 }
 0x2b2   :  { %v10393_v10 = vpop.f32.mrf.mxu0  ;;  %4444 = vmax.xlane.f32.xlu0 %v4443_v56  ;;  %4387 = vmax.xlane.f32.xlu1 %v4386_v35  ;;  %v17417_v35 = vld [vmem:[#allocation35_spill] sm:$0xff]  ;;  %v11542_v5 = vunpack.i.l.bf16 %v13521_v50  ;;  %v3624_v50 = vsel %vm1169_vm2, %v13597_v46, 0  ;;  %v17420_v46 = vld [vmem:[#allocation37_spill] sm:$0xff] }
 0x2b3   :  { %v11362_v10 = vunpack.i.l.bf16 %v17417_v35 }
 0x2b4   :  { %10535 = vmatmul.mubr.msk.bf16.vlgmr.msra.gmra.mxu0 %vm1169_vm2, %v754_v31  ;;  %v11363_v31 = vunpack.i.h.bf16 %v17417_v35 }
 0x2b5   :  { %10545 = vmatpush3.bf16.xpose.msra.mxu0 %v3074_v4  ;;  %10546 = vmatprep.mubr.msk.bf16.mxu0 %vm12391_vm1, %v17305_v47  ;;  %v11302_v4 = vunpack.i.l.bf16 %v13100_v2  ;;  %v11482_v2 = vunpack.i.l.bf16 %v13293_v27  ;;  %v3519_v27 = vpop.permute.xlu1 %3518 }
 0x2b6   :  { %10541 = vmatmul.mubr.msk.bf16.vlgmr.msra.gmra.mxu1 %vm1169_vm2, %v755_v8  ;;  %4390 = vmax.xlane.f32.xlu0 %v4389_v40  ;;  %v760_v61 = vpack.c.bf16 %v11363_v31, %v11362_v10 }
 0x2b7   :  { %10551 = vmatpush3.bf16.xpose.msra.mxu1 %v3124_v16  ;;  %10556 = vmatprep.subr.bf16.mxu0 %v17305_v47  ;;  %v761_v62 = vpack.c.bf16 %v11303_v25, %v11302_v4  ;;  %v3374_v16 = vsel %vm1169_vm2, %v13712_v12, 0  ;;  %v11423_v12 = vunpack.i.h.bf16 %v13331_v24  ;;  %v762_v34 = vpack.c.bf16 %v11483_v37, %v11482_v2 }
 0x2b8   :  { %10552 = vmatprep.mubr.msk.bf16.mxu1 %vm12391_vm1, %v17305_v47  ;;  %10562 = vmatprep.subr.bf16.mxu1 %v17305_v47  ;;  %v11368_v25 = vunpack.i.h.bf16 %v17420_v46  ;;  %v11367_v4 = vunpack.i.l.bf16 %v17420_v46 }
 0x2bc   :  { %10547 = vmatmul.mubr.msk.bf16.vlgmr.msra.gmra.mxu0 %vm1169_vm2, %v756_v52  ;;  %v3424_v52 = vsel %vm1169_vm2, %v13715_v13, 0 }
 0x2bd   :  { %10557 = vmatpush3.bf16.xpose.msra.mxu0 %v3174_v48  ;;  %10558 = vmatprep.mubr.msk.bf16.mxu0 %vm12391_vm1, %v17305_v47  ;;  %v3469_v48 = vpop.permute.xlu0 %3468 }
 0x2be   :  { %v13900_v60 = vpop.f32.mrf.mxu1  ;;  %10553 = vmatmul.mubr.msk.bf16.vlgmr.msra.gmra.mxu1 %vm1169_vm2, %v757_v21  ;;  %10568 = vmatprep.subr.bf16.mxu0 %v17305_v47  ;;  %v11422_v21 = vunpack.i.l.bf16 %v13331_v24  ;;  %v3474_v13 = vsel %vm1169_vm2, %v3469_v48, 0  ;;  %v3524_v24 = vsel %vm1169_vm2, %v3519_v27, 0  ;;  %v11428_v27 = vunpack.i.h.bf16 %v13346_v23 }
 0x2bf   :  { %10563 = vmatpush3.bf16.xpose.msra.mxu1 %v3224_v15  ;;  %10564 = vmatprep.mubr.msk.bf16.mxu1 %vm12391_vm1, %v17305_v47  ;;  %v11602_v15 = vunpack.i.l.bf16 %v13499_v42  ;;  %v3574_v42 = vsel %vm1169_vm2, %v13595_v14, 0  ;;  %v17419_v14 = vld [vmem:[#allocation24_spill] sm:$0xff] }
 0x2c0   :  { %v10344_v20 = vpop.f32.mrf.mxu1  ;;  %10574 = vmatprep.subr.bf16.mxu1 %v17305_v47  ;;  %v763_v39 = vpack.c.bf16 %v11423_v12, %v11422_v21  ;;  %v11187_v35 = vunpack.i.l.bf16 %v17419_v14  ;;  %v11488_v12 = vunpack.i.h.bf16 %v13309_v43  ;;  %v11487_v21 = vunpack.i.l.bf16 %v13309_v43 }
 0x2c1   :  { %v764_v41 = vpack.c.bf16 %v11603_v11, %v11602_v15  ;;  %v765_v20 = vpack.c.bf16 %v11543_v53, %v11542_v5  ;;  %v3869_v43 = vpop.permute.xlu0 %3868  ;;  %v4392_v15 = vsel %vm4367_vm3, %v13900_v60, -inf  ;;  %v3919_v5 = vpop.permute.xlu1 %3918 }
 0x2c2   :  { %v13909_v7 = vpop.f32.mrf.mxu1 }
 0x2c4   :  { %v10345_v56 = vpop.f32.mrf.mxu1  ;;  %10559 = vmatmul.mubr.msk.bf16.vlgmr.msra.gmra.mxu0 %vm1169_vm2, %v758_v54  ;;  %v17418_v54 = vld [vmem:[#allocation27_spill] sm:$0xff] }
 0x2c5   :  { %10569 = vmatpush3.bf16.xpose.msra.mxu0 %v3274_v30  ;;  %10570 = vmatprep.mubr.msk.bf16.mxu0 %vm12391_vm1, %v17305_v47  ;;  %v11247_v30 = vunpack.i.l.bf16 %v17418_v54  ;;  %v11188_v56 = vunpack.i.h.bf16 %v17419_v14  ;;  %v3924_v14 = vsel %vm1169_vm2, %v3919_v5, 0 }
 0x2c6   :  { %v13920_v8 = vpop.f32.mrf.mxu1  ;;  %10565 = vmatmul.mubr.msk.bf16.vlgmr.msra.gmra.mxu1 %vm1169_vm2, %v759_v36  ;;  %10580 = vmatprep.subr.bf16.mxu0 %v17305_v47  ;;  %v11248_v36 = vunpack.i.h.bf16 %v17418_v54 }
 0x2c7   :  { %10575 = vmatpush3.bf16.xpose.msra.mxu1 %v3324_v9  ;;  %10576 = vmatprep.mubr.msk.bf16.mxu1 %vm12391_vm1, %v17305_v47  ;;  %v767_v10 = vpack.c.bf16 %v11188_v56, %v11187_v35  ;;  %v3674_v9 = vsel %vm1169_vm2, %v13673_v38, 0  ;;  %v11308_v38 = vunpack.i.h.bf16 %v13110_v1  ;;  %v4398_v35 = vsel %vm4367_vm3, %v13920_v8, -inf }
 0x2c8   :  { %v10350_v40 = vpop.f32.mrf.mxu1  ;;  %10586 = vmatprep.subr.bf16.mxu1 %v17305_v47  ;;  %v766_v31 = vpack.c.bf16 %v11248_v36, %v11247_v30  ;;  %v4395_v36 = vsel %vm4367_vm3, %v13909_v7, -inf  ;;  %v11608_v30 = vunpack.i.h.bf16 %v13509_v63 }
 0x2c9   :  { %v3724_v40 = vsel %vm1169_vm2, %v13677_v22, 0  ;;  %v3774_v22 = vsel %vm1169_vm2, %v13719_v55, 0  ;;  %v3824_v55 = vsel %vm1169_vm2, %v13721_v33, 0 }
 0x2ca   :  { %v13929_v6 = vpop.f32.mrf.mxu1 }
 0x2cc   :  { %v10351_v32 = vpop.f32.mrf.mxu1  ;;  %10571 = vmatmul.mubr.msk.bf16.vlgmr.msra.gmra.mxu0 %vm1169_vm2, %v760_v61  ;;  %v11307_v61 = vunpack.i.l.bf16 %v13110_v1 }
 0x2cd   :  { %10581 = vmatpush3.bf16.xpose.msra.mxu0 %v3374_v16  ;;  %10582 = vmatprep.mubr.msk.bf16.mxu0 %vm12391_vm1, %v17305_v47  ;;  %v768_v16 = vpack.c.bf16 %v11368_v25, %v11367_v4 }
 0x2ce   :  { %10577 = vmatmul.mubr.msk.bf16.vlgmr.msra.gmra.mxu1 %vm1169_vm2, %v761_v62  ;;  %10592 = vmatprep.subr.bf16.mxu0 %v17305_v47  ;;  %v769_v37 = vpack.c.bf16 %v11308_v38, %v11307_v61 }
 0x2cf   :  { %10587 = vmatpush3.bf16.xpose.msra.mxu1 %v3424_v52  ;;  %10588 = vmatprep.mubr.msk.bf16.mxu1 %vm12391_vm1, %v17305_v47 }
 0x2d0   :  { %10598 = vmatprep.subr.bf16.mxu1 %v17305_v47 }
 0x2d4   :  { %10583 = vmatmul.mubr.msk.bf16.vlgmr.msra.gmra.mxu0 %vm1169_vm2, %v762_v34 }
 0x2d5   :  { %10593 = vmatpush3.bf16.xpose.msra.mxu0 %v3474_v13  ;;  %10594 = vmatprep.mubr.msk.bf16.mxu0 %vm12391_vm1, %v17305_v47 }
 0x2d6   :  { %10589 = vmatmul.mubr.msk.bf16.vlgmr.msra.gmra.mxu1 %vm1169_vm2, %v763_v39  ;;  %10604 = vmatprep.subr.bf16.mxu0 %v17305_v47  ;;  %v11427_v39 = vunpack.i.l.bf16 %v13346_v23 }
 0x2d7   :  { %10599 = vmatpush3.bf16.xpose.msra.mxu1 %v3524_v24  ;;  %10600 = vmatprep.mubr.msk.bf16.mxu1 %vm12391_vm1, %v17305_v47  ;;  %v770_v24 = vpack.c.bf16 %v11488_v12, %v11487_v21  ;;  %v4024_v21 = vsel %vm1169_vm2, %v13609_v26, 0 }
 0x2d8   :  { %10610 = vmatprep.subr.bf16.mxu1 %v17305_v47 }
 0x2dc   :  { %10595 = vmatmul.mubr.msk.bf16.vlgmr.msra.gmra.mxu0 %vm1169_vm2, %v764_v41  ;;  %v771_v41 = vpack.c.bf16 %v11428_v27, %v11427_v39 }
 0x2dd   :  { %10605 = vmatpush3.bf16.xpose.msra.mxu0 %v3574_v42  ;;  %10606 = vmatprep.mubr.msk.bf16.mxu0 %vm12391_vm1, %v17305_v47 }
 0x2de   :  { %10601 = vmatmul.mubr.msk.bf16.vlgmr.msra.gmra.mxu1 %vm1169_vm2, %v765_v20  ;;  %10616 = vmatprep.subr.bf16.mxu0 %v17305_v47  ;;  %v3874_v20 = vsel %vm1169_vm2, %v3869_v43, 0 }
 0x2df   :  { %10611 = vmatpush3.bf16.xpose.msra.mxu1 %v3624_v50  ;;  %10612 = vmatprep.mubr.msk.bf16.mxu1 %vm12391_vm1, %v17305_v47  ;;  %v11607_v50 = vunpack.i.l.bf16 %v13509_v63  ;;  %v4401_v63 = vsel %vm4367_vm3, %v13929_v6, -inf }
 0x2e0   :  { %10622 = vmatprep.subr.bf16.mxu1 %v17305_v47 }
 0x2e1   :  { %v772_v4 = vpack.c.bf16 %v11608_v30, %v11607_v50  ;;  %v11313_v50 = vunpack.i.h.bf16 %v13122_v45 }
 0x2e4   :  { %10607 = vmatmul.mubr.msk.bf16.vlgmr.msra.gmra.mxu0 %vm1169_vm2, %v766_v31 }
 0x2e5   :  { %10617 = vmatpush3.bf16.xpose.msra.mxu0 %v3674_v9  ;;  %10618 = vmatprep.mubr.msk.bf16.mxu0 %vm12391_vm1, %v17305_v47  ;;  %v11547_v9 = vunpack.i.l.bf16 %v13528_v19 }
 0x2e6   :  { %10613 = vmatmul.mubr.msk.bf16.vlgmr.msra.gmra.mxu1 %vm1169_vm2, %v767_v10  ;;  %10628 = vmatprep.subr.bf16.mxu0 %v17305_v47  ;;  %v11548_v10 = vunpack.i.h.bf16 %v13528_v19 }
 0x2e7   :  { %10623 = vmatpush3.bf16.xpose.msra.mxu1 %v3724_v40  ;;  %10624 = vmatprep.mubr.msk.bf16.mxu1 %vm12391_vm1, %v17305_v47 }
 0x2e8   :  { %v13992_v62 = vpop.f32.mrf.mxu1  ;;  %10634 = vmatprep.subr.bf16.mxu1 %v17305_v47  ;;  %v773_v61 = vpack.c.bf16 %v11548_v10, %v11547_v9  ;;  %v17423_v10 = vld [vmem:[#allocation14_spill] sm:$0xff] }
 0x2e9   :  { %v4404_v19 = vsel %vm4367_vm3, %v13992_v62, -inf  ;;  %v4174_v9 = vsel %vm1169_vm2, %v17423_v10, 0 }
 0x2ea   :  { %v10356_v32 = vpop.f32.mrf.mxu1 }
 0x2ec   :  { %v13997_v2 = vpop.f32.mrf.mxu1  ;;  %v13999_v52 = vpop.f32.mrf.mxu0  ;;  %10619 = vmatmul.mubr.msk.bf16.vlgmr.msra.gmra.mxu0 %vm1169_vm2, %v768_v16  ;;  %v3974_v16 = vsel %vm1169_vm2, %v13599_v59, 0 }
 0x2ed   :  { %10629 = vmatpush3.bf16.xpose.msra.mxu0 %v3774_v22  ;;  %v4452_v1 = vsel %vm4367_vm3, %v13999_v52, -inf  ;;  %10630 = vmatprep.mubr.msk.bf16.mxu0 %vm12391_vm1, %v17305_v47  ;;  %v17421_v22 = vld [vmem:[#allocation29_spill] sm:$0xff] }
 0x2ee   :  { %v10404_v48 = vpop.f32.mrf.mxu0  ;;  %10625 = vmatmul.mubr.msk.bf16.vlgmr.msra.gmra.mxu1 %vm1169_vm2, %v769_v37  ;;  %4453 = vmax.xlane.f32.xlu1 %v4452_v1  ;;  %v10357_v34 = vpop.f32.mrf.mxu1  ;;  %v4407_v37 = vsel %vm4367_vm3, %v13997_v2, -inf  ;;  %v11253_v1 = vunpack.i.h.bf16 %v17421_v22  ;;  %v11252_v12 = vunpack.i.l.bf16 %v17421_v22 }
 0x2ef   :  { %10635 = vmatpush3.bf16.xpose.msra.mxu1 %v3824_v55  ;;  %10640 = vmatprep.subr.bf16.mxu0 %v17305_v47  ;;  %v17422_v48 = vld [vmem:[#allocation26_spill] sm:$0xff] }
 0x2f0   :  { %v14014_v13 = vpop.f32.mrf.mxu1  ;;  %v14016_v11 = vpop.f32.mrf.mxu0  ;;  %10636 = vmatprep.mubr.msk.bf16.mxu1 %vm12391_vm1, %v17305_v47  ;;  %10646 = vmatprep.subr.bf16.mxu1 %v17305_v47  ;;  %v11193_v34 = vunpack.i.h.bf16 %v17422_v48  ;;  %v11192_v27 = vunpack.i.l.bf16 %v17422_v48  ;;  %v774_v43 = vpack.c.bf16 %v11253_v1, %v11252_v12  ;;  %v17426_v12 = vld [vmem:[#allocation68_spill] sm:$0xff] }
 0x2f1   :  { %v4455_v33 = vsel %vm4367_vm3, %v14016_v11, -inf  ;;  %v4410_v59 = vsel %vm4367_vm3, %v14014_v13, -inf }
 0x2f2   :  { %v10405_v53 = vpop.f32.mrf.mxu0  ;;  %4456 = vmax.xlane.f32.xlu0 %v4455_v33  ;;  %4393 = vmax.xlane.f32.xlu1 %v4392_v15  ;;  %v10362_v23 = vpop.f32.mrf.mxu1 }
 0x2f3   :  { %v4074_v53 = vsel %vm1169_vm2, %v13679_v44, 0 }
 0x2f4   :  { %v14026_v42 = vpop.f32.mrf.mxu1  ;;  %v14028_v54 = vpop.f32.mrf.mxu0  ;;  %10631 = vmatmul.mubr.msk.bf16.vlgmr.msra.gmra.mxu0 %vm1169_vm2, %v770_v24  ;;  %v775_v24 = vpack.c.bf16 %v11193_v34, %v11192_v27 }
 0x2f5   :  { %10641 = vmatpush3.bf16.xpose.msra.mxu0 %v3874_v20  ;;  %10642 = vmatprep.mubr.msk.bf16.mxu0 %vm12391_vm1, %v17305_v47  ;;  %v4413_v26 = vsel %vm4367_vm3, %v14026_v42, -inf  ;;  %v11372_v20 = vunpack.i.l.bf16 %v13098_v51  ;;  %v4269_v34 = vpop.permute.xlu0 %4268 }
 0x2f6   :  { %v10416_v56 = vpop.f32.mrf.mxu0  ;;  %10637 = vmatmul.mubr.msk.bf16.vlgmr.msra.gmra.mxu1 %vm1169_vm2, %v771_v41  ;;  %4396 = vmax.xlane.f32.xlu0 %v4395_v36  ;;  %v10363_v31 = vpop.f32.mrf.mxu1  ;;  %v11373_v41 = vunpack.i.h.bf16 %v13098_v51  ;;  %v4124_v36 = vsel %vm1169_vm2, %v13683_v0, 0 }
 0x2f7   :  { %4399 = vmax.xlane.f32.xlu1 %v4398_v35  ;;  %10647 = vmatpush3.bf16.xpose.msra.mxu1 %v3924_v14  ;;  %v11312_v14 = vunpack.i.l.bf16 %v13122_v45 }
 0x2f8   :  { %v14043_v46 = vpop.f32.mrf.mxu1  ;;  %v14045_v25 = vpop.f32.mrf.mxu0  ;;  %10652 = vmatprep.subr.bf16.mxu0 %v17305_v47  ;;  %10648 = vmatprep.mubr.msk.bf16.mxu1 %vm12391_vm1, %v17305_v47  ;;  %v776_v35 = vpack.c.bf16 %v11373_v41, %v11372_v20  ;;  %v17427_v20 = vld [vmem:[#allocation11_spill] sm:$0xff] }
 0x2f9   :  { %10658 = vmatprep.subr.bf16.mxu1 %v17305_v47  ;;  %v4422_v33 = vsel %vm4367_vm3, %v14043_v46, -inf  ;;  %v777_v45 = vpack.c.bf16 %v11313_v50, %v11312_v14  ;;  %v17428_v14 = vld [vmem:[#allocation66_spill] sm:$0xff] }
 0x2fa   :  { %v10417_v40 = vpop.f32.mrf.mxu0  ;;  %4402 = vmax.xlane.f32.xlu0 %v4401_v63  ;;  %v10374_v38 = vpop.f32.mrf.mxu1 }
 0x2fb   :  { %4405 = vmax.xlane.f32.xlu1 %v4404_v19  ;;  %v17424_v19 = vld [vmem:[#allocation61_spill] sm:$0xff] }
 0x2fc   :  { %v14057_v32 = vpop.f32.mrf.mxu1  ;;  %10643 = vmatmul.mubr.msk.bf16.vlgmr.msra.gmra.mxu0 %vm1169_vm2, %v772_v4  ;;  %v11493_v38 = vunpack.i.h.bf16 %v17424_v19 }
 0x2fd   :  { %10653 = vmatpush3.bf16.xpose.msra.mxu0 %v3974_v16  ;;  %10654 = vmatprep.mubr.msk.bf16.mxu0 %vm12391_vm1, %v17305_v47  ;;  %v4425_v5 = vsel %vm4367_vm3, %v14057_v32, -inf  ;;  %v17425_v16 = vld [vmem:[#allocation13_spill] sm:$0xff] }
 0x2fe   :  { %10649 = vmatmul.mubr.msk.bf16.vlgmr.msra.gmra.mxu1 %vm1169_vm2, %v773_v61  ;;  %4408 = vmax.xlane.f32.xlu0 %v4407_v37  ;;  %v10375_v55 = vpop.f32.mrf.mxu1  ;;  %v11492_v61 = vunpack.i.l.bf16 %v17424_v19  ;;  %v4224_v37 = vsel %vm1169_vm2, %v17425_v16, 0  ;;  %v17429_v19 = vld [vmem:[#allocation31_spill] sm:$0xff] }
 0x2ff   :  { %4411 = vmax.xlane.f32.xlu1 %v4410_v59  ;;  %10659 = vmatpush3.bf16.xpose.msra.mxu1 %v4024_v21  ;;  %v11433_v21 = vunpack.i.h.bf16 %v17426_v12  ;;  %v11432_v59 = vunpack.i.l.bf16 %v17426_v12  ;;  %v4467_v12 = vsel %vm4367_vm3, %v14045_v25, -inf }
 0x300   :  { %v14073_v39 = vpop.f32.mrf.mxu1  ;;  %10664 = vmatprep.subr.bf16.mxu0 %v17305_v47  ;;  %10660 = vmatprep.mubr.msk.bf16.mxu1 %vm12391_vm1, %v17305_v47 }
 0x301   :  { %10670 = vmatprep.subr.bf16.mxu1 %v17305_v47  ;;  %v4434_v44 = vsel %vm4367_vm3, %v14073_v39, -inf }
 0x302   :  { %4414 = vmax.xlane.f32.xlu0 %v4413_v26  ;;  %v10386_v15 = vpop.f32.mrf.mxu1  ;;  %v778_v26 = vpack.c.bf16 %v11493_v38, %v11492_v61  ;;  %v4464_v38 = vsel %vm4367_vm3, %v14028_v54, -inf }
 0x303   :  { %4423 = vmax.xlane.f32.xlu1 %v4422_v33  ;;  %v4319_v15 = vpop.permute.xlu1 %4318 }
 0x304   :  { %v14085_v23 = vpop.f32.mrf.mxu1  ;;  %10655 = vmatmul.mubr.msk.bf16.vlgmr.msra.gmra.mxu0 %vm1169_vm2, %v774_v43 }
 0x305   :  { %10665 = vmatpush3.bf16.xpose.msra.mxu0 %v4074_v53  ;;  %10666 = vmatprep.mubr.msk.bf16.mxu0 %vm12391_vm1, %v17305_v47  ;;  %v4437_v51 = vsel %vm4367_vm3, %v14085_v23, -inf  ;;  %v4274_v53 = vsel %vm1169_vm2, %v4269_v34, 0 }
 0x306   :  { %10661 = vmatmul.mubr.msk.bf16.vlgmr.msra.gmra.mxu1 %vm1169_vm2, %v775_v24  ;;  %4426 = vmax.xlane.f32.xlu0 %v4425_v5  ;;  %v10387_v30 = vpop.f32.mrf.mxu1  ;;  %v779_v24 = vpack.c.bf16 %v11433_v21, %v11432_v59 }
 0x307   :  { %4435 = vmax.xlane.f32.xlu1 %v4434_v44  ;;  %10671 = vmatpush3.bf16.xpose.msra.mxu1 %v4124_v36  ;;  %v11613_v36 = vunpack.i.h.bf16 %v17427_v20  ;;  %v11612_v44 = vunpack.i.l.bf16 %v17427_v20  ;;  %v4324_v30 = vsel %vm1169_vm2, %v4319_v15, 0 }
 0x308   :  { %v14101_v56 = vpop.f32.mrf.mxu1  ;;  %10676 = vmatprep.subr.bf16.mxu0 %v17305_v47  ;;  %10672 = vmatprep.mubr.msk.bf16.mxu1 %vm12391_vm1, %v17305_v47 }
 0x309   :  { %v4446_v0 = vsel %vm4367_vm3, %v14101_v56, -inf  ;;  %10682 = vmatprep.subr.bf16.mxu1 %v17305_v47 }
 0x30a   :  { %4438 = vmax.xlane.f32.xlu0 %v4437_v51  ;;  %v10398_v31 = vpop.f32.mrf.mxu1  ;;  %v11553_v51 = vunpack.i.h.bf16 %v17428_v14 }
 0x30b   :  { %4447 = vmax.xlane.f32.xlu1 %v4446_v0  ;;  %v11552_v0 = vunpack.i.l.bf16 %v17428_v14 }
 0x30c   :  { %v14113_v63 = vpop.f32.mrf.mxu1  ;;  %v14115_v4 = vpop.f32.mrf.mxu0  ;;  %10667 = vmatmul.mubr.msk.bf16.vlgmr.msra.gmra.mxu0 %vm1169_vm2, %v776_v35 }
 0x30d   :  { %10677 = vmatpush3.bf16.xpose.msra.mxu0 %v4174_v9  ;;  %v4449_v40 = vsel %vm4367_vm3, %v14113_v63, -inf  ;;  %10678 = vmatprep.mubr.msk.bf16.mxu0 %vm12391_vm1, %v17305_v47  ;;  %v781_v9 = vpack.c.bf16 %v11553_v51, %v11552_v0  ;;  %v14207_v0 = vpop.permute.xlu1 %6028 }
 0x30e   :  { %v10428_v22 = vpop.f32.mrf.mxu0  ;;  %10673 = vmatmul.mubr.msk.bf16.vlgmr.msra.gmra.mxu1 %vm1169_vm2, %v777_v45  ;;  %4450 = vmax.xlane.f32.xlu0 %v4449_v40  ;;  %v10399_v1 = vpop.f32.mrf.mxu1  ;;  %v780_v45 = vpack.c.bf16 %v11613_v36, %v11612_v44 }
 0x30f   :  { %10683 = vmatpush3.bf16.xpose.msra.mxu1 %v4224_v37  ;;  %10688 = vmatprep.subr.bf16.mxu0 %v17305_v47  ;;  %v17430_v37 = vld [vmem:[#allocation89_spill] sm:$0xff]  ;;  %v14199_v44 = vpop.permute.xlu0 %5981 }
 0x310   :  { %v14130_v55 = vpop.f32.mrf.mxu1  ;;  %v14132_v48 = vpop.f32.mrf.mxu0  ;;  %10684 = vmatprep.mubr.msk.bf16.mxu1 %vm12391_vm1, %v17305_v47  ;;  %10694 = vmatprep.subr.bf16.mxu1 %v17305_v47 }
 0x311   :  { %v4458_v27 = vsel %vm4367_vm3, %v14130_v55, -inf  ;;  %v4479_v20 = vsel %vm4367_vm3, %v14132_v48, -inf }
 0x312   :  { %v10429_v43 = vpop.f32.mrf.mxu0  ;;  %4459 = vmax.xlane.f32.xlu1 %v4458_v27  ;;  %v10410_v33 = vpop.f32.mrf.mxu1  ;;  %v4476_v27 = vsel %vm4367_vm3, %v14115_v4, -inf }
 0x314   :  { %v14140_v5 = vpop.f32.mrf.mxu1  ;;  %10679 = vmatmul.mubr.msk.bf16.vlgmr.msra.gmra.mxu0 %vm1169_vm2, %v778_v26 }
 0x315   :  { %10689 = vmatpush3.bf16.xpose.msra.mxu0 %v4274_v53  ;;  %v4461_v41 = vsel %vm4367_vm3, %v14140_v5, -inf  ;;  %10690 = vmatprep.mubr.msk.bf16.mxu0 %vm12391_vm1, %v17305_v47 }
 0x316   :  { %10685 = vmatmul.mubr.msk.bf16.vlgmr.msra.gmra.mxu1 %vm1169_vm2, %v779_v24  ;;  %4462 = vmax.xlane.f32.xlu0 %v4461_v41  ;;  %v10411_v50 = vpop.f32.mrf.mxu1 }
 0x317   :  { %10695 = vmatpush3.bf16.xpose.msra.mxu1 %v4324_v30  ;;  %10700 = vmatprep.subr.bf16.mxu0 %v17305_v47 }
 0x318   :  { %v14154_v35 = vpop.f32.mrf.mxu1  ;;  %10696 = vmatprep.mubr.msk.bf16.mxu1 %vm12391_vm1, %v17305_v47  ;;  %10706 = vmatprep.subr.bf16.mxu1 %v17305_v47 }
 0x319   :  { %v4470_v31 = vsel %vm4367_vm3, %v14154_v35, -inf }
 0x31a   :  { %4471 = vmax.xlane.f32.xlu1 %v4470_v31  ;;  %v10422_v10 = vpop.f32.mrf.mxu1  ;;  %v14209_v31 = vpop.permute.xlu0 %6075 }
 0x31b   :  { %17435 = vst [vmem:[#allocation32_spill] sm:$0xff] %v14209_v31  ;;  %v14213_v10 = vpop.permute.xlu1 %6122 }
 0x31c   :  { %v14161_v40 = vpop.f32.mrf.mxu1  ;;  %10691 = vmatmul.mubr.msk.bf16.vlgmr.msra.gmra.mxu0 %vm1169_vm2, %v780_v45  ;;  %17436 = vst [vmem:[#allocation36_spill] sm:$0xff] %v14213_v10 }
 0x31d   :  { %10701 = vmatpush3.bf16.msra.mxu0 %v17429_v19  ;;  %v4473_v61 = vsel %vm4367_vm3, %v14161_v40, -inf  ;;  %10702 = vmatprep.mubr.msk.bf16.mxu0 %vm12391_vm1, %v17305_v47 }
 0x31e   :  { %10697 = vmatmul.mubr.msk.bf16.vlgmr.msra.gmra.mxu1 %vm1169_vm2, %v781_v9  ;;  %4465 = vmax.xlane.f32.xlu1 %v4464_v38  ;;  %v10423_v16 = vpop.f32.mrf.mxu1  ;;  %v14215_v9 = vpop.permute.xlu0 %6169 }
 0x31f   :  { %4474 = vmax.xlane.f32.xlu0 %v4473_v61  ;;  %10707 = vmatpush3.bf16.msra.mxu1 %v17430_v37  ;;  %17437 = vst [vmem:[#allocation23_spill] sm:$0xff] %v14215_v9  ;;  %v4418_v19 = vpop.xlane.xlu1 %4417  ;;  %v17439_v16 = vld [vmem:[#allocation2_spill] sm:$0xff] }
 0x320   :  { %v14173_v22 = vpop.f32.mrf.mxu1  ;;  %10712 = vmatprep.subr.bf16.mxu0 %v17305_v47  ;;  %10708 = vmatprep.mubr.msk.bf16.mxu1 %vm12391_vm1, %v17305_v47 }
 0x321   :  { %v4482_v1 = vsel %vm4367_vm3, %v14173_v22, -inf  ;;  %10718 = vmatprep.subr.bf16.mxu1 %v17305_v47 }
 0x322   :  { %4483 = vmax.xlane.f32.xlu1 %v4482_v1  ;;  %v10434_v21 = vpop.f32.mrf.mxu1  ;;  %v4370_v38 = vpop.xlane.xlu0 %4369 }
 0x323   :  { %4468 = vmax.xlane.f32.xlu0 %v4467_v12  ;;  %v4752_v37 = vsub.f32 %v17439_v16, %v4370_v38  ;;  %v4373_v21 = vpop.xlane.xlu1 %4372 }
 0x324   :  { %v14183_v59 = vpop.f32.mrf.mxu1  ;;  %v14185_v34 = vpop.f32.mrf.mxu0 }
 0x325   :  { %17431 = vst [vmem:[#allocation16_spill] sm:$0xff] %v14185_v34  ;;  %v4485_v26 = vsel %vm4367_vm3, %v14183_v59, -inf  ;;  %v4488_v50 = vsel %vm4367_vm3, %v14185_v34, -inf }
 0x326   :  { %v10440_v43 = vpop.f32.mrf.mxu0  ;;  %4477 = vmax.xlane.f32.xlu1 %v4476_v27  ;;  %v10435_v33 = vpop.f32.mrf.mxu1 }
 0x327   :  { %4486 = vmax.xlane.f32.xlu0 %v4485_v26  ;;  %v17442_v33 = vld [vmem:[#allocation19_spill] sm:$0xff] }
 0x328   :  { %v14191_v15 = vpop.f32.mrf.mxu0  ;;  %v14193_v24 = vpop.f32.mrf.mxu1 }
 0x329   :  { %17432 = vst [vmem:[#allocation34_spill] sm:$0xff] %v14191_v15  ;;  %17433 = vst [vmem:[#allocation21_spill] sm:$0xff] %v14193_v24  ;;  %v4494_v53 = vsel %vm4367_vm3, %v14193_v24, -inf  ;;  %v4491_v45 = vsel %vm4367_vm3, %v14191_v15, -inf }
 0x32a   :  { %v10441_v41 = vpop.f32.mrf.mxu0  ;;  %4495 = vmax.xlane.f32.xlu1 %v4494_v53  ;;  %v10446_v36 = vpop.f32.mrf.mxu1  ;;  %v4768_v53 = vsub.f32 %v17442_v33, %v4418_v19 }
 0x32b   :  { %4480 = vmax.xlane.f32.xlu0 %v4479_v20  ;;  %v4880_v41 = vmul.f32 1.442695, %v4752_v37 }
 0x32c   :  { %v14201_v30 = vpop.f32.mrf.mxu1 }
 0x32d   :  { %17434 = vst [vmem:[#allocation18_spill] sm:$0xff] %v14201_v30  ;;  %v4497_v14 = vsel %vm4367_vm3, %v14201_v30, -inf  ;;  %11874 = vpow2.f32 %v4880_v41 }
 0x32e   :  { %4489 = vmax.xlane.f32.xlu1 %v4488_v50  ;;  %v10447_v51 = vpop.f32.mrf.mxu1  ;;  %v4421_v50 = vpop.xlane.xlu0 %4420 }
 0x32f   :  { %4498 = vmax.xlane.f32.xlu0 %v4497_v14  ;;  %v17444_v14 = vld [vmem:[#allocation5_spill] sm:$0xff] }
 0x330   :  { %v4753_v51 = vsub.f32 %v17444_v14, %v4373_v21 }
 0x333   :  { %4492 = vmax.xlane.f32.xlu0 %v4491_v45 }
 0x33c   :  { %v14217_v61 = vpop.f32.mrf.mxu0 }
 0x33d   :  { %17438 = vst [vmem:[#allocation20_spill] sm:$0xff] %v14217_v61  ;;  %v4500_v45 = vsel %vm4367_vm3, %v14217_v61, -inf }
 0x33e   :  { %v10452_v1 = vpop.f32.mrf.mxu0  ;;  %v14220_v12 = vpop.f32.mrf.mxu1 }
 0x33f   :  { %17440 = vst [vmem:[#allocation33_spill] sm:$0xff] %v14220_v12  ;;  %v4506_v27 = vsel %vm4367_vm3, %v14220_v12, -inf }
 0x340   :  { %v14224_v26 = vpop.f32.mrf.mxu0  ;;  %4507 = vmax.xlane.f32.xlu1 %v4506_v27  ;;  %v10458_v43 = vpop.f32.mrf.mxu1  ;;  %v4912_v27 = vmul.f32 1.442695, %v4768_v53 }
 0x341   :  { %17441 = vst [vmem:[#allocation38_spill] sm:$0xff] %v14224_v26  ;;  %v17447_v43 = vld [vmem:[#allocation3_spill] sm:$0xff]  ;;  %v4503_v21 = vsel %vm4367_vm3, %v14224_v26, -inf }
 0x342   :  { %v10453_v20 = vpop.f32.mrf.mxu0  ;;  %v14227_v36 = vpop.f32.mrf.mxu1  ;;  %v4769_v33 = vsub.f32 %v17447_v43, %v4421_v50  ;;  %11876 = vpow2.f32 %v4912_v27 }
 0x343   :  { %17443 = vst [vmem:[#allocation25_spill] sm:$0xff] %v14227_v36  ;;  %v4509_v38 = vsel %vm4367_vm3, %v14227_v36, -inf  ;;  %v4882_v20 = vmul.f32 1.442695, %v4753_v51 }
 0x344   :  { %v14234_v16 = vpop.f32.mrf.mxu0  ;;  %4501 = vmax.xlane.f32.xlu1 %v4500_v45  ;;  %4510 = vmax.xlane.f32.xlu0 %v4509_v38  ;;  %v10459_v1 = vpop.f32.mrf.mxu1 }
 0x345   :  { %17445 = vst [vmem:[#allocation22_spill] sm:$0xff] %v14234_v16  ;;  %v4376_v38 = vpop.xlane.xlu0 %4375  ;;  %v4914_v1 = vmul.f32 1.442695, %v4769_v33  ;;  %11878 = vpow2.f32 %v4882_v20  ;;  %v4512_v50 = vsel %vm4367_vm3, %v14234_v16, -inf  ;;  %v4430_v33 = vpop.xlane.xlu1 %4429 }
 0x346   :  { %v10464_v19 = vpop.f32.mrf.mxu0  ;;  %v14236_v37 = vpop.f32.mrf.mxu1  ;;  %v4772_v16 = vsub.f32 %v13768_v49, %v4430_v33 }
 0x347   :  { %17446 = vst [vmem:[#allocation35_spill] sm:$0xff] %v14236_v37  ;;  %v4518_v14 = vsel %vm4367_vm3, %v14236_v37, -inf  ;;  %11880 = vpow2.f32 %v4914_v1  ;;  %v14265_v1 = vpop.eup %11874 }
 0x348   :  { %v14243_v36 = vpop.f32.mrf.mxu0  ;;  %4504 = vmax.xlane.f32.xlu0 %v4503_v21  ;;  %4519 = vmax.xlane.f32.xlu1 %v4518_v14  ;;  %v10470_v45 = vpop.f32.mrf.mxu1  ;;  %v17451_v21 = vld [vmem:[#allocation4_spill] sm:$0xff]  ;;  %v4920_v49 = vmul.f32 1.442695, %v4772_v16 }
 0x349   :  { %17448 = vst [vmem:[#allocation27_spill] sm:$0xff] %v14243_v36  ;;  %v4754_v14 = vsub.f32 %v17451_v21, %v4376_v38  ;;  %v4515_v20 = vsel %vm4367_vm3, %v14243_v36, -inf }
 0x34a   :  { %v10465_v53 = vpop.f32.mrf.mxu0  ;;  %v14245_v41 = vpop.f32.mrf.mxu1 }
 0x34b   :  { %17449 = vst [vmem:[#allocation24_spill] sm:$0xff] %v14245_v41  ;;  %v4521_v51 = vsel %vm4367_vm3, %v14245_v41, -inf  ;;  %v4379_v53 = vpop.xlane.xlu0 %4378 }
 0x34c   :  { %v14251_v19 = vpop.f32.mrf.mxu0  ;;  %4513 = vmax.xlane.f32.xlu1 %v4512_v50  ;;  %4522 = vmax.xlane.f32.xlu0 %v4521_v51  ;;  %v10471_v43 = vpop.f32.mrf.mxu1  ;;  %v4884_v51 = vmul.f32 1.442695, %v4754_v14 }
 0x34d   :  { %17450 = vst [vmem:[#allocation37_spill] sm:$0xff] %v14251_v19  ;;  %v17454_v43 = vld [vmem:[#allocation8_spill] sm:$0xff]  ;;  %v4524_v36 = vsel %vm4367_vm3, %v14251_v19, -inf }
 0x34e   :  { %v10476_v45 = vpop.f32.mrf.mxu0  ;;  %v14254_v27 = vpop.f32.mrf.mxu1  ;;  %v4755_v38 = vsub.f32 %v17454_v43, %v4379_v53  ;;  %11882 = vpow2.f32 %v4884_v51 }
 0x34f   :  { %17452 = vst [vmem:[#allocation29_spill] sm:$0xff] %v14254_v27  ;;  %v4530_v37 = vsel %vm4367_vm3, %v14254_v27, -inf  ;;  %v4433_v12 = vpop.xlane.xlu0 %4432  ;;  %v14276_v43 = vpop.eup %11876 }
 0x350   :  { %v14260_v41 = vpop.f32.mrf.mxu0  ;;  %4516 = vmax.xlane.f32.xlu0 %v4515_v20  ;;  %4531 = vmax.xlane.f32.xlu1 %v4530_v37  ;;  %v10482_v50 = vpop.f32.mrf.mxu1  ;;  %v4886_v14 = vmul.f32 1.442695, %v4755_v38  ;;  %17458 = vst [vmem:[#allocation68_spill] sm:$0xff] %v14276_v43  ;;  %v4773_v33 = vsub.f32 %v13779_v28, %v4433_v12  ;;  %v5184_v12 = vsel %vm4367_vm3, %v14276_v43, 0.0 }
 0x351   :  { %17453 = vst [vmem:[#allocation26_spill] sm:$0xff] %v14260_v41  ;;  %v4382_v28 = vpop.xlane.xlu1 %4381 }
 0x352   :  { %v10477_v21 = vpop.f32.mrf.mxu0  ;;  %v14263_v45 = vpop.f32.mrf.mxu1  ;;  %11884 = vpow2.f32 %v4886_v14  ;;  %v4922_v16 = vmul.f32 1.442695, %v4773_v33 }
 0x353   :  { %17455 = vst [vmem:[#allocation14_spill] sm:$0xff] %v14263_v45  ;;  %v4533_v27 = vsel %vm4367_vm3, %v14263_v45, -inf  ;;  %v5136_v21 = vsel %vm4367_vm3, %v14265_v1, 0.0  ;;  %v4527_v45 = vsel %vm4367_vm3, %v14260_v41, -inf  ;;  %v14283_v19 = vpop.eup %11878  ;;  %11886 = vpow2.f32 %v4920_v49  ;;  %v4385_v33 = vpop.xlane.xlu0 %4384 }
 0x354   :  { %v14272_v20 = vpop.f32.mrf.mxu0  ;;  %4525 = vmax.xlane.f32.xlu1 %v4524_v36  ;;  %4534 = vmax.xlane.f32.xlu0 %v4533_v27  ;;  %v10483_v37 = vpop.f32.mrf.mxu1  ;;  %11888 = vpow2.f32 %v4922_v16  ;;  %v4756_v49 = vsub.f32 %v13728_v18, %v4382_v28 }
 0x355   :  { %17456 = vst [vmem:[#allocation61_spill] sm:$0xff] %v14272_v20  ;;  %v5139_v37 = vsel %vm4367_vm3, %v14283_v19, 0.0  ;;  %v4536_v24 = vsel %vm4367_vm3, %v14272_v20, -inf }
 0x356   :  { %v10488_v53 = vpop.f32.mrf.mxu0  ;;  %v14274_v50 = vpop.f32.mrf.mxu1  ;;  %v4888_v18 = vmul.f32 1.442695, %v4756_v49 }
 0x357   :  { %17457 = vst [vmem:[#allocation13_spill] sm:$0xff] %v14274_v50  ;;  %v14293_v53 = vpop.eup %11880  ;;  %v4542_v26 = vsel %vm4367_vm3, %v14274_v50, -inf  ;;  %v4445_v30 = vpop.xlane.xlu0 %4444 }
 0x358   :  { %v14285_v36 = vpop.f32.mrf.mxu0  ;;  %5137 = vadd.xlane.f32.xlu1 %v5136_v21  ;;  %4528 = vmax.xlane.f32.xlu0 %v4527_v45  ;;  %v10494_v27 = vpop.f32.mrf.mxu1  ;;  %17461 = vst [vmem:[#allocation31_spill] sm:$0xff] %v14293_v53  ;;  %11890 = vpow2.f32 %v4888_v18 }
 0x359   :  { %17459 = vst [vmem:[#allocation11_spill] sm:$0xff] %v14285_v36  ;;  %v4442_v27 = vpop.xlane.xlu1 %4441 }
 0x35a   :  { %v10489_v51 = vpop.f32.mrf.mxu0  ;;  %v14287_v38 = vpop.f32.mrf.mxu1  ;;  %v4776_v28 = vsub.f32 %v13851_v17, %v4442_v27 }
 0x35b   :  { %17460 = vst [vmem:[#allocation66_spill] sm:$0xff] %v14287_v38  ;;  %v5187_v51 = vsel %vm4367_vm3, %v14293_v53, 0.0  ;;  %v14309_v16 = vpop.eup %11882  ;;  %v4545_v50 = vsel %vm4367_vm3, %v14287_v38, -inf  ;;  %v4539_v38 = vsel %vm4367_vm3, %v14285_v36, -inf }
 0x35c   :  { %v14295_v41 = vpop.f32.mrf.mxu0  ;;  %5185 = vadd.xlane.f32.xlu1 %v5184_v12  ;;  %5140 = vadd.xlane.f32.xlu0 %v5139_v37  ;;  %v10495_v45 = vpop.f32.mrf.mxu1  ;;  %v4757_v37 = vsub.f32 %v13736_v3, %v4385_v33  ;;  %v5142_v49 = vsel %vm4367_vm3, %v14309_v16, 0.0  ;;  %v4928_v27 = vmul.f32 1.442695, %v4776_v28 }
 0x35d   :  { %17462 = vst [vmem:[#allocation89_spill] sm:$0xff] %v14295_v41  ;;  %v4388_v18 = vpop.xlane.xlu1 %4387 }
 0x35e   :  { %v10500_v14 = vpop.f32.mrf.mxu0  ;;  %v14297_v21 = vpop.f32.mrf.mxu1 }
 0x35f   :  { %17463 = vst [vmem:[#allocation2_spill] sm:$0xff] %v14297_v21  ;;  %v14322_v17 = vpop.eup %11884 }
 0x360   :  { %v14304_v61 = vpop.f32.mrf.mxu0  ;;  %5188 = vadd.xlane.f32.xlu0 %v5187_v51  ;;  %4543 = vmax.xlane.f32.xlu1 %v4542_v26  ;;  %v10506_v12 = vpop.f32.mrf.mxu1  ;;  %v4890_v26 = vmul.f32 1.442695, %v4757_v37 }
 0x361   :  { %17464 = vst [vmem:[#allocation19_spill] sm:$0xff] %v14304_v61  ;;  %v14327_v20 = vpop.eup %11886 }
 0x362   :  { %v10501_v45 = vpop.f32.mrf.mxu0  ;;  %v14307_v14 = vpop.f32.mrf.mxu1  ;;  %17468 = vst [vmem:[#allocation8_spill] sm:$0xff] %v14327_v20  ;;  %11892 = vpow2.f32 %v4890_v26 }
 0x363   :  { %17465 = vst [vmem:[#allocation5_spill] sm:$0xff] %v14307_v14  ;;  %v4777_v45 = vsub.f32 %v13866_v58, %v4445_v30  ;;  %11894 = vpow2.f32 %v4928_v27  ;;  %v5196_v58 = vsel %vm4367_vm3, %v14327_v20, 0.0  ;;  %v5145_v30 = vsel %vm4367_vm3, %v14322_v17, 0.0  ;;  %v14337_v28 = vpop.eup %11888 }
 0x364   :  { %v14316_v51 = vpop.f32.mrf.mxu0  ;;  %4537 = vmax.xlane.f32.xlu1 %v4536_v24  ;;  %4546 = vmax.xlane.f32.xlu0 %v4545_v50  ;;  %v10507_v3 = vpop.f32.mrf.mxu1  ;;  %17471 = vst [vmem:[#allocation93_spill] sm:$0xff] %v14337_v28  ;;  %v4758_v27 = vsub.f32 %v13741_v57, %v4388_v18  ;;  %v4548_v57 = vsel %vm4367_vm3, %v14295_v41, -inf  ;;  %v4557_v18 = vsel %vm4367_vm3, %v14307_v14, -inf  ;;  %v4551_v14 = vsel %vm4367_vm3, %v14304_v61, -inf }
 0x365   :  { %17466 = vst [vmem:[#allocation3_spill] sm:$0xff] %v14316_v51 }
 0x366   :  { %v10512_v33 = vpop.f32.mrf.mxu0  ;;  %v14318_v12 = vpop.f32.mrf.mxu1 }
 0x367   :  { %17467 = vst [vmem:[#allocation4_spill] sm:$0xff] %v14318_v12  ;;  %v4930_v33 = vmul.f32 1.442695, %v4777_v45  ;;  %v4391_v45 = vpop.xlane.xlu0 %4390  ;;  %v4566_v9 = vsel %vm4367_vm3, %v14318_v12, -inf }
 0x368   :  { %v14329_v24 = vpop.f32.mrf.mxu0  ;;  %5143 = vadd.xlane.f32.xlu1 %v5142_v49  ;;  %4540 = vmax.xlane.f32.xlu0 %v4539_v38  ;;  %v10518_v50 = vpop.f32.mrf.mxu1 }
 0x369   :  { %17469 = vst [vmem:[#allocation91_spill] sm:$0xff] %v14329_v24  ;;  %11896 = vpow2.f32 %v4930_v33  ;;  %v5199_v50 = vsel %vm4367_vm3, %v14337_v28, 0.0  ;;  %v4759_v33 = vsub.f32 %v13756_v29, %v4391_v45  ;;  %v14357_v28 = vpop.eup %11890 }
 0x36a   :  { %v10513_v37 = vpop.f32.mrf.mxu0  ;;  %v14331_v3 = vpop.f32.mrf.mxu1  ;;  %v5148_v45 = vsel %vm4367_vm3, %v14357_v28, 0.0 }
 0x36b   :  { %17470 = vst [vmem:[#allocation92_spill] sm:$0xff] %v14331_v3  ;;  %v4554_v37 = vsel %vm4367_vm3, %v14297_v21, -inf  ;;  %v4894_v29 = vmul.f32 1.442695, %v4759_v33  ;;  %v4569_v12 = vsel %vm4367_vm3, %v14331_v3, -inf }
 0x36c   :  { %v14339_v36 = vpop.f32.mrf.mxu0  ;;  %5197 = vadd.xlane.f32.xlu1 %v5196_v58  ;;  %5146 = vadd.xlane.f32.xlu0 %v5145_v30  ;;  %v10519_v38 = vpop.f32.mrf.mxu1 }
 0x36d   :  { %17472 = vst [vmem:[#allocation94_spill] sm:$0xff] %v14339_v36 }
 0x36e   :  { %v10524_v26 = vpop.f32.mrf.mxu0  ;;  %v14341_v49 = vpop.f32.mrf.mxu1 }
 0x36f   :  { %17473 = vst [vmem:[#allocation95_spill] sm:$0xff] %v14341_v49  ;;  %v4892_v26 = vmul.f32 1.442695, %v4758_v27 }
 0x370   :  { %v14348_v20 = vpop.f32.mrf.mxu0  ;;  %5200 = vadd.xlane.f32.xlu0 %v5199_v50  ;;  %4555 = vmax.xlane.f32.xlu1 %v4554_v37  ;;  %v10530_v58 = vpop.f32.mrf.mxu1 }
 0x371   :  { %17474 = vst [vmem:[#allocation96_spill] sm:$0xff] %v14348_v20  ;;  %11898 = vpow2.f32 %v4892_v26 }
 0x372   :  { %v10525_v30 = vpop.f32.mrf.mxu0  ;;  %v14350_v38 = vpop.f32.mrf.mxu1  ;;  %11900 = vpow2.f32 %v4894_v29 }
 0x373   :  { %17475 = vst [vmem:[#allocation97_spill] sm:$0xff] %v14350_v38  ;;  %v14363_v30 = vpop.eup %11892 }
 0x374   :  { %v14359_v21 = vpop.f32.mrf.mxu0  ;;  %4549 = vmax.xlane.f32.xlu1 %v4548_v57  ;;  %4558 = vmax.xlane.f32.xlu0 %v4557_v18  ;;  %v10531_v50 = vpop.f32.mrf.mxu1  ;;  %v5151_v61 = vsel %vm4367_vm3, %v14363_v30, 0.0 }
 0x375   :  { %17476 = vst [vmem:[#allocation98_spill] sm:$0xff] %v14359_v21  ;;  %v14371_v41 = vpop.eup %11894 }
 0x376   :  { %v10536_v37 = vpop.f32.mrf.mxu0  ;;  %v14361_v58 = vpop.f32.mrf.mxu1  ;;  %17478 = vst [vmem:[#allocation100_spill] sm:$0xff] %v14371_v41  ;;  %v5208_v15 = vsel %vm4367_vm3, %v14371_v41, 0.0 }
 0x377   :  { %17477 = vst [vmem:[#allocation99_spill] sm:$0xff] %v14361_v58  ;;  %v14365_v27 = vpop.xlane.xlu1 %4453  ;;  %v14383_v34 = vpop.eup %11896 }
 0x378   :  { %v14373_v57 = vpop.f32.mrf.mxu0  ;;  %5149 = vadd.xlane.f32.xlu1 %v5148_v45  ;;  %4552 = vmax.xlane.f32.xlu0 %v4551_v14  ;;  %v10542_v18 = vpop.f32.mrf.mxu1  ;;  %17481 = vst [vmem:[#allocation103_spill] sm:$0xff] %v14383_v34  ;;  %v5211_v41 = vsel %vm4367_vm3, %v14383_v34, 0.0 }
 0x379   :  { %17479 = vst [vmem:[#allocation101_spill] sm:$0xff] %v14373_v57 }
 0x37a   :  { %v10537_v50 = vpop.f32.mrf.mxu0  ;;  %v14375_v37 = vpop.f32.mrf.mxu1 }
 0x37b   :  { %17480 = vst [vmem:[#allocation102_spill] sm:$0xff] %v14375_v37  ;;  %v14377_v26 = vpop.xlane.xlu0 %4456  ;;  %v4394_v33 = vpop.xlane.xlu1 %4393 }
 0x37c   :  { %v4760_v43 = vsub.f32 %v13900_v60, %v4394_v33  ;;  %v14386_v45 = vpop.f32.mrf.mxu0  ;;  %5209 = vadd.xlane.f32.xlu1 %v5208_v15  ;;  %5152 = vadd.xlane.f32.xlu0 %v5151_v61  ;;  %v10543_v14 = vpop.f32.mrf.mxu1 }
 0x37d   :  { %17482 = vst [vmem:[#allocation104_spill] sm:$0xff] %v14386_v45 }
 0x37e   :  { %v10548_v18 = vpop.f32.mrf.mxu0  ;;  %v14388_v29 = vpop.f32.mrf.mxu1  ;;  %v4896_v50 = vmul.f32 1.442695, %v4760_v43 }
 0x37f   :  { %17483 = vst [vmem:[#allocation105_spill] sm:$0xff] %v14388_v29  ;;  %v4397_v53 = vpop.xlane.xlu0 %4396  ;;  %v4560_v18 = vsel %vm4367_vm3, %v14316_v51, -inf  ;;  %v14403_v34 = vpop.eup %11898 }
 0x380   :  { %v4761_v10 = vsub.f32 %v13909_v7, %v4397_v53  ;;  %v4400_v31 = vpop.xlane.xlu1 %4399  ;;  %v14395_v60 = vpop.f32.mrf.mxu0  ;;  %5212 = vadd.xlane.f32.xlu0 %v5211_v41  ;;  %4567 = vmax.xlane.f32.xlu1 %v4566_v9  ;;  %11902 = vpow2.f32 %v4896_v50 }
 0x381   :  { %17484 = vst [vmem:[#allocation106_spill] sm:$0xff] %v14395_v60  ;;  %v10554_v15 = vpop.f32.mrf.mxu1  ;;  %v14414_v3 = vpop.eup %11900 }
 0x382   :  { %v10549_v61 = vpop.f32.mrf.mxu0  ;;  %v4898_v33 = vmul.f32 1.442695, %v4761_v10  ;;  %v4762_v10 = vsub.f32 %v13920_v8, %v4400_v31  ;;  %v5154_v15 = vsel %vm4367_vm3, %v14403_v34, 0.0 }
 0x383   :  { %v14397_v14 = vpop.f32.mrf.mxu1  ;;  %v4403_v43 = vpop.xlane.xlu0 %4402  ;;  %v4563_v61 = vsel %vm4367_vm3, %v14329_v24, -inf  ;;  %v4578_v24 = vsel %vm4367_vm3, %v14341_v49, -inf }
 0x384   :  { %17485 = vst [vmem:[#allocation107_spill] sm:$0xff] %v14397_v14  ;;  %v14405_v7 = vpop.f32.mrf.mxu0  ;;  %4561 = vmax.xlane.f32.xlu1 %v4560_v18  ;;  %4570 = vmax.xlane.f32.xlu0 %v4569_v12  ;;  %v4406_v41 = vpop.xlane.xlu1 %4405  ;;  %11904 = vpow2.f32 %v4898_v33  ;;  %v4780_v33 = vsub.f32 %v13999_v52, %v14365_v27  ;;  %v4900_v31 = vmul.f32 1.442695, %v4762_v10  ;;  %v4763_v18 = vsub.f32 %v13929_v6, %v4403_v43 }
 0x385   :  { %17486 = vst [vmem:[#allocation108_spill] sm:$0xff] %v14405_v7  ;;  %v10555_v9 = vpop.f32.mrf.mxu1  ;;  %v4781_v52 = vsub.f32 %v14016_v11, %v14377_v26  ;;  %v4572_v43 = vsel %vm4367_vm3, %v14339_v36, -inf }
 0x386   :  { %v10560_v53 = vpop.f32.mrf.mxu0  ;;  %11906 = vpow2.f32 %v4900_v31  ;;  %v4902_v10 = vmul.f32 1.442695, %v4763_v18 }
 0x387   :  { %v14408_v50 = vpop.f32.mrf.mxu1  ;;  %v4409_v51 = vpop.xlane.xlu0 %4408  ;;  %v5157_v53 = vsel %vm4367_vm3, %v14414_v3, 0.0  ;;  %v4938_v26 = vmul.f32 1.442695, %v4781_v52 }
 0x388   :  { %17487 = vst [vmem:[#allocation109_spill] sm:$0xff] %v14408_v50  ;;  %v14416_v7 = vpop.f32.mrf.mxu0  ;;  %5155 = vadd.xlane.f32.xlu1 %v5154_v15  ;;  %4564 = vmax.xlane.f32.xlu0 %v4563_v61  ;;  %v4412_v50 = vpop.xlane.xlu1 %4411  ;;  %v4936_v61 = vmul.f32 1.442695, %v4780_v33 }
 0x389   :  { %17488 = vst [vmem:[#allocation110_spill] sm:$0xff] %v14416_v7  ;;  %v10566_v12 = vpop.f32.mrf.mxu1 }
 0x38a   :  { %v10561_v8 = vpop.f32.mrf.mxu0  ;;  %v4764_v12 = vsub.f32 %v13992_v62, %v4406_v41  ;;  %11908 = vpow2.f32 %v4936_v61  ;;  %v4575_v62 = vsel %vm4367_vm3, %v14348_v20, -inf }
 0x38b   :  { %v14421_v9 = vpop.f32.mrf.mxu1  ;;  %v4415_v27 = vpop.xlane.xlu0 %4414  ;;  %11910 = vpow2.f32 %v4902_v10 }
 0x38c   :  { %17489 = vst [vmem:[#allocation111_spill] sm:$0xff] %v14421_v9  ;;  %v14427_v7 = vpop.f32.mrf.mxu0  ;;  %5158 = vadd.xlane.f32.xlu0 %v5157_v53  ;;  %4579 = vmax.xlane.f32.xlu1 %v4578_v24  ;;  %v4581_v53 = vsel %vm4367_vm3, %v14350_v38, -inf  ;;  %v4424_v31 = vpop.xlane.xlu1 %4423  ;;  %v4904_v41 = vmul.f32 1.442695, %v4764_v12  ;;  %11912 = vpow2.f32 %v4938_v26  ;;  %v4767_v10 = vsub.f32 %v14026_v42, %v4415_v27 }
 0x38d   :  { %17490 = vst [vmem:[#allocation112_spill] sm:$0xff] %v14427_v7  ;;  %v10567_v15 = vpop.f32.mrf.mxu1  ;;  %v14438_v24 = vpop.eup %11902 }
 0x38e   :  { %v10572_v6 = vpop.f32.mrf.mxu0  ;;  %v4765_v15 = vsub.f32 %v13997_v2, %v4409_v51  ;;  %11914 = vpow2.f32 %v4904_v41  ;;  %v4910_v42 = vmul.f32 1.442695, %v4767_v10 }
 0x38f   :  { %v14434_v8 = vpop.f32.mrf.mxu1  ;;  %v4766_v6 = vsub.f32 %v14014_v13, %v4412_v50  ;;  %v4427_v61 = vpop.xlane.xlu0 %4426  ;;  %v4590_v13 = vsel %vm4367_vm3, %v14361_v58, -inf }
 0x390   :  { %17491 = vst [vmem:[#allocation113_spill] sm:$0xff] %v14434_v8  ;;  %v14440_v33 = vpop.f32.mrf.mxu0  ;;  %4573 = vmax.xlane.f32.xlu1 %v4572_v43  ;;  %4582 = vmax.xlane.f32.xlu0 %v4581_v53  ;;  %v5160_v43 = vsel %vm4367_vm3, %v14438_v24, 0.0  ;;  %v4906_v51 = vmul.f32 1.442695, %v4765_v15  ;;  %v4771_v27 = vsub.f32 %v14057_v32, %v4427_v61 }
 0x391   :  { %17492 = vst [vmem:[#allocation114_spill] sm:$0xff] %v14440_v33  ;;  %v10578_v11 = vpop.f32.mrf.mxu1  ;;  %v14450_v53 = vpop.eup %11904  ;;  %v4908_v50 = vmul.f32 1.442695, %v4766_v6 }
 0x392   :  { %v10573_v18 = vpop.f32.mrf.mxu0  ;;  %v4770_v11 = vsub.f32 %v14043_v46, %v4424_v31  ;;  %v5163_v49 = vsel %vm4367_vm3, %v14450_v53, 0.0  ;;  %11916 = vpow2.f32 %v4906_v51  ;;  %v4584_v46 = vsel %vm4367_vm3, %v14359_v21, -inf }
 0x393   :  { %v14446_v38 = vpop.f32.mrf.mxu1  ;;  %v4439_v15 = vpop.xlane.xlu0 %4438  ;;  %11918 = vpow2.f32 %v4908_v50  ;;  %v4918_v61 = vmul.f32 1.442695, %v4771_v27 }
 0x394   :  { %17493 = vst [vmem:[#allocation115_spill] sm:$0xff] %v14446_v38  ;;  %v14452_v52 = vpop.f32.mrf.mxu0  ;;  %5161 = vadd.xlane.f32.xlu1 %v5160_v43  ;;  %4576 = vmax.xlane.f32.xlu0 %v4575_v62  ;;  %v4436_v43 = vpop.xlane.xlu1 %4435  ;;  %v4916_v31 = vmul.f32 1.442695, %v4770_v11  ;;  %11920 = vpow2.f32 %v4910_v42  ;;  %v4775_v11 = vsub.f32 %v14085_v23, %v4439_v15 }
 0x395   :  { %17494 = vst [vmem:[#allocation116_spill] sm:$0xff] %v14452_v52  ;;  %v10579_v2 = vpop.f32.mrf.mxu1  ;;  %v4774_v6 = vsub.f32 %v14073_v39, %v4436_v43 }
 0x396   :  { %v10584_v12 = vpop.f32.mrf.mxu0  ;;  %11922 = vpow2.f32 %v4916_v31 }
 0x397   :  { %v14458_v18 = vpop.f32.mrf.mxu1  ;;  %v14472_v12 = vpop.eup %11906  ;;  %v4924_v39 = vmul.f32 1.442695, %v4774_v6  ;;  %11924 = vpow2.f32 %v4918_v61  ;;  %v4926_v6 = vmul.f32 1.442695, %v4775_v11 }
 0x398   :  { %17495 = vst [vmem:[#allocation117_spill] sm:$0xff] %v14458_v18  ;;  %v14462_v62 = vpop.f32.mrf.mxu0  ;;  %5164 = vadd.xlane.f32.xlu0 %v5163_v49  ;;  %4591 = vmax.xlane.f32.xlu1 %v4590_v13  ;;  %v4593_v49 = vsel %vm4367_vm3, %v14375_v37, -inf  ;;  %v4587_v13 = vsel %vm4367_vm3, %v14373_v57, -inf  ;;  %v14478_v50 = vpop.eup %11908 }
 0x399   :  { %17496 = vst [vmem:[#allocation118_spill] sm:$0xff] %v14462_v62  ;;  %v10590_v26 = vpop.f32.mrf.mxu1  ;;  %17499 = vst [vmem:[#allocation121_spill] sm:$0xff] %v14478_v50  ;;  %v14481_v43 = vpop.xlane.xlu1 %4447  ;;  %v5220_v23 = vsel %vm4367_vm3, %v14478_v50, 0.0  ;;  %11926 = vpow2.f32 %v4924_v39 }
 0x39a   :  { %v10585_v41 = vpop.f32.mrf.mxu0  ;;  %v4451_v42 = vpop.xlane.xlu0 %4450  ;;  %11928 = vpow2.f32 %v4926_v6 }
 0x39b   :  { %v14468_v2 = vpop.f32.mrf.mxu1  ;;  %v5166_v41 = vsel %vm4367_vm3, %v14472_v12, 0.0 }
 0x39c   :  { %17497 = vst [vmem:[#allocation119_spill] sm:$0xff] %v14468_v2  ;;  %v14474_v51 = vpop.f32.mrf.mxu0  ;;  %4585 = vmax.xlane.f32.xlu1 %v4584_v46  ;;  %4594 = vmax.xlane.f32.xlu0 %v4593_v49  ;;  %v14487_v46 = vpop.eup %11910 }
 0x39d   :  { %17498 = vst [vmem:[#allocation120_spill] sm:$0xff] %v14474_v51  ;;  %v10591_v32 = vpop.f32.mrf.mxu1  ;;  %v14493_v15 = vpop.eup %11912 }
 0x39e   :  { %v10596_v10 = vpop.f32.mrf.mxu0  ;;  %17502 = vst [vmem:[#allocation124_spill] sm:$0xff] %v14493_v15  ;;  %v4779_v32 = vsub.f32 %v14113_v63, %v4451_v42  ;;  %v5223_v57 = vsel %vm4367_vm3, %v14493_v15, 0.0 }
 0x39f   :  { %v14483_v26 = vpop.f32.mrf.mxu1  ;;  %v14496_v10 = vpop.xlane.xlu1 %4459 }
 0x3a0   :  { %17500 = vst [vmem:[#allocation122_spill] sm:$0xff] %v14483_v26  ;;  %v14489_v27 = vpop.f32.mrf.mxu0  ;;  %5167 = vadd.xlane.f32.xlu1 %v5166_v41  ;;  %4588 = vmax.xlane.f32.xlu0 %v4587_v13  ;;  %v5169_v41 = vsel %vm4367_vm3, %v14487_v46, 0.0  ;;  %v14502_v13 = vpop.eup %11914  ;;  %v4934_v39 = vmul.f32 1.442695, %v4779_v32 }
 0x3a1   :  { %17501 = vst [vmem:[#allocation123_spill] sm:$0xff] %v14489_v27  ;;  %v10602_v49 = vpop.f32.mrf.mxu1  ;;  %v14506_v58 = vpop.eup %11916  ;;  %v5172_v42 = vsel %vm4367_vm3, %v14502_v13, 0.0 }
 0x3a2   :  { %v10597_v31 = vpop.f32.mrf.mxu0  ;;  %v14516_v21 = vpop.eup %11918  ;;  %11930 = vpow2.f32 %v4934_v39  ;;  %v5175_v36 = vsel %vm4367_vm3, %v14506_v58, 0.0 }
 0x3a3   :  { %v14498_v37 = vpop.f32.mrf.mxu1  ;;  %v14508_v63 = vpop.xlane.xlu1 %4471  ;;  %v5178_v20 = vsel %vm4367_vm3, %v14516_v21, 0.0 }
 0x3a4   :  { %17503 = vst [vmem:[#allocation125_spill] sm:$0xff] %v14498_v37  ;;  %v14504_v61 = vpop.f32.mrf.mxu0  ;;  %5221 = vadd.xlane.f32.xlu1 %v5220_v23  ;;  %5170 = vadd.xlane.f32.xlu0 %v5169_v41  ;;  %v14518_v23 = vpop.xlane.xlu0 %4462 }
 0x3a5   :  { %17504 = vst [vmem:[#allocation126_spill] sm:$0xff] %v14504_v61  ;;  %v10603_v49 = vpop.f32.mrf.mxu1 }
 0x3a6   :  { %v10608_v31 = vpop.f32.mrf.mxu0  ;;  %v14522_v49 = vpop.eup %11920 }
 0x3a7   :  { %v14510_v11 = vpop.f32.mrf.mxu1  ;;  %v5181_v50 = vsel %vm4367_vm3, %v14522_v49, 0.0 }
 0x3a8   :  { %17505 = vst [vmem:[#allocation127_spill] sm:$0xff] %v14510_v11  ;;  %v14520_v41 = vpop.f32.mrf.mxu0  ;;  %5173 = vadd.xlane.f32.xlu1 %v5172_v42  ;;  %5224 = vadd.xlane.f32.xlu0 %v5223_v57  ;;  %v14530_v11 = vpop.eup %11922 }
 0x3a9   :  { %17506 = vst [vmem:[#allocation128_spill] sm:$0xff] %v14520_v41  ;;  %v10614_v6 = vpop.f32.mrf.mxu1  ;;  %v14532_v61 = vpop.xlane.xlu0 %4474 }
 0x3aa   :  { %v10609_v32 = vpop.f32.mrf.mxu0  ;;  %v14536_v57 = vpop.xlane.xlu1 %4465 }
 0x3ab   :  { %v14524_v31 = vpop.f32.mrf.mxu1  ;;  %v14538_v6 = vpop.eup %11924 }
 0x3ac   :  { %17507 = vst [vmem:[#allocation129_spill] sm:$0xff] %v14524_v31  ;;  %v14534_v41 = vpop.f32.mrf.mxu0  ;;  %5179 = vadd.xlane.f32.xlu1 %v5178_v20  ;;  %5176 = vadd.xlane.f32.xlu0 %v5175_v36  ;;  %v5190_v31 = vsel %vm4367_vm3, %v14530_v11, 0.0  ;;  %v14546_v15 = vpop.eup %11926  ;;  %v5193_v26 = vsel %vm4367_vm3, %v14538_v6, 0.0 }
 0x3ad   :  { %17508 = vst [vmem:[#allocation130_spill] sm:$0xff] %v14534_v41  ;;  %v10615_v42 = vpop.f32.mrf.mxu1  ;;  %17510 = vst [vmem:[#allocation132_spill] sm:$0xff] %v14546_v15  ;;  %v14550_v36 = vpop.xlane.xlu0 %4468 }
 0x3ae   :  { %v10620_v39 = vpop.f32.mrf.mxu0  ;;  %v14560_v27 = vpop.eup %11928 }
 0x3af   :  { %v14540_v32 = vpop.f32.mrf.mxu1  ;;  %v14552_v39 = vpop.xlane.xlu1 %4483  ;;  %17513 = vst [vmem:[#allocation135_spill] sm:$0xff] %v14560_v27 }
 0x3b0   :  { %17509 = vst [vmem:[#allocation131_spill] sm:$0xff] %v14540_v32  ;;  %v14548_v37 = vpop.f32.mrf.mxu0  ;;  %5191 = vadd.xlane.f32.xlu1 %v5190_v31  ;;  %5182 = vadd.xlane.f32.xlu0 %v5181_v50  ;;  %v5202_v32 = vsel %vm4367_vm3, %v14546_v15, 0.0 }
 0x3b1   :  { %17511 = vst [vmem:[#allocation133_spill] sm:$0xff] %v14548_v37  ;;  %v10626_v20 = vpop.f32.mrf.mxu1  ;;  %v14570_v37 = vpop.xlane.xlu0 %4486 }
 0x3b2   :  { %v10621_v42 = vpop.f32.mrf.mxu0 }
 0x3b3   :  { %v14554_v41 = vpop.f32.mrf.mxu1  ;;  %v5205_v42 = vsel %vm4367_vm3, %v14560_v27, 0.0  ;;  %v14574_v18 = vpop.xlane.xlu1 %4477 }
 0x3b4   :  { %17512 = vst [vmem:[#allocation134_spill] sm:$0xff] %v14554_v41  ;;  %v14562_v51 = vpop.f32.mrf.mxu0  ;;  %5203 = vadd.xlane.f32.xlu1 %v5202_v32  ;;  %5194 = vadd.xlane.f32.xlu0 %v5193_v26  ;;  %v14568_v41 = vpop.eup %11930 }
 0x3b5   :  { %17514 = vst [vmem:[#allocation136_spill] sm:$0xff] %v14562_v51  ;;  %v10627_v50 = vpop.f32.mrf.mxu1  ;;  %17516 = vst [vmem:[#allocation138_spill] sm:$0xff] %v14568_v41  ;;  %v5217_v26 = vsel %vm4367_vm3, %v14568_v41, 0.0 }
 0x3b6   :  { %v10632_v31 = vpop.f32.mrf.mxu0 }
 0x3b7   :  { %v14564_v20 = vpop.f32.mrf.mxu1  ;;  %v14584_v15 = vpop.xlane.xlu1 %4495 }
 0x3b8   :  { %17515 = vst [vmem:[#allocation137_spill] sm:$0xff] %v14564_v20  ;;  %v14572_v2 = vpop.f32.mrf.mxu0  ;;  %5206 = vadd.xlane.f32.xlu0 %v5205_v42  ;;  %v14582_v20 = vpop.xlane.xlu0 %4480 }
 0x3b9   :  { %17517 = vst [vmem:[#allocation139_spill] sm:$0xff] %v14572_v2  ;;  %v10638_v62 = vpop.f32.mrf.mxu1 }
 0x3ba   :  { %v10633_v51 = vpop.f32.mrf.mxu0 }
 0x3bb   :  { %v14576_v32 = vpop.f32.mrf.mxu1 }
 0x3bc   :  { %17518 = vst [vmem:[#allocation140_spill] sm:$0xff] %v14576_v32  ;;  %v14580_v50 = vpop.f32.mrf.mxu0  ;;  %5218 = vadd.xlane.f32.xlu0 %v5217_v26  ;;  %v14592_v32 = vpop.xlane.xlu0 %4498 }
 0x3bd   :  { %17519 = vst [vmem:[#allocation141_spill] sm:$0xff] %v14580_v50  ;;  %v10639_v31 = vpop.f32.mrf.mxu1  ;;  %v14596_v50 = vpop.xlane.xlu1 %4489 }
 0x3be   :  { %v10644_v52 = vpop.f32.mrf.mxu0  ;;  %v17524_v31 = vld [vmem:[#allocation9_spill] sm:$0xff] }
 0x3bf   :  { %v14586_v2 = vpop.f32.mrf.mxu1 }
 0x3c0   :  { %17520 = vst [vmem:[#allocation142_spill] sm:$0xff] %v14586_v2  ;;  %v14588_v42 = vpop.f32.mrf.mxu0 }
 0x3c1   :  { %17521 = vst [vmem:[#allocation143_spill] sm:$0xff] %v14588_v42  ;;  %v10650_v62 = vpop.f32.mrf.mxu1 }
 0x3c2   :  { %v10645_v51 = vpop.f32.mrf.mxu0 }
 0x3c3   :  { %v14590_v27 = vpop.f32.mrf.mxu1  ;;  %v14606_v51 = vpop.xlane.xlu0 %4492 }
 0x3c4   :  { %17522 = vst [vmem:[#allocation144_spill] sm:$0xff] %v14590_v27  ;;  %v14594_v41 = vpop.f32.mrf.mxu0 }
 0x3c5   :  { %17523 = vst [vmem:[#allocation145_spill] sm:$0xff] %v14594_v41  ;;  %v10651_v26 = vpop.f32.mrf.mxu1  ;;  %6216 = vrot.lane.b32.xlu1 %v17524_v31, %s12392_s6 }
 0x3c6   :  { %v10656_v52 = vpop.f32.mrf.mxu0 }
 0x3c7   :  { %v14600_v38 = vpop.f32.mrf.mxu1 }
 0x3c8   :  { %17525 = vst [vmem:[#allocation9_spill] sm:$0xff] %v14600_v38  ;;  %v14602_v2 = vpop.f32.mrf.mxu0 }
 0x3c9   :  { %17526 = vst [vmem:[#allocation146_spill] sm:$0xff] %v14602_v2  ;;  %v10662_v42 = vpop.f32.mrf.mxu1  ;;  %v14604_v62 = vpop.xlane.xlu1 %4507 }
 0x3ca   :  { %17527 = vst [vmem:[#allocation147_spill] sm:$0xff] %v14604_v62  ;;  %v10657_v27 = vpop.f32.mrf.mxu0  ;;  %v4778_v42 = vsub.f32 %v14101_v56, %v14481_v43 }
 0x3cb   :  { %v14608_v8 = vpop.f32.mrf.mxu1 }
 0x3cc   :  { %17528 = vst [vmem:[#allocation148_spill] sm:$0xff] %v14608_v8  ;;  %v14610_v41 = vpop.f32.mrf.mxu0 }
 0x3cd   :  { %17529 = vst [vmem:[#allocation149_spill] sm:$0xff] %v14610_v41  ;;  %v10663_v33 = vpop.f32.mrf.mxu1  ;;  %v14612_v26 = vpop.xlane.xlu1 %4501 }
 0x3ce   :  { %v14614_v7 = vpop.xlane.xlu0 %4510  ;;  %v10668_v31 = vpop.f32.mrf.mxu0  ;;  %v17535_v33 = vld [vmem:[#allocation10_spill] sm:$0xff] }
 0x3cf   :  { %17530 = vst [vmem:[#allocation150_spill] sm:$0xff] %v14614_v7  ;;  %v14616_v52 = vpop.f32.mrf.mxu1  ;;  %v4932_v7 = vmul.f32 1.442695, %v4778_v42  ;;  %v4782_v31 = vsub.f32 %v14130_v55, %v14496_v10 }
 0x3d0   :  { %17531 = vst [vmem:[#allocation151_spill] sm:$0xff] %v14616_v52  ;;  %v14620_v38 = vpop.f32.mrf.mxu0 }
 0x3d1   :  { %17532 = vst [vmem:[#allocation152_spill] sm:$0xff] %v14620_v38  ;;  %v10674_v2 = vpop.f32.mrf.mxu1  ;;  %v14622_v62 = vpop.xlane.xlu1 %4519  ;;  %11932 = vpow2.f32 %v4932_v7 }
 0x3d2   :  { %17533 = vst [vmem:[#allocation153_spill] sm:$0xff] %v14622_v62  ;;  %v14624_v27 = vpop.xlane.xlu0 %4504  ;;  %v10669_v8 = vpop.f32.mrf.mxu0  ;;  %6263 = vrot.lane.b32.xlu0 %v17535_v33, %s12392_s6  ;;  %v4783_v33 = vsub.f32 %v14140_v5, %v14518_v23  ;;  %v4784_v23 = vsub.f32 %v14028_v54, %v14536_v57 }
 0x3d3   :  { %17534 = vst [vmem:[#allocation154_spill] sm:$0xff] %v14624_v27  ;;  %v14628_v41 = vpop.f32.mrf.mxu1  ;;  %v4940_v8 = vmul.f32 1.442695, %v4782_v31 }
 0x3d4   :  { %17536 = vst [vmem:[#allocation10_spill] sm:$0xff] %v14628_v41  ;;  %v14632_v52 = vpop.f32.mrf.mxu0 }
 0x3d5   :  { %17537 = vst [vmem:[#allocation155_spill] sm:$0xff] %v14632_v52  ;;  %v10675_v56 = vpop.f32.mrf.mxu1  ;;  %v14634_v43 = vpop.xlane.xlu1 %4513  ;;  %11934 = vpow2.f32 %v4940_v8  ;;  %v4942_v52 = vmul.f32 1.442695, %v4783_v33 }
 0x3d6   :  { %v14636_v2 = vpop.xlane.xlu0 %4522  ;;  %v10680_v38 = vpop.f32.mrf.mxu0 }
 0x3d7   :  { %v14638_v62 = vpop.f32.mrf.mxu1  ;;  %11936 = vpow2.f32 %v4942_v52 }
 0x3d8   :  { %17538 = vst [vmem:[#allocation156_spill] sm:$0xff] %v14638_v62  ;;  %v14642_v41 = vpop.f32.mrf.mxu0 }
 0x3d9   :  { %17539 = vst [vmem:[#allocation157_spill] sm:$0xff] %v14642_v41  ;;  %v10686_v42 = vpop.f32.mrf.mxu1  ;;  %v14644_v27 = vpop.xlane.xlu1 %4531 }
 0x3da   :  { %17540 = vst [vmem:[#allocation158_spill] sm:$0xff] %v14644_v27  ;;  %v14646_v55 = vpop.xlane.xlu0 %4516  ;;  %v10681_v10 = vpop.f32.mrf.mxu0 }
 0x3db   :  { %v14648_v56 = vpop.f32.mrf.mxu1 }
 0x3dc   :  { %17541 = vst [vmem:[#allocation159_spill] sm:$0xff] %v14648_v56  ;;  %v14650_v38 = vpop.f32.mrf.mxu0 }
 0x3dd   :  { %17542 = vst [vmem:[#allocation160_spill] sm:$0xff] %v14650_v38  ;;  %v10687_v62 = vpop.f32.mrf.mxu1  ;;  %v14652_v7 = vpop.xlane.xlu1 %4525  ;;  %v4944_v38 = vmul.f32 1.442695, %v4784_v23 }
 0x3de   :  { %v14654_v31 = vpop.xlane.xlu0 %4534  ;;  %v10692_v5 = vpop.f32.mrf.mxu0  ;;  %v4786_v62 = vsub.f32 %v14154_v35, %v14508_v63 }
 0x3df   :  { %v14658_v42 = vpop.f32.mrf.mxu1  ;;  %v4785_v5 = vsub.f32 %v14045_v25, %v14550_v36  ;;  %v14670_v54 = vpop.eup %11932 }
 0x3e0   :  { %17543 = vst [vmem:[#allocation161_spill] sm:$0xff] %v14658_v42  ;;  %v14660_v41 = vpop.f32.mrf.mxu0  ;;  %v4948_v42 = vmul.f32 1.442695, %v4786_v62  ;;  %v5214_v35 = vsel %vm4367_vm3, %v14670_v54, 0.0  ;;  %v4596_v62 = vsel %vm4367_vm3, %v14386_v45, -inf }
 0x3e1   :  { %17544 = vst [vmem:[#allocation162_spill] sm:$0xff] %v14660_v41  ;;  %v10698_v10 = vpop.f32.mrf.mxu1  ;;  %v5138_v56 = vpop.xlane.xlu1 %5137  ;;  %v4946_v41 = vmul.f32 1.442695, %v4785_v5 }
 0x3e2   :  { %v14662_v8 = vpop.xlane.xlu0 %4528  ;;  %v10693_v33 = vpop.f32.mrf.mxu0  ;;  %11938 = vrcp.f32 %v5138_v56 }
 0x3e3   :  { %v14666_v27 = vpop.f32.mrf.mxu1  ;;  %11940 = vpow2.f32 %v4944_v38  ;;  %v4787_v33 = vsub.f32 %v14161_v40, %v14532_v61  ;;  %v14678_v63 = vpop.eup %11934 }
 0x3e4   :  { %17545 = vst [vmem:[#allocation163_spill] sm:$0xff] %v14666_v27  ;;  %v5226_v38 = vsel %vm4367_vm3, %v14678_v63, 0.0  ;;  %v14686_v23 = vpop.eup %11936 }
 0x3e5   :  { %v10699_v57 = vpop.f32.mrf.mxu1  ;;  %v14672_v52 = vpop.xlane.xlu1 %5185  ;;  %v4950_v56 = vmul.f32 1.442695, %v4787_v33  ;;  %v5229_v5 = vsel %vm4367_vm3, %v14686_v23, 0.0  ;;  %v4599_v33 = vsel %vm4367_vm3, %v14395_v60, -inf }
 0x3e6   :  { %v5141_v10 = vpop.xlane.xlu0 %5140 }
 0x3e7   :  { %11942 = vrcp.f32 %v5141_v10 }
 0x3e8   :  { %11944 = vpow2.f32 %v4948_v42 }
 0x3e9   :  { %v14680_v25 = vpop.xlane.xlu1 %4543  ;;  %5215 = vadd.xlane.f32.xlu1 %v5214_v35  ;;  %11946 = vpow2.f32 %v4946_v41  ;;  %v4602_v35 = vsel %vm4367_vm3, %v14388_v29, -inf  ;;  %v4605_v29 = vsel %vm4367_vm3, %v14397_v14, -inf }
 0x3ea   :  { %17546 = vst [vmem:[#allocation164_spill] sm:$0xff] %v14680_v25  ;;  %v14682_v36 = vpop.xlane.xlu0 %5188  ;;  %11948 = vpow2.f32 %v4950_v56 }
 0x3ed   :  { %v14688_v40 = vpop.xlane.xlu1 %4537  ;;  %5227 = vadd.xlane.f32.xlu1 %v5226_v38 }
 0x3ee   :  { %v14690_v61 = vpop.xlane.xlu0 %4546 }
 0x3ef   :  { %17547 = vst [vmem:[#allocation165_spill] sm:$0xff] %v14690_v61  ;;  %v11939_v57 = vpop.eup %11938 }
 0x3f0   :  { %v14698_v10 = vpop.eup %11940  ;;  %v5648_v27 = vmul.f32 %v11939_v57, %v14265_v1  ;;  %v17549_v1 = vld [vmem:[#allocation90_spill] sm:$0xff] }
 0x3f1   :  { %v5144_v42 = vpop.xlane.xlu1 %5143  ;;  %4597 = vmax.xlane.f32.xlu1 %v4596_v62  ;;  %5230 = vadd.xlane.f32.xlu0 %v5229_v5  ;;  %v5232_v60 = vsel %vm4367_vm3, %v14698_v10, 0.0 }
 0x3f2   :  { %v14696_v41 = vpop.xlane.xlu0 %4540  ;;  %11950 = vrcp.f32 %v5144_v42 }
 0x3f4   :  { %v11943_v56 = vpop.eup %11942 }
 0x3f5   :  { %v14704_v38 = vpop.xlane.xlu1 %5197  ;;  %4600 = vmax.xlane.f32.xlu0 %v4599_v33  ;;  %4603 = vmax.xlane.f32.xlu1 %v4602_v35  ;;  %v5649_v62 = vmul.f32 %v11943_v56, %v14283_v19  ;;  %v14708_v45 = vpop.eup %11944 }
 0x3f6   :  { %v5147_v5 = vpop.xlane.xlu0 %5146  ;;  %v14714_v25 = vpop.eup %11946 }
 0x3f7   :  { %11952 = vrcp.f32 %v5147_v5  ;;  %v5776_v61 = vpack.c.bf16 %v5649_v62, %v5648_v27  ;;  %v5238_v27 = vsel %vm4367_vm3, %v14708_v45, 0.0  ;;  %v5235_v42 = vsel %vm4367_vm3, %v14714_v25, 0.0  ;;  %v14729_v57 = vpop.eup %11948 }
 0x3f9   :  { %v14716_v33 = vpop.xlane.xlu1 %4555  ;;  %5233 = vadd.xlane.f32.xlu1 %v5232_v60  ;;  %4606 = vmax.xlane.f32.xlu0 %v4605_v29 }
 0x3fa   :  { %17548 = vst [vmem:[#allocation166_spill] sm:$0xff] %v14716_v33  ;;  %10703 = vmatmul.mubr.msk.bf16.vlgmr.msra.gmra.mxu0 %vm4367_vm3, %v5776_v61  ;;  %v14719_v19 = vpop.xlane.xlu0 %5200  ;;  %v5241_v61 = vsel %vm4367_vm3, %v14729_v57, 0.0 }
 0x3fb   :  { %10713 = vmatpush3.bf16.msra.mxu0 %v17549_v1  ;;  %10714 = vmatprep.mubr.msk.bf16.mxu0 %vm12391_vm1, %v17305_v47 }
 0x3fc   :  { %10724 = vmatprep.subr.bf16.mxu0 %v17305_v47 }
 0x3fd   :  { %v14731_v29 = vpop.xlane.xlu1 %4549  ;;  %5239 = vadd.xlane.f32.xlu1 %v5238_v27  ;;  %5236 = vadd.xlane.f32.xlu0 %v5235_v42 }
 0x3fe   :  { %17550 = vst [vmem:[#allocation90_spill] sm:$0xff] %v14731_v29  ;;  %v14733_v60 = vpop.xlane.xlu0 %4558 }
 0x3ff   :  { %17551 = vst [vmem:[#allocation167_spill] sm:$0xff] %v14733_v60  ;;  %v11951_v62 = vpop.eup %11950 }
 0x400   :  { %v5650_v14 = vmul.f32 %v11951_v62, %v14309_v16 }
 0x401   :  { %v5150_v35 = vpop.xlane.xlu1 %5149  ;;  %5242 = vadd.xlane.f32.xlu0 %v5241_v61  ;;  %v17555_v61 = vld [vmem:[#allocation17_spill] sm:$0xff] }
 0x402   :  { %v14737_v56 = vpop.xlane.xlu0 %4552  ;;  %11954 = vrcp.f32 %v5150_v35 }
 0x404   :  { %v11953_v5 = vpop.eup %11952 }
 0x405   :  { %v14739_v1 = vpop.xlane.xlu1 %5209  ;;  %v5651_v33 = vmul.f32 %v11953_v5, %v14322_v17 }
 0x406   :  { %v5153_v27 = vpop.xlane.xlu0 %5152 }
 0x407   :  { %11956 = vrcp.f32 %v5153_v27  ;;  %v5777_v42 = vpack.c.bf16 %v5651_v33, %v5650_v14 }
 0x409   :  { %v14743_v60 = vpop.xlane.xlu1 %4567  ;;  %10709 = vmatmul.mubr.msk.bf16.vlgmr.msra.gmra.mxu1 %vm4367_vm3, %v5777_v42 }
 0x40a   :  { %17552 = vst [vmem:[#allocation168_spill] sm:$0xff] %v14743_v60  ;;  %v14746_v29 = vpop.xlane.xlu0 %5212  ;;  %10719 = vmatpush3.bf16.msra.mxu1 %v14199_v44  ;;  %10720 = vmatprep.mubr.msk.bf16.mxu1 %vm12391_vm1, %v17305_v47  ;;  %v17557_v60 = vld [vmem:[#allocation12_spill] sm:$0xff] }
 0x40b   :  { %10730 = vmatprep.subr.bf16.mxu1 %v17305_v47 }
 0x40d   :  { %v14752_v16 = vpop.xlane.xlu1 %4561 }
 0x40e   :  { %17553 = vst [vmem:[#allocation169_spill] sm:$0xff] %v14752_v16  ;;  %v14754_v17 = vpop.xlane.xlu0 %4570  ;;  %6310 = vrot.lane.b32.xlu1 %v17555_v61, %s12392_s6 }
 0x40f   :  { %17554 = vst [vmem:[#allocation170_spill] sm:$0xff] %v14754_v17  ;;  %v11955_v35 = vpop.eup %11954 }
 0x410   :  { %v5652_v44 = vmul.f32 %v11955_v35, %v14357_v28 }
 0x411   :  { %v5156_v14 = vpop.xlane.xlu1 %5155 }
 0x412   :  { %v14758_v33 = vpop.xlane.xlu0 %4564  ;;  %11958 = vrcp.f32 %v5156_v14 }
 0x414   :  { %v11957_v62 = vpop.eup %11956 }
 0x415   :  { %v14760_v5 = vpop.xlane.xlu1 %4579  ;;  %v5653_v27 = vmul.f32 %v11957_v62, %v14363_v30  ;;  %v4790_v62 = vsub.f32 %v14173_v22, %v14552_v39 }
 0x416   :  { %17556 = vst [vmem:[#allocation17_spill] sm:$0xff] %v14760_v5  ;;  %v5159_v42 = vpop.xlane.xlu0 %5158 }
 0x417   :  { %6357 = vrot.lane.b32.xlu0 %v17557_v60, %s12392_s6  ;;  %11960 = vrcp.f32 %v5159_v42  ;;  %v5778_v17 = vpack.c.bf16 %v5653_v27, %v5652_v44  ;;  %v4788_v60 = vsub.f32 %v14115_v4, %v14574_v18  ;;  %v4789_v44 = vsub.f32 %v14132_v48, %v14582_v20  ;;  %v17560_v20 = vld [vmem:[#allocation32_spill] sm:$0xff] }
 0x418   :  { %v4956_v4 = vmul.f32 1.442695, %v4790_v62 }
 0x419   :  { %v14766_v16 = vpop.xlane.xlu1 %4573  ;;  %10715 = vmatmul.mubr.msk.bf16.vlgmr.msra.gmra.mxu0 %vm4367_vm3, %v5778_v17  ;;  %v4952_v42 = vmul.f32 1.442695, %v4788_v60  ;;  %v4954_v22 = vmul.f32 1.442695, %v4789_v44  ;;  %v17561_v60 = vld [vmem:[#allocation108_spill] sm:$0xff] }
 0x41a   :  { %v14769_v61 = vpop.xlane.xlu0 %4582  ;;  %10725 = vmatpush3.bf16.msra.mxu0 %v14207_v0  ;;  %10726 = vmatprep.mubr.msk.bf16.mxu0 %vm12391_vm1, %v17305_v47 }
 0x41b   :  { %17558 = vst [vmem:[#allocation12_spill] sm:$0xff] %v14769_v61  ;;  %10736 = vmatprep.subr.bf16.mxu0 %v17305_v47 }
 0x41d   :  { %v5162_v28 = vpop.xlane.xlu1 %5161 }
 0x41e   :  { %v14775_v30 = vpop.xlane.xlu0 %4576  ;;  %11962 = vrcp.f32 %v5162_v28  ;;  %v4791_v28 = vsub.f32 %v14183_v59, %v14570_v37 }
 0x41f   :  { %v11959_v17 = vpop.eup %11958 }
 0x420   :  { %v5654_v61 = vmul.f32 %v11959_v17, %v14403_v34  ;;  %v4958_v34 = vmul.f32 1.442695, %v4791_v28 }
 0x421   :  { %v14777_v14 = vpop.xlane.xlu1 %4591 }
 0x422   :  { %17559 = vst [vmem:[#allocation171_spill] sm:$0xff] %v14777_v14  ;;  %v5165_v35 = vpop.xlane.xlu0 %5164 }
 0x423   :  { %11964 = vrcp.f32 %v5165_v35  ;;  %v4608_v35 = vsel %vm4367_vm3, %v17561_v60, -inf }
 0x424   :  { %v11961_v0 = vpop.eup %11960  ;;  %11966 = vpow2.f32 %v4952_v42  ;;  %v17562_v42 = vld [vmem:[#allocation110_spill] sm:$0xff] }
 0x425   :  { %v14785_v27 = vpop.xlane.xlu1 %4585  ;;  %v5655_v14 = vmul.f32 %v11961_v0, %v14414_v3  ;;  %11968 = vpow2.f32 %v4956_v4  ;;  %v4611_v4 = vsel %vm4367_vm3, %v17562_v42, -inf }
 0x426   :  { %v14789_v5 = vpop.xlane.xlu0 %4594  ;;  %11970 = vpow2.f32 %v4954_v22  ;;  %v17563_v22 = vld [vmem:[#allocation109_spill] sm:$0xff] }
 0x427   :  { %v5779_v18 = vpack.c.bf16 %v5655_v14, %v5654_v61 }
 0x429   :  { %v5168_v39 = vpop.xlane.xlu1 %5167  ;;  %10721 = vmatmul.mubr.msk.bf16.vlgmr.msra.gmra.mxu1 %vm4367_vm3, %v5779_v18 }
 0x42a   :  { %v14794_v48 = vpop.xlane.xlu0 %4588  ;;  %10731 = vmatpush3.bf16.msra.mxu1 %v17560_v20  ;;  %10732 = vmatprep.mubr.msk.bf16.mxu1 %vm12391_vm1, %v17305_v47  ;;  %11972 = vrcp.f32 %v5168_v39  ;;  %v4614_v39 = vsel %vm4367_vm3, %v17563_v22, -inf }
 0x42b   :  { %10742 = vmatprep.subr.bf16.mxu1 %v17305_v47  ;;  %v11963_v37 = vpop.eup %11962 }
 0x42c   :  { %v5656_v17 = vmul.f32 %v11963_v37, %v14438_v24  ;;  %v17564_v24 = vld [vmem:[#allocation36_spill] sm:$0xff] }
 0x42d   :  { %v14800_v3 = vpop.xlane.xlu1 %5221 }
 0x42e   :  { %v5171_v59 = vpop.xlane.xlu0 %5170 }
 0x42f   :  { %11974 = vrcp.f32 %v5171_v59 }
 0x430   :  { %v11965_v61 = vpop.eup %11964  ;;  %11976 = vpow2.f32 %v4958_v34  ;;  %v4617_v34 = vsel %vm4367_vm3, %v14421_v9, -inf }
 0x431   :  { %v5174_v14 = vpop.xlane.xlu1 %5173  ;;  %v5657_v62 = vmul.f32 %v11965_v61, %v14450_v53  ;;  %v14813_v20 = vpop.eup %11966 }
 0x432   :  { %v14806_v0 = vpop.xlane.xlu0 %5224  ;;  %4609 = vmax.xlane.f32.xlu1 %v4608_v35  ;;  %11978 = vrcp.f32 %v5174_v14  ;;  %v14819_v53 = vpop.eup %11968  ;;  %v5244_v61 = vsel %vm4367_vm3, %v14813_v20, 0.0 }
 0x433   :  { %v5780_v44 = vpack.c.bf16 %v5657_v62, %v5656_v17  ;;  %v14823_v59 = vpop.eup %11970 }
 0x434   :  { %v5247_v62 = vsel %vm4367_vm3, %v14823_v59, 0.0 }
 0x435   :  { %10727 = vmatmul.mubr.msk.bf16.vlgmr.msra.gmra.mxu0 %vm4367_vm3, %v5780_v44  ;;  %v5180_v18 = vpop.xlane.xlu1 %5179 }
 0x436   :  { %v5177_v28 = vpop.xlane.xlu0 %5176  ;;  %4612 = vmax.xlane.f32.xlu0 %v4611_v4  ;;  %10737 = vmatpush3.bf16.msra.mxu0 %v17564_v24 }
 0x437   :  { %11980 = vrcp.f32 %v5177_v28  ;;  %4615 = vmax.xlane.f32.xlu1 %v4614_v39  ;;  %10738 = vmatprep.mubr.msk.bf16.mxu0 %vm12391_vm1, %v17305_v47  ;;  %v11973_v14 = vpop.eup %11972  ;;  %v5250_v28 = vsel %vm4367_vm3, %v14819_v53, 0.0 }
 0x438   :  { %10748 = vmatprep.subr.bf16.mxu0 %v17305_v47  ;;  %11982 = vrcp.f32 %v5180_v18  ;;  %v5658_v4 = vmul.f32 %v11973_v14, %v14472_v12 }
 0x439   :  { %11984 = vrcp.f32 %v14682_v36  ;;  %v5192_v17 = vpop.xlane.xlu1 %5191 }
 0x43a   :  { %v5183_v37 = vpop.xlane.xlu0 %5182  ;;  %4618 = vmax.xlane.f32.xlu0 %v4617_v34 }
 0x43b   :  { %11986 = vrcp.f32 %v5183_v37  ;;  %5245 = vadd.xlane.f32.xlu1 %v5244_v61 }
 0x43c   :  { %v11975_v35 = vpop.eup %11974  ;;  %11988 = vrcp.f32 %v14672_v52 }
 0x43d   :  { %v14831_v44 = vpop.eup %11976  ;;  %v5659_v36 = vmul.f32 %v11975_v35, %v14487_v46  ;;  %v14842_v12 = vpop.xlane.xlu1 %5203  ;;  %v17565_v46 = vld [vmem:[#allocation23_spill] sm:$0xff] }
 0x43e   :  { %v5195_v18 = vpop.xlane.xlu0 %5194  ;;  %5248 = vadd.xlane.f32.xlu0 %v5247_v62  ;;  %v5253_v52 = vsel %vm4367_vm3, %v14831_v44, 0.0 }
 0x43f   :  { %11990 = vrcp.f32 %v5195_v18  ;;  %5251 = vadd.xlane.f32.xlu1 %v5250_v28  ;;  %v5781_v39 = vpack.c.bf16 %v5659_v36, %v5658_v4  ;;  %v11979_v24 = vpop.eup %11978 }
 0x440   :  { %11992 = vrcp.f32 %v5192_v17  ;;  %v5660_v61 = vmul.f32 %v11979_v24, %v14502_v13  ;;  %v17566_v13 = vld [vmem:[#allocation31_spill] sm:$0xff] }
 0x441   :  { %10733 = vmatmul.mubr.msk.bf16.vlgmr.msra.gmra.mxu1 %vm4367_vm3, %v5781_v39  ;;  %v6217_v39 = vpop.permute.xlu1 %6216 }
 0x442   :  { %v14840_v34 = vpop.xlane.xlu0 %5206  ;;  %5254 = vadd.xlane.f32.xlu0 %v5253_v52  ;;  %10743 = vmatpush3.bf16.msra.mxu1 %v17565_v46 }
 0x443   :  { %10744 = vmatprep.mubr.msk.bf16.mxu1 %vm12391_vm1, %v17305_v47  ;;  %10754 = vmatprep.subr.bf16.mxu1 %v17305_v47 }
 0x444   :  { %v11981_v37 = vpop.eup %11980 }
 0x445   :  { %v5661_v14 = vmul.f32 %v11981_v37, %v14506_v58  ;;  %v11983_v35 = vpop.eup %11982  ;;  %v17567_v37 = vld [vmem:[#allocation68_spill] sm:$0xff] }
 0x446   :  { %v11985_v17 = vpop.eup %11984  ;;  %v14850_v62 = vpop.xlane.xlu0 %5218  ;;  %v5662_v18 = vmul.f32 %v11983_v35, %v14516_v21 }
 0x447   :  { %v5782_v4 = vpack.c.bf16 %v5661_v14, %v5660_v61  ;;  %v5665_v58 = vmul.f32 %v11985_v17, %v17566_v13  ;;  %v17568_v17 = vld [vmem:[#allocation28_spill] sm:$0xff] }
 0x448   :  { %v11987_v36 = vpop.eup %11986 }
 0x449   :  { %v5663_v28 = vmul.f32 %v11987_v36, %v14522_v49  ;;  %10739 = vmatmul.mubr.msk.bf16.vlgmr.msra.gmra.mxu0 %vm4367_vm3, %v5782_v4  ;;  %v11989_v52 = vpop.eup %11988 }
 0x44a   :  { %10749 = vmatpush3.bf16.msra.mxu0 %v6217_v39  ;;  %10750 = vmatprep.mubr.msk.bf16.mxu0 %vm12391_vm1, %v17305_v47  ;;  %v5664_v61 = vmul.f32 %v11989_v52, %v17567_v37  ;;  %v6264_v14 = vpop.permute.xlu0 %6263  ;;  %v17571_v39 = vld [vmem:[#allocation34_spill] sm:$0xff]  ;;  %v17572_v52 = vld [vmem:[#allocation21_spill] sm:$0xff] }
 0x44b   :  { %v5783_v24 = vpack.c.bf16 %v5663_v28, %v5662_v18  ;;  %10760 = vmatprep.subr.bf16.mxu0 %v17305_v47  ;;  %v17570_v18 = vld [vmem:[#allocation16_spill] sm:$0xff]  ;;  %v4794_v13 = vsub.f32 %v17572_v52, %v14584_v15  ;;  %v17575_v15 = vld [vmem:[#allocation114_spill] sm:$0xff] }
 0x44c   :  { %v11991_v46 = vpop.eup %11990  ;;  %v5784_v35 = vpack.c.bf16 %v5665_v58, %v5664_v61  ;;  %v4792_v28 = vsub.f32 %v17570_v18, %v14596_v50  ;;  %v17574_v50 = vld [vmem:[#allocation112_spill] sm:$0xff]  ;;  %v17577_v18 = vld [vmem:[#allocation115_spill] sm:$0xff] }
 0x44d   :  { %10745 = vmatmul.mubr.msk.bf16.vlgmr.msra.gmra.mxu1 %vm4367_vm3, %v5783_v24  ;;  %v11993_v21 = vpop.eup %11992  ;;  %v5667_v49 = vmul.f32 %v11991_v46, %v14538_v6  ;;  %v17569_v6 = vld [vmem:[#allocation30_spill] sm:$0xff]  ;;  %v4964_v61 = vmul.f32 1.442695, %v4794_v13 }
 0x44e   :  { %10755 = vmatpush3.bf16.msra.mxu1 %v6264_v14  ;;  %10756 = vmatprep.mubr.msk.bf16.mxu1 %vm12391_vm1, %v17305_v47  ;;  %v5666_v4 = vmul.f32 %v11993_v21, %v14530_v11  ;;  %v4793_v11 = vsub.f32 %v17571_v39, %v14606_v51  ;;  %v4960_v58 = vmul.f32 1.442695, %v4792_v28  ;;  %v17573_v24 = vld [vmem:[#allocation18_spill] sm:$0xff]  ;;  %v4629_v28 = vsel %vm4367_vm3, %v17577_v18, -inf }
 0x44f   :  { %10766 = vmatprep.subr.bf16.mxu1 %v17305_v47  ;;  %v4795_v46 = vsub.f32 %v17573_v24, %v14592_v32  ;;  %v17576_v32 = vld [vmem:[#allocation113_spill] sm:$0xff] }
 0x450   :  { %6404 = vrot.lane.b32.xlu1 %v17568_v17, %s12392_s6  ;;  %v5785_v36 = vpack.c.bf16 %v5667_v49, %v5666_v4  ;;  %v4962_v37 = vmul.f32 1.442695, %v4793_v11  ;;  %11994 = vpow2.f32 %v4960_v58  ;;  %v4620_v49 = vsel %vm4367_vm3, %v17574_v50, -inf }
 0x451   :  { %10751 = vmatmul.mubr.msk.bf16.vlgmr.msra.gmra.mxu0 %vm4367_vm3, %v5784_v35  ;;  %v4966_v14 = vmul.f32 1.442695, %v4795_v46  ;;  %v4623_v35 = vsel %vm4367_vm3, %v17575_v15, -inf  ;;  %v4626_v17 = vsel %vm4367_vm3, %v17576_v32, -inf  ;;  %v17583_v15 = vld [vmem:[#allocation135_spill] sm:$0xff] }
 0x452   :  { %10762 = vmatprep.mubr.msk.bf16.mxu0 %vm12391_vm1, %v17305_v47  ;;  %11996 = vpow2.f32 %v4962_v37 }
 0x453   :  { %11998 = vpow2.f32 %v4964_v61 }
 0x454   :  { %12000 = vpow2.f32 %v4966_v14 }
 0x455   :  { %10757 = vmatmul.mubr.msk.bf16.vlgmr.msra.gmra.mxu1 %vm4367_vm3, %v5785_v36  ;;  %12002 = vrcp.f32 %v14719_v19 }
 0x456   :  { %10768 = vmatprep.mubr.msk.bf16.mxu1 %vm12391_vm1, %v17305_v47  ;;  %12004 = vrcp.f32 %v14704_v38 }
 0x457   :  { %12006 = vrcp.f32 %v14840_v34 }
 0x458   :  { %6451 = vrot.lane.b32.xlu0 %v17569_v6, %s12392_s6  ;;  %12008 = vrcp.f32 %v14842_v12 }
 0x45d   :  { %v14894_v4 = vpop.eup %11994 }
 0x45e   :  { %v5256_v11 = vsel %vm4367_vm3, %v14894_v4, 0.0 }
 0x45f   :  { %v14904_v39 = vpop.eup %11996 }
 0x460   :  { %v14908_v52 = vpop.eup %11998  ;;  %v5259_v13 = vsel %vm4367_vm3, %v14904_v39, 0.0 }
 0x461   :  { %v14918_v58 = vpop.eup %12000  ;;  %v5262_v24 = vsel %vm4367_vm3, %v14908_v52, 0.0 }
 0x462   :  { %v5265_v12 = vsel %vm4367_vm3, %v14918_v58, 0.0  ;;  %v12003_v37 = vpop.eup %12002 }
 0x472   :  { %v14884_v21 = vpop.xlane.xlu1 %5215 }
 0x474   :  { %4621 = vmax.xlane.f32.xlu1 %v4620_v49  ;;  %v12005_v49 = vpop.eup %12004 }
 0x476   :  { %v14888_v51 = vpop.xlane.xlu1 %5227 }
 0x477   :  { %4624 = vmax.xlane.f32.xlu0 %v4623_v35  ;;  %v17581_v35 = vld [vmem:[#allocation93_spill] sm:$0xff] }
 0x478   :  { %4627 = vmax.xlane.f32.xlu1 %v4626_v17  ;;  %v5669_v17 = vmul.f32 %v12003_v37, %v17581_v35  ;;  %v17589_v35 = vld [vmem:[#allocation38_spill] sm:$0xff] }
 0x47a   :  { %v14898_v36 = vpop.xlane.xlu1 %4597  ;;  %v14900_v6 = vpop.xlane.xlu0 %5230 }
 0x47b   :  { %4630 = vmax.xlane.f32.xlu0 %v4629_v28  ;;  %v12007_v28 = vpop.eup %12006 }
 0x47c   :  { %5257 = vadd.xlane.f32.xlu1 %v5256_v11  ;;  %v17582_v11 = vld [vmem:[#allocation8_spill] sm:$0xff]  ;;  %v12009_v32 = vpop.eup %12008  ;;  %v5671_v50 = vmul.f32 %v12007_v28, %v17583_v15  ;;  %v17586_v15 = vld [vmem:[#allocation15_spill] sm:$0xff] }
 0x47e   :  { %v14912_v38 = vpop.xlane.xlu0 %4600  ;;  %v14914_v19 = vpop.xlane.xlu1 %4603 }
 0x47f   :  { %17578 = vst [vmem:[#allocation32_spill] sm:$0xff] %v14912_v38  ;;  %17579 = vst [vmem:[#allocation36_spill] sm:$0xff] %v14914_v19  ;;  %5260 = vadd.xlane.f32.xlu0 %v5259_v13  ;;  %v5668_v13 = vmul.f32 %v12005_v49, %v17582_v11  ;;  %v17585_v49 = vld [vmem:[#allocation39_spill] sm:$0xff]  ;;  %v17608_v19 = vld [vmem:[#allocation138_spill] sm:$0xff] }
 0x480   :  { %5263 = vadd.xlane.f32.xlu1 %v5262_v24 }
 0x481   :  { %v5786_v9 = vpack.c.bf16 %v5669_v17, %v5668_v13  ;;  %v17592_v13 = vld [vmem:[#allocation150_spill] sm:$0xff] }
 0x482   :  { %v14922_v46 = vpop.xlane.xlu1 %5233  ;;  %v14924_v34 = vpop.xlane.xlu0 %4606 }
 0x483   :  { %17580 = vst [vmem:[#allocation23_spill] sm:$0xff] %v14924_v34  ;;  %5266 = vadd.xlane.f32.xlu0 %v5265_v12  ;;  %v17584_v12 = vld [vmem:[#allocation132_spill] sm:$0xff] }
 0x484   :  { %v5670_v22 = vmul.f32 %v12009_v32, %v17584_v12  ;;  %v17588_v32 = vld [vmem:[#allocation154_spill] sm:$0xff] }
 0x485   :  { %v4797_v17 = vsub.f32 %v17589_v35, %v17588_v32  ;;  %v17596_v35 = vld [vmem:[#allocation117_spill] sm:$0xff] }
 0x486   :  { %v14928_v61 = vpop.xlane.xlu1 %5239  ;;  %v14930_v14 = vpop.xlane.xlu0 %5236  ;;  %v5787_v37 = vpack.c.bf16 %v5671_v50, %v5670_v22  ;;  %v17590_v22 = vld [vmem:[#allocation147_spill] sm:$0xff]  ;;  %v17591_v50 = vld [vmem:[#allocation33_spill] sm:$0xff] }
 0x487   :  { %v4798_v28 = vsub.f32 %v17591_v50, %v17590_v22 }
 0x48a   :  { %v6311_v24 = vpop.permute.xlu1 %6310  ;;  %v14934_v18 = vpop.xlane.xlu0 %5242 }
 0x48b   :  { %10761 = vmatpush3.bf16.msra.mxu0 %v6311_v24  ;;  %v17593_v24 = vld [vmem:[#allocation25_spill] sm:$0xff] }
 0x48c   :  { %10772 = vmatprep.subr.bf16.mxu0 %v17305_v47  ;;  %v4799_v12 = vsub.f32 %v17593_v24, %v17592_v13 }
 0x48e   :  { %10763 = vmatmul.mubr.msk.bf16.vlgmr.msra.gmra.mxu0 %vm4367_vm3, %v5786_v9  ;;  %v6358_v42 = vpop.permute.xlu0 %6357  ;;  %v17587_v9 = vld [vmem:[#allocation20_spill] sm:$0xff]  ;;  %v4974_v60 = vmul.f32 1.442695, %v4799_v12 }
 0x48f   :  { %10767 = vmatpush3.bf16.msra.mxu1 %v6358_v42  ;;  %10774 = vmatprep.mubr.msk.bf16.mxu0 %vm12391_vm1, %v17305_v47  ;;  %v4796_v42 = vsub.f32 %v17587_v9, %v14612_v26  ;;  %v17595_v9 = vld [vmem:[#allocation118_spill] sm:$0xff] }
 0x490   :  { %10778 = vmatprep.subr.bf16.mxu1 %v17305_v47  ;;  %v4635_v32 = vsel %vm4367_vm3, %v17595_v9, -inf }
 0x491   :  { %6498 = vrot.lane.b32.xlu1 %v17585_v49, %s12392_s6  ;;  %v4968_v11 = vmul.f32 1.442695, %v4796_v42  ;;  %v4972_v49 = vmul.f32 1.442695, %v4798_v28  ;;  %v4638_v42 = vsel %vm4367_vm3, %v17596_v35, -inf }
 0x492   :  { %10769 = vmatmul.mubr.msk.bf16.vlgmr.msra.gmra.mxu1 %vm4367_vm3, %v5787_v37  ;;  %v4970_v37 = vmul.f32 1.442695, %v4797_v17 }
 0x493   :  { %10780 = vmatprep.mubr.msk.bf16.mxu1 %vm12391_vm1, %v17305_v47  ;;  %12010 = vpow2.f32 %v4968_v11 }
 0x494   :  { %12012 = vpow2.f32 %v4970_v37 }
 0x495   :  { %12014 = vpow2.f32 %v4972_v49 }
 0x496   :  { %12016 = vpow2.f32 %v4974_v60  ;;  %v17599_v60 = vld [vmem:[#allocation119_spill] sm:$0xff] }
 0x497   :  { %12018 = vrcp.f32 %v14746_v29  ;;  %v4641_v28 = vsel %vm4367_vm3, %v17599_v60, -inf  ;;  %v17604_v60 = vld [vmem:[#allocation103_spill] sm:$0xff] }
 0x498   :  { %12020 = vrcp.f32 %v14739_v1 }
 0x499   :  { %6545 = vrot.lane.b32.xlu0 %v17586_v15, %s12392_s6  ;;  %v17594_v15 = vld [vmem:[#allocation116_spill] sm:$0xff]  ;;  %12022 = vrcp.f32 %v14884_v21 }
 0x49a   :  { %v4632_v26 = vsel %vm4367_vm3, %v17594_v15, -inf  ;;  %12024 = vrcp.f32 %v14850_v62  ;;  %v17606_v15 = vld [vmem:[#allocation100_spill] sm:$0xff] }
 0x4a0   :  { %v14964_v22 = vpop.eup %12010 }
 0x4a1   :  { %v14973_v11 = vpop.eup %12012  ;;  %v5268_v24 = vsel %vm4367_vm3, %v14964_v22, 0.0 }
 0x4a2   :  { %v14978_v12 = vpop.eup %12014  ;;  %v5271_v49 = vsel %vm4367_vm3, %v14973_v11, 0.0 }
 0x4a3   :  { %v14988_v1 = vpop.eup %12016 }
 0x4a4   :  { %v5277_v62 = vsel %vm4367_vm3, %v14988_v1, 0.0 }
 0x4b5   :  { %4633 = vmax.xlane.f32.xlu1 %v4632_v26 }
 0x4b8   :  { %4636 = vmax.xlane.f32.xlu0 %v4635_v32 }
 0x4b9   :  { %4639 = vmax.xlane.f32.xlu1 %v4638_v42  ;;  %v5274_v42 = vsel %vm4367_vm3, %v14978_v12, 0.0 }
 0x4ba   :  { %v14967_v17 = vpop.f32.mrf.mxu0 }
 0x4bb   :  { %17597 = vst [vmem:[#allocation31_spill] sm:$0xff] %v14967_v17  ;;  %v14969_v50 = vpop.xlane.xlu1 %4609 }
 0x4bc   :  { %17598 = vst [vmem:[#allocation68_spill] sm:$0xff] %v14969_v50  ;;  %v10704_v13 = vpop.f32.mrf.mxu0  ;;  %4642 = vmax.xlane.f32.xlu0 %v4641_v28 }
 0x4bd   :  { %5269 = vadd.xlane.f32.xlu1 %v5268_v24  ;;  %v12019_v13 = vpop.eup %12018 }
 0x4be   :  { %v14981_v29 = vpop.f32.mrf.mxu0  ;;  %v5673_v35 = vmul.f32 %v12019_v13, %v17604_v60 }
 0x4bf   :  { %17600 = vst [vmem:[#allocation28_spill] sm:$0xff] %v14981_v29  ;;  %v14984_v37 = vpop.xlane.xlu0 %4612 }
 0x4c0   :  { %17601 = vst [vmem:[#allocation30_spill] sm:$0xff] %v14984_v37  ;;  %v10705_v26 = vpop.f32.mrf.mxu0  ;;  %v14990_v32 = vpop.xlane.xlu1 %4615  ;;  %5272 = vadd.xlane.f32.xlu0 %v5271_v49 }
 0x4c1   :  { %17602 = vst [vmem:[#allocation16_spill] sm:$0xff] %v14990_v32  ;;  %5275 = vadd.xlane.f32.xlu1 %v5274_v42  ;;  %v12021_v26 = vpop.eup %12020 }
 0x4c2   :  { %v12023_v29 = vpop.eup %12022 }
 0x4c3   :  { %v14994_v21 = vpop.xlane.xlu0 %4618  ;;  %v12025_v42 = vpop.eup %12024 }
 0x4c4   :  { %17603 = vst [vmem:[#allocation34_spill] sm:$0xff] %v14994_v21  ;;  %v14998_v28 = vpop.xlane.xlu1 %5245  ;;  %5278 = vadd.xlane.f32.xlu0 %v5277_v62  ;;  %v5672_v21 = vmul.f32 %v12021_v26, %v17606_v15  ;;  %v5674_v62 = vmul.f32 %v12023_v29, %v14670_v54  ;;  %v5675_v38 = vmul.f32 %v12025_v42, %v17608_v19  ;;  %v17609_v54 = vld [vmem:[#allocation40_spill] sm:$0xff]  ;;  %v17611_v15 = vld [vmem:[#allocation41_spill] sm:$0xff]  ;;  %v17613_v29 = vld [vmem:[#allocation22_spill] sm:$0xff] }
 0x4c5   :  { %v17615_v26 = vld [vmem:[#allocation153_spill] sm:$0xff] }
 0x4c6   :  { %v5788_v34 = vpack.c.bf16 %v5673_v35, %v5672_v21 }
 0x4c7   :  { %v15000_v24 = vpop.xlane.xlu0 %5248 }
 0x4c8   :  { %v15002_v17 = vpop.xlane.xlu1 %5251 }
 0x4c9   :  { %v15005_v9 = vpop.f32.mrf.mxu1 }
 0x4ca   :  { %17605 = vst [vmem:[#allocation21_spill] sm:$0xff] %v15005_v9  ;;  %v5789_v9 = vpack.c.bf16 %v5675_v38, %v5674_v62 }
 0x4cb   :  { %v15007_v49 = vpop.xlane.xlu0 %5254  ;;  %v10710_v32 = vpop.f32.mrf.mxu1 }
 0x4cc   :  { %v6405_v37 = vpop.permute.xlu1 %6404  ;;  %v17614_v32 = vld [vmem:[#allocation27_spill] sm:$0xff] }
 0x4cd   :  { %10773 = vmatpush3.bf16.msra.mxu0 %v6405_v37  ;;  %v15011_v50 = vpop.f32.mrf.mxu1  ;;  %v4800_v37 = vsub.f32 %v17613_v29, %v14634_v43  ;;  %v4801_v21 = vsub.f32 %v17614_v32, %v14646_v55  ;;  %v17620_v55 = vld [vmem:[#allocation120_spill] sm:$0xff] }
 0x4ce   :  { %17607 = vst [vmem:[#allocation18_spill] sm:$0xff] %v15011_v50  ;;  %10784 = vmatprep.subr.bf16.mxu0 %v17305_v47  ;;  %v4644_v29 = vsel %vm4367_vm3, %v17620_v55, -inf  ;;  %v17634_v55 = vld [vmem:[#allocation121_spill] sm:$0xff] }
 0x4cf   :  { %v6452_v60 = vpop.permute.xlu0 %6451  ;;  %v10711_v13 = vpop.f32.mrf.mxu1  ;;  %v4976_v62 = vmul.f32 1.442695, %v4800_v37 }
 0x4d0   :  { %10775 = vmatmul.mubr.msk.bf16.vlgmr.msra.gmra.mxu0 %vm4367_vm3, %v5788_v34  ;;  %10779 = vmatpush3.bf16.msra.mxu1 %v6452_v60  ;;  %v17618_v13 = vld [vmem:[#allocation24_spill] sm:$0xff] }
 0x4d1   :  { %10786 = vmatprep.mubr.msk.bf16.mxu0 %vm12391_vm1, %v17305_v47  ;;  %10790 = vmatprep.subr.bf16.mxu1 %v17305_v47  ;;  %12026 = vpow2.f32 %v4976_v62 }
 0x4d2   :  { %6592 = vrot.lane.b32.xlu1 %v17609_v54, %s12392_s6  ;;  %v4803_v54 = vsub.f32 %v17618_v13, %v14636_v2 }
 0x4d3   :  { %10781 = vmatmul.mubr.msk.bf16.vlgmr.msra.gmra.mxu1 %vm4367_vm3, %v5789_v9  ;;  %v17616_v9 = vld [vmem:[#allocation35_spill] sm:$0xff] }
 0x4d4   :  { %10792 = vmatprep.mubr.msk.bf16.mxu1 %vm12391_vm1, %v17305_v47  ;;  %v4802_v42 = vsub.f32 %v17616_v9, %v17615_v26  ;;  %v17622_v26 = vld [vmem:[#allocation123_spill] sm:$0xff] }
 0x4d5   :  { %v4647_v2 = vsel %vm4367_vm3, %v17622_v26, -inf }
 0x4d9   :  { %v15024_v19 = vpop.f32.mrf.mxu0 }
 0x4da   :  { %17610 = vst [vmem:[#allocation93_spill] sm:$0xff] %v15024_v19  ;;  %6639 = vrot.lane.b32.xlu0 %v17611_v15, %s12392_s6  ;;  %v4978_v15 = vmul.f32 1.442695, %v4801_v21  ;;  %v4980_v19 = vmul.f32 1.442695, %v4802_v42  ;;  %v17623_v21 = vld [vmem:[#allocation122_spill] sm:$0xff] }
 0x4db   :  { %v10716_v34 = vpop.f32.mrf.mxu0  ;;  %v4650_v9 = vsel %vm4367_vm3, %v17623_v21, -inf }
 0x4dc   :  { %12028 = vpow2.f32 %v4978_v15 }
 0x4dd   :  { %v15028_v38 = vpop.f32.mrf.mxu0  ;;  %12030 = vpow2.f32 %v4980_v19 }
 0x4de   :  { %17612 = vst [vmem:[#allocation8_spill] sm:$0xff] %v15028_v38  ;;  %v4982_v38 = vmul.f32 1.442695, %v4803_v54  ;;  %v15050_v42 = vpop.eup %12026 }
 0x4df   :  { %v10717_v35 = vpop.f32.mrf.mxu0 }
 0x4e0   :  { %12032 = vpow2.f32 %v4982_v38  ;;  %v17625_v38 = vld [vmem:[#allocation125_spill] sm:$0xff] }
 0x4e1   :  { %12034 = vrcp.f32 %v14806_v0  ;;  %v4653_v13 = vsel %vm4367_vm3, %v17625_v38, -inf }
 0x4e2   :  { %12036 = vrcp.f32 %v14800_v3 }
 0x4e3   :  { %12038 = vrcp.f32 %v14900_v6 }
 0x4e4   :  { %12040 = vrcp.f32 %v14888_v51 }
 0x4e9   :  { %v15036_v60 = vpop.f32.mrf.mxu1  ;;  %v15057_v54 = vpop.eup %12028 }
 0x4ea   :  { %17617 = vst [vmem:[#allocation135_spill] sm:$0xff] %v15036_v60 }
 0x4eb   :  { %v10722_v34 = vpop.f32.mrf.mxu1 }
 0x4ec   :  { %v5280_v34 = vsel %vm4367_vm3, %v15050_v42, 0.0 }
 0x4ed   :  { %v15040_v35 = vpop.f32.mrf.mxu1 }
 0x4ee   :  { %17619 = vst [vmem:[#allocation132_spill] sm:$0xff] %v15040_v35 }
 0x4ef   :  { %v10723_v43 = vpop.f32.mrf.mxu1 }
 0x4f0   :  { %v15064_v43 = vpop.eup %12030 }
 0x4f5   :  { %v15044_v37 = vpop.f32.mrf.mxu0 }
 0x4f6   :  { %17621 = vst [vmem:[#allocation39_spill] sm:$0xff] %v15044_v37  ;;  %4645 = vmax.xlane.f32.xlu1 %v4644_v29  ;;  %v5283_v29 = vsel %vm4367_vm3, %v15057_v54, 0.0 }
 0x4f7   :  { %v10728_v32 = vpop.f32.mrf.mxu0 }
 0x4f8   :  { %v15072_v32 = vpop.eup %12032 }
 0x4f9   :  { %4648 = vmax.xlane.f32.xlu0 %v4647_v2  ;;  %v15052_v62 = vpop.f32.mrf.mxu0  ;;  %v5286_v2 = vsel %vm4367_vm3, %v15064_v43, 0.0  ;;  %v5289_v51 = vsel %vm4367_vm3, %v15072_v32, 0.0  ;;  %v12035_v37 = vpop.eup %12034 }
 0x4fa   :  { %17624 = vst [vmem:[#allocation15_spill] sm:$0xff] %v15052_v62  ;;  %4651 = vmax.xlane.f32.xlu1 %v4650_v9 }
 0x4fb   :  { %v10729_v19 = vpop.f32.mrf.mxu0 }
 0x4fd   :  { %v15060_v15 = vpop.xlane.xlu1 %4621  ;;  %4654 = vmax.xlane.f32.xlu0 %v4653_v13 }
 0x4fe   :  { %17626 = vst [vmem:[#allocation20_spill] sm:$0xff] %v15060_v15  ;;  %5281 = vadd.xlane.f32.xlu1 %v5280_v34 }
 0x500   :  { %v15068_v0 = vpop.xlane.xlu0 %4624 }
 0x501   :  { %17627 = vst [vmem:[#allocation154_spill] sm:$0xff] %v15068_v0  ;;  %v15074_v3 = vpop.xlane.xlu1 %4627  ;;  %5284 = vadd.xlane.f32.xlu0 %v5283_v29  ;;  %v15078_v9 = vpop.f32.mrf.mxu1 }
 0x502   :  { %17628 = vst [vmem:[#allocation38_spill] sm:$0xff] %v15074_v3  ;;  %17629 = vst [vmem:[#allocation147_spill] sm:$0xff] %v15078_v9  ;;  %5287 = vadd.xlane.f32.xlu1 %v5286_v2  ;;  %v12037_v2 = vpop.eup %12036  ;;  %v17633_v9 = vld [vmem:[#allocation124_spill] sm:$0xff] }
 0x503   :  { %v10734_v6 = vpop.f32.mrf.mxu1  ;;  %v5677_v50 = vmul.f32 %v12035_v37, %v17633_v9 }
 0x504   :  { %v15080_v19 = vpop.xlane.xlu0 %4630  ;;  %v12039_v6 = vpop.eup %12038 }
 0x505   :  { %17630 = vst [vmem:[#allocation33_spill] sm:$0xff] %v15080_v19  ;;  %v15084_v13 = vpop.xlane.xlu1 %5257  ;;  %5290 = vadd.xlane.f32.xlu0 %v5289_v51  ;;  %v15086_v34 = vpop.f32.mrf.mxu1  ;;  %v5676_v51 = vmul.f32 %v12037_v2, %v17634_v55 }
 0x506   :  { %17631 = vst [vmem:[#allocation150_spill] sm:$0xff] %v15086_v34  ;;  %v12041_v26 = vpop.eup %12040 }
 0x507   :  { %v10735_v62 = vpop.f32.mrf.mxu1  ;;  %v5790_v0 = vpack.c.bf16 %v5677_v50, %v5676_v51  ;;  %v5678_v37 = vmul.f32 %v12041_v26, %v14678_v63  ;;  %v17639_v50 = vld [vmem:[#allocation52_spill] sm:$0xff]  ;;  %v17643_v51 = vld [vmem:[#allocation53_spill] sm:$0xff] }
 0x508   :  { %v15088_v60 = vpop.xlane.xlu0 %5260  ;;  %v5679_v62 = vmul.f32 %v12039_v6, %v14686_v23 }
 0x509   :  { %v15090_v35 = vpop.f32.mrf.mxu0  ;;  %v15092_v29 = vpop.xlane.xlu1 %5263 }
 0x50a   :  { %17632 = vst [vmem:[#allocation25_spill] sm:$0xff] %v15090_v35  ;;  %v5791_v2 = vpack.c.bf16 %v5679_v62, %v5678_v37  ;;  %v17644_v37 = vld [vmem:[#allocation37_spill] sm:$0xff] }
 0x50b   :  { %v10740_v38 = vpop.f32.mrf.mxu0 }
 0x50c   :  { %v15095_v21 = vpop.xlane.xlu0 %5266 }
 0x50d   :  { %v15098_v19 = vpop.f32.mrf.mxu0  ;;  %v6499_v34 = vpop.permute.xlu1 %6498 }
 0x50e   :  { %17635 = vst [vmem:[#allocation103_spill] sm:$0xff] %v15098_v19  ;;  %v15101_v3 = vpop.f32.mrf.mxu1  ;;  %10785 = vmatpush3.bf16.msra.mxu0 %v6499_v34 }
 0x50f   :  { %17636 = vst [vmem:[#allocation100_spill] sm:$0xff] %v15101_v3  ;;  %v10741_v35 = vpop.f32.mrf.mxu0  ;;  %10796 = vmatprep.subr.bf16.mxu0 %v17305_v47 }
 0x510   :  { %v10746_v38 = vpop.f32.mrf.mxu1  ;;  %v6546_v9 = vpop.permute.xlu0 %6545 }
 0x511   :  { %v15105_v15 = vpop.f32.mrf.mxu0  ;;  %10787 = vmatmul.mubr.msk.bf16.vlgmr.msra.gmra.mxu0 %vm4367_vm3, %v5790_v0  ;;  %10791 = vmatpush3.bf16.msra.mxu1 %v6546_v9  ;;  %v4804_v38 = vsub.f32 %v17644_v37, %v14652_v7  ;;  %v17645_v9 = vld [vmem:[#allocation26_spill] sm:$0xff]  ;;  %v17651_v37 = vld [vmem:[#allocation127_spill] sm:$0xff] }
 0x512   :  { %17637 = vst [vmem:[#allocation138_spill] sm:$0xff] %v15105_v15  ;;  %v15108_v55 = vpop.f32.mrf.mxu1  ;;  %10798 = vmatprep.mubr.msk.bf16.mxu0 %vm12391_vm1, %v17305_v47  ;;  %10802 = vmatprep.subr.bf16.mxu1 %v17305_v47 }
 0x513   :  { %17638 = vst [vmem:[#allocation40_spill] sm:$0xff] %v15108_v55  ;;  %v10752_v23 = vpop.f32.mrf.mxu0  ;;  %6686 = vrot.lane.b32.xlu1 %v17639_v50, %s12392_s6  ;;  %v17647_v50 = vld [vmem:[#allocation29_spill] sm:$0xff]  ;;  %v4984_v15 = vmul.f32 1.442695, %v4804_v38  ;;  %v4662_v38 = vsel %vm4367_vm3, %v17651_v37, -inf }
 0x514   :  { %v10747_v63 = vpop.f32.mrf.mxu1  ;;  %10793 = vmatmul.mubr.msk.bf16.vlgmr.msra.gmra.mxu1 %vm4367_vm3, %v5791_v2  ;;  %v4805_v2 = vsub.f32 %v17645_v9, %v14662_v8  ;;  %v17646_v23 = vld [vmem:[#allocation158_spill] sm:$0xff] }
 0x515   :  { %v15116_v35 = vpop.f32.mrf.mxu0  ;;  %10804 = vmatprep.mubr.msk.bf16.mxu1 %vm12391_vm1, %v17305_v47  ;;  %v4806_v63 = vsub.f32 %v17647_v50, %v17646_v23  ;;  %12042 = vpow2.f32 %v4984_v15 }
 0x516   :  { %17640 = vst [vmem:[#allocation41_spill] sm:$0xff] %v15116_v35  ;;  %v15120_v26 = vpop.f32.mrf.mxu1 }
 0x517   :  { %17641 = vst [vmem:[#allocation22_spill] sm:$0xff] %v15120_v26  ;;  %v10753_v0 = vpop.f32.mrf.mxu0  ;;  %v17648_v26 = vld [vmem:[#allocation14_spill] sm:$0xff]  ;;  %v4988_v35 = vmul.f32 1.442695, %v4806_v63 }
 0x518   :  { %v10758_v34 = vpop.f32.mrf.mxu1  ;;  %v4807_v0 = vsub.f32 %v17648_v26, %v14654_v31  ;;  %v17652_v31 = vld [vmem:[#allocation129_spill] sm:$0xff] }
 0x519   :  { %v4986_v34 = vmul.f32 1.442695, %v4805_v2  ;;  %v4665_v15 = vsel %vm4367_vm3, %v17652_v31, -inf }
 0x51a   :  { %v15122_v6 = vpop.f32.mrf.mxu1 }
 0x51b   :  { %17642 = vst [vmem:[#allocation27_spill] sm:$0xff] %v15122_v6  ;;  %6733 = vrot.lane.b32.xlu0 %v17643_v51, %s12392_s6  ;;  %v4990_v6 = vmul.f32 1.442695, %v4807_v0  ;;  %12044 = vpow2.f32 %v4986_v34  ;;  %v17649_v51 = vld [vmem:[#allocation126_spill] sm:$0xff] }
 0x51c   :  { %v10759_v62 = vpop.f32.mrf.mxu1  ;;  %12046 = vpow2.f32 %v4988_v35  ;;  %v4656_v7 = vsel %vm4367_vm3, %v17649_v51, -inf }
 0x51d   :  { %12048 = vpow2.f32 %v4990_v6  ;;  %v17650_v62 = vld [vmem:[#allocation128_spill] sm:$0xff] }
 0x51e   :  { %v4659_v8 = vsel %vm4367_vm3, %v17650_v62, -inf  ;;  %12050 = vrcp.f32 %v14930_v14 }
 0x51f   :  { %12052 = vrcp.f32 %v14922_v46 }
 0x520   :  { %12054 = vrcp.f32 %v14934_v18 }
 0x521   :  { %12056 = vrcp.f32 %v14928_v61 }
 0x522   :  { %v15140_v9 = vpop.eup %12042 }
 0x523   :  { %v5292_v6 = vsel %vm4367_vm3, %v15140_v9, 0.0 }
 0x528   :  { %v15145_v35 = vpop.eup %12044 }
 0x529   :  { %v15152_v2 = vpop.eup %12046  ;;  %v5295_v23 = vsel %vm4367_vm3, %v15145_v35, 0.0 }
 0x52a   :  { %v15160_v50 = vpop.eup %12048  ;;  %v5298_v63 = vsel %vm4367_vm3, %v15152_v2, 0.0 }
 0x52b   :  { %v5301_v18 = vsel %vm4367_vm3, %v15160_v50, 0.0  ;;  %v12051_v34 = vpop.eup %12050 }
 0x537   :  { %4657 = vmax.xlane.f32.xlu1 %v4656_v7 }
 0x53a   :  { %4660 = vmax.xlane.f32.xlu0 %v4659_v8 }
 0x53b   :  { %4663 = vmax.xlane.f32.xlu1 %v4662_v38  ;;  %v12053_v38 = vpop.eup %12052 }
 0x53e   :  { %v15148_v26 = vpop.xlane.xlu1 %4633  ;;  %4666 = vmax.xlane.f32.xlu0 %v4665_v15  ;;  %v12055_v15 = vpop.eup %12054 }
 0x53f   :  { %5293 = vadd.xlane.f32.xlu1 %v5292_v6  ;;  %v5681_v6 = vmul.f32 %v12051_v34, %v14714_v25  ;;  %v5683_v31 = vmul.f32 %v12055_v15, %v14729_v57  ;;  %v17656_v57 = vld [vmem:[#allocation65_spill] sm:$0xff]  ;;  %v17660_v15 = vld [vmem:[#allocation11_spill] sm:$0xff] }
 0x541   :  { %v15156_v14 = vpop.xlane.xlu0 %4636 }
 0x542   :  { %v15162_v46 = vpop.xlane.xlu1 %4639  ;;  %5296 = vadd.xlane.f32.xlu0 %v5295_v23  ;;  %v12057_v23 = vpop.eup %12056 }
 0x543   :  { %5299 = vadd.xlane.f32.xlu1 %v5298_v63  ;;  %v5680_v63 = vmul.f32 %v12053_v38, %v14698_v10  ;;  %v5682_v62 = vmul.f32 %v12057_v23, %v14708_v45  ;;  %v17661_v23 = vld [vmem:[#allocation164_spill] sm:$0xff] }
 0x545   :  { %v15166_v0 = vpop.xlane.xlu0 %4642  ;;  %v5792_v37 = vpack.c.bf16 %v5681_v6, %v5680_v63  ;;  %v5793_v10 = vpack.c.bf16 %v5683_v31, %v5682_v62  ;;  %v17659_v62 = vld [vmem:[#allocation61_spill] sm:$0xff]  ;;  %v4809_v6 = vsub.f32 %v17660_v15, %v14696_v41  ;;  %v17667_v15 = vld [vmem:[#allocation131_spill] sm:$0xff] }
 0x546   :  { %v15170_v61 = vpop.xlane.xlu1 %5269  ;;  %5302 = vadd.xlane.f32.xlu0 %v5301_v18  ;;  %v4808_v31 = vsub.f32 %v17659_v62, %v14688_v40  ;;  %v17662_v63 = vld [vmem:[#allocation13_spill] sm:$0xff] }
 0x547   :  { %v17666_v62 = vld [vmem:[#allocation133_spill] sm:$0xff] }
 0x548   :  { %v4671_v41 = vsel %vm4367_vm3, %v17666_v62, -inf }
 0x549   :  { %v15172_v7 = vpop.xlane.xlu0 %5272 }
 0x54a   :  { %v15174_v8 = vpop.xlane.xlu1 %5275 }
 0x54d   :  { %v15177_v3 = vpop.xlane.xlu0 %5278 }
 0x54e   :  { %v6593_v55 = vpop.permute.xlu1 %6592  ;;  %v15180_v19 = vpop.f32.mrf.mxu0 }
 0x54f   :  { %17653 = vst [vmem:[#allocation153_spill] sm:$0xff] %v15180_v19  ;;  %10797 = vmatpush3.bf16.msra.mxu0 %v6593_v55 }
 0x550   :  { %v10764_v18 = vpop.f32.mrf.mxu0  ;;  %10808 = vmatprep.subr.bf16.mxu0 %v17305_v47 }
 0x551   :  { %v6640_v51 = vpop.permute.xlu0 %6639  ;;  %v4810_v18 = vsub.f32 %v17662_v63, %v17661_v23 }
 0x552   :  { %10799 = vmatmul.mubr.msk.bf16.vlgmr.msra.gmra.mxu0 %vm4367_vm3, %v5792_v37  ;;  %v15186_v25 = vpop.f32.mrf.mxu0  ;;  %v15188_v34 = vpop.f32.mrf.mxu1  ;;  %10803 = vmatpush3.bf16.msra.mxu1 %v6640_v51  ;;  %v17658_v51 = vld [vmem:[#allocation67_spill] sm:$0xff] }
 0x553   :  { %17654 = vst [vmem:[#allocation35_spill] sm:$0xff] %v15186_v25  ;;  %17655 = vst [vmem:[#allocation24_spill] sm:$0xff] %v15188_v34  ;;  %10810 = vmatprep.mubr.msk.bf16.mxu0 %vm12391_vm1, %v17305_v47  ;;  %10814 = vmatprep.subr.bf16.mxu1 %v17305_v47  ;;  %v4994_v34 = vmul.f32 1.442695, %v4809_v6  ;;  %v17668_v6 = vld [vmem:[#allocation134_spill] sm:$0xff] }
 0x554   :  { %6780 = vrot.lane.b32.xlu1 %v17656_v57, %s12392_s6  ;;  %v10765_v55 = vpop.f32.mrf.mxu0  ;;  %v10770_v38 = vpop.f32.mrf.mxu1  ;;  %v4992_v57 = vmul.f32 1.442695, %v4808_v31  ;;  %v4674_v31 = vsel %vm4367_vm3, %v17667_v15, -inf }
 0x555   :  { %10805 = vmatmul.mubr.msk.bf16.vlgmr.msra.gmra.mxu1 %vm4367_vm3, %v5793_v10  ;;  %v17663_v10 = vld [vmem:[#allocation165_spill] sm:$0xff]  ;;  %v17664_v55 = vld [vmem:[#allocation66_spill] sm:$0xff] }
 0x556   :  { %v15196_v45 = vpop.f32.mrf.mxu1  ;;  %10816 = vmatprep.mubr.msk.bf16.mxu1 %vm12391_vm1, %v17305_v47  ;;  %v4811_v38 = vsub.f32 %v17664_v55, %v17663_v10  ;;  %12058 = vpow2.f32 %v4992_v57 }
 0x557   :  { %17657 = vst [vmem:[#allocation124_spill] sm:$0xff] %v15196_v45  ;;  %v4996_v45 = vmul.f32 1.442695, %v4810_v18  ;;  %12060 = vpow2.f32 %v4994_v34  ;;  %v4677_v34 = vsel %vm4367_vm3, %v17668_v6, -inf }
 0x558   :  { %v10771_v37 = vpop.f32.mrf.mxu1 }
 0x559   :  { %v4998_v37 = vmul.f32 1.442695, %v4811_v38  ;;  %12062 = vpow2.f32 %v4996_v45 }
 0x55b   :  { %12064 = vpow2.f32 %v4998_v37 }
 0x55c   :  { %6827 = vrot.lane.b32.xlu0 %v17658_v51, %s12392_s6  ;;  %v17665_v51 = vld [vmem:[#allocation130_spill] sm:$0xff]  ;;  %12066 = vrcp.f32 %v15000_v24 }
 0x55d   :  { %v4668_v40 = vsel %vm4367_vm3, %v17665_v51, -inf  ;;  %12068 = vrcp.f32 %v14998_v28 }
 0x55e   :  { %12070 = vrcp.f32 %v15007_v49 }
 0x55f   :  { %12072 = vrcp.f32 %v15002_v17 }
 0x563   :  { %v15216_v23 = vpop.eup %12058 }
 0x564   :  { %v15221_v45 = vpop.eup %12060  ;;  %v5304_v18 = vsel %vm4367_vm3, %v15216_v23, 0.0 }
 0x565   :  { %v5307_v10 = vsel %vm4367_vm3, %v15221_v45, 0.0 }
 0x566   :  { %v15228_v57 = vpop.eup %12062 }
 0x567   :  { %v5310_v38 = vsel %vm4367_vm3, %v15228_v57, 0.0 }
 0x568   :  { %v15236_v55 = vpop.eup %12064 }
 0x569   :  { %v5313_v49 = vsel %vm4367_vm3, %v15236_v55, 0.0 }
 0x578   :  { %4669 = vmax.xlane.f32.xlu1 %v4668_v40  ;;  %v12067_v40 = vpop.eup %12066 }
 0x579   :  { %v5685_v19 = vmul.f32 %v12067_v40, %v14823_v59 }
 0x57b   :  { %4672 = vmax.xlane.f32.xlu0 %v4671_v41 }
 0x57c   :  { %4675 = vmax.xlane.f32.xlu1 %v4674_v31 }
 0x57f   :  { %v15224_v63 = vpop.xlane.xlu1 %4645  ;;  %4678 = vmax.xlane.f32.xlu0 %v4677_v34  ;;  %v12069_v34 = vpop.eup %12068 }
 0x580   :  { %5305 = vadd.xlane.f32.xlu1 %v5304_v18  ;;  %v12071_v18 = vpop.eup %12070 }
 0x581   :  { %v5687_v15 = vmul.f32 %v12071_v18, %v14831_v44  ;;  %v17674_v44 = vld [vmem:[#allocation7_spill] sm:$0xff] }
 0x582   :  { %v15232_v24 = vpop.xlane.xlu0 %4648  ;;  %v17679_v18 = vld [vmem:[#allocation19_spill] sm:$0xff] }
 0x583   :  { %v15238_v28 = vpop.xlane.xlu1 %4651  ;;  %5308 = vadd.xlane.f32.xlu0 %v5307_v10  ;;  %v12073_v10 = vpop.eup %12072 }
 0x584   :  { %17669 = vst [vmem:[#allocation121_spill] sm:$0xff] %v15238_v28  ;;  %5311 = vadd.xlane.f32.xlu1 %v5310_v38  ;;  %v5684_v38 = vmul.f32 %v12069_v34, %v14813_v20  ;;  %v5686_v51 = vmul.f32 %v12073_v10, %v14819_v53  ;;  %v4813_v10 = vsub.f32 %v17679_v18, %v14737_v56  ;;  %v17686_v18 = vld [vmem:[#allocation137_spill] sm:$0xff] }
 0x586   :  { %v15242_v37 = vpop.xlane.xlu0 %4654  ;;  %v5795_v20 = vpack.c.bf16 %v5687_v15, %v5686_v51  ;;  %v17676_v51 = vld [vmem:[#allocation6_spill] sm:$0xff] }
 0x587   :  { %17670 = vst [vmem:[#allocation52_spill] sm:$0xff] %v15242_v37  ;;  %v15246_v17 = vpop.xlane.xlu1 %5281  ;;  %5314 = vadd.xlane.f32.xlu0 %v5313_v49  ;;  %v5794_v49 = vpack.c.bf16 %v5685_v19, %v5684_v38  ;;  %v17677_v15 = vld [vmem:[#allocation90_spill] sm:$0xff] }
 0x588   :  { %v17680_v38 = vld [vmem:[#allocation166_spill] sm:$0xff] }
 0x58a   :  { %v15248_v41 = vpop.xlane.xlu0 %5284 }
 0x58b   :  { %v15250_v31 = vpop.xlane.xlu1 %5287 }
 0x58e   :  { %v15253_v25 = vpop.xlane.xlu0 %5290 }
 0x58f   :  { %v6687_v6 = vpop.permute.xlu1 %6686 }
 0x590   :  { %v15257_v62 = vpop.f32.mrf.mxu0  ;;  %10809 = vmatpush3.bf16.msra.mxu0 %v6687_v6 }
 0x591   :  { %17671 = vst [vmem:[#allocation53_spill] sm:$0xff] %v15257_v62  ;;  %10820 = vmatprep.subr.bf16.mxu0 %v17305_v47 }
 0x592   :  { %v10776_v37 = vpop.f32.mrf.mxu0  ;;  %v6734_v28 = vpop.permute.xlu0 %6733 }
 0x593   :  { %10811 = vmatmul.mubr.msk.bf16.vlgmr.msra.gmra.mxu0 %vm4367_vm3, %v5794_v49  ;;  %v15262_v59 = vpop.f32.mrf.mxu1  ;;  %10815 = vmatpush3.bf16.msra.mxu1 %v6734_v28  ;;  %v17678_v37 = vld [vmem:[#allocation89_spill] sm:$0xff]  ;;  %v17681_v49 = vld [vmem:[#allocation2_spill] sm:$0xff] }
 0x594   :  { %17672 = vst [vmem:[#allocation37_spill] sm:$0xff] %v15262_v59  ;;  %v15264_v40 = vpop.f32.mrf.mxu0  ;;  %10822 = vmatprep.mubr.msk.bf16.mxu0 %vm12391_vm1, %v17305_v47  ;;  %10826 = vmatprep.subr.bf16.mxu1 %v17305_v47  ;;  %v4812_v34 = vsub.f32 %v17678_v37, %v17677_v15  ;;  %v17685_v37 = vld [vmem:[#allocation139_spill] sm:$0xff] }
 0x595   :  { %17673 = vst [vmem:[#allocation26_spill] sm:$0xff] %v15264_v40  ;;  %6874 = vrot.lane.b32.xlu1 %v17674_v44, %s12392_s6  ;;  %v10782_v19 = vpop.f32.mrf.mxu1  ;;  %v4814_v44 = vsub.f32 %v17681_v49, %v17680_v38  ;;  %v4683_v56 = vsel %vm4367_vm3, %v17685_v37, -inf }
 0x596   :  { %v10777_v53 = vpop.f32.mrf.mxu0  ;;  %10817 = vmatmul.mubr.msk.bf16.vlgmr.msra.gmra.mxu1 %vm4367_vm3, %v5795_v20  ;;  %v5000_v19 = vmul.f32 1.442695, %v4812_v34  ;;  %v17682_v20 = vld [vmem:[#allocation167_spill] sm:$0xff]  ;;  %v4686_v34 = vsel %vm4367_vm3, %v17686_v18, -inf }
 0x597   :  { %v15272_v6 = vpop.f32.mrf.mxu1  ;;  %10828 = vmatprep.mubr.msk.bf16.mxu1 %vm12391_vm1, %v17305_v47  ;;  %v17683_v53 = vld [vmem:[#allocation5_spill] sm:$0xff]  ;;  %v5004_v62 = vmul.f32 1.442695, %v4814_v44 }
 0x598   :  { %17675 = vst [vmem:[#allocation158_spill] sm:$0xff] %v15272_v6  ;;  %v4815_v59 = vsub.f32 %v17683_v53, %v17682_v20  ;;  %v5002_v6 = vmul.f32 1.442695, %v4813_v10  ;;  %12074 = vpow2.f32 %v5000_v19 }
 0x599   :  { %v10783_v28 = vpop.f32.mrf.mxu1 }
 0x59a   :  { %v5006_v28 = vmul.f32 1.442695, %v4815_v59  ;;  %12076 = vpow2.f32 %v5002_v6  ;;  %v17687_v59 = vld [vmem:[#allocation140_spill] sm:$0xff] }
 0x59b   :  { %12078 = vpow2.f32 %v5004_v62  ;;  %v4689_v62 = vsel %vm4367_vm3, %v17687_v59, -inf }
 0x59c   :  { %12080 = vpow2.f32 %v5006_v28 }
 0x59d   :  { %6921 = vrot.lane.b32.xlu0 %v17676_v51, %s12392_s6  ;;  %v17684_v51 = vld [vmem:[#allocation136_spill] sm:$0xff]  ;;  %12082 = vrcp.f32 %v15088_v60 }
 0x59e   :  { %v4680_v15 = vsel %vm4367_vm3, %v17684_v51, -inf  ;;  %12084 = vrcp.f32 %v15084_v13 }
 0x59f   :  { %12086 = vrcp.f32 %v15095_v21 }
 0x5a0   :  { %12088 = vrcp.f32 %v15092_v29 }
 0x5a5   :  { %v15292_v38 = vpop.eup %12074 }
 0x5a6   :  { %v5316_v49 = vsel %vm4367_vm3, %v15292_v38, 0.0 }
 0x5a7   :  { %v15297_v6 = vpop.eup %12076 }
 0x5a8   :  { %v15304_v44 = vpop.eup %12078  ;;  %v5319_v19 = vsel %vm4367_vm3, %v15297_v6, 0.0 }
 0x5a9   :  { %v15312_v20 = vpop.eup %12080  ;;  %v5322_v53 = vsel %vm4367_vm3, %v15304_v44, 0.0 }
 0x5aa   :  { %v5325_v21 = vsel %vm4367_vm3, %v15312_v20, 0.0 }
 0x5b9   :  { %4681 = vmax.xlane.f32.xlu1 %v4680_v15  ;;  %v12083_v15 = vpop.eup %12082 }
 0x5ba   :  { %v5689_v40 = vmul.f32 %v12083_v15, %v14904_v39 }
 0x5bc   :  { %4684 = vmax.xlane.f32.xlu0 %v4683_v56 }
 0x5bd   :  { %4687 = vmax.xlane.f32.xlu1 %v4686_v34 }
 0x5c0   :  { %v15300_v10 = vpop.xlane.xlu1 %4657  ;;  %4690 = vmax.xlane.f32.xlu0 %v4689_v62  ;;  %v12085_v62 = vpop.eup %12084 }
 0x5c1   :  { %5317 = vadd.xlane.f32.xlu1 %v5316_v49  ;;  %v12087_v49 = vpop.eup %12086 }
 0x5c2   :  { %v5691_v37 = vmul.f32 %v12087_v49, %v14918_v58  ;;  %v17694_v58 = vld [vmem:[#allocation42_spill] sm:$0xff]  ;;  %v17699_v49 = vld [vmem:[#allocation91_spill] sm:$0xff] }
 0x5c3   :  { %v15308_v60 = vpop.xlane.xlu0 %4660 }
 0x5c4   :  { %17688 = vst [vmem:[#allocation29_spill] sm:$0xff] %v15308_v60  ;;  %v15314_v13 = vpop.xlane.xlu1 %4663  ;;  %5320 = vadd.xlane.f32.xlu0 %v5319_v19  ;;  %v12089_v19 = vpop.eup %12088 }
 0x5c5   :  { %17689 = vst [vmem:[#allocation14_spill] sm:$0xff] %v15314_v13  ;;  %5323 = vadd.xlane.f32.xlu1 %v5322_v53  ;;  %v5688_v53 = vmul.f32 %v12085_v62, %v14894_v4 }
 0x5c7   :  { %v15318_v28 = vpop.xlane.xlu0 %4666 }
 0x5c8   :  { %17690 = vst [vmem:[#allocation65_spill] sm:$0xff] %v15318_v28  ;;  %v15322_v29 = vpop.xlane.xlu1 %5293  ;;  %5326 = vadd.xlane.f32.xlu0 %v5325_v21  ;;  %v5796_v21 = vpack.c.bf16 %v5689_v40, %v5688_v53  ;;  %v5690_v28 = vmul.f32 %v12089_v19, %v14908_v52  ;;  %v4817_v19 = vsub.f32 %v17699_v49, %v14758_v33  ;;  %v17700_v53 = vld [vmem:[#allocation168_spill] sm:$0xff]  ;;  %v17706_v49 = vld [vmem:[#allocation142_spill] sm:$0xff] }
 0x5ca   :  { %v5797_v4 = vpack.c.bf16 %v5691_v37, %v5690_v28  ;;  %v17696_v37 = vld [vmem:[#allocation43_spill] sm:$0xff] }
 0x5cb   :  { %v15324_v56 = vpop.xlane.xlu0 %5296  ;;  %v17698_v28 = vld [vmem:[#allocation3_spill] sm:$0xff] }
 0x5cc   :  { %v15326_v34 = vpop.xlane.xlu1 %5299 }
 0x5cf   :  { %v15329_v59 = vpop.xlane.xlu0 %5302 }
 0x5d0   :  { %v6781_v18 = vpop.permute.xlu1 %6780 }
 0x5d1   :  { %v15333_v51 = vpop.f32.mrf.mxu0  ;;  %10821 = vmatpush3.bf16.msra.mxu0 %v6781_v18 }
 0x5d2   :  { %17691 = vst [vmem:[#allocation67_spill] sm:$0xff] %v15333_v51  ;;  %10832 = vmatprep.subr.bf16.mxu0 %v17305_v47 }
 0x5d3   :  { %v10788_v13 = vpop.f32.mrf.mxu0  ;;  %v6828_v60 = vpop.permute.xlu0 %6827 }
 0x5d4   :  { %10823 = vmatmul.mubr.msk.bf16.vlgmr.msra.gmra.mxu0 %vm4367_vm3, %v5796_v21  ;;  %v15338_v39 = vpop.f32.mrf.mxu1  ;;  %10827 = vmatpush3.bf16.msra.mxu1 %v6828_v60  ;;  %v17697_v13 = vld [vmem:[#allocation169_spill] sm:$0xff]  ;;  %v17701_v21 = vld [vmem:[#allocation4_spill] sm:$0xff] }
 0x5d5   :  { %17692 = vst [vmem:[#allocation61_spill] sm:$0xff] %v15338_v39  ;;  %v15340_v15 = vpop.f32.mrf.mxu0  ;;  %10834 = vmatprep.mubr.msk.bf16.mxu0 %vm12391_vm1, %v17305_v47  ;;  %10838 = vmatprep.subr.bf16.mxu1 %v17305_v47  ;;  %v4816_v62 = vsub.f32 %v17698_v28, %v17697_v13  ;;  %v17705_v28 = vld [vmem:[#allocation143_spill] sm:$0xff] }
 0x5d6   :  { %17693 = vst [vmem:[#allocation11_spill] sm:$0xff] %v15340_v15  ;;  %6968 = vrot.lane.b32.xlu1 %v17694_v58, %s12392_s6  ;;  %v10794_v40 = vpop.f32.mrf.mxu1  ;;  %v4818_v58 = vsub.f32 %v17701_v21, %v17700_v53  ;;  %v4695_v33 = vsel %vm4367_vm3, %v17705_v28, -inf }
 0x5d7   :  { %v10789_v52 = vpop.f32.mrf.mxu0  ;;  %10829 = vmatmul.mubr.msk.bf16.vlgmr.msra.gmra.mxu1 %vm4367_vm3, %v5797_v4  ;;  %v5008_v40 = vmul.f32 1.442695, %v4816_v62  ;;  %v17702_v4 = vld [vmem:[#allocation170_spill] sm:$0xff]  ;;  %v4698_v62 = vsel %vm4367_vm3, %v17706_v49, -inf }
 0x5d8   :  { %v15348_v18 = vpop.f32.mrf.mxu1  ;;  %10840 = vmatprep.mubr.msk.bf16.mxu1 %vm12391_vm1, %v17305_v47  ;;  %v17703_v52 = vld [vmem:[#allocation92_spill] sm:$0xff]  ;;  %v5012_v51 = vmul.f32 1.442695, %v4818_v58 }
 0x5d9   :  { %17695 = vst [vmem:[#allocation164_spill] sm:$0xff] %v15348_v18  ;;  %v4819_v39 = vsub.f32 %v17703_v52, %v17702_v4  ;;  %v5010_v18 = vmul.f32 1.442695, %v4817_v19  ;;  %12090 = vpow2.f32 %v5008_v40 }
 0x5da   :  { %v10795_v60 = vpop.f32.mrf.mxu1 }
 0x5db   :  { %v5014_v60 = vmul.f32 1.442695, %v4819_v39  ;;  %12092 = vpow2.f32 %v5010_v18  ;;  %v17707_v39 = vld [vmem:[#allocation144_spill] sm:$0xff] }
 0x5dc   :  { %12094 = vpow2.f32 %v5012_v51  ;;  %v4701_v51 = vsel %vm4367_vm3, %v17707_v39, -inf }
 0x5dd   :  { %12096 = vpow2.f32 %v5014_v60 }
 0x5de   :  { %7015 = vrot.lane.b32.xlu0 %v17696_v37, %s12392_s6  ;;  %v17704_v37 = vld [vmem:[#allocation141_spill] sm:$0xff]  ;;  %12098 = vrcp.f32 %v15172_v7 }
 0x5df   :  { %v4692_v13 = vsel %vm4367_vm3, %v17704_v37, -inf  ;;  %12100 = vrcp.f32 %v15170_v61 }
 0x5e0   :  { %12102 = vrcp.f32 %v15177_v3 }
 0x5e1   :  { %12104 = vrcp.f32 %v15174_v8 }
 0x5e6   :  { %v15368_v53 = vpop.eup %12090 }
 0x5e7   :  { %v5328_v21 = vsel %vm4367_vm3, %v15368_v53, 0.0 }
 0x5e8   :  { %v15373_v18 = vpop.eup %12092 }
 0x5e9   :  { %v15380_v58 = vpop.eup %12094  ;;  %v5331_v40 = vsel %vm4367_vm3, %v15373_v18, 0.0 }
 0x5ea   :  { %v15388_v4 = vpop.eup %12096  ;;  %v5334_v52 = vsel %vm4367_vm3, %v15380_v58, 0.0 }
 0x5eb   :  { %v5337_v3 = vsel %vm4367_vm3, %v15388_v4, 0.0 }
 0x5fa   :  { %4693 = vmax.xlane.f32.xlu1 %v4692_v13  ;;  %v12099_v13 = vpop.eup %12098 }
 0x5fb   :  { %v5693_v15 = vmul.f32 %v12099_v13, %v14973_v11 }
 0x5fd   :  { %4696 = vmax.xlane.f32.xlu0 %v4695_v33 }
 0x5fe   :  { %4699 = vmax.xlane.f32.xlu1 %v4698_v62 }
 0x601   :  { %v15376_v19 = vpop.xlane.xlu1 %4669  ;;  %4702 = vmax.xlane.f32.xlu0 %v4701_v51  ;;  %v12101_v51 = vpop.eup %12100 }
 0x602   :  { %17708 = vst [vmem:[#allocation13_spill] sm:$0xff] %v15376_v19  ;;  %5329 = vadd.xlane.f32.xlu1 %v5328_v21  ;;  %v12103_v21 = vpop.eup %12102 }
 0x603   :  { %v5695_v28 = vmul.f32 %v12103_v21, %v14988_v1  ;;  %v17723_v1 = vld [vmem:[#allocation97_spill] sm:$0xff] }
 0x604   :  { %v15384_v7 = vpop.xlane.xlu0 %4672 }
 0x605   :  { %17709 = vst [vmem:[#allocation165_spill] sm:$0xff] %v15384_v7  ;;  %v15390_v61 = vpop.xlane.xlu1 %4675  ;;  %5332 = vadd.xlane.f32.xlu0 %v5331_v40  ;;  %v12105_v40 = vpop.eup %12104 }
 0x606   :  { %17710 = vst [vmem:[#allocation66_spill] sm:$0xff] %v15390_v61  ;;  %5335 = vadd.xlane.f32.xlu1 %v5334_v52  ;;  %v5692_v52 = vmul.f32 %v12101_v51, %v14964_v22  ;;  %v17718_v51 = vld [vmem:[#allocation94_spill] sm:$0xff] }
 0x607   :  { %v4820_v21 = vsub.f32 %v17718_v51, %v14766_v16  ;;  %v17725_v51 = vld [vmem:[#allocation146_spill] sm:$0xff] }
 0x608   :  { %v15394_v60 = vpop.xlane.xlu0 %4678 }
 0x609   :  { %17711 = vst [vmem:[#allocation7_spill] sm:$0xff] %v15394_v60  ;;  %v15398_v8 = vpop.xlane.xlu1 %5305  ;;  %5338 = vadd.xlane.f32.xlu0 %v5337_v3  ;;  %v5798_v3 = vpack.c.bf16 %v5693_v15, %v5692_v52  ;;  %v5694_v60 = vmul.f32 %v12105_v40, %v14978_v12  ;;  %v17715_v12 = vld [vmem:[#allocation54_spill] sm:$0xff]  ;;  %v17719_v40 = vld [vmem:[#allocation96_spill] sm:$0xff] }
 0x60a   :  { %v4821_v52 = vsub.f32 %v17719_v40, %v14775_v30  ;;  %v4707_v30 = vsel %vm4367_vm3, %v17725_v51, -inf  ;;  %v17726_v40 = vld [vmem:[#allocation9_spill] sm:$0xff] }
 0x60b   :  { %v5799_v22 = vpack.c.bf16 %v5695_v28, %v5694_v60  ;;  %v17717_v60 = vld [vmem:[#allocation55_spill] sm:$0xff] }
 0x60c   :  { %v15400_v33 = vpop.xlane.xlu0 %5308 }
 0x60d   :  { %v15402_v62 = vpop.xlane.xlu1 %5311 }
 0x610   :  { %v15405_v39 = vpop.xlane.xlu0 %5314 }
 0x611   :  { %v6875_v49 = vpop.permute.xlu1 %6874 }
 0x612   :  { %v15409_v37 = vpop.f32.mrf.mxu0  ;;  %10833 = vmatpush3.bf16.msra.mxu0 %v6875_v49 }
 0x613   :  { %17712 = vst [vmem:[#allocation6_spill] sm:$0xff] %v15409_v37  ;;  %10844 = vmatprep.subr.bf16.mxu0 %v17305_v47 }
 0x614   :  { %v10800_v61 = vpop.f32.mrf.mxu0  ;;  %v6922_v7 = vpop.permute.xlu0 %6921 }
 0x615   :  { %10835 = vmatmul.mubr.msk.bf16.vlgmr.msra.gmra.mxu0 %vm4367_vm3, %v5798_v3  ;;  %v15414_v11 = vpop.f32.mrf.mxu1  ;;  %10839 = vmatpush3.bf16.msra.mxu1 %v6922_v7  ;;  %v17720_v3 = vld [vmem:[#allocation17_spill] sm:$0xff] }
 0x616   :  { %17713 = vst [vmem:[#allocation90_spill] sm:$0xff] %v15414_v11  ;;  %v15416_v13 = vpop.f32.mrf.mxu0  ;;  %10846 = vmatprep.mubr.msk.bf16.mxu0 %vm12391_vm1, %v17305_v47  ;;  %10850 = vmatprep.subr.bf16.mxu1 %v17305_v47 }
 0x617   :  { %17714 = vst [vmem:[#allocation89_spill] sm:$0xff] %v15416_v13  ;;  %7062 = vrot.lane.b32.xlu1 %v17715_v12, %s12392_s6  ;;  %v10806_v15 = vpop.f32.mrf.mxu1  ;;  %v5018_v13 = vmul.f32 1.442695, %v4821_v52 }
 0x618   :  { %v10801_v49 = vpop.f32.mrf.mxu0  ;;  %10841 = vmatmul.mubr.msk.bf16.vlgmr.msra.gmra.mxu1 %vm4367_vm3, %v5799_v22  ;;  %v17721_v22 = vld [vmem:[#allocation95_spill] sm:$0xff]  ;;  %v5016_v15 = vmul.f32 1.442695, %v4820_v21  ;;  %v4710_v21 = vsel %vm4367_vm3, %v17726_v40, -inf }
 0x619   :  { %v15426_v61 = vpop.f32.mrf.mxu1  ;;  %10852 = vmatprep.mubr.msk.bf16.mxu1 %vm12391_vm1, %v17305_v47  ;;  %v4822_v12 = vsub.f32 %v17721_v22, %v17720_v3  ;;  %v17722_v49 = vld [vmem:[#allocation12_spill] sm:$0xff] }
 0x61a   :  { %17716 = vst [vmem:[#allocation19_spill] sm:$0xff] %v15426_v61  ;;  %v4823_v37 = vsub.f32 %v17723_v1, %v17722_v49  ;;  %12106 = vpow2.f32 %v5016_v15 }
 0x61b   :  { %v10807_v7 = vpop.f32.mrf.mxu1  ;;  %v5020_v19 = vmul.f32 1.442695, %v4822_v12  ;;  %12108 = vpow2.f32 %v5018_v13 }
 0x61c   :  { %v5022_v7 = vmul.f32 1.442695, %v4823_v37  ;;  %v17727_v37 = vld [vmem:[#allocation148_spill] sm:$0xff] }
 0x61d   :  { %12110 = vpow2.f32 %v5020_v19  ;;  %v4713_v19 = vsel %vm4367_vm3, %v17727_v37, -inf }
 0x61e   :  { %12112 = vpow2.f32 %v5022_v7 }
 0x61f   :  { %7109 = vrot.lane.b32.xlu0 %v17717_v60, %s12392_s6  ;;  %v17724_v60 = vld [vmem:[#allocation145_spill] sm:$0xff]  ;;  %12114 = vrcp.f32 %v15248_v41 }
 0x620   :  { %v4704_v16 = vsel %vm4367_vm3, %v17724_v60, -inf  ;;  %12116 = vrcp.f32 %v15246_v17 }
 0x621   :  { %12118 = vrcp.f32 %v15253_v25 }
 0x622   :  { %12120 = vrcp.f32 %v15250_v31 }
 0x627   :  { %v15448_v3 = vpop.eup %12106 }
 0x628   :  { %v15453_v13 = vpop.eup %12108  ;;  %v5340_v52 = vsel %vm4367_vm3, %v15448_v3, 0.0 }
 0x629   :  { %v5343_v12 = vsel %vm4367_vm3, %v15453_v13, 0.0 }
 0x62a   :  { %v15460_v22 = vpop.eup %12110 }
 0x62b   :  { %v15468_v15 = vpop.eup %12112  ;;  %v5346_v49 = vsel %vm4367_vm3, %v15460_v22, 0.0 }
 0x62c   :  { %v5349_v25 = vsel %vm4367_vm3, %v15468_v15, 0.0 }
 0x63b   :  { %4705 = vmax.xlane.f32.xlu1 %v4704_v16  ;;  %v12115_v16 = vpop.eup %12114 }
 0x63c   :  { %v5697_v28 = vmul.f32 %v12115_v16, %v15057_v54 }
 0x63e   :  { %4708 = vmax.xlane.f32.xlu0 %v4707_v30 }
 0x63f   :  { %4711 = vmax.xlane.f32.xlu1 %v4710_v21 }
 0x642   :  { %v15456_v1 = vpop.xlane.xlu1 %4681  ;;  %4714 = vmax.xlane.f32.xlu0 %v4713_v19  ;;  %v12117_v19 = vpop.eup %12116 }
 0x643   :  { %5341 = vadd.xlane.f32.xlu1 %v5340_v52  ;;  %v12119_v52 = vpop.eup %12118 }
 0x644   :  { %v5699_v37 = vmul.f32 %v12119_v52, %v15072_v32 }
 0x645   :  { %v15464_v41 = vpop.xlane.xlu0 %4684 }
 0x646   :  { %v15470_v17 = vpop.xlane.xlu1 %4687  ;;  %5344 = vadd.xlane.f32.xlu0 %v5343_v12  ;;  %v12121_v12 = vpop.eup %12120 }
 0x647   :  { %5347 = vadd.xlane.f32.xlu1 %v5346_v49  ;;  %v5696_v49 = vmul.f32 %v12117_v19, %v15050_v42  ;;  %v5698_v51 = vmul.f32 %v12121_v12, %v15064_v43  ;;  %v17732_v43 = vld [vmem:[#allocation69_spill] sm:$0xff]  ;;  %v17735_v19 = vld [vmem:[#allocation98_spill] sm:$0xff] }
 0x648   :  { %v4824_v52 = vsub.f32 %v17735_v19, %v14785_v27  ;;  %v17736_v12 = vld [vmem:[#allocation101_spill] sm:$0xff]  ;;  %v17741_v19 = vld [vmem:[#allocation152_spill] sm:$0xff] }
 0x649   :  { %v15474_v7 = vpop.xlane.xlu0 %4690  ;;  %v5801_v42 = vpack.c.bf16 %v5699_v37, %v5698_v51 }
 0x64a   :  { %17728 = vst [vmem:[#allocation166_spill] sm:$0xff] %v15474_v7  ;;  %v15478_v31 = vpop.xlane.xlu1 %5317  ;;  %5350 = vadd.xlane.f32.xlu0 %v5349_v25  ;;  %v5800_v25 = vpack.c.bf16 %v5697_v28, %v5696_v49  ;;  %v4825_v49 = vsub.f32 %v17736_v12, %v14794_v48  ;;  %v4719_v48 = vsel %vm4367_vm3, %v17741_v19, -inf  ;;  %v17742_v12 = vld [vmem:[#allocation151_spill] sm:$0xff] }
 0x64d   :  { %v15480_v30 = vpop.xlane.xlu0 %5320 }
 0x64e   :  { %v15482_v21 = vpop.xlane.xlu1 %5323 }
 0x651   :  { %v15485_v11 = vpop.xlane.xlu0 %5326 }
 0x652   :  { %v6969_v61 = vpop.permute.xlu1 %6968 }
 0x653   :  { %v15489_v40 = vpop.f32.mrf.mxu0  ;;  %10845 = vmatpush3.bf16.msra.mxu0 %v6969_v61 }
 0x654   :  { %17729 = vst [vmem:[#allocation2_spill] sm:$0xff] %v15489_v40  ;;  %10856 = vmatprep.subr.bf16.mxu0 %v17305_v47  ;;  %v5026_v40 = vmul.f32 1.442695, %v4825_v49 }
 0x655   :  { %v10812_v60 = vpop.f32.mrf.mxu0  ;;  %v7016_v7 = vpop.permute.xlu0 %7015 }
 0x656   :  { %10847 = vmatmul.mubr.msk.bf16.vlgmr.msra.gmra.mxu0 %vm4367_vm3, %v5800_v25  ;;  %v15494_v54 = vpop.f32.mrf.mxu1  ;;  %10851 = vmatpush3.bf16.msra.mxu1 %v7016_v7  ;;  %v17734_v7 = vld [vmem:[#allocation70_spill] sm:$0xff]  ;;  %v17737_v25 = vld [vmem:[#allocation171_spill] sm:$0xff] }
 0x657   :  { %17730 = vst [vmem:[#allocation167_spill] sm:$0xff] %v15494_v54  ;;  %v15496_v16 = vpop.f32.mrf.mxu0  ;;  %10858 = vmatprep.mubr.msk.bf16.mxu0 %vm12391_vm1, %v17305_v47  ;;  %10862 = vmatprep.subr.bf16.mxu1 %v17305_v47 }
 0x658   :  { %17731 = vst [vmem:[#allocation5_spill] sm:$0xff] %v15496_v16  ;;  %7156 = vrot.lane.b32.xlu1 %v17732_v43, %s12392_s6  ;;  %v10818_v61 = vpop.f32.mrf.mxu1 }
 0x659   :  { %v10813_v28 = vpop.f32.mrf.mxu0  ;;  %10853 = vmatmul.mubr.msk.bf16.vlgmr.msra.gmra.mxu1 %vm4367_vm3, %v5801_v42  ;;  %v17738_v42 = vld [vmem:[#allocation99_spill] sm:$0xff]  ;;  %v5024_v61 = vmul.f32 1.442695, %v4824_v52  ;;  %v4722_v52 = vsel %vm4367_vm3, %v17742_v12, -inf }
 0x65a   :  { %v15506_v60 = vpop.f32.mrf.mxu1  ;;  %10864 = vmatprep.mubr.msk.bf16.mxu1 %vm12391_vm1, %v17305_v47  ;;  %v4826_v43 = vsub.f32 %v17738_v42, %v17737_v25  ;;  %v17739_v28 = vld [vmem:[#allocation102_spill] sm:$0xff] }
 0x65b   :  { %17733 = vst [vmem:[#allocation42_spill] sm:$0xff] %v15506_v60  ;;  %v4827_v32 = vsub.f32 %v17739_v28, %v14789_v5  ;;  %12122 = vpow2.f32 %v5024_v61  ;;  %v17743_v5 = vld [vmem:[#allocation10_spill] sm:$0xff] }
 0x65c   :  { %v10819_v37 = vpop.f32.mrf.mxu1  ;;  %v5028_v16 = vmul.f32 1.442695, %v4826_v43  ;;  %12124 = vpow2.f32 %v5026_v40  ;;  %v4725_v40 = vsel %vm4367_vm3, %v17743_v5, -inf }
 0x65d   :  { %v5030_v37 = vmul.f32 1.442695, %v4827_v32 }
 0x65e   :  { %12126 = vpow2.f32 %v5028_v16 }
 0x65f   :  { %12128 = vpow2.f32 %v5030_v37 }
 0x660   :  { %7203 = vrot.lane.b32.xlu0 %v17734_v7, %s12392_s6  ;;  %v17740_v7 = vld [vmem:[#allocation149_spill] sm:$0xff]  ;;  %12130 = vrcp.f32 %v15324_v56 }
 0x661   :  { %v4716_v27 = vsel %vm4367_vm3, %v17740_v7, -inf  ;;  %12132 = vrcp.f32 %v15322_v29 }
 0x662   :  { %12134 = vrcp.f32 %v15329_v59 }
 0x663   :  { %12136 = vrcp.f32 %v15326_v34 }
 0x668   :  { %v15528_v25 = vpop.eup %12122 }
 0x669   :  { %v15533_v16 = vpop.eup %12124  ;;  %v5352_v49 = vsel %vm4367_vm3, %v15528_v25, 0.0 }
 0x66a   :  { %v5355_v43 = vsel %vm4367_vm3, %v15533_v16, 0.0 }
 0x66b   :  { %v15540_v42 = vpop.eup %12126 }
 0x66c   :  { %v15548_v61 = vpop.eup %12128  ;;  %v5358_v28 = vsel %vm4367_vm3, %v15540_v42, 0.0 }
 0x66d   :  { %v5361_v59 = vsel %vm4367_vm3, %v15548_v61, 0.0 }
 0x67c   :  { %4717 = vmax.xlane.f32.xlu1 %v4716_v27  ;;  %v12131_v27 = vpop.eup %12130 }
 0x67d   :  { %v5701_v51 = vmul.f32 %v12131_v27, %v15145_v35 }
 0x67f   :  { %4720 = vmax.xlane.f32.xlu0 %v4719_v48 }
 0x680   :  { %4723 = vmax.xlane.f32.xlu1 %v4722_v52 }
 0x683   :  { %v15536_v32 = vpop.xlane.xlu1 %4693  ;;  %4726 = vmax.xlane.f32.xlu0 %v4725_v40  ;;  %v12133_v40 = vpop.eup %12132 }
 0x684   :  { %5353 = vadd.xlane.f32.xlu1 %v5352_v49  ;;  %v12135_v49 = vpop.eup %12134 }
 0x685   :  { %v5703_v5 = vmul.f32 %v12135_v49, %v15160_v50 }
 0x686   :  { %v15544_v56 = vpop.xlane.xlu0 %4696 }
 0x687   :  { %v15550_v29 = vpop.xlane.xlu1 %4699  ;;  %5356 = vadd.xlane.f32.xlu0 %v5355_v43  ;;  %v12137_v43 = vpop.eup %12136 }
 0x688   :  { %17744 = vst [vmem:[#allocation43_spill] sm:$0xff] %v15550_v29  ;;  %5359 = vadd.xlane.f32.xlu1 %v5358_v28  ;;  %v5700_v28 = vmul.f32 %v12133_v40, %v15140_v9  ;;  %v5702_v19 = vmul.f32 %v12137_v43, %v15152_v2  ;;  %v17749_v2 = vld [vmem:[#allocation79_spill] sm:$0xff]  ;;  %v17752_v40 = vld [vmem:[#allocation104_spill] sm:$0xff] }
 0x689   :  { %v4828_v49 = vsub.f32 %v17752_v40, %v14898_v36  ;;  %v17753_v43 = vld [vmem:[#allocation32_spill] sm:$0xff]  ;;  %v17760_v40 = vld [vmem:[#allocation157_spill] sm:$0xff] }
 0x68a   :  { %v15554_v37 = vpop.xlane.xlu0 %4702  ;;  %v5803_v9 = vpack.c.bf16 %v5703_v5, %v5702_v19 }
 0x68b   :  { %17745 = vst [vmem:[#allocation169_spill] sm:$0xff] %v15554_v37  ;;  %v15558_v34 = vpop.xlane.xlu1 %5329  ;;  %5362 = vadd.xlane.f32.xlu0 %v5361_v59  ;;  %v5802_v59 = vpack.c.bf16 %v5701_v51, %v5700_v28  ;;  %v17754_v28 = vld [vmem:[#allocation106_spill] sm:$0xff] }
 0x68e   :  { %v15560_v48 = vpop.xlane.xlu0 %5332 }
 0x68f   :  { %v15562_v52 = vpop.xlane.xlu1 %5335 }
 0x692   :  { %v15565_v54 = vpop.xlane.xlu0 %5338 }
 0x693   :  { %v7063_v60 = vpop.permute.xlu1 %7062 }
 0x694   :  { %v15569_v12 = vpop.f32.mrf.mxu0  ;;  %10857 = vmatpush3.bf16.msra.mxu0 %v7063_v60 }
 0x695   :  { %17746 = vst [vmem:[#allocation3_spill] sm:$0xff] %v15569_v12  ;;  %10868 = vmatprep.subr.bf16.mxu0 %v17305_v47  ;;  %v17757_v12 = vld [vmem:[#allocation23_spill] sm:$0xff] }
 0x696   :  { %v10824_v7 = vpop.f32.mrf.mxu0  ;;  %v7110_v37 = vpop.permute.xlu0 %7109 }
 0x697   :  { %10859 = vmatmul.mubr.msk.bf16.vlgmr.msra.gmra.mxu0 %vm4367_vm3, %v5802_v59  ;;  %v15574_v35 = vpop.f32.mrf.mxu1  ;;  %10863 = vmatpush3.bf16.msra.mxu1 %v7110_v37  ;;  %v17751_v37 = vld [vmem:[#allocation80_spill] sm:$0xff]  ;;  %v4829_v59 = vsub.f32 %v17754_v28, %v17753_v43 }
 0x698   :  { %17747 = vst [vmem:[#allocation91_spill] sm:$0xff] %v15574_v35  ;;  %v15576_v27 = vpop.f32.mrf.mxu0  ;;  %10870 = vmatprep.mubr.msk.bf16.mxu0 %vm12391_vm1, %v17305_v47  ;;  %10874 = vmatprep.subr.bf16.mxu1 %v17305_v47  ;;  %v17761_v43 = vld [vmem:[#allocation156_spill] sm:$0xff] }
 0x699   :  { %17748 = vst [vmem:[#allocation168_spill] sm:$0xff] %v15576_v27  ;;  %7250 = vrot.lane.b32.xlu1 %v17749_v2, %s12392_s6  ;;  %v10830_v60 = vpop.f32.mrf.mxu1  ;;  %v5032_v2 = vmul.f32 1.442695, %v4828_v49  ;;  %v5034_v50 = vmul.f32 1.442695, %v4829_v59  ;;  %v17758_v27 = vld [vmem:[#allocation107_spill] sm:$0xff] }
 0x69a   :  { %v10825_v51 = vpop.f32.mrf.mxu0  ;;  %10865 = vmatmul.mubr.msk.bf16.vlgmr.msra.gmra.mxu1 %vm4367_vm3, %v5803_v9  ;;  %v17755_v9 = vld [vmem:[#allocation36_spill] sm:$0xff]  ;;  %v17756_v60 = vld [vmem:[#allocation105_spill] sm:$0xff]  ;;  %v4831_v29 = vsub.f32 %v17758_v27, %v17757_v12  ;;  %v4731_v49 = vsel %vm4367_vm3, %v17760_v40, -inf  ;;  %v4734_v28 = vsel %vm4367_vm3, %v17761_v43, -inf  ;;  %v17762_v12 = vld [vmem:[#allocation159_spill] sm:$0xff] }
 0x69b   :  { %v15586_v7 = vpop.f32.mrf.mxu1  ;;  %10876 = vmatprep.mubr.msk.bf16.mxu1 %vm12391_vm1, %v17305_v47  ;;  %v4830_v51 = vsub.f32 %v17756_v60, %v17755_v9  ;;  %12138 = vpow2.f32 %v5032_v2 }
 0x69c   :  { %17750 = vst [vmem:[#allocation4_spill] sm:$0xff] %v15586_v7  ;;  %12140 = vpow2.f32 %v5034_v50 }
 0x69d   :  { %v10831_v5 = vpop.f32.mrf.mxu1  ;;  %v5036_v19 = vmul.f32 1.442695, %v4830_v51 }
 0x69e   :  { %v5038_v5 = vmul.f32 1.442695, %v4831_v29  ;;  %v4737_v29 = vsel %vm4367_vm3, %v17762_v12, -inf }
 0x69f   :  { %12142 = vpow2.f32 %v5036_v19 }
 0x6a0   :  { %12144 = vpow2.f32 %v5038_v5 }
 0x6a1   :  { %7297 = vrot.lane.b32.xlu0 %v17751_v37, %s12392_s6  ;;  %v17759_v37 = vld [vmem:[#allocation155_spill] sm:$0xff]  ;;  %12146 = vrcp.f32 %v15400_v33 }
 0x6a2   :  { %v4728_v36 = vsel %vm4367_vm3, %v17759_v37, -inf  ;;  %12148 = vrcp.f32 %v15398_v8 }
 0x6a3   :  { %12150 = vrcp.f32 %v15405_v39 }
 0x6a4   :  { %12152 = vrcp.f32 %v15402_v62 }
 0x6a8   :  { %v15608_v59 = vpop.eup %12138 }
 0x6a9   :  { %v15613_v27 = vpop.eup %12140  ;;  %v5364_v19 = vsel %vm4367_vm3, %v15608_v59, 0.0 }
 0x6aa   :  { %v5367_v9 = vsel %vm4367_vm3, %v15613_v27, 0.0 }
 0x6ac   :  { %v15620_v2 = vpop.eup %12142 }
 0x6ad   :  { %v15628_v60 = vpop.eup %12144  ;;  %v5370_v51 = vsel %vm4367_vm3, %v15620_v2, 0.0 }
 0x6ae   :  { %v5373_v39 = vsel %vm4367_vm3, %v15628_v60, 0.0 }
 0x6bd   :  { %4729 = vmax.xlane.f32.xlu1 %v4728_v36  ;;  %v12147_v36 = vpop.eup %12146 }
 0x6be   :  { %v5705_v35 = vmul.f32 %v12147_v36, %v15221_v45 }
 0x6c0   :  { %4732 = vmax.xlane.f32.xlu0 %v4731_v49 }
 0x6c1   :  { %4735 = vmax.xlane.f32.xlu1 %v4734_v28 }
 0x6c4   :  { %v15616_v50 = vpop.xlane.xlu1 %4705  ;;  %4738 = vmax.xlane.f32.xlu0 %v4737_v29  ;;  %v12149_v29 = vpop.eup %12148 }
 0x6c5   :  { %17763 = vst [vmem:[#allocation170_spill] sm:$0xff] %v15616_v50  ;;  %5365 = vadd.xlane.f32.xlu1 %v5364_v19  ;;  %v12151_v19 = vpop.eup %12150 }
 0x6c6   :  { %v5707_v43 = vmul.f32 %v12151_v19, %v15236_v55  ;;  %v17774_v19 = vld [vmem:[#allocation108_spill] sm:$0xff] }
 0x6c7   :  { %v15624_v33 = vpop.xlane.xlu0 %4708 }
 0x6c8   :  { %17764 = vst [vmem:[#allocation92_spill] sm:$0xff] %v15624_v33  ;;  %v15630_v8 = vpop.xlane.xlu1 %4711  ;;  %5368 = vadd.xlane.f32.xlu0 %v5367_v9  ;;  %v12153_v9 = vpop.eup %12152  ;;  %v17780_v33 = vld [vmem:[#allocation111_spill] sm:$0xff] }
 0x6c9   :  { %17765 = vst [vmem:[#allocation54_spill] sm:$0xff] %v15630_v8  ;;  %5371 = vadd.xlane.f32.xlu1 %v5370_v51  ;;  %v5704_v51 = vmul.f32 %v12149_v29, %v15216_v23  ;;  %v5706_v37 = vmul.f32 %v12153_v9, %v15228_v57  ;;  %v17770_v57 = vld [vmem:[#allocation44_spill] sm:$0xff] }
 0x6ca   :  { %v17773_v29 = vld [vmem:[#allocation68_spill] sm:$0xff] }
 0x6cb   :  { %v15634_v5 = vpop.xlane.xlu0 %4714  ;;  %v5805_v23 = vpack.c.bf16 %v5707_v43, %v5706_v37  ;;  %v4832_v9 = vsub.f32 %v17774_v19, %v17773_v29  ;;  %v17782_v19 = vld [vmem:[#allocation162_spill] sm:$0xff] }
 0x6cc   :  { %17766 = vst [vmem:[#allocation55_spill] sm:$0xff] %v15634_v5  ;;  %v15638_v62 = vpop.xlane.xlu1 %5341  ;;  %5374 = vadd.xlane.f32.xlu0 %v5373_v39  ;;  %v5804_v39 = vpack.c.bf16 %v5705_v35, %v5704_v51  ;;  %v17775_v51 = vld [vmem:[#allocation30_spill] sm:$0xff] }
 0x6cf   :  { %v15640_v49 = vpop.xlane.xlu0 %5344 }
 0x6d0   :  { %v15642_v28 = vpop.xlane.xlu1 %5347 }
 0x6d3   :  { %v15645_v7 = vpop.xlane.xlu0 %5350 }
 0x6d4   :  { %v7157_v12 = vpop.permute.xlu1 %7156 }
 0x6d5   :  { %v15649_v40 = vpop.f32.mrf.mxu0  ;;  %10869 = vmatpush3.bf16.msra.mxu0 %v7157_v12 }
 0x6d6   :  { %17767 = vst [vmem:[#allocation94_spill] sm:$0xff] %v15649_v40  ;;  %10880 = vmatprep.subr.bf16.mxu0 %v17305_v47 }
 0x6d7   :  { %v10836_v5 = vpop.f32.mrf.mxu0  ;;  %v7204_v8 = vpop.permute.xlu0 %7203 }
 0x6d8   :  { %10871 = vmatmul.mubr.msk.bf16.vlgmr.msra.gmra.mxu0 %vm4367_vm3, %v5804_v39  ;;  %v15654_v45 = vpop.f32.mrf.mxu1  ;;  %10875 = vmatpush3.bf16.msra.mxu1 %v7204_v8  ;;  %v17772_v8 = vld [vmem:[#allocation45_spill] sm:$0xff]  ;;  %v17776_v39 = vld [vmem:[#allocation110_spill] sm:$0xff] }
 0x6d9   :  { %17768 = vst [vmem:[#allocation96_spill] sm:$0xff] %v15654_v45  ;;  %v15656_v36 = vpop.f32.mrf.mxu0  ;;  %10882 = vmatprep.mubr.msk.bf16.mxu0 %vm12391_vm1, %v17305_v47  ;;  %10886 = vmatprep.subr.bf16.mxu1 %v17305_v47 }
 0x6da   :  { %17769 = vst [vmem:[#allocation17_spill] sm:$0xff] %v15656_v36  ;;  %7344 = vrot.lane.b32.xlu1 %v17770_v57, %s12392_s6  ;;  %v10842_v35 = vpop.f32.mrf.mxu1  ;;  %v4833_v57 = vsub.f32 %v17776_v39, %v17775_v51  ;;  %v17779_v36 = vld [vmem:[#allocation34_spill] sm:$0xff]  ;;  %v17783_v51 = vld [vmem:[#allocation161_spill] sm:$0xff] }
 0x6db   :  { %v10837_v12 = vpop.f32.mrf.mxu0  ;;  %10877 = vmatmul.mubr.msk.bf16.vlgmr.msra.gmra.mxu1 %vm4367_vm3, %v5805_v23  ;;  %v5040_v35 = vmul.f32 1.442695, %v4832_v9  ;;  %v17777_v23 = vld [vmem:[#allocation16_spill] sm:$0xff]  ;;  %v4835_v50 = vsub.f32 %v17780_v33, %v17779_v36  ;;  %v4743_v9 = vsel %vm4367_vm3, %v17782_v19, -inf  ;;  %v4746_v39 = vsel %vm4367_vm3, %v17783_v51, -inf }
 0x6dc   :  { %v15666_v5 = vpop.f32.mrf.mxu1  ;;  %10888 = vmatprep.mubr.msk.bf16.mxu1 %vm12391_vm1, %v17305_v47  ;;  %v17778_v12 = vld [vmem:[#allocation109_spill] sm:$0xff]  ;;  %v5042_v40 = vmul.f32 1.442695, %v4833_v57 }
 0x6dd   :  { %17771 = vst [vmem:[#allocation95_spill] sm:$0xff] %v15666_v5  ;;  %v4834_v55 = vsub.f32 %v17778_v12, %v17777_v23  ;;  %12154 = vpow2.f32 %v5040_v35 }
 0x6de   :  { %v10843_v43 = vpop.f32.mrf.mxu1  ;;  %12156 = vpow2.f32 %v5042_v40  ;;  %v17784_v40 = vld [vmem:[#allocation163_spill] sm:$0xff] }
 0x6df   :  { %v5044_v37 = vmul.f32 1.442695, %v4834_v55  ;;  %v5046_v43 = vmul.f32 1.442695, %v4835_v50  ;;  %v4749_v50 = vsel %vm4367_vm3, %v17784_v40, -inf }
 0x6e1   :  { %12158 = vpow2.f32 %v5044_v37 }
 0x6e2   :  { %7391 = vrot.lane.b32.xlu0 %v17772_v8, %s12392_s6  ;;  %12160 = vpow2.f32 %v5046_v43  ;;  %v17781_v8 = vld [vmem:[#allocation160_spill] sm:$0xff] }
 0x6e3   :  { %v4740_v29 = vsel %vm4367_vm3, %v17781_v8, -inf  ;;  %12162 = vrcp.f32 %v15480_v30 }
 0x6e4   :  { %12164 = vrcp.f32 %v15478_v31 }
 0x6e5   :  { %12166 = vrcp.f32 %v15485_v11 }
 0x6e6   :  { %12168 = vrcp.f32 %v15482_v21 }
 0x6ea   :  { %v15688_v57 = vpop.eup %12154 }
 0x6eb   :  { %v15693_v33 = vpop.eup %12156  ;;  %v5376_v55 = vsel %vm4367_vm3, %v15688_v57, 0.0 }
 0x6ec   :  { %v5379_v35 = vsel %vm4367_vm3, %v15693_v33, 0.0 }
 0x6ee   :  { %v15700_v37 = vpop.eup %12158 }
 0x6ef   :  { %v15708_v23 = vpop.eup %12160  ;;  %v5382_v12 = vsel %vm4367_vm3, %v15700_v37, 0.0 }
 0x6f0   :  { %v5385_v11 = vsel %vm4367_vm3, %v15708_v23, 0.0 }
 0x6fe   :  { %4741 = vmax.xlane.f32.xlu1 %v4740_v29  ;;  %v12163_v29 = vpop.eup %12162 }
 0x6ff   :  { %v5709_v45 = vmul.f32 %v12163_v29, %v15297_v6 }
 0x701   :  { %4744 = vmax.xlane.f32.xlu0 %v4743_v9 }
 0x702   :  { %4747 = vmax.xlane.f32.xlu1 %v4746_v39 }
 0x705   :  { %v15696_v36 = vpop.xlane.xlu1 %4717  ;;  %4750 = vmax.xlane.f32.xlu0 %v4749_v50  ;;  %v12165_v50 = vpop.eup %12164 }
 0x706   :  { %17785 = vst [vmem:[#allocation12_spill] sm:$0xff] %v15696_v36  ;;  %5377 = vadd.xlane.f32.xlu1 %v5376_v55  ;;  %v12167_v55 = vpop.eup %12166 }
 0x707   :  { %v5711_v51 = vmul.f32 %v12167_v55, %v15312_v20  ;;  %v17796_v55 = vld [vmem:[#allocation112_spill] sm:$0xff] }
 0x708   :  { %v15704_v30 = vpop.xlane.xlu0 %4720 }
 0x709   :  { %17786 = vst [vmem:[#allocation97_spill] sm:$0xff] %v15704_v30  ;;  %v15710_v31 = vpop.xlane.xlu1 %4723  ;;  %5380 = vadd.xlane.f32.xlu0 %v5379_v35  ;;  %v12169_v35 = vpop.eup %12168  ;;  %v17802_v30 = vld [vmem:[#allocation115_spill] sm:$0xff] }
 0x70a   :  { %17787 = vst [vmem:[#allocation69_spill] sm:$0xff] %v15710_v31  ;;  %5383 = vadd.xlane.f32.xlu1 %v5382_v12  ;;  %v5708_v12 = vmul.f32 %v12165_v50, %v15292_v38  ;;  %v5710_v8 = vmul.f32 %v12169_v35, %v15304_v44  ;;  %v17792_v44 = vld [vmem:[#allocation56_spill] sm:$0xff] }
 0x70b   :  { %v17795_v50 = vld [vmem:[#allocation20_spill] sm:$0xff] }
 0x70c   :  { %v15714_v43 = vpop.xlane.xlu0 %4726  ;;  %v5807_v38 = vpack.c.bf16 %v5711_v51, %v5710_v8  ;;  %v4836_v35 = vsub.f32 %v17796_v55, %v17795_v50 }
 0x70d   :  { %17788 = vst [vmem:[#allocation70_spill] sm:$0xff] %v15714_v43  ;;  %v15718_v21 = vpop.xlane.xlu1 %5353  ;;  %5386 = vadd.xlane.f32.xlu0 %v5385_v11  ;;  %v5806_v11 = vpack.c.bf16 %v5709_v45, %v5708_v12  ;;  %v17797_v12 = vld [vmem:[#allocation154_spill] sm:$0xff] }
 0x710   :  { %v15720_v9 = vpop.xlane.xlu0 %5356 }
 0x711   :  { %v15722_v39 = vpop.xlane.xlu1 %5359 }
 0x714   :  { %v15725_v5 = vpop.xlane.xlu0 %5362 }
 0x715   :  { %v7251_v40 = vpop.permute.xlu1 %7250 }
 0x716   :  { %v15729_v19 = vpop.f32.mrf.mxu0  ;;  %10881 = vmatpush3.bf16.msra.mxu0 %v7251_v40 }
 0x717   :  { %17789 = vst [vmem:[#allocation98_spill] sm:$0xff] %v15729_v19  ;;  %10892 = vmatprep.subr.bf16.mxu0 %v17305_v47 }
 0x718   :  { %v10848_v43 = vpop.f32.mrf.mxu0  ;;  %v7298_v31 = vpop.permute.xlu0 %7297 }
 0x719   :  { %10883 = vmatmul.mubr.msk.bf16.vlgmr.msra.gmra.mxu0 %vm4367_vm3, %v5806_v11  ;;  %v15734_v6 = vpop.f32.mrf.mxu1  ;;  %10887 = vmatpush3.bf16.msra.mxu1 %v7298_v31  ;;  %v17794_v31 = vld [vmem:[#allocation57_spill] sm:$0xff]  ;;  %v17798_v11 = vld [vmem:[#allocation114_spill] sm:$0xff] }
 0x71a   :  { %17790 = vst [vmem:[#allocation101_spill] sm:$0xff] %v15734_v6  ;;  %v15736_v29 = vpop.f32.mrf.mxu0  ;;  %10894 = vmatprep.mubr.msk.bf16.mxu0 %vm12391_vm1, %v17305_v47  ;;  %10898 = vmatprep.subr.bf16.mxu1 %v17305_v47 }
 0x71b   :  { %17791 = vst [vmem:[#allocation171_spill] sm:$0xff] %v15736_v29  ;;  %7438 = vrot.lane.b32.xlu1 %v17792_v44, %s12392_s6  ;;  %v10854_v45 = vpop.f32.mrf.mxu1  ;;  %v4837_v44 = vsub.f32 %v17798_v11, %v17797_v12  ;;  %v17801_v29 = vld [vmem:[#allocation33_spill] sm:$0xff] }
 0x71c   :  { %v10849_v40 = vpop.f32.mrf.mxu0  ;;  %10889 = vmatmul.mubr.msk.bf16.vlgmr.msra.gmra.mxu1 %vm4367_vm3, %v5807_v38  ;;  %v5048_v45 = vmul.f32 1.442695, %v4836_v35  ;;  %v17799_v38 = vld [vmem:[#allocation38_spill] sm:$0xff]  ;;  %v4839_v36 = vsub.f32 %v17802_v30, %v17801_v29 }
 0x71d   :  { %v15746_v43 = vpop.f32.mrf.mxu1  ;;  %10900 = vmatprep.mubr.msk.bf16.mxu1 %vm12391_vm1, %v17305_v47  ;;  %v17800_v40 = vld [vmem:[#allocation113_spill] sm:$0xff]  ;;  %v5050_v19 = vmul.f32 1.442695, %v4837_v44 }
 0x71e   :  { %17793 = vst [vmem:[#allocation99_spill] sm:$0xff] %v15746_v43  ;;  %v4838_v20 = vsub.f32 %v17800_v40, %v17799_v38  ;;  %12170 = vpow2.f32 %v5048_v45 }
 0x71f   :  { %v10855_v51 = vpop.f32.mrf.mxu1  ;;  %12172 = vpow2.f32 %v5050_v19 }
 0x720   :  { %v5052_v8 = vmul.f32 1.442695, %v4838_v20  ;;  %v5054_v51 = vmul.f32 1.442695, %v4839_v36 }
 0x722   :  { %12174 = vpow2.f32 %v5052_v8 }
 0x723   :  { %7485 = vrot.lane.b32.xlu0 %v17794_v31, %s12392_s6  ;;  %12176 = vpow2.f32 %v5054_v51 }
 0x724   :  { %12178 = vrcp.f32 %v15560_v48 }
 0x725   :  { %12180 = vrcp.f32 %v15558_v34 }
 0x726   :  { %12182 = vrcp.f32 %v15565_v54  ;;  %v17805_v54 = vld [vmem:[#allocation71_spill] sm:$0xff] }
 0x727   :  { %12184 = vrcp.f32 %v15562_v52 }
 0x72b   :  { %v15762_v31 = vpop.eup %12170 }
 0x72c   :  { %v15764_v50 = vpop.eup %12172  ;;  %v5388_v55 = vsel %vm4367_vm3, %v15762_v31, 0.0 }
 0x72d   :  { %v5391_v12 = vsel %vm4367_vm3, %v15764_v50, 0.0 }
 0x72f   :  { %v15768_v35 = vpop.eup %12174 }
 0x730   :  { %v15772_v30 = vpop.eup %12176  ;;  %v5394_v19 = vsel %vm4367_vm3, %v15768_v35, 0.0 }
 0x731   :  { %v5397_v36 = vsel %vm4367_vm3, %v15772_v30, 0.0  ;;  %v12179_v48 = vpop.eup %12178 }
 0x732   :  { %v12181_v34 = vpop.eup %12180  ;;  %v5713_v51 = vmul.f32 %v12179_v48, %v15373_v18 }
 0x733   :  { %v12183_v40 = vpop.eup %12182 }
 0x73f   :  { %5389 = vadd.xlane.f32.xlu1 %v5388_v55  ;;  %v12185_v55 = vpop.eup %12184 }
 0x742   :  { %5392 = vadd.xlane.f32.xlu0 %v5391_v12  ;;  %v5712_v12 = vmul.f32 %v12181_v34, %v15368_v53 }
 0x743   :  { %5395 = vadd.xlane.f32.xlu1 %v5394_v19 }
 0x744   :  { %v5808_v43 = vpack.c.bf16 %v5713_v51, %v5712_v12 }
 0x746   :  { %v15780_v29 = vpop.xlane.xlu1 %4729  ;;  %5398 = vadd.xlane.f32.xlu0 %v5397_v36  ;;  %v5715_v36 = vmul.f32 %v12183_v40, %v15388_v4 }
 0x749   :  { %v15784_v20 = vpop.xlane.xlu0 %4732 }
 0x74a   :  { %v15786_v8 = vpop.xlane.xlu1 %4735 }
 0x74b   :  { %17803 = vst [vmem:[#allocation102_spill] sm:$0xff] %v15786_v8 }
 0x74d   :  { %v15788_v11 = vpop.xlane.xlu0 %4738 }
 0x74e   :  { %17804 = vst [vmem:[#allocation79_spill] sm:$0xff] %v15788_v11  ;;  %v15790_v44 = vpop.xlane.xlu1 %5365  ;;  %v5714_v11 = vmul.f32 %v12185_v55, %v15380_v58  ;;  %v17809_v58 = vld [vmem:[#allocation72_spill] sm:$0xff] }
 0x750   :  { %v5809_v53 = vpack.c.bf16 %v5715_v36, %v5714_v11  ;;  %v17811_v11 = vld [vmem:[#allocation116_spill] sm:$0xff] }
 0x751   :  { %v15792_v45 = vpop.xlane.xlu0 %5368  ;;  %v4840_v51 = vsub.f32 %v17811_v11, %v15148_v26 }
 0x752   :  { %v15794_v38 = vpop.xlane.xlu1 %5371 }
 0x754   :  { %7532 = vrot.lane.b32.xlu1 %v17805_v54, %s12392_s6 }
 0x755   :  { %v15799_v52 = vpop.xlane.xlu0 %5374 }
 0x756   :  { %v7345_v19 = vpop.permute.xlu1 %7344 }
 0x757   :  { %v15803_v6 = vpop.f32.mrf.mxu0  ;;  %10893 = vmatpush3.bf16.msra.mxu0 %v7345_v19  ;;  %v17812_v19 = vld [vmem:[#allocation118_spill] sm:$0xff] }
 0x758   :  { %17806 = vst [vmem:[#allocation80_spill] sm:$0xff] %v15803_v6  ;;  %10904 = vmatprep.subr.bf16.mxu0 %v17305_v47  ;;  %v4841_v36 = vsub.f32 %v17812_v19, %v15156_v14 }
 0x759   :  { %v10860_v18 = vpop.f32.mrf.mxu0  ;;  %v7392_v48 = vpop.permute.xlu0 %7391 }
 0x75a   :  { %10895 = vmatmul.mubr.msk.bf16.vlgmr.msra.gmra.mxu0 %vm4367_vm3, %v5808_v43  ;;  %v15808_v54 = vpop.f32.mrf.mxu1  ;;  %10899 = vmatpush3.bf16.msra.mxu1 %v7392_v48  ;;  %v5056_v18 = vmul.f32 1.442695, %v4840_v51  ;;  %v17813_v48 = vld [vmem:[#allocation117_spill] sm:$0xff] }
 0x75b   :  { %17807 = vst [vmem:[#allocation104_spill] sm:$0xff] %v15808_v54  ;;  %v15810_v8 = vpop.f32.mrf.mxu0  ;;  %10906 = vmatprep.mubr.msk.bf16.mxu0 %vm12391_vm1, %v17305_v47  ;;  %10910 = vmatprep.subr.bf16.mxu1 %v17305_v47 }
 0x75c   :  { %17808 = vst [vmem:[#allocation32_spill] sm:$0xff] %v15810_v8  ;;  %7579 = vrot.lane.b32.xlu0 %v17809_v58, %s12392_s6  ;;  %v10866_v34 = vpop.f32.mrf.mxu1  ;;  %v4842_v58 = vsub.f32 %v17813_v48, %v15162_v46  ;;  %12186 = vpow2.f32 %v5056_v18  ;;  %v17816_v18 = vld [vmem:[#allocation81_spill] sm:$0xff] }
 0x75d   :  { %v10861_v40 = vpop.f32.mrf.mxu0  ;;  %10901 = vmatmul.mubr.msk.bf16.vlgmr.msra.gmra.mxu1 %vm4367_vm3, %v5809_v53  ;;  %v5058_v53 = vmul.f32 1.442695, %v4841_v36  ;;  %v17814_v34 = vld [vmem:[#allocation119_spill] sm:$0xff] }
 0x75e   :  { %v15820_v43 = vpop.f32.mrf.mxu1  ;;  %10912 = vmatprep.mubr.msk.bf16.mxu1 %vm12391_vm1, %v17305_v47  ;;  %v4843_v40 = vsub.f32 %v17814_v34, %v15166_v0  ;;  %v5060_v4 = vmul.f32 1.442695, %v4842_v58 }
 0x75f   :  { %17810 = vst [vmem:[#allocation106_spill] sm:$0xff] %v15820_v43  ;;  %12188 = vpow2.f32 %v5058_v53 }
 0x760   :  { %v10867_v12 = vpop.f32.mrf.mxu1  ;;  %v5062_v6 = vmul.f32 1.442695, %v4843_v40  ;;  %12190 = vpow2.f32 %v5060_v4  ;;  %v17818_v40 = vld [vmem:[#allocation82_spill] sm:$0xff] }
 0x762   :  { %12192 = vpow2.f32 %v5062_v6 }
 0x763   :  { %12194 = vrcp.f32 %v15640_v49 }
 0x764   :  { %12196 = vrcp.f32 %v15638_v62 }
 0x765   :  { %12198 = vrcp.f32 %v15645_v7 }
 0x766   :  { %12200 = vrcp.f32 %v15642_v28 }
 0x769   :  { %v15834_v26 = vpop.eup %12186 }
 0x76a   :  { %v5400_v14 = vsel %vm4367_vm3, %v15834_v26, 0.0 }
 0x76c   :  { %v15836_v11 = vpop.eup %12188 }
 0x76d   :  { %v15840_v51 = vpop.eup %12190  ;;  %v5403_v46 = vsel %vm4367_vm3, %v15836_v11, 0.0 }
 0x76e   :  { %v5406_v12 = vsel %vm4367_vm3, %v15840_v51, 0.0 }
 0x76f   :  { %v15844_v0 = vpop.eup %12192 }
 0x770   :  { %v5409_v6 = vsel %vm4367_vm3, %v15844_v0, 0.0  ;;  %v12195_v49 = vpop.eup %12194 }
 0x771   :  { %v12197_v34 = vpop.eup %12196  ;;  %v5717_v28 = vmul.f32 %v12195_v49, %v15453_v13 }
 0x772   :  { %v12199_v7 = vpop.eup %12198 }
 0x773   :  { %v5719_v54 = vmul.f32 %v12199_v7, %v15468_v15  ;;  %v17823_v15 = vld [vmem:[#allocation121_spill] sm:$0xff] }
 0x778   :  { %5401 = vadd.xlane.f32.xlu1 %v5400_v14 }
 0x77b   :  { %5404 = vadd.xlane.f32.xlu0 %v5403_v46  ;;  %v12201_v46 = vpop.eup %12200 }
 0x77c   :  { %5407 = vadd.xlane.f32.xlu1 %v5406_v12  ;;  %v5716_v12 = vmul.f32 %v12197_v34, %v15448_v3  ;;  %v5718_v13 = vmul.f32 %v12201_v46, %v15460_v22  ;;  %v17824_v34 = vld [vmem:[#allocation122_spill] sm:$0xff]  ;;  %v17827_v46 = vld [vmem:[#allocation125_spill] sm:$0xff] }
 0x77d   :  { %v4846_v7 = vsub.f32 %v17824_v34, %v17823_v15 }
 0x77e   :  { %v5810_v8 = vpack.c.bf16 %v5717_v28, %v5716_v12  ;;  %v5811_v28 = vpack.c.bf16 %v5719_v54, %v5718_v13 }
 0x77f   :  { %5410 = vadd.xlane.f32.xlu0 %v5409_v6  ;;  %v5068_v54 = vmul.f32 1.442695, %v4846_v7 }
 0x787   :  { %v15852_v4 = vpop.xlane.xlu1 %4741 }
 0x78a   :  { %v15856_v19 = vpop.xlane.xlu0 %4744 }
 0x78b   :  { %v15858_v36 = vpop.xlane.xlu1 %4747 }
 0x78c   :  { %17815 = vst [vmem:[#allocation36_spill] sm:$0xff] %v15858_v36 }
 0x78d   :  { %7626 = vrot.lane.b32.xlu1 %v17816_v18, %s12392_s6  ;;  %v17819_v18 = vld [vmem:[#allocation120_spill] sm:$0xff] }
 0x78e   :  { %v15862_v48 = vpop.xlane.xlu0 %4750  ;;  %v4844_v55 = vsub.f32 %v17819_v18, %v15224_v63 }
 0x78f   :  { %17817 = vst [vmem:[#allocation105_spill] sm:$0xff] %v15862_v48  ;;  %v15864_v58 = vpop.xlane.xlu1 %5377  ;;  %v17821_v48 = vld [vmem:[#allocation123_spill] sm:$0xff] }
 0x790   :  { %v4845_v36 = vsub.f32 %v17821_v48, %v15232_v24  ;;  %v5064_v63 = vmul.f32 1.442695, %v4844_v55  ;;  %v17826_v55 = vld [vmem:[#allocation52_spill] sm:$0xff]  ;;  %v17832_v24 = vld [vmem:[#allocation29_spill] sm:$0xff] }
 0x791   :  { %v4847_v12 = vsub.f32 %v17827_v46, %v17826_v55 }
 0x792   :  { %v15866_v53 = vpop.xlane.xlu0 %5380  ;;  %v5066_v48 = vmul.f32 1.442695, %v4845_v36  ;;  %12202 = vpow2.f32 %v5064_v63 }
 0x793   :  { %v15868_v62 = vpop.xlane.xlu1 %5383 }
 0x794   :  { %12204 = vpow2.f32 %v5066_v48  ;;  %v17829_v48 = vld [vmem:[#allocation46_spill] sm:$0xff] }
 0x795   :  { %7673 = vrot.lane.b32.xlu0 %v17818_v40, %s12392_s6  ;;  %12206 = vpow2.f32 %v5068_v54 }
 0x796   :  { %v15873_v14 = vpop.xlane.xlu0 %5386 }
 0x797   :  { %v7439_v6 = vpop.permute.xlu1 %7438 }
 0x798   :  { %v15879_v43 = vpop.f32.mrf.mxu0  ;;  %10905 = vmatpush3.bf16.msra.mxu0 %v7439_v6 }
 0x799   :  { %17820 = vst [vmem:[#allocation23_spill] sm:$0xff] %v15879_v43  ;;  %10916 = vmatprep.subr.bf16.mxu0 %v17305_v47 }
 0x79a   :  { %v10872_v49 = vpop.f32.mrf.mxu0  ;;  %v7486_v40 = vpop.permute.xlu0 %7485 }
 0x79b   :  { %10907 = vmatmul.mubr.msk.bf16.vlgmr.msra.gmra.mxu0 %vm4367_vm3, %v5810_v8  ;;  %v15886_v3 = vpop.f32.mrf.mxu1  ;;  %10911 = vmatpush3.bf16.msra.mxu1 %v7486_v40  ;;  %v5070_v40 = vmul.f32 1.442695, %v4847_v12 }
 0x79c   :  { %17822 = vst [vmem:[#allocation107_spill] sm:$0xff] %v15886_v3  ;;  %v15890_v6 = vpop.f32.mrf.mxu0  ;;  %10918 = vmatprep.mubr.msk.bf16.mxu0 %vm12391_vm1, %v17305_v47  ;;  %10922 = vmatprep.subr.bf16.mxu1 %v17305_v47 }
 0x79d   :  { %17825 = vst [vmem:[#allocation44_spill] sm:$0xff] %v15890_v6  ;;  %v10878_v22 = vpop.f32.mrf.mxu1  ;;  %12208 = vpow2.f32 %v5070_v40 }
 0x79e   :  { %v10873_v8 = vpop.f32.mrf.mxu0  ;;  %10913 = vmatmul.mubr.msk.bf16.vlgmr.msra.gmra.mxu1 %vm4367_vm3, %v5811_v28  ;;  %12210 = vrcp.f32 %v15720_v9 }
 0x79f   :  { %v15900_v18 = vpop.f32.mrf.mxu1  ;;  %10924 = vmatprep.mubr.msk.bf16.mxu1 %vm12391_vm1, %v17305_v47  ;;  %v15906_v15 = vpop.eup %12202  ;;  %12212 = vrcp.f32 %v15718_v21  ;;  %v17830_v21 = vld [vmem:[#allocation47_spill] sm:$0xff] }
 0x7a0   :  { %17828 = vst [vmem:[#allocation45_spill] sm:$0xff] %v15900_v18  ;;  %v5412_v34 = vsel %vm4367_vm3, %v15906_v15, 0.0  ;;  %12214 = vrcp.f32 %v15725_v5  ;;  %v17835_v18 = vld [vmem:[#allocation127_spill] sm:$0xff] }
 0x7a1   :  { %v10879_v49 = vpop.f32.mrf.mxu1  ;;  %v15908_v36 = vpop.eup %12204  ;;  %12216 = vrcp.f32 %v15722_v39 }
 0x7a2   :  { %v15912_v28 = vpop.eup %12206  ;;  %v5415_v63 = vsel %vm4367_vm3, %v15908_v36, 0.0 }
 0x7a3   :  { %v5418_v22 = vsel %vm4367_vm3, %v15912_v28, 0.0 }
 0x7aa   :  { %v15916_v7 = vpop.eup %12208 }
 0x7ab   :  { %v5421_v8 = vsel %vm4367_vm3, %v15916_v7, 0.0  ;;  %v12211_v46 = vpop.eup %12210 }
 0x7ac   :  { %v12213_v49 = vpop.eup %12212  ;;  %v5721_v9 = vmul.f32 %v12211_v46, %v15533_v16 }
 0x7ad   :  { %v12215_v40 = vpop.eup %12214 }
 0x7ae   :  { %v12217_v39 = vpop.eup %12216 }
 0x7af   :  { %v5722_v16 = vmul.f32 %v12217_v39, %v15540_v42 }
 0x7b1   :  { %5413 = vadd.xlane.f32.xlu1 %v5412_v34  ;;  %v5720_v34 = vmul.f32 %v12213_v49, %v15528_v25  ;;  %v17834_v49 = vld [vmem:[#allocation14_spill] sm:$0xff] }
 0x7b2   :  { %v4850_v43 = vsub.f32 %v17835_v18, %v17834_v49 }
 0x7b3   :  { %v5812_v13 = vpack.c.bf16 %v5721_v9, %v5720_v34 }
 0x7b4   :  { %5416 = vadd.xlane.f32.xlu0 %v5415_v63 }
 0x7b5   :  { %5419 = vadd.xlane.f32.xlu1 %v5418_v22  ;;  %v17831_v22 = vld [vmem:[#allocation126_spill] sm:$0xff] }
 0x7b8   :  { %5422 = vadd.xlane.f32.xlu0 %v5421_v8  ;;  %v4848_v8 = vsub.f32 %v17831_v22, %v15300_v10 }
 0x7ba   :  { %v5072_v25 = vmul.f32 1.442695, %v4848_v8 }
 0x7bc   :  { %12218 = vpow2.f32 %v5072_v25 }
 0x7c6   :  { %7720 = vrot.lane.b32.xlu1 %v17829_v48, %s12392_s6  ;;  %v5723_v48 = vmul.f32 %v12215_v40, %v15548_v61  ;;  %v17836_v61 = vld [vmem:[#allocation65_spill] sm:$0xff] }
 0x7c7   :  { %v17837_v40 = vld [vmem:[#allocation129_spill] sm:$0xff] }
 0x7c8   :  { %v15928_v55 = vpop.xlane.xlu1 %5389  ;;  %v5813_v10 = vpack.c.bf16 %v5723_v48, %v5722_v16  ;;  %v4851_v9 = vsub.f32 %v17837_v40, %v17836_v61 }
 0x7ca   :  { %v5078_v39 = vmul.f32 1.442695, %v4851_v9  ;;  %v17842_v9 = vld [vmem:[#allocation58_spill] sm:$0xff] }
 0x7cb   :  { %v15930_v12 = vpop.xlane.xlu0 %5392 }
 0x7cc   :  { %v15932_v54 = vpop.xlane.xlu1 %5395 }
 0x7ce   :  { %7767 = vrot.lane.b32.xlu0 %v17830_v21, %s12392_s6  ;;  %v17833_v21 = vld [vmem:[#allocation128_spill] sm:$0xff] }
 0x7cf   :  { %v15937_v5 = vpop.xlane.xlu0 %5398  ;;  %v4849_v3 = vsub.f32 %v17833_v21, %v17832_v24  ;;  %v5076_v24 = vmul.f32 1.442695, %v4850_v43 }
 0x7d0   :  { %v7533_v63 = vpop.permute.xlu1 %7532 }
 0x7d1   :  { %10917 = vmatpush3.bf16.msra.mxu0 %v7533_v63  ;;  %v5074_v42 = vmul.f32 1.442695, %v4849_v3 }
 0x7d2   :  { %10928 = vmatprep.subr.bf16.mxu0 %v17305_v47 }
 0x7d3   :  { %v7580_v46 = vpop.permute.xlu0 %7579  ;;  %12220 = vpow2.f32 %v5074_v42 }
 0x7d4   :  { %10919 = vmatmul.mubr.msk.bf16.vlgmr.msra.gmra.mxu0 %vm4367_vm3, %v5812_v13  ;;  %10923 = vmatpush3.bf16.msra.mxu1 %v7580_v46  ;;  %12222 = vpow2.f32 %v5076_v24  ;;  %v15970_v46 = vpop.eup %12218 }
 0x7d5   :  { %10930 = vmatprep.mubr.msk.bf16.mxu0 %vm12391_vm1, %v17305_v47  ;;  %10934 = vmatprep.subr.bf16.mxu1 %v17305_v47  ;;  %12224 = vpow2.f32 %v5078_v39  ;;  %v5424_v25 = vsel %vm4367_vm3, %v15970_v46, 0.0 }
 0x7d6   :  { %12226 = vrcp.f32 %v15792_v45 }
 0x7d7   :  { %10925 = vmatmul.mubr.msk.bf16.vlgmr.msra.gmra.mxu1 %vm4367_vm3, %v5813_v10  ;;  %12228 = vrcp.f32 %v15790_v44  ;;  %v17843_v44 = vld [vmem:[#allocation59_spill] sm:$0xff] }
 0x7d8   :  { %10936 = vmatprep.mubr.msk.bf16.mxu1 %vm12391_vm1, %v17305_v47  ;;  %12230 = vrcp.f32 %v15799_v52 }
 0x7d9   :  { %v15958_v13 = vpop.f32.mrf.mxu0  ;;  %12232 = vrcp.f32 %v15794_v38 }
 0x7da   :  { %17838 = vst [vmem:[#allocation68_spill] sm:$0xff] %v15958_v13  ;;  %v17849_v13 = vld [vmem:[#allocation131_spill] sm:$0xff] }
 0x7db   :  { %v10884_v18 = vpop.f32.mrf.mxu0 }
 0x7dc   :  { %v15960_v34 = vpop.f32.mrf.mxu1 }
 0x7dd   :  { %17839 = vst [vmem:[#allocation108_spill] sm:$0xff] %v15960_v34  ;;  %v15962_v63 = vpop.f32.mrf.mxu0  ;;  %v17846_v34 = vld [vmem:[#allocation165_spill] sm:$0xff] }
 0x7de   :  { %17840 = vst [vmem:[#allocation30_spill] sm:$0xff] %v15962_v63  ;;  %v10890_v22 = vpop.f32.mrf.mxu1 }
 0x7df   :  { %v10885_v8 = vpop.f32.mrf.mxu0 }
 0x7e0   :  { %v15966_v48 = vpop.f32.mrf.mxu1  ;;  %v15972_v21 = vpop.eup %12220 }
 0x7e1   :  { %17841 = vst [vmem:[#allocation110_spill] sm:$0xff] %v15966_v48  ;;  %v15976_v49 = vpop.eup %12222  ;;  %v5427_v10 = vsel %vm4367_vm3, %v15972_v21, 0.0 }
 0x7e2   :  { %v10891_v16 = vpop.f32.mrf.mxu1  ;;  %v15980_v42 = vpop.eup %12224  ;;  %v5430_v61 = vsel %vm4367_vm3, %v15976_v49, 0.0 }
 0x7e3   :  { %v5433_v40 = vsel %vm4367_vm3, %v15980_v42, 0.0  ;;  %v12227_v18 = vpop.eup %12226 }
 0x7e4   :  { %v12229_v8 = vpop.eup %12228  ;;  %v5725_v45 = vmul.f32 %v12227_v18, %v15613_v27 }
 0x7e5   :  { %v12231_v16 = vpop.eup %12230 }
 0x7e6   :  { %v12233_v38 = vpop.eup %12232  ;;  %v5727_v43 = vmul.f32 %v12231_v16, %v15628_v60  ;;  %v17850_v60 = vld [vmem:[#allocation7_spill] sm:$0xff]  ;;  %v17851_v16 = vld [vmem:[#allocation134_spill] sm:$0xff] }
 0x7e7   :  { %v5726_v27 = vmul.f32 %v12233_v38, %v15620_v2 }
 0x7ea   :  { %5425 = vadd.xlane.f32.xlu1 %v5424_v25  ;;  %v5724_v25 = vmul.f32 %v12229_v8, %v15608_v59  ;;  %v17848_v8 = vld [vmem:[#allocation66_spill] sm:$0xff] }
 0x7eb   :  { %v4854_v63 = vsub.f32 %v17849_v13, %v17848_v8 }
 0x7ec   :  { %v5814_v3 = vpack.c.bf16 %v5725_v45, %v5724_v25  ;;  %v4855_v45 = vsub.f32 %v17851_v16, %v17850_v60 }
 0x7ed   :  { %5428 = vadd.xlane.f32.xlu0 %v5427_v10 }
 0x7ee   :  { %5431 = vadd.xlane.f32.xlu1 %v5430_v61  ;;  %v17844_v61 = vld [vmem:[#allocation13_spill] sm:$0xff] }
 0x7f1   :  { %5434 = vadd.xlane.f32.xlu0 %v5433_v40  ;;  %v17845_v40 = vld [vmem:[#allocation130_spill] sm:$0xff] }
 0x7ff   :  { %7814 = vrot.lane.b32.xlu1 %v17842_v9, %s12392_s6  ;;  %v4852_v9 = vsub.f32 %v17845_v40, %v17844_v61  ;;  %v5815_v61 = vpack.c.bf16 %v5727_v43, %v5726_v27 }
 0x801   :  { %v15992_v24 = vpop.xlane.xlu1 %5401  ;;  %v5080_v59 = vmul.f32 1.442695, %v4852_v9 }
 0x803   :  { %12234 = vpow2.f32 %v5080_v59 }
 0x804   :  { %v15994_v39 = vpop.xlane.xlu0 %5404 }
 0x805   :  { %v15996_v22 = vpop.xlane.xlu1 %5407 }
 0x807   :  { %7861 = vrot.lane.b32.xlu0 %v17843_v44, %s12392_s6  ;;  %v17847_v44 = vld [vmem:[#allocation133_spill] sm:$0xff] }
 0x808   :  { %v16001_v52 = vpop.xlane.xlu0 %5410  ;;  %v4853_v48 = vsub.f32 %v17847_v44, %v17846_v34  ;;  %v5084_v34 = vmul.f32 1.442695, %v4854_v63 }
 0x809   :  { %v7627_v10 = vpop.permute.xlu1 %7626 }
 0x80a   :  { %10929 = vmatpush3.bf16.msra.mxu0 %v7627_v10  ;;  %v5082_v2 = vmul.f32 1.442695, %v4853_v48 }
 0x80b   :  { %10940 = vmatprep.subr.bf16.mxu0 %v17305_v47 }
 0x80c   :  { %v7674_v18 = vpop.permute.xlu0 %7673  ;;  %12236 = vpow2.f32 %v5082_v2 }
 0x80d   :  { %10931 = vmatmul.mubr.msk.bf16.vlgmr.msra.gmra.mxu0 %vm4367_vm3, %v5814_v3  ;;  %10935 = vmatpush3.bf16.msra.mxu1 %v7674_v18  ;;  %v5086_v3 = vmul.f32 1.442695, %v4855_v45  ;;  %12238 = vpow2.f32 %v5084_v34  ;;  %v17852_v45 = vld [vmem:[#allocation73_spill] sm:$0xff] }
 0x80e   :  { %10942 = vmatprep.mubr.msk.bf16.mxu0 %vm12391_vm1, %v17305_v47  ;;  %10946 = vmatprep.subr.bf16.mxu1 %v17305_v47 }
 0x80f   :  { %12240 = vpow2.f32 %v5086_v3 }
 0x810   :  { %10937 = vmatmul.mubr.msk.bf16.vlgmr.msra.gmra.mxu1 %vm4367_vm3, %v5815_v61  ;;  %v16028_v48 = vpop.eup %12234  ;;  %12242 = vrcp.f32 %v15866_v53 }
 0x811   :  { %10948 = vmatprep.mubr.msk.bf16.mxu1 %vm12391_vm1, %v17305_v47  ;;  %v5436_v44 = vsel %vm4367_vm3, %v16028_v48, 0.0  ;;  %12244 = vrcp.f32 %v15864_v58  ;;  %v17853_v58 = vld [vmem:[#allocation74_spill] sm:$0xff] }
 0x812   :  { %12246 = vrcp.f32 %v15873_v14 }
 0x813   :  { %12248 = vrcp.f32 %v15868_v62 }
 0x819   :  { %v16034_v63 = vpop.eup %12236 }
 0x81a   :  { %v16022_v13 = vpop.f32.mrf.mxu0  ;;  %v16040_v59 = vpop.eup %12238  ;;  %v5439_v61 = vsel %vm4367_vm3, %v16034_v63, 0.0 }
 0x81b   :  { %v5442_v60 = vsel %vm4367_vm3, %v16040_v59, 0.0 }
 0x81c   :  { %v10896_v43 = vpop.f32.mrf.mxu0  ;;  %v16044_v2 = vpop.eup %12240 }
 0x81d   :  { %v16024_v38 = vpop.f32.mrf.mxu1  ;;  %v5445_v16 = vsel %vm4367_vm3, %v16044_v2, 0.0  ;;  %v12243_v3 = vpop.eup %12242 }
 0x81e   :  { %v16026_v25 = vpop.f32.mrf.mxu0  ;;  %v5729_v53 = vmul.f32 %v12243_v3, %v15693_v33 }
 0x81f   :  { %v10902_v40 = vpop.f32.mrf.mxu1 }
 0x820   :  { %v10897_v9 = vpop.f32.mrf.mxu0 }
 0x821   :  { %v16032_v27 = vpop.f32.mrf.mxu1  ;;  %v12245_v9 = vpop.eup %12244 }
 0x823   :  { %5437 = vadd.xlane.f32.xlu1 %v5436_v44  ;;  %v10903_v8 = vpop.f32.mrf.mxu1  ;;  %v12247_v44 = vpop.eup %12246 }
 0x824   :  { %v12249_v62 = vpop.eup %12248  ;;  %v5728_v8 = vmul.f32 %v12245_v9, %v15688_v57  ;;  %v17856_v9 = vld [vmem:[#allocation137_spill] sm:$0xff] }
 0x825   :  { %v5730_v33 = vmul.f32 %v12249_v62, %v15700_v37  ;;  %v4858_v6 = vsub.f32 %v17856_v9, %v15470_v17 }
 0x826   :  { %5440 = vadd.xlane.f32.xlu0 %v5439_v61  ;;  %v5816_v10 = vpack.c.bf16 %v5729_v53, %v5728_v8 }
 0x827   :  { %5443 = vadd.xlane.f32.xlu1 %v5442_v60  ;;  %v17854_v60 = vld [vmem:[#allocation136_spill] sm:$0xff] }
 0x82a   :  { %5446 = vadd.xlane.f32.xlu0 %v5445_v16  ;;  %v4856_v16 = vsub.f32 %v17854_v60, %v15456_v1 }
 0x82c   :  { %v5088_v57 = vmul.f32 1.442695, %v4856_v16 }
 0x82e   :  { %12250 = vpow2.f32 %v5088_v57 }
 0x838   :  { %7908 = vrot.lane.b32.xlu1 %v17852_v45, %s12392_s6  ;;  %v5731_v45 = vmul.f32 %v12247_v44, %v15708_v23  ;;  %v17857_v23 = vld [vmem:[#allocation166_spill] sm:$0xff]  ;;  %v17858_v44 = vld [vmem:[#allocation140_spill] sm:$0xff] }
 0x839   :  { %v4859_v53 = vsub.f32 %v17858_v44, %v17857_v23 }
 0x83a   :  { %v16056_v34 = vpop.xlane.xlu1 %5413  ;;  %v5817_v1 = vpack.c.bf16 %v5731_v45, %v5730_v33 }
 0x83b   :  { %v16086_v17 = vpop.eup %12250 }
 0x83d   :  { %v16058_v43 = vpop.xlane.xlu0 %5416 }
 0x83e   :  { %v16060_v40 = vpop.xlane.xlu1 %5419 }
 0x840   :  { %7955 = vrot.lane.b32.xlu0 %v17853_v58, %s12392_s6  ;;  %v17855_v58 = vld [vmem:[#allocation139_spill] sm:$0xff] }
 0x841   :  { %v16065_v14 = vpop.xlane.xlu0 %5422  ;;  %v4857_v18 = vsub.f32 %v17855_v58, %v15464_v41  ;;  %v5092_v41 = vmul.f32 1.442695, %v4858_v6 }
 0x842   :  { %v7721_v61 = vpop.permute.xlu1 %7720 }
 0x843   :  { %10941 = vmatpush3.bf16.msra.mxu0 %v7721_v61  ;;  %v5090_v37 = vmul.f32 1.442695, %v4857_v18  ;;  %v5448_v18 = vsel %vm4367_vm3, %v16086_v17, 0.0 }
 0x844   :  { %10952 = vmatprep.subr.bf16.mxu0 %v17305_v47 }
 0x845   :  { %v7768_v3 = vpop.permute.xlu0 %7767  ;;  %12252 = vpow2.f32 %v5090_v37 }
 0x846   :  { %10943 = vmatmul.mubr.msk.bf16.vlgmr.msra.gmra.mxu0 %vm4367_vm3, %v5816_v10  ;;  %10947 = vmatpush3.bf16.msra.mxu1 %v7768_v3  ;;  %v5094_v10 = vmul.f32 1.442695, %v4859_v53  ;;  %12254 = vpow2.f32 %v5092_v41  ;;  %v17861_v53 = vld [vmem:[#allocation83_spill] sm:$0xff] }
 0x847   :  { %10954 = vmatprep.mubr.msk.bf16.mxu0 %vm12391_vm1, %v17305_v47  ;;  %10958 = vmatprep.subr.bf16.mxu1 %v17305_v47 }
 0x848   :  { %12256 = vpow2.f32 %v5094_v10 }
 0x849   :  { %10949 = vmatmul.mubr.msk.bf16.vlgmr.msra.gmra.mxu1 %vm4367_vm3, %v5817_v1  ;;  %12258 = vrcp.f32 %v15930_v12 }
 0x84a   :  { %10960 = vmatprep.mubr.msk.bf16.mxu1 %vm12391_vm1, %v17305_v47  ;;  %12260 = vrcp.f32 %v15928_v55  ;;  %v17862_v55 = vld [vmem:[#allocation84_spill] sm:$0xff] }
 0x84b   :  { %12262 = vrcp.f32 %v15937_v5 }
 0x84c   :  { %12264 = vrcp.f32 %v15932_v54 }
 0x852   :  { %v16088_v62 = vpop.eup %12252 }
 0x853   :  { %v16094_v61 = vpop.eup %12254  ;;  %v5451_v6 = vsel %vm4367_vm3, %v16088_v62, 0.0 }
 0x854   :  { %v5454_v3 = vsel %vm4367_vm3, %v16094_v61, 0.0 }
 0x855   :  { %v16100_v45 = vpop.eup %12256 }
 0x856   :  { %v5457_v37 = vsel %vm4367_vm3, %v16100_v45, 0.0  ;;  %v12259_v10 = vpop.eup %12258 }
 0x857   :  { %v5733_v12 = vmul.f32 %v12259_v10, %v15764_v50 }
 0x85b   :  { %v16090_v8 = vpop.f32.mrf.mxu0 }
 0x85c   :  { %5449 = vadd.xlane.f32.xlu1 %v5448_v18 }
 0x85d   :  { %v10908_v60 = vpop.f32.mrf.mxu0 }
 0x85e   :  { %v16096_v16 = vpop.f32.mrf.mxu1 }
 0x85f   :  { %17859 = vst [vmem:[#allocation16_spill] sm:$0xff] %v16096_v16  ;;  %v16102_v33 = vpop.f32.mrf.mxu0  ;;  %5452 = vadd.xlane.f32.xlu0 %v5451_v6  ;;  %v12261_v6 = vpop.eup %12260  ;;  %v17866_v16 = vld [vmem:[#allocation142_spill] sm:$0xff] }
 0x860   :  { %5455 = vadd.xlane.f32.xlu1 %v5454_v3  ;;  %v10914_v57 = vpop.f32.mrf.mxu1  ;;  %v12263_v3 = vpop.eup %12262 }
 0x861   :  { %v10909_v9 = vpop.f32.mrf.mxu0  ;;  %v12265_v54 = vpop.eup %12264  ;;  %v5732_v57 = vmul.f32 %v12261_v6, %v15762_v31  ;;  %v17865_v6 = vld [vmem:[#allocation43_spill] sm:$0xff] }
 0x862   :  { %v16108_v1 = vpop.f32.mrf.mxu1  ;;  %v5734_v50 = vmul.f32 %v12265_v54, %v15768_v35 }
 0x863   :  { %17860 = vst [vmem:[#allocation109_spill] sm:$0xff] %v16108_v1  ;;  %5458 = vadd.xlane.f32.xlu0 %v5457_v37  ;;  %v17863_v37 = vld [vmem:[#allocation141_spill] sm:$0xff]  ;;  %v5818_v23 = vpack.c.bf16 %v5733_v12, %v5732_v57  ;;  %v4862_v1 = vsub.f32 %v17866_v16, %v17865_v6 }
 0x864   :  { %v10915_v44 = vpop.f32.mrf.mxu1 }
 0x865   :  { %v4860_v44 = vsub.f32 %v17863_v37, %v15536_v32 }
 0x867   :  { %v5096_v31 = vmul.f32 1.442695, %v4860_v44 }
 0x869   :  { %12266 = vpow2.f32 %v5096_v31 }
 0x871   :  { %8002 = vrot.lane.b32.xlu1 %v17861_v53, %s12392_s6  ;;  %v5735_v53 = vmul.f32 %v12263_v3, %v15772_v30  ;;  %v17867_v30 = vld [vmem:[#allocation169_spill] sm:$0xff]  ;;  %v17868_v3 = vld [vmem:[#allocation144_spill] sm:$0xff] }
 0x872   :  { %v4863_v12 = vsub.f32 %v17868_v3, %v17867_v30 }
 0x873   :  { %v16120_v41 = vpop.xlane.xlu1 %5425  ;;  %v5819_v32 = vpack.c.bf16 %v5735_v53, %v5734_v50 }
 0x876   :  { %v16122_v18 = vpop.xlane.xlu0 %5428  ;;  %v16150_v16 = vpop.eup %12266 }
 0x877   :  { %v16124_v60 = vpop.xlane.xlu1 %5431 }
 0x879   :  { %8049 = vrot.lane.b32.xlu0 %v17862_v55, %s12392_s6  ;;  %v17864_v55 = vld [vmem:[#allocation143_spill] sm:$0xff] }
 0x87a   :  { %v16129_v5 = vpop.xlane.xlu0 %5434  ;;  %v4861_v58 = vsub.f32 %v17864_v55, %v15544_v56  ;;  %v5100_v56 = vmul.f32 1.442695, %v4862_v1 }
 0x87b   :  { %v7815_v9 = vpop.permute.xlu1 %7814 }
 0x87c   :  { %10953 = vmatpush3.bf16.msra.mxu0 %v7815_v9  ;;  %v5098_v35 = vmul.f32 1.442695, %v4861_v58  ;;  %v5460_v58 = vsel %vm4367_vm3, %v16150_v16, 0.0 }
 0x87d   :  { %10964 = vmatprep.subr.bf16.mxu0 %v17305_v47 }
 0x87e   :  { %v7862_v10 = vpop.permute.xlu0 %7861  ;;  %12268 = vpow2.f32 %v5098_v35 }
 0x87f   :  { %10955 = vmatmul.mubr.msk.bf16.vlgmr.msra.gmra.mxu0 %vm4367_vm3, %v5818_v23  ;;  %10959 = vmatpush3.bf16.msra.mxu1 %v7862_v10  ;;  %v5102_v23 = vmul.f32 1.442695, %v4863_v12  ;;  %12270 = vpow2.f32 %v5100_v56  ;;  %v17869_v12 = vld [vmem:[#allocation48_spill] sm:$0xff] }
 0x880   :  { %10966 = vmatprep.mubr.msk.bf16.mxu0 %vm12391_vm1, %v17305_v47  ;;  %10970 = vmatprep.subr.bf16.mxu1 %v17305_v47 }
 0x881   :  { %12272 = vpow2.f32 %v5102_v23 }
 0x882   :  { %10961 = vmatmul.mubr.msk.bf16.vlgmr.msra.gmra.mxu1 %vm4367_vm3, %v5819_v32  ;;  %12274 = vrcp.f32 %v15994_v39 }
 0x883   :  { %10972 = vmatprep.mubr.msk.bf16.mxu1 %vm12391_vm1, %v17305_v47  ;;  %12276 = vrcp.f32 %v15992_v24  ;;  %v17870_v24 = vld [vmem:[#allocation49_spill] sm:$0xff] }
 0x884   :  { %12278 = vrcp.f32 %v16001_v52 }
 0x885   :  { %12280 = vrcp.f32 %v15996_v22 }
 0x88b   :  { %v16152_v54 = vpop.eup %12268 }
 0x88c   :  { %v16158_v9 = vpop.eup %12270  ;;  %v5463_v1 = vsel %vm4367_vm3, %v16152_v54, 0.0 }
 0x88d   :  { %v5466_v10 = vsel %vm4367_vm3, %v16158_v9, 0.0 }
 0x88e   :  { %v16164_v53 = vpop.eup %12272 }
 0x88f   :  { %v5469_v35 = vsel %vm4367_vm3, %v16164_v53, 0.0  ;;  %v12275_v23 = vpop.eup %12274 }
 0x894   :  { %v16154_v57 = vpop.f32.mrf.mxu0 }
 0x895   :  { %5461 = vadd.xlane.f32.xlu1 %v5460_v58 }
 0x896   :  { %v10920_v37 = vpop.f32.mrf.mxu0 }
 0x897   :  { %v16160_v44 = vpop.f32.mrf.mxu1 }
 0x898   :  { %v16166_v50 = vpop.f32.mrf.mxu0  ;;  %5464 = vadd.xlane.f32.xlu0 %v5463_v1  ;;  %v12277_v1 = vpop.eup %12276 }
 0x899   :  { %5467 = vadd.xlane.f32.xlu1 %v5466_v10  ;;  %v10926_v31 = vpop.f32.mrf.mxu1  ;;  %v12279_v10 = vpop.eup %12278  ;;  %v5736_v22 = vmul.f32 %v12277_v1, %v15834_v26  ;;  %v17875_v1 = vld [vmem:[#allocation54_spill] sm:$0xff] }
 0x89a   :  { %v10921_v6 = vpop.f32.mrf.mxu0  ;;  %v5737_v31 = vmul.f32 %v12275_v23, %v15836_v11  ;;  %v12281_v52 = vpop.eup %12280 }
 0x89b   :  { %v16172_v32 = vpop.f32.mrf.mxu1  ;;  %v5738_v11 = vmul.f32 %v12281_v52, %v15840_v51 }
 0x89c   :  { %5470 = vadd.xlane.f32.xlu0 %v5469_v35  ;;  %v17871_v35 = vld [vmem:[#allocation170_spill] sm:$0xff] }
 0x89d   :  { %v10927_v3 = vpop.f32.mrf.mxu1 }
 0x89e   :  { %v17872_v3 = vld [vmem:[#allocation145_spill] sm:$0xff] }
 0x8aa   :  { %8096 = vrot.lane.b32.xlu1 %v17869_v12, %s12392_s6  ;;  %v4864_v12 = vsub.f32 %v17872_v3, %v17871_v35 }
 0x8ac   :  { %v5438_v56 = vpop.xlane.xlu1 %5437  ;;  %v5104_v26 = vmul.f32 1.442695, %v4864_v12 }
 0x8ad   :  { %12282 = vrcp.f32 %v5438_v56  ;;  %v5739_v56 = vmul.f32 %v12279_v10, %v15844_v0  ;;  %v17877_v10 = vld [vmem:[#allocation55_spill] sm:$0xff] }
 0x8af   :  { %v5441_v58 = vpop.xlane.xlu0 %5440  ;;  %v5821_v35 = vpack.c.bf16 %v5739_v56, %v5738_v11 }
 0x8b0   :  { %v5444_v37 = vpop.xlane.xlu1 %5443  ;;  %12284 = vrcp.f32 %v5441_v58  ;;  %v5820_v58 = vpack.c.bf16 %v5737_v31, %v5736_v22  ;;  %v17878_v31 = vld [vmem:[#allocation148_spill] sm:$0xff] }
 0x8b1   :  { %12286 = vrcp.f32 %v5444_v37  ;;  %v17873_v37 = vld [vmem:[#allocation92_spill] sm:$0xff]  ;;  %v4867_v52 = vsub.f32 %v17878_v31, %v17877_v10 }
 0x8b2   :  { %8143 = vrot.lane.b32.xlu0 %v17870_v24, %s12392_s6  ;;  %v17874_v24 = vld [vmem:[#allocation146_spill] sm:$0xff] }
 0x8b3   :  { %v5447_v39 = vpop.xlane.xlu0 %5446  ;;  %v4865_v30 = vsub.f32 %v17874_v24, %v17873_v37 }
 0x8b4   :  { %v7909_v6 = vpop.permute.xlu1 %7908  ;;  %12288 = vrcp.f32 %v5447_v39  ;;  %v17876_v39 = vld [vmem:[#allocation9_spill] sm:$0xff] }
 0x8b5   :  { %10965 = vmatpush3.bf16.msra.mxu0 %v7909_v6  ;;  %v4866_v55 = vsub.f32 %v17876_v39, %v17875_v1  ;;  %v5106_v51 = vmul.f32 1.442695, %v4865_v30  ;;  %12290 = vpow2.f32 %v5104_v26 }
 0x8b6   :  { %10976 = vmatprep.subr.bf16.mxu0 %v17305_v47 }
 0x8b7   :  { %v7956_v23 = vpop.permute.xlu0 %7955  ;;  %v5108_v6 = vmul.f32 1.442695, %v4866_v55  ;;  %12292 = vpow2.f32 %v5106_v51 }
 0x8b8   :  { %10967 = vmatmul.mubr.msk.bf16.vlgmr.msra.gmra.mxu0 %vm4367_vm3, %v5820_v58  ;;  %10971 = vmatpush3.bf16.msra.mxu1 %v7956_v23  ;;  %v5110_v58 = vmul.f32 1.442695, %v4867_v52 }
 0x8b9   :  { %10978 = vmatprep.mubr.msk.bf16.mxu0 %vm12391_vm1, %v17305_v47  ;;  %10982 = vmatprep.subr.bf16.mxu1 %v17305_v47  ;;  %12294 = vpow2.f32 %v5108_v6 }
 0x8ba   :  { %v12283_v0 = vpop.eup %12282  ;;  %12296 = vpow2.f32 %v5110_v58 }
 0x8bb   :  { %10973 = vmatmul.mubr.msk.bf16.vlgmr.msra.gmra.mxu1 %vm4367_vm3, %v5821_v35  ;;  %v16207_v3 = vmul.f32 %v12283_v0, %v16028_v48  ;;  %12298 = vrcp.f32 %v16058_v43 }
 0x8bc   :  { %10984 = vmatprep.mubr.msk.bf16.mxu1 %vm12391_vm1, %v17305_v47  ;;  %12300 = vrcp.f32 %v16056_v34  ;;  %v17880_v34 = vld [vmem:[#allocation62_spill] sm:$0xff] }
 0x8bd   :  { %v12285_v22 = vpop.eup %12284  ;;  %12302 = vrcp.f32 %v16065_v14 }
 0x8be   :  { %v16210_v12 = vmul.f32 %v12285_v22, %v16034_v63  ;;  %v12287_v56 = vpop.eup %12286  ;;  %12304 = vrcp.f32 %v16060_v40 }
 0x8bf   :  { %v16215_v23 = vmul.f32 %v12287_v56, %v16040_v59 }
 0x8c1   :  { %v12289_v11 = vpop.eup %12288 }
 0x8c2   :  { %v16218_v37 = vmul.f32 %v12289_v11, %v16044_v2  ;;  %v16222_v63 = vpop.eup %12290  ;;  %v17879_v11 = vld [vmem:[#allocation60_spill] sm:$0xff] }
 0x8c3   :  { %v5472_v26 = vsel %vm4367_vm3, %v16222_v63, 0.0 }
 0x8c4   :  { %v16224_v55 = vpop.eup %12292 }
 0x8c5   :  { %v5475_v2 = vsel %vm4367_vm3, %v16224_v55, 0.0 }
 0x8c6   :  { %v16230_v1 = vpop.eup %12294 }
 0x8c7   :  { %v16236_v35 = vpop.eup %12296  ;;  %v5478_v51 = vsel %vm4367_vm3, %v16230_v1, 0.0 }
 0x8c8   :  { %v5481_v6 = vsel %vm4367_vm3, %v16236_v35, 0.0 }
 0x8cd   :  { %v16226_v24 = vpop.f32.mrf.mxu0 }
 0x8ce   :  { %5473 = vadd.xlane.f32.xlu1 %v5472_v26 }
 0x8cf   :  { %v10932_v59 = vpop.f32.mrf.mxu0 }
 0x8d0   :  { %v16232_v39 = vpop.f32.mrf.mxu1  ;;  %v12299_v59 = vpop.eup %12298 }
 0x8d1   :  { %v16238_v0 = vpop.f32.mrf.mxu0  ;;  %5476 = vadd.xlane.f32.xlu0 %v5475_v2 }
 0x8d2   :  { %5479 = vadd.xlane.f32.xlu1 %v5478_v51  ;;  %v10938_v31 = vpop.f32.mrf.mxu1 }
 0x8d3   :  { %v10933_v52 = vpop.f32.mrf.mxu0  ;;  %v12301_v31 = vpop.eup %12300 }
 0x8d4   :  { %v16244_v22 = vpop.f32.mrf.mxu1  ;;  %v12303_v52 = vpop.eup %12302  ;;  %v5740_v40 = vmul.f32 %v12301_v31, %v15906_v15  ;;  %v17885_v31 = vld [vmem:[#allocation69_spill] sm:$0xff] }
 0x8d5   :  { %5482 = vadd.xlane.f32.xlu0 %v5481_v6  ;;  %v5741_v6 = vmul.f32 %v12299_v59, %v15908_v36  ;;  %v12305_v14 = vpop.eup %12304  ;;  %v5743_v10 = vmul.f32 %v12303_v52, %v15916_v7  ;;  %v17887_v52 = vld [vmem:[#allocation70_spill] sm:$0xff] }
 0x8d6   :  { %v10939_v58 = vpop.f32.mrf.mxu1  ;;  %v5742_v36 = vmul.f32 %v12305_v14, %v15912_v28 }
 0x8e3   :  { %8190 = vrot.lane.b32.xlu1 %v17879_v11, %s12392_s6  ;;  %v17881_v11 = vld [vmem:[#allocation12_spill] sm:$0xff] }
 0x8e5   :  { %v5450_v26 = vpop.xlane.xlu1 %5449 }
 0x8e6   :  { %12306 = vrcp.f32 %v5450_v26  ;;  %v17882_v26 = vld [vmem:[#allocation149_spill] sm:$0xff] }
 0x8e7   :  { %v4868_v56 = vsub.f32 %v17882_v26, %v17881_v11  ;;  %v5823_v11 = vpack.c.bf16 %v5743_v10, %v5742_v36 }
 0x8e8   :  { %v5453_v2 = vpop.xlane.xlu0 %5452 }
 0x8e9   :  { %v5456_v51 = vpop.xlane.xlu1 %5455  ;;  %12308 = vrcp.f32 %v5453_v2  ;;  %v5822_v2 = vpack.c.bf16 %v5741_v6, %v5740_v40  ;;  %v5112_v15 = vmul.f32 1.442695, %v4868_v56  ;;  %v17888_v6 = vld [vmem:[#allocation10_spill] sm:$0xff] }
 0x8ea   :  { %12310 = vrcp.f32 %v5456_v51  ;;  %v17883_v51 = vld [vmem:[#allocation97_spill] sm:$0xff]  ;;  %v4871_v14 = vsub.f32 %v17888_v6, %v17887_v52 }
 0x8eb   :  { %8237 = vrot.lane.b32.xlu0 %v17880_v34, %s12392_s6  ;;  %v17884_v34 = vld [vmem:[#allocation152_spill] sm:$0xff] }
 0x8ec   :  { %v5459_v43 = vpop.xlane.xlu0 %5458  ;;  %v4869_v48 = vsub.f32 %v17884_v34, %v17883_v51 }
 0x8ed   :  { %v8003_v58 = vpop.permute.xlu1 %8002  ;;  %12312 = vrcp.f32 %v5459_v43  ;;  %v17886_v43 = vld [vmem:[#allocation151_spill] sm:$0xff] }
 0x8ee   :  { %10977 = vmatpush3.bf16.msra.mxu0 %v8003_v58  ;;  %v4870_v30 = vsub.f32 %v17886_v43, %v17885_v31  ;;  %v5114_v28 = vmul.f32 1.442695, %v4869_v48  ;;  %12314 = vpow2.f32 %v5112_v15 }
 0x8ef   :  { %10988 = vmatprep.subr.bf16.mxu0 %v17305_v47 }
 0x8f0   :  { %v8050_v59 = vpop.permute.xlu0 %8049  ;;  %v5116_v40 = vmul.f32 1.442695, %v4870_v30  ;;  %12316 = vpow2.f32 %v5114_v28 }
 0x8f1   :  { %10979 = vmatmul.mubr.msk.bf16.vlgmr.msra.gmra.mxu0 %vm4367_vm3, %v5822_v2  ;;  %10983 = vmatpush3.bf16.msra.mxu1 %v8050_v59  ;;  %v5118_v2 = vmul.f32 1.442695, %v4871_v14 }
 0x8f2   :  { %10990 = vmatprep.mubr.msk.bf16.mxu0 %vm12391_vm1, %v17305_v47  ;;  %10994 = vmatprep.subr.bf16.mxu1 %v17305_v47  ;;  %12318 = vpow2.f32 %v5116_v40 }
 0x8f3   :  { %v12307_v7 = vpop.eup %12306  ;;  %12320 = vpow2.f32 %v5118_v2 }
 0x8f4   :  { %10985 = vmatmul.mubr.msk.bf16.vlgmr.msra.gmra.mxu1 %vm4367_vm3, %v5823_v11  ;;  %v16279_v10 = vmul.f32 %v12307_v7, %v16086_v17  ;;  %12322 = vrcp.f32 %v16122_v18 }
 0x8f5   :  { %10996 = vmatprep.mubr.msk.bf16.mxu1 %vm12391_vm1, %v17305_v47  ;;  %12324 = vrcp.f32 %v16120_v41  ;;  %v17890_v41 = vld [vmem:[#allocation76_spill] sm:$0xff] }
 0x8f6   :  { %v12309_v56 = vpop.eup %12308  ;;  %12326 = vrcp.f32 %v16129_v5 }
 0x8f7   :  { %v16282_v58 = vmul.f32 %v12309_v56, %v16088_v62  ;;  %v12311_v26 = vpop.eup %12310  ;;  %12328 = vrcp.f32 %v16124_v60 }
 0x8f8   :  { %v16287_v59 = vmul.f32 %v12311_v26, %v16094_v61 }
 0x8f9   :  { %v5828_v48 = vpack.c.bf16 %v16282_v58, %v16279_v10 }
 0x8fa   :  { %v12313_v36 = vpop.eup %12312 }
 0x8fb   :  { %v16290_v51 = vmul.f32 %v12313_v36, %v16100_v45  ;;  %v16294_v62 = vpop.eup %12314  ;;  %v17889_v36 = vld [vmem:[#allocation75_spill] sm:$0xff] }
 0x8fc   :  { %v5484_v15 = vsel %vm4367_vm3, %v16294_v62, 0.0 }
 0x8fd   :  { %v5829_v17 = vpack.c.bf16 %v16290_v51, %v16287_v59  ;;  %v16296_v30 = vpop.eup %12316  ;;  %v17918_v59 = vld [vmem:[#allocation89_spill] sm:$0xff]  ;;  %v17919_v51 = vld [vmem:[#allocation6_spill] sm:$0xff] }
 0x8fe   :  { %v5487_v45 = vsel %vm4367_vm3, %v16296_v30, 0.0 }
 0x8ff   :  { %v16302_v31 = vpop.eup %12318 }
 0x900   :  { %v16308_v11 = vpop.eup %12320  ;;  %v5490_v28 = vsel %vm4367_vm3, %v16302_v31, 0.0 }
 0x901   :  { %v5493_v40 = vsel %vm4367_vm3, %v16308_v11, 0.0 }
 0x906   :  { %v16298_v34 = vpop.f32.mrf.mxu0 }
 0x907   :  { %5485 = vadd.xlane.f32.xlu1 %v5484_v15 }
 0x908   :  { %v10944_v61 = vpop.f32.mrf.mxu0 }
 0x909   :  { %v16304_v43 = vpop.f32.mrf.mxu1  ;;  %v12323_v61 = vpop.eup %12322 }
 0x90a   :  { %v16310_v7 = vpop.f32.mrf.mxu0  ;;  %5488 = vadd.xlane.f32.xlu0 %v5487_v45 }
 0x90b   :  { %5491 = vadd.xlane.f32.xlu1 %v5490_v28  ;;  %v10950_v6 = vpop.f32.mrf.mxu1 }
 0x90c   :  { %v10945_v14 = vpop.f32.mrf.mxu0  ;;  %v12325_v6 = vpop.eup %12324 }
 0x90d   :  { %v16316_v56 = vpop.f32.mrf.mxu1  ;;  %v12327_v14 = vpop.eup %12326  ;;  %v5744_v60 = vmul.f32 %v12325_v6, %v15970_v46  ;;  %v17893_v6 = vld [vmem:[#allocation102_spill] sm:$0xff] }
 0x90e   :  { %5494 = vadd.xlane.f32.xlu0 %v5493_v40  ;;  %v5745_v40 = vmul.f32 %v12323_v61, %v15972_v21  ;;  %v12329_v5 = vpop.eup %12328  ;;  %v5747_v26 = vmul.f32 %v12327_v14, %v15980_v42  ;;  %v17895_v14 = vld [vmem:[#allocation79_spill] sm:$0xff] }
 0x90f   :  { %v10951_v2 = vpop.f32.mrf.mxu1  ;;  %v5746_v21 = vmul.f32 %v12329_v5, %v15976_v49 }
 0x91c   :  { %8284 = vrot.lane.b32.xlu1 %v17889_v36, %s12392_s6  ;;  %v17891_v36 = vld [vmem:[#allocation155_spill] sm:$0xff] }
 0x91e   :  { %v5462_v15 = vpop.xlane.xlu1 %5461 }
 0x91f   :  { %12330 = vrcp.f32 %v5462_v15  ;;  %v4872_v15 = vsub.f32 %v17891_v36, %v15780_v29  ;;  %v5825_v29 = vpack.c.bf16 %v5747_v26, %v5746_v21 }
 0x921   :  { %v5465_v45 = vpop.xlane.xlu0 %5464  ;;  %v5120_v46 = vmul.f32 1.442695, %v4872_v15 }
 0x922   :  { %v5468_v28 = vpop.xlane.xlu1 %5467  ;;  %12332 = vrcp.f32 %v5465_v45  ;;  %v5824_v45 = vpack.c.bf16 %v5745_v40, %v5744_v60  ;;  %v17896_v40 = vld [vmem:[#allocation159_spill] sm:$0xff] }
 0x923   :  { %12334 = vrcp.f32 %v5468_v28  ;;  %v17892_v28 = vld [vmem:[#allocation157_spill] sm:$0xff] }
 0x924   :  { %8331 = vrot.lane.b32.xlu0 %v17890_v41, %s12392_s6  ;;  %v4873_v41 = vsub.f32 %v17892_v28, %v15784_v20  ;;  %v4875_v20 = vsub.f32 %v17896_v40, %v17895_v14  ;;  %v17899_v14 = vld [vmem:[#allocation160_spill] sm:$0xff] }
 0x925   :  { %v5471_v18 = vpop.xlane.xlu0 %5470 }
 0x926   :  { %v8097_v2 = vpop.permute.xlu1 %8096  ;;  %12336 = vrcp.f32 %v5471_v18  ;;  %v17894_v18 = vld [vmem:[#allocation156_spill] sm:$0xff]  ;;  %v5122_v49 = vmul.f32 1.442695, %v4873_v41  ;;  %v5126_v15 = vmul.f32 1.442695, %v4875_v20 }
 0x927   :  { %10989 = vmatpush3.bf16.msra.mxu0 %v8097_v2  ;;  %v4874_v52 = vsub.f32 %v17894_v18, %v17893_v6  ;;  %12338 = vpow2.f32 %v5120_v46 }
 0x928   :  { %11000 = vmatprep.subr.bf16.mxu0 %v17305_v47  ;;  %12340 = vpow2.f32 %v5122_v49 }
 0x929   :  { %v8144_v61 = vpop.permute.xlu0 %8143  ;;  %v5124_v60 = vmul.f32 1.442695, %v4874_v52 }
 0x92a   :  { %10991 = vmatmul.mubr.msk.bf16.vlgmr.msra.gmra.mxu0 %vm4367_vm3, %v5824_v45  ;;  %10995 = vmatpush3.bf16.msra.mxu1 %v8144_v61 }
 0x92b   :  { %11002 = vmatprep.mubr.msk.bf16.mxu0 %vm12391_vm1, %v17305_v47  ;;  %11006 = vmatprep.subr.bf16.mxu1 %v17305_v47  ;;  %12342 = vpow2.f32 %v5124_v60 }
 0x92c   :  { %v12331_v42 = vpop.eup %12330  ;;  %12344 = vpow2.f32 %v5126_v15 }
 0x92d   :  { %10997 = vmatmul.mubr.msk.bf16.vlgmr.msra.gmra.mxu1 %vm4367_vm3, %v5825_v29  ;;  %v16351_v26 = vmul.f32 %v12331_v42, %v16150_v16  ;;  %v17910_v16 = vld [vmem:[#allocation51_spill] sm:$0xff] }
 0x92e   :  { %11008 = vmatprep.mubr.msk.bf16.mxu1 %vm12391_vm1, %v17305_v47 }
 0x92f   :  { %v12333_v5 = vpop.eup %12332 }
 0x930   :  { %v16354_v2 = vmul.f32 %v12333_v5, %v16152_v54  ;;  %v12335_v36 = vpop.eup %12334 }
 0x931   :  { %v16359_v61 = vmul.f32 %v12335_v36, %v16158_v9  ;;  %v4876_v36 = vsub.f32 %v17899_v14, %v15852_v4  ;;  %v17904_v14 = vpack.c.bf16 %v16218_v37, %v16215_v23  ;;  %v17907_v37 = vld [vmem:[#allocation50_spill] sm:$0xff] }
 0x932   :  { %v5830_v45 = vpack.c.bf16 %v16354_v2, %v16351_v26 }
 0x933   :  { %v12337_v21 = vpop.eup %12336 }
 0x934   :  { %v16362_v28 = vmul.f32 %v12337_v21, %v16164_v53  ;;  %v16366_v54 = vpop.eup %12338  ;;  %v17897_v21 = vld [vmem:[#allocation85_spill] sm:$0xff] }
 0x935   :  { %v16368_v52 = vpop.eup %12340  ;;  %v5496_v46 = vsel %vm4367_vm3, %v16366_v54, 0.0 }
 0x936   :  { %v5499_v53 = vsel %vm4367_vm3, %v16368_v52, 0.0 }
 0x938   :  { %v16374_v6 = vpop.eup %12342 }
 0x939   :  { %v16380_v29 = vpop.eup %12344  ;;  %v5502_v49 = vsel %vm4367_vm3, %v16374_v6, 0.0 }
 0x93a   :  { %v5505_v60 = vsel %vm4367_vm3, %v16380_v29, 0.0 }
 0x93f   :  { %v16370_v41 = vpop.f32.mrf.mxu0 }
 0x940   :  { %5497 = vadd.xlane.f32.xlu1 %v5496_v46 }
 0x941   :  { %v10956_v9 = vpop.f32.mrf.mxu0 }
 0x942   :  { %v16376_v18 = vpop.f32.mrf.mxu1 }
 0x943   :  { %v16382_v42 = vpop.f32.mrf.mxu0  ;;  %5500 = vadd.xlane.f32.xlu0 %v5499_v53 }
 0x944   :  { %5503 = vadd.xlane.f32.xlu1 %v5502_v49  ;;  %v10962_v40 = vpop.f32.mrf.mxu1  ;;  %v17898_v49 = vld [vmem:[#allocation86_spill] sm:$0xff] }
 0x945   :  { %v10957_v20 = vpop.f32.mrf.mxu0 }
 0x946   :  { %v16388_v5 = vpop.f32.mrf.mxu1 }
 0x947   :  { %5506 = vadd.xlane.f32.xlu0 %v5505_v60 }
 0x948   :  { %v10963_v15 = vpop.f32.mrf.mxu1 }
 0x949   :  { %v17900_v15 = vld [vmem:[#allocation162_spill] sm:$0xff] }
 0x955   :  { %8378 = vrot.lane.b32.xlu1 %v17897_v21, %s12392_s6  ;;  %v4877_v21 = vsub.f32 %v17900_v15, %v15856_v19 }
 0x957   :  { %v5474_v46 = vpop.xlane.xlu1 %5473  ;;  %v5130_v19 = vmul.f32 1.442695, %v4877_v21 }
 0x958   :  { %12346 = vrcp.f32 %v5474_v46  ;;  %v17901_v46 = vpack.c.bf16 %v16210_v12, %v16207_v3  ;;  %v17905_v3 = vld [vmem:[#allocation105_spill] sm:$0xff]  ;;  %v17906_v12 = vld [vmem:[#allocation163_spill] sm:$0xff] }
 0x95a   :  { %v5477_v9 = vpop.xlane.xlu0 %5476 }
 0x95b   :  { %v5480_v53 = vpop.xlane.xlu1 %5479  ;;  %12348 = vrcp.f32 %v5477_v9  ;;  %v5128_v9 = vmul.f32 1.442695, %v4876_v36 }
 0x95c   :  { %12350 = vrcp.f32 %v5480_v53  ;;  %v17902_v53 = vld [vmem:[#allocation36_spill] sm:$0xff] }
 0x95d   :  { %8425 = vrot.lane.b32.xlu0 %v17898_v49, %s12392_s6  ;;  %v17903_v49 = vld [vmem:[#allocation161_spill] sm:$0xff] }
 0x95e   :  { %v5483_v40 = vpop.xlane.xlu0 %5482 }
 0x95f   :  { %v8191_v20 = vpop.permute.xlu1 %8190  ;;  %12352 = vrcp.f32 %v5483_v40  ;;  %v4878_v40 = vsub.f32 %v17903_v49, %v17902_v53 }
 0x960   :  { %11001 = vmatpush3.bf16.msra.mxu0 %v8191_v20  ;;  %v4879_v20 = vsub.f32 %v17906_v12, %v17905_v3  ;;  %12354 = vpow2.f32 %v5128_v9 }
 0x961   :  { %11012 = vmatprep.subr.bf16.mxu0 %v17305_v47  ;;  %12356 = vpow2.f32 %v5130_v19 }
 0x962   :  { %v8238_v60 = vpop.permute.xlu0 %8237  ;;  %v5134_v23 = vmul.f32 1.442695, %v4879_v20 }
 0x963   :  { %11003 = vmatmul.mubr.msk.bf16.vlgmr.msra.gmra.mxu0 %vm4367_vm3, %v17901_v46  ;;  %11007 = vmatpush3.bf16.msra.mxu1 %v8238_v60  ;;  %v5132_v60 = vmul.f32 1.442695, %v4878_v40 }
 0x964   :  { %11014 = vmatprep.mubr.msk.bf16.mxu0 %vm12391_vm1, %v17305_v47  ;;  %11018 = vmatprep.subr.bf16.mxu1 %v17305_v47 }
 0x965   :  { %v12347_v4 = vpop.eup %12346  ;;  %12358 = vpow2.f32 %v5132_v60  ;;  %v17908_v60 = vld [vmem:[#allocation63_spill] sm:$0xff] }
 0x966   :  { %11009 = vmatmul.mubr.msk.bf16.vlgmr.msra.gmra.mxu1 %vm4367_vm3, %v17904_v14  ;;  %v16421_v15 = vmul.f32 %v12347_v4, %v16222_v63  ;;  %12360 = vpow2.f32 %v5134_v23 }
 0x967   :  { %11020 = vmatprep.mubr.msk.bf16.mxu1 %vm12391_vm1, %v17305_v47 }
 0x968   :  { %v12349_v36 = vpop.eup %12348 }
 0x969   :  { %v16424_v46 = vmul.f32 %v12349_v36, %v16224_v55  ;;  %v12351_v53 = vpop.eup %12350 }
 0x96a   :  { %v16429_v49 = vmul.f32 %v12351_v53, %v16230_v1 }
 0x96c   :  { %v12353_v21 = vpop.eup %12352 }
 0x96d   :  { %v16432_v9 = vmul.f32 %v12353_v21, %v16236_v35  ;;  %v16436_v55 = vpop.eup %12354 }
 0x96e   :  { %v16438_v40 = vpop.eup %12356  ;;  %v5508_v14 = vsel %vm4367_vm3, %v16436_v55, 0.0 }
 0x96f   :  { %v5511_v35 = vsel %vm4367_vm3, %v16438_v40, 0.0 }
 0x972   :  { %v16444_v19 = vpop.eup %12358 }
 0x973   :  { %v16450_v12 = vpop.eup %12360  ;;  %v5514_v36 = vsel %vm4367_vm3, %v16444_v19, 0.0 }
 0x978   :  { %v16440_v4 = vpop.f32.mrf.mxu0 }
 0x979   :  { %5509 = vadd.xlane.f32.xlu1 %v5508_v14  ;;  %v5517_v14 = vsel %vm4367_vm3, %v16450_v12, 0.0 }
 0x97a   :  { %v10968_v1 = vpop.f32.mrf.mxu0 }
 0x97b   :  { %v16446_v3 = vpop.f32.mrf.mxu1 }
 0x97c   :  { %v16452_v20 = vpop.f32.mrf.mxu0  ;;  %5512 = vadd.xlane.f32.xlu0 %v5511_v35 }
 0x97d   :  { %5515 = vadd.xlane.f32.xlu1 %v5514_v36  ;;  %v10974_v53 = vpop.f32.mrf.mxu1 }
 0x97e   :  { %v10969_v23 = vpop.f32.mrf.mxu0 }
 0x97f   :  { %v16458_v21 = vpop.f32.mrf.mxu1  ;;  %v17909_v23 = vld [vmem:[#allocation64_spill] sm:$0xff] }
 0x980   :  { %5518 = vadd.xlane.f32.xlu0 %v5517_v14 }
 0x981   :  { %v10975_v63 = vpop.f32.mrf.mxu1 }
 0x98e   :  { %8472 = vrot.lane.b32.xlu1 %v17907_v37, %s12392_s6  ;;  %v17911_v37 = vld [vmem:[#allocation78_spill] sm:$0xff] }
 0x990   :  { %v5486_v35 = vpop.xlane.xlu1 %5485 }
 0x991   :  { %12362 = vrcp.f32 %v5486_v35  ;;  %v17912_v35 = vld [vmem:[#allocation77_spill] sm:$0xff] }
 0x992   :  { %8566 = vrot.lane.b32.xlu1 %v17908_v60, %s12392_s6 }
 0x993   :  { %v5489_v36 = vpop.xlane.xlu0 %5488 }
 0x994   :  { %v5492_v53 = vpop.xlane.xlu1 %5491  ;;  %12364 = vrcp.f32 %v5489_v36  ;;  %v17914_v36 = vld [vmem:[#allocation87_spill] sm:$0xff] }
 0x995   :  { %12366 = vrcp.f32 %v5492_v53 }
 0x996   :  { %8613 = vrot.lane.b32.xlu1 %v17909_v23, %s12392_s6  ;;  %8519 = vrot.lane.b32.xlu0 %v17910_v16, %s12392_s6  ;;  %v17913_v16 = vld [vmem:[#allocation88_spill] sm:$0xff]  ;;  %v17915_v23 = vld [vmem:[#allocation19_spill] sm:$0xff] }
 0x997   :  { %v5495_v14 = vpop.xlane.xlu0 %5494 }
 0x998   :  { %v8285_v63 = vpop.permute.xlu1 %8284  ;;  %12368 = vrcp.f32 %v5495_v14  ;;  %v17916_v14 = vld [vmem:[#allocation90_spill] sm:$0xff] }
 0x999   :  { %11013 = vmatpush3.bf16.msra.mxu0 %v8285_v63  ;;  %v17917_v63 = vpack.i.bf16 %v17915_v23, %v17916_v14  ;;  %v17928_v14 = vld [vmem:[#allocation167_spill] sm:$0xff] }
 0x99a   :  { %8707 = vrot.lane.b32.xlu1 %v17911_v37, %s12392_s6  ;;  %8660 = vrot.lane.b32.xlu0 %v17912_v35, %s12392_s6 }
 0x99b   :  { %v8332_v60 = vpop.permute.xlu0 %8331  ;;  %11024 = vmatprep.subr.bf16.mxu0 %v17305_v47 }
 0x99c   :  { %11015 = vmatmul.mubr.msk.bf16.vlgmr.msra.gmra.mxu0 %vm4367_vm3, %v5828_v48  ;;  %11019 = vmatpush3.bf16.msra.mxu1 %v8332_v60 }
 0x99d   :  { %11026 = vmatprep.mubr.msk.bf16.mxu0 %vm12391_vm1, %v17305_v47  ;;  %11030 = vmatprep.subr.bf16.mxu1 %v17305_v47 }
 0x99e   :  { %8801 = vrot.lane.b32.xlu1 %v17913_v16, %s12392_s6  ;;  %8754 = vrot.lane.b32.xlu0 %v17914_v36, %s12392_s6  ;;  %v12363_v53 = vpop.eup %12362  ;;  %v17921_v16 = vpack.i.bf16 %v16032_v27, %v16024_v38  ;;  %v17922_v36 = vpack.i.bf16 %v16026_v25, %v16022_v13 }
 0x99f   :  { %11021 = vmatmul.mubr.msk.bf16.vlgmr.msra.gmra.mxu1 %vm4367_vm3, %v5829_v17  ;;  %v16495_v58 = vmul.f32 %v12363_v53, %v16294_v62  ;;  %v17920_v17 = vpack.i.bf16 %v17918_v59, %v17919_v51 }
 0x9a0   :  { %11032 = vmatprep.mubr.msk.bf16.mxu1 %vm12391_vm1, %v17305_v47 }
 0x9a1   :  { %v12365_v10 = vpop.eup %12364 }
 0x9a2   :  { %v16498_v48 = vmul.f32 %v12365_v10, %v16296_v30  ;;  %11620 = vrot.lane.b32.xlu1 %v17917_v63, %s12393_s7  ;;  %11615 = vrot.lane.b32.xlu0 %v17920_v17, %s12393_s7  ;;  %v12367_v37 = vpop.eup %12366 }
 0x9a3   :  { %v16511_v60 = vmul.f32 %v12367_v37, %v16302_v31 }
 0x9a4   :  { %v5834_v35 = vpack.c.bf16 %v16498_v48, %v16495_v58 }
 0x9a5   :  { %v12369_v62 = vpop.eup %12368 }
 0x9a6   :  { %v16514_v30 = vmul.f32 %v12369_v62, %v16308_v11  ;;  %11630 = vrot.lane.b32.xlu1 %v17921_v16, %s12394_s8  ;;  %11625 = vrot.lane.b32.xlu0 %v17922_v36, %s12394_s8  ;;  %v17923_v36 = vpack.c.bf16 %v16362_v28, %v16359_v61  ;;  %v17924_v61 = vld [vmem:[#allocation5_spill] sm:$0xff]  ;;  %v17925_v28 = vld [vmem:[#allocation2_spill] sm:$0xff] }
 0x9a8   :  { %v5835_v53 = vpack.c.bf16 %v16514_v30, %v16511_v60 }
 0x9b1   :  { %v16526_v10 = vpop.f32.mrf.mxu0 }
 0x9b3   :  { %v10980_v31 = vpop.f32.mrf.mxu0 }
 0x9b4   :  { %v16528_v23 = vpop.f32.mrf.mxu1 }
 0x9b5   :  { %v16530_v11 = vpop.f32.mrf.mxu0 }
 0x9b6   :  { %v10986_v38 = vpop.f32.mrf.mxu1 }
 0x9b7   :  { %v10981_v27 = vpop.f32.mrf.mxu0 }
 0x9b8   :  { %v16534_v63 = vpop.f32.mrf.mxu1 }
 0x9ba   :  { %v10987_v25 = vpop.f32.mrf.mxu1 }
 0x9c9   :  { %v5498_v59 = vpop.xlane.xlu1 %5497 }
 0x9cc   :  { %v5501_v51 = vpop.xlane.xlu0 %5500 }
 0x9cd   :  { %v5504_v17 = vpop.xlane.xlu1 %5503  ;;  %12370 = vrcp.f32 %v5501_v51 }
 0x9ce   :  { %12372 = vrcp.f32 %v5498_v59 }
 0x9d0   :  { %v5507_v37 = vpop.xlane.xlu0 %5506 }
 0x9d1   :  { %v8379_v62 = vpop.permute.xlu1 %8378  ;;  %12374 = vrcp.f32 %v5507_v37 }
 0x9d2   :  { %11025 = vmatpush3.bf16.msra.mxu0 %v8379_v62  ;;  %12376 = vrcp.f32 %v5504_v17 }
 0x9d3   :  { %11036 = vmatprep.subr.bf16.mxu0 %v17305_v47 }
 0x9d4   :  { %v8426_v16 = vpop.permute.xlu0 %8425 }
 0x9d5   :  { %11027 = vmatmul.mubr.msk.bf16.vlgmr.msra.gmra.mxu0 %vm4367_vm3, %v5830_v45  ;;  %11031 = vmatpush3.bf16.msra.mxu1 %v8426_v16 }
 0x9d6   :  { %11038 = vmatprep.mubr.msk.bf16.mxu0 %vm12391_vm1, %v17305_v47  ;;  %11042 = vmatprep.subr.bf16.mxu1 %v17305_v47 }
 0x9d8   :  { %11033 = vmatmul.mubr.msk.bf16.vlgmr.msra.gmra.mxu1 %vm4367_vm3, %v17923_v36  ;;  %v17926_v36 = vpack.i.bf16 %v17924_v61, %v17925_v28 }
 0x9d9   :  { %11044 = vmatprep.mubr.msk.bf16.mxu1 %vm12391_vm1, %v17305_v47 }
 0x9ea   :  { %v8136_v31 = vpop.f32.mrf.mxu0 }
 0x9ec   :  { %v10992_v38 = vpop.f32.mrf.mxu0 }
 0x9ed   :  { %v8183_v27 = vpop.f32.mrf.mxu1  ;;  %v17927_v38 = vld [vmem:[#allocation42_spill] sm:$0xff] }
 0x9ee   :  { %v8139_v26 = vpop.f32.mrf.mxu0  ;;  %v17929_v1 = vpack.i.bf16 %v17927_v38, %v17928_v14  ;;  %v17935_v14 = vpack.c.bf16 %v16432_v9, %v16429_v49 }
 0x9ef   :  { %v11634_v2 = vpack.i.bf16 %v8139_v26, %v8136_v31  ;;  %v10998_v45 = vpop.f32.mrf.mxu1  ;;  %v17930_v31 = vpack.i.bf16 %v16102_v33, %v16090_v8  ;;  %v17934_v33 = vpack.c.bf16 %v16424_v46, %v16421_v15  ;;  %v12371_v15 = vpop.eup %12370 }
 0x9f0   :  { %v10993_v25 = vpop.f32.mrf.mxu0  ;;  %v12373_v49 = vpop.eup %12372  ;;  %v5769_v51 = vmul.f32 %v12371_v15, %v16368_v52  ;;  %v17940_v15 = vld [vmem:[#allocation91_spill] sm:$0xff] }
 0x9f1   :  { %11635 = vrot.lane.b32.xlu0 %v11634_v2, %s12395_s9  ;;  %v8186_v62 = vpop.f32.mrf.mxu1  ;;  %v12375_v9 = vpop.eup %12374  ;;  %v5768_v58 = vmul.f32 %v12373_v49, %v16366_v54  ;;  %v17942_v49 = vpack.i.bf16 %v16166_v50, %v16154_v57 }
 0x9f2   :  { %v11639_v16 = vpack.i.bf16 %v8186_v62, %v8183_v27  ;;  %v17931_v27 = vld [vmem:[#allocation109_spill] sm:$0xff]  ;;  %v12377_v37 = vpop.eup %12376  ;;  %v5771_v48 = vmul.f32 %v12375_v9, %v16380_v29  ;;  %v17943_v9 = vpack.i.bf16 %v16172_v32, %v16160_v44  ;;  %v17945_v32 = vld [vmem:[#allocation31_spill] sm:$0xff] }
 0x9f3   :  { %v10999_v13 = vpop.f32.mrf.mxu1  ;;  %v5836_v52 = vpack.c.bf16 %v5769_v51, %v5768_v58  ;;  %v5770_v60 = vmul.f32 %v12377_v37, %v16374_v6 }
 0x9f4   :  { %11640 = vrot.lane.b32.xlu1 %v11639_v16, %s12395_s9  ;;  %v17932_v13 = vld [vmem:[#allocation16_spill] sm:$0xff] }
 0x9f5   :  { %11645 = vrot.lane.b32.xlu0 %v17926_v36, %s12393_s7  ;;  %v17933_v26 = vpack.i.bf16 %v17931_v27, %v17932_v13 }
 0x9f8   :  { %11650 = vrot.lane.b32.xlu1 %v17929_v1, %s12393_s7 }
 0x9f9   :  { %11655 = vrot.lane.b32.xlu0 %v17930_v31, %s12394_s8 }
 0x9fc   :  { %11660 = vrot.lane.b32.xlu1 %v17933_v26, %s12394_s8  ;;  %v11873_v26 = vld [vmem:[%s17044_s3] sm:$0xff]  }
 0xa02   :  { %v5510_v2 = vpop.xlane.xlu1 %5509 }
 0xa05   :  { %v5513_v45 = vpop.xlane.xlu0 %5512 }
 0xa06   :  { %v5516_v25 = vpop.xlane.xlu1 %5515  ;;  %12378 = vrcp.f32 %v5513_v45 }
 0xa07   :  { %12380 = vrcp.f32 %v5510_v2 }
 0xa09   :  { %v5519_v62 = vpop.xlane.xlu0 %5518 }
 0xa0a   :  { %v8473_v16 = vpop.permute.xlu1 %8472  ;;  %12382 = vrcp.f32 %v5519_v62 }
 0xa0b   :  { %11037 = vmatpush3.bf16.msra.mxu0 %v8473_v16  ;;  %12384 = vrcp.f32 %v5516_v25 }
 0xa0c   :  { %11048 = vmatprep.subr.bf16.mxu0 %v17305_v47 }
 0xa0d   :  { %v8520_v1 = vpop.permute.xlu0 %8519 }
 0xa0e   :  { %v8567_v8 = vpop.permute.xlu1 %8566  ;;  %11039 = vmatmul.mubr.msk.bf16.vlgmr.msra.gmra.mxu0 %vm4367_vm3, %v17934_v33  ;;  %11043 = vmatpush3.bf16.msra.mxu1 %v8520_v1  ;;  %v17937_v33 = vld [vmem:[#allocation3_spill] sm:$0xff] }
 0xa0f   :  { %11049 = vmatpush3.bf16.msra.mxu0 %v8567_v8  ;;  %11054 = vmatprep.subr.bf16.mxu1 %v17305_v47 }
 0xa10   :  { %11050 = vmatprep.mubr.msk.bf16.mxu0 %vm12391_vm1, %v17305_v47  ;;  %11060 = vmatprep.subr.bf16.mxu0 %v17305_v47 }
 0xa11   :  { %11045 = vmatmul.mubr.msk.bf16.vlgmr.msra.gmra.mxu1 %vm4367_vm3, %v17935_v14  ;;  %v8661_v46 = vpop.permute.xlu0 %8660 }
 0xa12   :  { %v8614_v59 = vpop.permute.xlu1 %8613  ;;  %11056 = vmatprep.mubr.msk.bf16.mxu1 %vm12391_vm1, %v17305_v47 }
 0xa13   :  { %11055 = vmatpush3.bf16.msra.mxu1 %v8614_v59  ;;  %v12379_v61 = vpop.eup %12378  ;;  %v17939_v59 = vld [vmem:[#allocation4_spill] sm:$0xff] }
 0xa14   :  { %11066 = vmatprep.subr.bf16.mxu1 %v17305_v47  ;;  %v12381_v54 = vpop.eup %12380  ;;  %v5773_v28 = vmul.f32 %v12379_v61, %v16438_v40 }
 0xa15   :  { %v8755_v30 = vpop.permute.xlu0 %8754  ;;  %v5772_v31 = vmul.f32 %v12381_v54, %v16436_v55 }
 0xa16   :  { %11051 = vmatmul.mubr.msk.bf16.vlgmr.msra.gmra.mxu0 %vm4367_vm3, %v5834_v35  ;;  %v8708_v17 = vpop.permute.xlu1 %8707  ;;  %v11872_v35 = vld [vmem:[%s17044_s3 + $0x8] sm:$0xff]  }
 0xa17   :  { %11061 = vmatpush3.bf16.msra.mxu0 %v8661_v46  ;;  %11062 = vmatprep.mubr.msk.bf16.mxu0 %vm12391_vm1, %v17305_v47  ;;  %v12383_v29 = vpop.eup %12382  ;;  %v5838_v13 = vpack.c.bf16 %v5773_v28, %v5772_v31  ;;  %v17941_v46 = vpack.i.bf16 %v17939_v59, %v17940_v15  ;;  %v17948_v59 = vld [vmem:[#allocation17_spill] sm:$0xff]  ;;  %v17949_v15 = vld [vmem:[#allocation94_spill] sm:$0xff] }
 0xa18   :  { %11072 = vmatprep.subr.bf16.mxu0 %v17305_v47  ;;  %v12385_v38 = vpop.eup %12384  ;;  %v5775_v6 = vmul.f32 %v12383_v29, %v16450_v12 }
 0xa19   :  { %11057 = vmatmul.mubr.msk.bf16.vlgmr.msra.gmra.mxu1 %vm4367_vm3, %v5835_v53  ;;  %v5837_v53 = vpack.c.bf16 %v5771_v48, %v5770_v60  ;;  %v5774_v40 = vmul.f32 %v12385_v38, %v16444_v19  ;;  %v17936_v19 = vld [vmem:[#allocation168_spill] sm:$0xff]  ;;  %v11616_v51 = vpop.permute.xlu0 %11615 }
 0xa1a   :  { %11067 = vmatpush3.bf16.msra.mxu1 %v8708_v17  ;;  %11068 = vmatprep.mubr.msk.bf16.mxu1 %vm12391_vm1, %v17305_v47  ;;  %v8802_v36 = vpop.permute.xlu1 %8801  ;;  %v17938_v14 = vpack.i.bf16 %v17936_v19, %v17937_v33  ;;  %v17947_v19 = vld [vmem:[#allocation21_spill] sm:$0xff] }
 0xa1b   :  { %11078 = vmatprep.subr.bf16.mxu1 %v17305_v47  ;;  %v5839_v25 = vpack.c.bf16 %v5775_v6, %v5774_v40 }
 0xa1d   :  { %v11626_v58 = vpop.permute.xlu0 %11625 }
 0xa1e   :  { %11063 = vmatmul.mubr.msk.bf16.vlgmr.msra.gmra.mxu0 %vm4367_vm3, %v5836_v52  ;;  %v11621_v17 = vpop.permute.xlu1 %11620  ;;  %v11618_v52 = vunpack.i.h.bf16 %v11616_v51  ;;  %v11628_v54 = vunpack.i.h.bf16 %v11626_v58 }
 0xa1f   :  { %11073 = vmatpush3.bf16.msra.mxu0 %v8755_v30  ;;  %11074 = vmatprep.mubr.msk.bf16.mxu0 %vm12391_vm1, %v17305_v47  ;;  %v11623_v50 = vunpack.i.h.bf16 %v11621_v17  ;;  %v11622_v31 = vunpack.i.l.bf16 %v11621_v17 }
 0xa20   :  { %11084 = vmatprep.subr.bf16.mxu0 %v11872_v35 }
 0xa21   :  { %11069 = vmatmul.mubr.msk.bf16.vlgmr.msra.gmra.mxu1 %vm4367_vm3, %v5837_v53  ;;  %v11627_v53 = vunpack.i.l.bf16 %v11626_v58  ;;  %v9234_v33 = vsel %vm1169_vm2, %v17947_v19, %v11622_v31 }
 0xa22   :  { %11079 = vmatpush3.bf16.msra.mxu1 %v8802_v36  ;;  %11080 = vmatprep.mubr.msk.bf16.mxu1 %vm12391_vm1, %v17305_v47  ;;  %v11631_v60 = vpop.permute.xlu1 %11630  ;;  %v17944_v36 = vld [vmem:[#allocation28_spill] sm:$0xff] }
 0xa23   :  { %v8230_v27 = vpop.f32.mrf.mxu0  ;;  %v9233_v44 = vsel %vm1169_vm2, %v17944_v36, %v11618_v52  ;;  %v11633_v6 = vunpack.i.h.bf16 %v11631_v60  ;;  %v17951_v52 = vld [vmem:[#allocation95_spill] sm:$0xff] }
 0xa25   :  { %v11004_v2 = vpop.f32.mrf.mxu0 }
 0xa26   :  { %11075 = vmatmul.mubr.msk.bf16.vlgmr.msra.gmra.mxu0 %vm4367_vm3, %v5838_v13  ;;  %v8277_v45 = vpop.f32.mrf.mxu1 }
 0xa27   :  { %v8233_v55 = vpop.f32.mrf.mxu0  ;;  %11085 = vmatpush3.bf16.msra.mxu0 %v11872_v35  ;;  %v11617_v35 = vunpack.i.l.bf16 %v11616_v51 }
 0xa28   :  { %v11664_v62 = vpack.i.bf16 %v8233_v55, %v8230_v27  ;;  %v11010_v16 = vpop.f32.mrf.mxu1  ;;  %11086 = vmatprep.subr.bf16.mxu0 %v11873_v26  ;;  %v9265_v55 = vsel %vm4367_vm3, %v9233_v44, %v11628_v54 }
 0xa29   :  { %v11005_v47 = vpop.f32.mrf.mxu0  ;;  %11081 = vmatmul.mubr.msk.bf16.vlgmr.msra.gmra.mxu1 %vm4367_vm3, %v5839_v25  ;;  %v9232_v38 = vsel %vm1169_vm2, %v17945_v32, %v11617_v35  ;;  %v17946_v16 = vld [vmem:[#allocation18_spill] sm:$0xff]  ;;  %v17952_v35 = vld [vmem:[#allocation96_spill] sm:$0xff] }
 0xa2a   :  { %11665 = vrot.lane.b32.xlu0 %v11664_v62, %s12395_s9  ;;  %v8280_v12 = vpop.f32.mrf.mxu1  ;;  %v9264_v25 = vsel %vm4367_vm3, %v9232_v38, %v11627_v53  ;;  %v9235_v47 = vsel %vm1169_vm2, %v17946_v16, %v11623_v50 }
 0xa2b   :  { %v11669_v1 = vpack.i.bf16 %v8280_v12, %v8277_v45  ;;  %11087 = vmatpush3.bf16.msra.mxu0 %v11873_v26  ;;  %v11632_v26 = vunpack.i.l.bf16 %v11631_v60  ;;  %v9267_v51 = vsel %vm4367_vm3, %v9235_v47, %v11633_v6  ;;  %v17954_v60 = vpack.i.bf16 %v16238_v0, %v16226_v24 }
 0xa2c   :  { %v11011_v8 = vpop.f32.mrf.mxu1 }
 0xa2d   :  { %11670 = vrot.lane.b32.xlu1 %v11669_v1, %s12395_s9  ;;  %v9266_v17 = vsel %vm4367_vm3, %v9234_v33, %v11632_v26  ;;  %v17956_v26 = vld [vmem:[#allocation8_spill] sm:$0xff] }
 0xa2e   :  { %11675 = vrot.lane.b32.xlu0 %v17938_v14, %s12393_s7  ;;  %v17958_v33 = vld [vmem:[#allocation132_spill] sm:$0xff] }
 0xa31   :  { %11680 = vrot.lane.b32.xlu1 %v17941_v46, %s12393_s7  ;;  %v17950_v46 = vpack.i.bf16 %v17948_v59, %v17949_v15 }
 0xa32   :  { %11685 = vrot.lane.b32.xlu0 %v17942_v49, %s12394_s8 }
 0xa35   :  { %11690 = vrot.lane.b32.xlu1 %v17943_v9, %s12394_s8 }
 0xa5c   :  { %v8324_v37 = vpop.f32.mrf.mxu0 }
 0xa5e   :  { %v11016_v48 = vpop.f32.mrf.mxu0 }
 0xa5f   :  { %v8371_v61 = vpop.f32.mrf.mxu1 }
 0xa60   :  { %v8327_v30 = vpop.f32.mrf.mxu0 }
 0xa61   :  { %v11694_v29 = vpack.i.bf16 %v8327_v30, %v8324_v37  ;;  %v11022_v57 = vpop.f32.mrf.mxu1  ;;  %v17955_v30 = vpack.i.bf16 %v16244_v22, %v16232_v39  ;;  %v17957_v22 = vld [vmem:[#allocation93_spill] sm:$0xff] }
 0xa62   :  { %v11017_v28 = vpop.f32.mrf.mxu0 }
 0xa63   :  { %11695 = vrot.lane.b32.xlu0 %v11694_v29, %s12395_s9  ;;  %v11636_v27 = vpop.permute.xlu0 %11635  ;;  %v8374_v13 = vpop.f32.mrf.mxu1 }
 0xa64   :  { %v11638_v40 = vunpack.i.h.bf16 %v11636_v27  ;;  %v11637_v2 = vunpack.i.l.bf16 %v11636_v27  ;;  %v11699_v45 = vpack.i.bf16 %v8374_v13, %v8371_v61  ;;  %v17953_v61 = vpack.i.bf16 %v17951_v52, %v17952_v35 }
 0xa65   :  { %v11023_v62 = vpop.f32.mrf.mxu1 }
 0xa66   :  { %v9297_v12 = vsel %vm9296_vm4, %v9264_v25, %v11637_v2  ;;  %v9298_v1 = vsel %vm9296_vm4, %v9265_v55, %v11638_v40  ;;  %v11641_v8 = vpop.permute.xlu1 %11640  ;;  %11700 = vrot.lane.b32.xlu1 %v11699_v45, %s12395_s9 }
 0xa67   :  { %v9329_v14 = vpack.c.bf16 %v9298_v1, %v9297_v12  ;;  %11705 = vrot.lane.b32.xlu0 %v17950_v46, %s12393_s7  ;;  %v11643_v49 = vunpack.i.h.bf16 %v11641_v8  ;;  %v11642_v9 = vunpack.i.l.bf16 %v11641_v8  ;;  %v11646_v54 = vpop.permute.xlu0 %11645 }
 0xa68   :  { %v11648_v28 = vunpack.i.h.bf16 %v11646_v54  ;;  %v11647_v36 = vunpack.i.l.bf16 %v11646_v54 }
 0xa69   :  { %v9300_v37 = vsel %vm9296_vm4, %v9267_v51, %v11643_v49  ;;  %v9299_v58 = vsel %vm9296_vm4, %v9266_v17, %v11642_v9  ;;  %11088 = vmatprep.mubr.msk.bf16.mxu0 %vm156_vm0, %v9329_v14  ;;  %v17959_v49 = vld [vmem:[#allocation135_spill] sm:$0xff] }
 0xa6a   :  { %v9330_v48 = vpack.c.bf16 %v9300_v37, %v9299_v58  ;;  %11710 = vrot.lane.b32.xlu1 %v17953_v61, %s12393_s7  ;;  %v11651_v53 = vpop.permute.xlu1 %11650  ;;  %v9237_v39 = vsel %vm1169_vm2, %v17956_v26, %v11648_v28  ;;  %v9236_v40 = vsel %vm1169_vm2, %v17957_v22, %v11647_v36  ;;  %v17960_v17 = vld [vmem:[#allocation171_spill] sm:$0xff]  ;;  %v17961_v37 = vld [vmem:[#allocation98_spill] sm:$0xff]  ;;  %v17967_v28 = vpack.i.bf16 %v16316_v56, %v16304_v43 }
 0xa6b   :  { %11715 = vrot.lane.b32.xlu0 %v17954_v60, %s12394_s8  ;;  %v11656_v57 = vpop.permute.xlu0 %11655  ;;  %v11653_v27 = vunpack.i.h.bf16 %v11651_v53  ;;  %v11652_v2 = vunpack.i.l.bf16 %v11651_v53  ;;  %v17962_v58 = vpack.i.bf16 %v17960_v17, %v17961_v37  ;;  %v17963_v53 = vld [vmem:[#allocation99_spill] sm:$0xff] }
 0xa6c   :  { %11089 = vmatmul.mubr.msk.bf16.vlgmr.msra.gmra.mxu0 %vm156_vm0, %v9330_v48  ;;  %v11658_v31 = vunpack.i.h.bf16 %v11656_v57  ;;  %v11657_v24 = vunpack.i.l.bf16 %v11656_v57  ;;  %v17969_v56 = vld [vmem:[#allocation39_spill] sm:$0xff] }
 0xa6d   :  { %v9239_v14 = vsel %vm1169_vm2, %v17958_v33, %v11653_v27  ;;  %v9238_v9 = vsel %vm1169_vm2, %v17959_v49, %v11652_v2  ;;  %v17968_v2 = vld [vmem:[#allocation15_spill] sm:$0xff] }
 0xa6e   :  { %11720 = vrot.lane.b32.xlu1 %v17955_v30, %s12394_s8  ;;  %v11661_v32 = vpop.permute.xlu1 %11660  ;;  %v9268_v1 = vsel %vm4367_vm3, %v9236_v40, %v11657_v24  ;;  %v9269_v8 = vsel %vm4367_vm3, %v9237_v39, %v11658_v31  ;;  %v17971_v37 = vld [vmem:[#allocation147_spill] sm:$0xff] }
 0xa6f   :  { %v11663_v45 = vunpack.i.h.bf16 %v11661_v32  ;;  %v11662_v62 = vunpack.i.l.bf16 %v11661_v32 }
 0xa71   :  { %v9270_v35 = vsel %vm4367_vm3, %v9238_v9, %v11662_v62  ;;  %v9271_v61 = vsel %vm4367_vm3, %v9239_v14, %v11663_v45 }
 0xa95   :  { %v8418_v29 = vpop.f32.mrf.mxu0 }
 0xa97   :  { %v11028_v50 = vpop.f32.mrf.mxu0 }
 0xa98   :  { %v8465_v44 = vpop.f32.mrf.mxu1  ;;  %v17966_v50 = vpack.i.bf16 %v16310_v7, %v16298_v34 }
 0xa99   :  { %v8421_v38 = vpop.f32.mrf.mxu0 }
 0xa9a   :  { %v11724_v0 = vpack.i.bf16 %v8421_v38, %v8418_v29  ;;  %v11034_v6 = vpop.f32.mrf.mxu1  ;;  %v17964_v29 = vld [vmem:[#allocation101_spill] sm:$0xff] }
 0xa9b   :  { %v11029_v13 = vpop.f32.mrf.mxu0  ;;  %v17965_v57 = vpack.i.bf16 %v17963_v53, %v17964_v29 }
 0xa9c   :  { %11725 = vrot.lane.b32.xlu0 %v11724_v0, %s12395_s9  ;;  %v11666_v25 = vpop.permute.xlu0 %11665  ;;  %v8468_v55 = vpop.f32.mrf.mxu1 }
 0xa9d   :  { %v11668_v16 = vunpack.i.h.bf16 %v11666_v25  ;;  %v11667_v47 = vunpack.i.l.bf16 %v11666_v25  ;;  %v11729_v12 = vpack.i.bf16 %v8468_v55, %v8465_v44 }
 0xa9e   :  { %v11035_v19 = vpop.f32.mrf.mxu1 }
 0xa9f   :  { %v9301_v59 = vsel %vm9296_vm4, %v9268_v1, %v11667_v47  ;;  %v9302_v15 = vsel %vm9296_vm4, %v9269_v8, %v11668_v16  ;;  %v11671_v46 = vpop.permute.xlu1 %11670  ;;  %11730 = vrot.lane.b32.xlu1 %v11729_v12, %s12395_s9 }
 0xaa0   :  { %v9331_v51 = vpack.c.bf16 %v9302_v15, %v9301_v59  ;;  %11735 = vrot.lane.b32.xlu0 %v17962_v58, %s12393_s7  ;;  %v11673_v48 = vunpack.i.h.bf16 %v11671_v46  ;;  %v11672_v52 = vunpack.i.l.bf16 %v11671_v46  ;;  %v11676_v36 = vpop.permute.xlu0 %11675  ;;  %v17970_v15 = vld [vmem:[#allocation150_spill] sm:$0xff] }
 0xaa1   :  { %v11678_v24 = vunpack.i.h.bf16 %v11676_v36  ;;  %v11677_v0 = vunpack.i.l.bf16 %v11676_v36 }
 0xaa2   :  { %v9304_v60 = vsel %vm9296_vm4, %v9271_v61, %v11673_v48  ;;  %v9303_v30 = vsel %vm9296_vm4, %v9270_v35, %v11672_v52  ;;  %11092 = vmatprep.mubr.msk.bf16.mxu0 %vm156_vm0, %v9331_v51  ;;  %v17972_v52 = vld [vmem:[#allocation32_spill] sm:$0xff] }
 0xaa3   :  { %v9332_v54 = vpack.c.bf16 %v9304_v60, %v9303_v30  ;;  %11740 = vrot.lane.b32.xlu1 %v17965_v57, %s12393_s7  ;;  %v11681_v44 = vpop.permute.xlu1 %11680  ;;  %v9241_v43 = vsel %vm1169_vm2, %v17968_v2, %v11678_v24  ;;  %v9240_v45 = vsel %vm1169_vm2, %v17969_v56, %v11677_v0  ;;  %v17973_v35 = vld [vmem:[#allocation80_spill] sm:$0xff]  ;;  %v17978_v0 = vpack.i.bf16 %v16382_v42, %v16370_v41 }
 0xaa4   :  { %11745 = vrot.lane.b32.xlu0 %v17966_v50, %s12394_s8  ;;  %v11686_v38 = vpop.permute.xlu0 %11685  ;;  %v11683_v22 = vunpack.i.h.bf16 %v11681_v44  ;;  %v11682_v25 = vunpack.i.l.bf16 %v11681_v44  ;;  %v17974_v61 = vpack.i.bf16 %v17972_v52, %v17973_v35  ;;  %v17980_v42 = vld [vmem:[#allocation44_spill] sm:$0xff] }
 0xaa5   :  { %11093 = vmatmul.mubr.msk.bf16.gmra.mxu0 %vm156_vm0, %v9332_v54  ;;  %v11688_v26 = vunpack.i.h.bf16 %v11686_v38  ;;  %v11687_v34 = vunpack.i.l.bf16 %v11686_v38  ;;  %v17975_v38 = vld [vmem:[#allocation106_spill] sm:$0xff] }
 0xaa6   :  { %v9243_v46 = vsel %vm1169_vm2, %v17970_v15, %v11683_v22  ;;  %v9242_v58 = vsel %vm1169_vm2, %v17971_v37, %v11682_v25  ;;  %v17995_v37 = vpack.i.bf16 %v16534_v63, %v16528_v23 }
 0xaa7   :  { %11750 = vrot.lane.b32.xlu1 %v17967_v28, %s12394_s8  ;;  %v11691_v27 = vpop.permute.xlu1 %11690  ;;  %v9272_v33 = vsel %vm4367_vm3, %v9240_v45, %v11687_v34  ;;  %v9273_v14 = vsel %vm4367_vm3, %v9241_v43, %v11688_v26  ;;  %v17981_v43 = vld [vmem:[#allocation23_spill] sm:$0xff] }
 0xaa8   :  { %v11693_v55 = vunpack.i.h.bf16 %v11691_v27  ;;  %v11692_v47 = vunpack.i.l.bf16 %v11691_v27  ;;  %v17982_v56 = vpack.i.bf16 %v17980_v42, %v17981_v43 }
 0xaaa   :  { %v9274_v53 = vsel %vm4367_vm3, %v9242_v58, %v11692_v47  ;;  %v9275_v29 = vsel %vm4367_vm3, %v9243_v46, %v11693_v55  ;;  %v17986_v47 = vpack.i.bf16 %v16452_v20, %v16440_v4  ;;  %v17988_v4 = vld [vmem:[#allocation30_spill] sm:$0xff]  ;;  %v17989_v20 = vld [vmem:[#allocation68_spill] sm:$0xff] }
 0xace   :  { %v8512_v32 = vpop.f32.mrf.mxu0 }
 0xad0   :  { %v11040_v31 = vpop.f32.mrf.mxu0 }
 0xad1   :  { %v8559_v6 = vpop.f32.mrf.mxu1  ;;  %v17976_v31 = vld [vmem:[#allocation104_spill] sm:$0xff] }
 0xad2   :  { %v8515_v13 = vpop.f32.mrf.mxu0  ;;  %v17977_v24 = vpack.i.bf16 %v17975_v38, %v17976_v31 }
 0xad3   :  { %v11754_v7 = vpack.i.bf16 %v8515_v13, %v8512_v32  ;;  %v11046_v39 = vpop.f32.mrf.mxu1 }
 0xad4   :  { %v11041_v40 = vpop.f32.mrf.mxu0 }
 0xad5   :  { %11755 = vrot.lane.b32.xlu0 %v11754_v7, %s12395_s9  ;;  %v11696_v62 = vpop.permute.xlu0 %11695  ;;  %v8562_v16 = vpop.f32.mrf.mxu1  ;;  %v17979_v7 = vpack.i.bf16 %v16388_v5, %v16376_v18  ;;  %v17983_v18 = vld [vmem:[#allocation45_spill] sm:$0xff]  ;;  %v17984_v5 = vld [vmem:[#allocation107_spill] sm:$0xff] }
 0xad6   :  { %v11698_v12 = vunpack.i.h.bf16 %v11696_v62  ;;  %v11697_v1 = vunpack.i.l.bf16 %v11696_v62  ;;  %v11759_v8 = vpack.i.bf16 %v8562_v16, %v8559_v6  ;;  %v8606_v19 = vpop.f32.mrf.mxu0  ;;  %v17985_v16 = vpack.i.bf16 %v17983_v18, %v17984_v5 }
 0xad7   :  { %v11047_v59 = vpop.f32.mrf.mxu1 }
 0xad8   :  { %v9305_v49 = vsel %vm9296_vm4, %v9272_v33, %v11697_v1  ;;  %v9306_v9 = vsel %vm9296_vm4, %v9273_v14, %v11698_v12  ;;  %v11052_v51 = vpop.f32.mrf.mxu0  ;;  %v11701_v17 = vpop.permute.xlu1 %11700  ;;  %11760 = vrot.lane.b32.xlu1 %v11759_v8, %s12395_s9  ;;  %v17987_v14 = vpack.i.bf16 %v16458_v21, %v16446_v3  ;;  %v17994_v3 = vpack.i.bf16 %v16530_v11, %v16526_v10 }
 0xad9   :  { %v9333_v48 = vpack.c.bf16 %v9306_v9, %v9305_v49  ;;  %11765 = vrot.lane.b32.xlu0 %v17974_v61, %s12393_s7  ;;  %v11703_v60 = vunpack.i.h.bf16 %v11701_v17  ;;  %v11702_v30 = vunpack.i.l.bf16 %v11701_v17  ;;  %v8653_v54 = vpop.f32.mrf.mxu1  ;;  %v17990_v49 = vpack.i.bf16 %v17988_v4, %v17989_v20  ;;  %v17991_v9 = vld [vmem:[#allocation110_spill] sm:$0xff]  ;;  %v17992_v51 = vld [vmem:[#allocation108_spill] sm:$0xff] }
 0xada   :  { %v8609_v57 = vpop.f32.mrf.mxu0  ;;  %v17993_v17 = vpack.i.bf16 %v17991_v9, %v17992_v51  ;;  %v18000_v51 = vld [vmem:[#allocation41_spill] sm:$0xff] }
 0xadb   :  { %v9308_v50 = vsel %vm9296_vm4, %v9275_v29, %v11703_v60  ;;  %v9307_v28 = vsel %vm9296_vm4, %v9274_v53, %v11702_v30  ;;  %11096 = vmatprep.mubr.msk.bf16.mxu0 %vm156_vm0, %v9333_v48  ;;  %v11058_v36 = vpop.f32.mrf.mxu1  ;;  %v11784_v13 = vpack.i.bf16 %v8609_v57, %v8606_v19  ;;  %v11706_v48 = vpop.permute.xlu0 %11705  ;;  %v17996_v53 = vld [vmem:[#allocation103_spill] sm:$0xff]  ;;  %v17997_v57 = vld [vmem:[#allocation25_spill] sm:$0xff] }
 0xadc   :  { %v9334_v44 = vpack.c.bf16 %v9308_v50, %v9307_v28  ;;  %v11053_v32 = vpop.f32.mrf.mxu0  ;;  %11770 = vrot.lane.b32.xlu1 %v17977_v24, %s12393_s7  ;;  %v11711_v52 = vpop.permute.xlu1 %11710  ;;  %v11708_v61 = vunpack.i.h.bf16 %v11706_v48  ;;  %v11707_v60 = vunpack.i.l.bf16 %v11706_v48  ;;  %v17998_v24 = vld [vmem:[#allocation40_spill] sm:$0xff] }
 0xadd   :  { %11775 = vrot.lane.b32.xlu0 %v17978_v0, %s12394_s8  ;;  %v8656_v6 = vpop.f32.mrf.mxu1  ;;  %v11713_v11 = vunpack.i.h.bf16 %v11711_v52  ;;  %v11712_v63 = vunpack.i.l.bf16 %v11711_v52 }
 0xade   :  { %v8700_v27 = vpop.f32.mrf.mxu0  ;;  %11097 = vmatmul.mubr.msk.bf16.gmra.mxu0 %vm156_vm0, %v9334_v44  ;;  %v11789_v22 = vpack.i.bf16 %v8656_v6, %v8653_v54  ;;  %v9245_v29 = vsel %vm1169_vm2, %v17996_v53, %v11708_v61  ;;  %v9244_v23 = vsel %vm1169_vm2, %v17997_v57, %v11707_v60  ;;  %v18003_v57 = vld [vmem:[#allocation22_spill] sm:$0xff] }
 0xadf   :  { %v11059_v26 = vpop.f32.mrf.mxu1  ;;  %v11716_v35 = vpop.permute.xlu0 %11715  ;;  %v9247_v0 = vsel %vm1169_vm2, %v17998_v24, %v11713_v11 }
 0xae0   :  { %v11064_v34 = vpop.f32.mrf.mxu0  ;;  %11780 = vrot.lane.b32.xlu1 %v17979_v7, %s12394_s8  ;;  %v11718_v30 = vunpack.i.h.bf16 %v11716_v35  ;;  %v11717_v54 = vunpack.i.l.bf16 %v11716_v35  ;;  %v11721_v10 = vpop.permute.xlu1 %11720  ;;  %v17999_v26 = vld [vmem:[#allocation100_spill] sm:$0xff] }
 0xae1   :  { %11785 = vrot.lane.b32.xlu0 %v11784_v13, %s12395_s9  ;;  %v8747_v39 = vpop.f32.mrf.mxu1  ;;  %v11723_v28 = vunpack.i.h.bf16 %v11721_v10  ;;  %v11722_v36 = vunpack.i.l.bf16 %v11721_v10  ;;  %v9246_v34 = vsel %vm1169_vm2, %v17999_v26, %v11712_v63 }
 0xae2   :  { %v8703_v40 = vpop.f32.mrf.mxu0  ;;  %v9276_v38 = vsel %vm4367_vm3, %v9244_v23, %v11717_v54  ;;  %v9277_v31 = vsel %vm4367_vm3, %v9245_v29, %v11718_v30  ;;  %v18002_v54 = vld [vmem:[#allocation27_spill] sm:$0xff] }
 0xae3   :  { %v11070_v2 = vpop.f32.mrf.mxu1  ;;  %v11814_v8 = vpack.i.bf16 %v8703_v40, %v8700_v27  ;;  %v9278_v40 = vsel %vm4367_vm3, %v9246_v34, %v11722_v36 }
 0xae4   :  { %v11065_v41 = vpop.f32.mrf.mxu0  ;;  %11790 = vrot.lane.b32.xlu1 %v11789_v22, %s12395_s9  ;;  %v9279_v2 = vsel %vm4367_vm3, %v9247_v0, %v11723_v28 }
 0xae5   :  { %11795 = vrot.lane.b32.xlu0 %v17982_v56, %s12393_s7  ;;  %v8750_v45 = vpop.f32.mrf.mxu1  ;;  %v16807_v56 = vld [vmem:[%s17045_s4] ss:$0 sm:$0xff] }
 0xae6   :  { %v8794_v25 = vpop.f32.mrf.mxu0  ;;  %v11819_v15 = vpack.i.bf16 %v8750_v45, %v8747_v39 }
 0xae7   :  { %v11071_v55 = vpop.f32.mrf.mxu1 }
 0xae8   :  { %v11076_v62 = vpop.f32.mrf.mxu0  ;;  %11800 = vrot.lane.b32.xlu1 %v17985_v16, %s12393_s7 }
 0xae9   :  { %11805 = vrot.lane.b32.xlu0 %v17986_v47, %s12394_s8  ;;  %v8841_v12 = vpop.f32.mrf.mxu1 }
 0xaea   :  { %v8797_v1 = vpop.f32.mrf.mxu0 }
 0xaeb   :  { %v11082_v19 = vpop.f32.mrf.mxu1  ;;  %v11844_v21 = vpack.i.bf16 %v8797_v1, %v8794_v25 }
 0xaec   :  { %v11077_v33 = vpop.f32.mrf.mxu0  ;;  %11810 = vrot.lane.b32.xlu1 %v17987_v14, %s12394_s8 }
 0xaed   :  { %11815 = vrot.lane.b32.xlu0 %v11814_v8, %s12395_s9  ;;  %v8844_v59 = vpop.f32.mrf.mxu1 }
 0xaee   :  { %v11849_v58 = vpack.i.bf16 %v8844_v59, %v8841_v12 }
 0xaef   :  { %v11083_v46 = vpop.f32.mrf.mxu1 }
 0xaf0   :  { %11820 = vrot.lane.b32.xlu1 %v11819_v15, %s12395_s9 }
 0xaf1   :  { %11825 = vrot.lane.b32.xlu0 %v17990_v49, %s12393_s7 }
 0xaf4   :  { %11830 = vrot.lane.b32.xlu1 %v17993_v17, %s12393_s7 }
 0xaf5   :  { %11835 = vrot.lane.b32.xlu0 %v17994_v3, %s12394_s8  ;;  %v18001_v3 = vld [vmem:[#allocation138_spill] sm:$0xff] }
 0xaf8   :  { %11840 = vrot.lane.b32.xlu1 %v17995_v37, %s12394_s8 }
 0xaf9   :  { %11845 = vrot.lane.b32.xlu0 %v11844_v21, %s12395_s9 }
 0xafc   :  { %11850 = vrot.lane.b32.xlu1 %v11849_v58, %s12395_s9 }
 0xb0e   :  { %v11726_v50 = vpop.permute.xlu0 %11725 }
 0xb0f   :  { %v11728_v44 = vunpack.i.h.bf16 %v11726_v50  ;;  %v11727_v32 = vunpack.i.l.bf16 %v11726_v50 }
 0xb11   :  { %v9309_v6 = vsel %vm9296_vm4, %v9276_v38, %v11727_v32  ;;  %v9310_v27 = vsel %vm9296_vm4, %v9277_v31, %v11728_v44  ;;  %v11731_v13 = vpop.permute.xlu1 %11730 }
 0xb12   :  { %v9335_v7 = vpack.c.bf16 %v9310_v27, %v9309_v6  ;;  %v11733_v39 = vunpack.i.h.bf16 %v11731_v13  ;;  %v11732_v22 = vunpack.i.l.bf16 %v11731_v13  ;;  %v11736_v33 = vpop.permute.xlu0 %11735 }
 0xb13   :  { %v11738_v15 = vunpack.i.h.bf16 %v11736_v33  ;;  %v11737_v46 = vunpack.i.l.bf16 %v11736_v33 }
 0xb14   :  { %v9312_v41 = vsel %vm9296_vm4, %v9279_v2, %v11733_v39  ;;  %v9311_v42 = vsel %vm9296_vm4, %v9278_v40, %v11732_v22  ;;  %11100 = vmatprep.mubr.msk.bf16.mxu0 %vm156_vm0, %v9335_v7  ;;  %v18004_v22 = vld [vmem:[#allocation35_spill] sm:$0xff]  ;;  %v18005_v2 = vld [vmem:[#allocation153_spill] sm:$0xff] }
 0xb15   :  { %v9336_v43 = vpack.c.bf16 %v9312_v41, %v9311_v42  ;;  %v11741_v14 = vpop.permute.xlu1 %11740  ;;  %v9249_v17 = vsel %vm1169_vm2, %v18000_v51, %v11738_v15  ;;  %v9248_v21 = vsel %vm1169_vm2, %v18001_v3, %v11737_v46 }
 0xb16   :  { %v11746_v59 = vpop.permute.xlu0 %11745  ;;  %v11743_v9 = vunpack.i.h.bf16 %v11741_v14  ;;  %v11742_v37 = vunpack.i.l.bf16 %v11741_v14 }
 0xb17   :  { %11101 = vmatmul.mubr.msk.bf16.gmra.mxu0 %vm156_vm0, %v9336_v43  ;;  %v11748_v4 = vunpack.i.h.bf16 %v11746_v59  ;;  %v11747_v20 = vunpack.i.l.bf16 %v11746_v59 }
 0xb18   :  { %v9251_v10 = vsel %vm1169_vm2, %v18002_v54, %v11743_v9  ;;  %v9250_v23 = vsel %vm1169_vm2, %v18003_v57, %v11742_v37 }
 0xb19   :  { %v11751_v49 = vpop.permute.xlu1 %11750  ;;  %v9280_v60 = vsel %vm4367_vm3, %v9248_v21, %v11747_v20  ;;  %v9281_v30 = vsel %vm4367_vm3, %v9249_v17, %v11748_v4 }
 0xb1a   :  { %v11753_v48 = vunpack.i.h.bf16 %v11751_v49  ;;  %v11752_v52 = vunpack.i.l.bf16 %v11751_v49 }
 0xb1c   :  { %v9282_v44 = vsel %vm4367_vm3, %v9250_v23, %v11752_v52  ;;  %v9283_v32 = vsel %vm4367_vm3, %v9251_v10, %v11753_v48 }
 0xb2c   :  { %v11090_v45 = vpop.f32.mrf.mxu0 }
 0xb2d   :  { %v9459_v25 = vadd.f32 %v11090_v45, %v16807_v56 }
 0xb2e   :  { %v9450_v55 = vpop.f32.mrf.mxu0 }
 0xb2f   :  { %v9958_v62 = vpack.c.bf16 %v9459_v25, %v9459_v25  ;;  %v9451_v18 = vadd.f32 %v16807_v56, %v9450_v55 }
 0xb30   :  { %v11091_v5 = vpop.f32.mrf.mxu0 }
 0xb31   :  { %9708 = vst.msk [vmem:[%s17046_s5 + $0x8] sm:$0xf] %vm9705_vm5, %v9958_v62  ;;  %v9956_v16 = vpack.c.bf16 %v9451_v18, %v9451_v18  ;;  %v9462_v47 = vadd.f32 %v11091_v5, %v16807_v56 }
 0xb32   :  { %v9453_v12 = vpop.f32.mrf.mxu0 }
 0xb33   :  { %9706 = vst.msk [vmem:[%s17046_s5] sm:$0xf] %vm9705_vm5, %v9956_v16  ;;  %v9959_v1 = vpack.c.bf16 %v9462_v47, %v9462_v47  ;;  %v9454_v8 = vadd.f32 %v16807_v56, %v9453_v12  ;;  %v18006_v16 = vld [vmem:[#allocation124_spill] sm:$0xff] }
 0xb35   :  { %9709 = vst.msk [vmem:[%s17046_s5 + $0xc] sm:$0xf] %vm9705_vm5, %v9959_v1  ;;  %v9957_v19 = vpack.c.bf16 %v9454_v8, %v9454_v8 }
 0xb37   :  { %9707 = vst.msk [vmem:[%s17046_s5 + $0x4] sm:$0xf] %vm9705_vm5, %v9957_v19  ;;  %v18007_v19 = vld [vmem:[#allocation24_spill] sm:$0xff] }
 0xb47   :  { %v11756_v58 = vpop.permute.xlu0 %11755 }
 0xb48   :  { %v11758_v35 = vunpack.i.h.bf16 %v11756_v58  ;;  %v11757_v61 = vunpack.i.l.bf16 %v11756_v58 }
 0xb4a   :  { %v9313_v11 = vsel %vm9296_vm4, %v9280_v60, %v11757_v61  ;;  %v9314_v53 = vsel %vm9296_vm4, %v9281_v30, %v11758_v35  ;;  %v11761_v29 = vpop.permute.xlu1 %11760  ;;  %v18008_v61 = vld [vmem:[#allocation26_spill] sm:$0xff]  ;;  %v18009_v30 = vld [vmem:[#allocation53_spill] sm:$0xff] }
 0xb4b   :  { %v9337_v63 = vpack.c.bf16 %v9314_v53, %v9313_v11  ;;  %v11766_v50 = vpop.permute.xlu0 %11765  ;;  %v11763_v28 = vunpack.i.h.bf16 %v11761_v29  ;;  %v11762_v36 = vunpack.i.l.bf16 %v11761_v29 }
 0xb4c   :  { %v11768_v6 = vunpack.i.h.bf16 %v11766_v50  ;;  %v11767_v27 = vunpack.i.l.bf16 %v11766_v50 }
 0xb4d   :  { %v9316_v38 = vsel %vm9296_vm4, %v9283_v32, %v11763_v28  ;;  %v9315_v31 = vsel %vm9296_vm4, %v9282_v44, %v11762_v36  ;;  %11104 = vmatprep.mubr.msk.bf16.mxu0 %vm156_vm0, %v9337_v63  ;;  %v18010_v28 = vld [vmem:[#allocation158_spill] sm:$0xff] }
 0xb4e   :  { %v9338_v24 = vpack.c.bf16 %v9316_v38, %v9315_v31  ;;  %v11771_v0 = vpop.permute.xlu1 %11770  ;;  %v9253_v40 = vsel %vm1169_vm2, %v18004_v22, %v11768_v6  ;;  %v9252_v41 = vsel %vm1169_vm2, %v18005_v2, %v11767_v27  ;;  %v18011_v31 = vld [vmem:[#allocation37_spill] sm:$0xff] }
 0xb4f   :  { %v11776_v13 = vpop.permute.xlu0 %11775  ;;  %v11773_v7 = vunpack.i.h.bf16 %v11771_v0  ;;  %v11772_v42 = vunpack.i.l.bf16 %v11771_v0 }
 0xb50   :  { %11105 = vmatmul.mubr.msk.bf16.gmra.mxu0 %vm156_vm0, %v9338_v24  ;;  %v11778_v26 = vunpack.i.h.bf16 %v11776_v13  ;;  %v11777_v34 = vunpack.i.l.bf16 %v11776_v13 }
 0xb51   :  { %v9255_v47 = vsel %vm1169_vm2, %v18006_v16, %v11773_v7  ;;  %v9254_v33 = vsel %vm1169_vm2, %v18007_v19, %v11772_v42 }
 0xb52   :  { %v11781_v39 = vpop.permute.xlu1 %11780  ;;  %v9284_v18 = vsel %vm4367_vm3, %v9252_v41, %v11777_v34  ;;  %v9285_v5 = vsel %vm4367_vm3, %v9253_v40, %v11778_v26 }
 0xb53   :  { %v11786_v43 = vpop.permute.xlu0 %11785  ;;  %v11783_v55 = vunpack.i.h.bf16 %v11781_v39  ;;  %v11782_v62 = vunpack.i.l.bf16 %v11781_v39 }
 0xb54   :  { %v11788_v45 = vunpack.i.h.bf16 %v11786_v43  ;;  %v11787_v25 = vunpack.i.l.bf16 %v11786_v43 }
 0xb55   :  { %v9286_v4 = vsel %vm4367_vm3, %v9254_v33, %v11782_v62  ;;  %v9287_v20 = vsel %vm4367_vm3, %v9255_v47, %v11783_v55  ;;  %v18012_v47 = vld [vmem:[#allocation11_spill] sm:$0xff] }
 0xb56   :  { %v9317_v12 = vsel %vm9296_vm4, %v9284_v18, %v11787_v25  ;;  %v9318_v1 = vsel %vm9296_vm4, %v9285_v5, %v11788_v45  ;;  %v11791_v8 = vpop.permute.xlu1 %11790 }
 0xb57   :  { %v9339_v14 = vpack.c.bf16 %v9318_v1, %v9317_v12  ;;  %v11796_v59 = vpop.permute.xlu0 %11795  ;;  %v11793_v15 = vunpack.i.h.bf16 %v11791_v8  ;;  %v11792_v46 = vunpack.i.l.bf16 %v11791_v8 }
 0xb58   :  { %v11798_v3 = vunpack.i.h.bf16 %v11796_v59  ;;  %v11797_v21 = vunpack.i.l.bf16 %v11796_v59 }
 0xb59   :  { %v9320_v49 = vsel %vm9296_vm4, %v9287_v20, %v11793_v15  ;;  %v9319_v9 = vsel %vm9296_vm4, %v9286_v4, %v11792_v46  ;;  %11108 = vmatprep.mubr.msk.bf16.mxu0 %vm156_vm0, %v9339_v14  ;;  %v18013_v14 = vld [vmem:[#allocation67_spill] sm:$0xff] }
 0xb5a   :  { %v9340_v51 = vpack.c.bf16 %v9320_v49, %v9319_v9  ;;  %v11801_v17 = vpop.permute.xlu1 %11800  ;;  %v9257_v60 = vsel %vm1169_vm2, %v18008_v61, %v11798_v3  ;;  %v9256_v54 = vsel %vm1169_vm2, %v18009_v30, %v11797_v21  ;;  %v18015_v30 = vld [vmem:[#allocation61_spill] sm:$0xff] }
 0xb5b   :  { %v11806_v37 = vpop.permute.xlu0 %11805  ;;  %v11803_v52 = vunpack.i.h.bf16 %v11801_v17  ;;  %v11802_v10 = vunpack.i.l.bf16 %v11801_v17 }
 0xb5c   :  { %11109 = vmatmul.mubr.msk.bf16.gmra.mxu0 %vm156_vm0, %v9340_v51  ;;  %v11808_v58 = vunpack.i.h.bf16 %v11806_v37  ;;  %v11807_v48 = vunpack.i.l.bf16 %v11806_v37 }
 0xb5d   :  { %v9259_v36 = vsel %vm1169_vm2, %v18010_v28, %v11803_v52  ;;  %v9258_v24 = vsel %vm1169_vm2, %v18011_v31, %v11802_v10 }
 0xb5e   :  { %v11811_v35 = vpop.permute.xlu1 %11810  ;;  %v9288_v63 = vsel %vm4367_vm3, %v9256_v54, %v11807_v48  ;;  %v9289_v50 = vsel %vm4367_vm3, %v9257_v60, %v11808_v58  ;;  %v18014_v58 = vld [vmem:[#allocation164_spill] sm:$0xff] }
 0xb5f   :  { %v11816_v11 = vpop.permute.xlu0 %11815  ;;  %v11813_v57 = vunpack.i.h.bf16 %v11811_v35  ;;  %v11812_v23 = vunpack.i.l.bf16 %v11811_v35 }
 0xb60   :  { %v11818_v53 = vunpack.i.h.bf16 %v11816_v11  ;;  %v11817_v29 = vunpack.i.l.bf16 %v11816_v11 }
 0xb61   :  { %v9290_v26 = vsel %vm4367_vm3, %v9258_v24, %v11812_v23  ;;  %v9291_v34 = vsel %vm4367_vm3, %v9259_v36, %v11813_v57 }
 0xb62   :  { %v9321_v44 = vsel %vm9296_vm4, %v9288_v63, %v11817_v29  ;;  %v9322_v32 = vsel %vm9296_vm4, %v9289_v50, %v11818_v53  ;;  %v11821_v38 = vpop.permute.xlu1 %11820 }
 0xb63   :  { %v9341_v0 = vpack.c.bf16 %v9322_v32, %v9321_v44  ;;  %v11826_v6 = vpop.permute.xlu0 %11825  ;;  %v11823_v27 = vunpack.i.h.bf16 %v11821_v38  ;;  %v11822_v13 = vunpack.i.l.bf16 %v11821_v38 }
 0xb64   :  { %v11828_v40 = vunpack.i.h.bf16 %v11826_v6  ;;  %v11827_v43 = vunpack.i.l.bf16 %v11826_v6 }
 0xb65   :  { %v9324_v7 = vsel %vm9296_vm4, %v9291_v34, %v11823_v27  ;;  %v9323_v39 = vsel %vm9296_vm4, %v9290_v26, %v11822_v13  ;;  %11112 = vmatprep.mubr.msk.bf16.mxu0 %vm156_vm0, %v9341_v0  ;;  %v11094_v22 = vpop.f32.mrf.mxu0 }
 0xb66   :  { %v9342_v2 = vpack.c.bf16 %v9324_v7, %v9323_v39  ;;  %v9475_v41 = vadd.f32 %v11094_v22, %v16807_v56  ;;  %v11831_v42 = vpop.permute.xlu1 %11830  ;;  %v9261_v12 = vsel %vm1169_vm2, %v18012_v47, %v11828_v40  ;;  %v9260_v59 = vsel %vm1169_vm2, %v18013_v14, %v11827_v43 }
 0xb67   :  { %v11836_v45 = vpop.permute.xlu0 %11835  ;;  %v9466_v25 = vpop.f32.mrf.mxu0  ;;  %v11833_v1 = vunpack.i.h.bf16 %v11831_v42  ;;  %v11832_v15 = vunpack.i.l.bf16 %v11831_v42 }
 0xb68   :  { %v9962_v55 = vpack.c.bf16 %v9475_v41, %v9475_v41  ;;  %v9467_v62 = vadd.f32 %v16807_v56, %v9466_v25  ;;  %11113 = vmatmul.mubr.msk.bf16.gmra.mxu0 %vm156_vm0, %v9342_v2  ;;  %v11838_v18 = vunpack.i.h.bf16 %v11836_v45  ;;  %v11837_v5 = vunpack.i.l.bf16 %v11836_v45 }
 0xb69   :  { %v11095_v16 = vpop.f32.mrf.mxu0  ;;  %v9263_v48 = vsel %vm1169_vm2, %v18014_v58, %v11833_v1  ;;  %v9262_v54 = vsel %vm1169_vm2, %v18015_v30, %v11832_v15 }
 0xb6a   :  { %9712 = vst.msk [vmem:[%s17046_s5 + $0x18] sm:$0xf] %vm9705_vm5, %v9962_v55  ;;  %v9960_v8 = vpack.c.bf16 %v9467_v62, %v9467_v62  ;;  %v9478_v19 = vadd.f32 %v11095_v16, %v16807_v56  ;;  %v11841_v33 = vpop.permute.xlu1 %11840  ;;  %v9292_v21 = vsel %vm4367_vm3, %v9260_v59, %v11837_v5  ;;  %v9293_v37 = vsel %vm4367_vm3, %v9261_v12, %v11838_v18 }
 0xb6b   :  { %v11846_v46 = vpop.permute.xlu0 %11845  ;;  %v11843_v4 = vunpack.i.h.bf16 %v11841_v33  ;;  %v11842_v20 = vunpack.i.l.bf16 %v11841_v33  ;;  %v9469_v49 = vpop.f32.mrf.mxu0 }
 0xb6c   :  { %9710 = vst.msk [vmem:[%s17046_s5 + $0x10] sm:$0xf] %vm9705_vm5, %v9960_v8  ;;  %v9963_v9 = vpack.c.bf16 %v9478_v19, %v9478_v19  ;;  %v11848_v51 = vunpack.i.h.bf16 %v11846_v46  ;;  %v11847_v17 = vunpack.i.l.bf16 %v11846_v46  ;;  %v9470_v3 = vadd.f32 %v16807_v56, %v9469_v49 }
 0xb6d   :  { %v9294_v29 = vsel %vm4367_vm3, %v9262_v54, %v11842_v20  ;;  %v9295_v57 = vsel %vm4367_vm3, %v9263_v48, %v11843_v4 }
 0xb6e   :  { %9713 = vst.msk [vmem:[%s17046_s5 + $0x1c] sm:$0xf] %vm9705_vm5, %v9963_v9  ;;  %v9325_v52 = vsel %vm9296_vm4, %v9292_v21, %v11847_v17  ;;  %v9326_v35 = vsel %vm9296_vm4, %v9293_v37, %v11848_v51  ;;  %v9961_v61 = vpack.c.bf16 %v9470_v3, %v9470_v3  ;;  %v11851_v60 = vpop.permute.xlu1 %11850 }
 0xb6f   :  { %v9343_v10 = vpack.c.bf16 %v9326_v35, %v9325_v52  ;;  %v11853_v11 = vunpack.i.h.bf16 %v11851_v60  ;;  %v11852_v53 = vunpack.i.l.bf16 %v11851_v60 }
 0xb70   :  { %9711 = vst.msk [vmem:[%s17046_s5 + $0x14] sm:$0xf] %vm9705_vm5, %v9961_v61 }
 0xb71   :  { %v9328_v23 = vsel %vm9296_vm4, %v9295_v57, %v11853_v11  ;;  %v9327_v63 = vsel %vm9296_vm4, %v9294_v29, %v11852_v53  ;;  %11116 = vmatprep.mubr.msk.bf16.mxu0 %vm156_vm0, %v9343_v10 }
 0xb72   :  { %v9344_v50 = vpack.c.bf16 %v9328_v23, %v9327_v63 }
 0xb74   :  { %11117 = vmatmul.mubr.msk.bf16.gmra.mxu0 %vm156_vm0, %v9344_v50 }
 0xb9e   :  { %v11098_v28 = vpop.f32.mrf.mxu0 }
 0xb9f   :  { %v9491_v36 = vadd.f32 %v11098_v28, %v16807_v56 }
 0xba0   :  { %v9482_v44 = vpop.f32.mrf.mxu0 }
 0xba1   :  { %v9966_v32 = vpack.c.bf16 %v9491_v36, %v9491_v36  ;;  %v9483_v38 = vadd.f32 %v16807_v56, %v9482_v44 }
 0xba2   :  { %v11099_v31 = vpop.f32.mrf.mxu0 }
 0xba3   :  { %9716 = vst.msk [vmem:[%s17046_s5 + $0x28] sm:$0xf] %vm9705_vm5, %v9966_v32  ;;  %v9964_v24 = vpack.c.bf16 %v9483_v38, %v9483_v38  ;;  %v9494_v0 = vadd.f32 %v11099_v31, %v16807_v56 }
 0xba4   :  { %v9485_v6 = vpop.f32.mrf.mxu0 }
 0xba5   :  { %9714 = vst.msk [vmem:[%s17046_s5 + $0x20] sm:$0xf] %vm9705_vm5, %v9964_v24  ;;  %v9967_v27 = vpack.c.bf16 %v9494_v0, %v9494_v0  ;;  %v9486_v13 = vadd.f32 %v16807_v56, %v9485_v6 }
 0xba7   :  { %9717 = vst.msk [vmem:[%s17046_s5 + $0x2c] sm:$0xf] %vm9705_vm5, %v9967_v27  ;;  %v9965_v26 = vpack.c.bf16 %v9486_v13, %v9486_v13 }
 0xba9   :  { %9715 = vst.msk [vmem:[%s17046_s5 + $0x24] sm:$0xf] %vm9705_vm5, %v9965_v26 }
 0xbd7   :  { %v11102_v34 = vpop.f32.mrf.mxu0 }
 0xbd8   :  { %v9507_v7 = vadd.f32 %v11102_v34, %v16807_v56 }
 0xbd9   :  { %v9498_v39 = vpop.f32.mrf.mxu0 }
 0xbda   :  { %v9970_v22 = vpack.c.bf16 %v9507_v7, %v9507_v7  ;;  %v9499_v40 = vadd.f32 %v16807_v56, %v9498_v39 }
 0xbdb   :  { %v11103_v2 = vpop.f32.mrf.mxu0 }
 0xbdc   :  { %9720 = vst.msk [vmem:[%s17046_s5 + $0x38] sm:$0xf] %vm9705_vm5, %v9970_v22  ;;  %v9968_v41 = vpack.c.bf16 %v9499_v40, %v9499_v40  ;;  %v9510_v42 = vadd.f32 %v11103_v2, %v16807_v56 }
 0xbdd   :  { %v9501_v43 = vpop.f32.mrf.mxu0 }
 0xbde   :  { %9718 = vst.msk [vmem:[%s17046_s5 + $0x30] sm:$0xf] %vm9705_vm5, %v9968_v41  ;;  %v9971_v45 = vpack.c.bf16 %v9510_v42, %v9510_v42  ;;  %v9502_v25 = vadd.f32 %v16807_v56, %v9501_v43 }
 0xbe0   :  { %9721 = vst.msk [vmem:[%s17046_s5 + $0x3c] sm:$0xf] %vm9705_vm5, %v9971_v45  ;;  %v9969_v55 = vpack.c.bf16 %v9502_v25, %v9502_v25 }
 0xbe2   :  { %9719 = vst.msk [vmem:[%s17046_s5 + $0x34] sm:$0xf] %vm9705_vm5, %v9969_v55 }
 0xc10   :  { %v11106_v62 = vpop.f32.mrf.mxu0 }
 0xc11   :  { %v9523_v18 = vadd.f32 %v11106_v62, %v16807_v56 }
 0xc12   :  { %v9514_v5 = vpop.f32.mrf.mxu0 }
 0xc13   :  { %v9974_v16 = vpack.c.bf16 %v9523_v18, %v9523_v18  ;;  %v9515_v47 = vadd.f32 %v16807_v56, %v9514_v5 }
 0xc14   :  { %v11107_v12 = vpop.f32.mrf.mxu0 }
 0xc15   :  { %9724 = vst.msk [vmem:[%s17046_s5 + $0x48] sm:$0xf] %vm9705_vm5, %v9974_v16  ;;  %v9972_v1 = vpack.c.bf16 %v9515_v47, %v9515_v47  ;;  %v9526_v8 = vadd.f32 %v11107_v12, %v16807_v56 }
 0xc16   :  { %v9517_v19 = vpop.f32.mrf.mxu0 }
 0xc17   :  { %9722 = vst.msk [vmem:[%s17046_s5 + $0x40] sm:$0xf] %vm9705_vm5, %v9972_v1  ;;  %v9975_v33 = vpack.c.bf16 %v9526_v8, %v9526_v8  ;;  %v9518_v14 = vadd.f32 %v16807_v56, %v9517_v19 }
 0xc19   :  { %9725 = vst.msk [vmem:[%s17046_s5 + $0x4c] sm:$0xf] %vm9705_vm5, %v9975_v33  ;;  %v9973_v59 = vpack.c.bf16 %v9518_v14, %v9518_v14 }
 0xc1b   :  { %9723 = vst.msk [vmem:[%s17046_s5 + $0x44] sm:$0xf] %vm9705_vm5, %v9973_v59 }
 0xc1c   :  { %v11110_v15 = vpop.f32.mrf.mxu0 }
 0xc1d   :  { %v9539_v46 = vadd.f32 %v11110_v15, %v16807_v56 }
 0xc1e   :  { %v9530_v4 = vpop.f32.mrf.mxu0 }
 0xc1f   :  { %v9978_v20 = vpack.c.bf16 %v9539_v46, %v9539_v46  ;;  %v9531_v49 = vadd.f32 %v16807_v56, %v9530_v4 }
 0xc20   :  { %v11111_v9 = vpop.f32.mrf.mxu0 }
 0xc21   :  { %9728 = vst.msk [vmem:[%s17046_s5 + $0x58] sm:$0xf] %vm9705_vm5, %v9978_v20  ;;  %v9976_v51 = vpack.c.bf16 %v9531_v49, %v9531_v49  ;;  %v9542_v17 = vadd.f32 %v11111_v9, %v16807_v56 }
 0xc22   :  { %v9533_v3 = vpop.f32.mrf.mxu0 }
 0xc23   :  { %9726 = vst.msk [vmem:[%s17046_s5 + $0x50] sm:$0xf] %vm9705_vm5, %v9976_v51  ;;  %v9979_v21 = vpack.c.bf16 %v9542_v17, %v9542_v17  ;;  %v9534_v37 = vadd.f32 %v16807_v56, %v9533_v3 }
 0xc25   :  { %9729 = vst.msk [vmem:[%s17046_s5 + $0x5c] sm:$0xf] %vm9705_vm5, %v9979_v21  ;;  %v9977_v58 = vpack.c.bf16 %v9534_v37, %v9534_v37 }
 0xc27   :  { %9727 = vst.msk [vmem:[%s17046_s5 + $0x54] sm:$0xf] %vm9705_vm5, %v9977_v58 }
 0xc28   :  { %v11114_v48 = vpop.f32.mrf.mxu0 }
 0xc29   :  { %v9555_v52 = vadd.f32 %v11114_v48, %v16807_v56 }
 0xc2a   :  { %v9546_v35 = vpop.f32.mrf.mxu0 }
 0xc2b   :  { %v9982_v61 = vpack.c.bf16 %v9555_v52, %v9555_v52  ;;  %v9547_v60 = vadd.f32 %v16807_v56, %v9546_v35 }
 0xc2c   :  { %v11115_v30 = vpop.f32.mrf.mxu0 }
 0xc2d   :  { %9732 = vst.msk [vmem:[%s17046_s5 + $0x68] sm:$0xf] %vm9705_vm5, %v9982_v61  ;;  %v9980_v54 = vpack.c.bf16 %v9547_v60, %v9547_v60  ;;  %v9558_v10 = vadd.f32 %v11115_v30, %v16807_v56 }
 0xc2e   :  { %v9549_v11 = vpop.f32.mrf.mxu0 }
 0xc2f   :  { %9730 = vst.msk [vmem:[%s17046_s5 + $0x60] sm:$0xf] %vm9705_vm5, %v9980_v54  ;;  %v9983_v53 = vpack.c.bf16 %v9558_v10, %v9558_v10  ;;  %v9550_v29 = vadd.f32 %v16807_v56, %v9549_v11 }
 0xc31   :  { %9733 = vst.msk [vmem:[%s17046_s5 + $0x6c] sm:$0xf] %vm9705_vm5, %v9983_v53  ;;  %v9981_v57 = vpack.c.bf16 %v9550_v29, %v9550_v29 }
 0xc33   :  { %9731 = vst.msk [vmem:[%s17046_s5 + $0x64] sm:$0xf] %vm9705_vm5, %v9981_v57 }
 0xc34   :  { %v11118_v23 = vpop.f32.mrf.mxu0 }
 0xc35   :  { %v9571_v63 = vadd.f32 %v11118_v23, %v16807_v56 }
 0xc36   :  { %v9562_v50 = vpop.f32.mrf.mxu0 }
 0xc37   :  { %v9986_v28 = vpack.c.bf16 %v9571_v63, %v9571_v63  ;;  %v9563_v36 = vadd.f32 %v16807_v56, %v9562_v50 }
 0xc38   :  { %v11119_v44 = vpop.f32.mrf.mxu0 }
 0xc39   :  { %9736 = vst.msk [vmem:[%s17046_s5 + $0x78] sm:$0xf] %vm9705_vm5, %v9986_v28  ;;  %v9984_v32 = vpack.c.bf16 %v9563_v36, %v9563_v36  ;;  %v9574_v38 = vadd.f32 %v11119_v44, %v16807_v56 }
 0xc3a   :  { %v9565_v31 = vpop.f32.mrf.mxu0 }
 0xc3b   :  { %9734 = vst.msk [vmem:[%s17046_s5 + $0x70] sm:$0xf] %vm9705_vm5, %v9984_v32  ;;  %v9987_v24 = vpack.c.bf16 %v9574_v38, %v9574_v38  ;;  %v9566_v0 = vadd.f32 %v16807_v56, %v9565_v31 }
 0xc3d   :  { %9737 = vst.msk [vmem:[%s17046_s5 + $0x7c] sm:$0xf] %vm9705_vm5, %v9987_v24  ;;  %v9985_v6 = vpack.c.bf16 %v9566_v0, %v9566_v0 }
 0xc3f   :  { %9735 = vst.msk [vmem:[%s17046_s5 + $0x74] sm:$0xf] %vm9705_vm5, %v9985_v6 }

</bundles_post_ra>
